<compile_context>
chip_gen: v7x
topology: tpu7x:2x2x1
jax: 0.10.0
libtpu: 0.0.40
codegen_flags: <defaults>
</compile_context>

<pallas_src>
import functools

import jax
import jax.numpy as jnp
from jax import lax
from jax.experimental import pallas as pl
from jax.experimental.pallas import tpu as pltpu

_EPS = 1e-5
_NEG_INF = -1e30


def _round_up(x, m):
    return (x + m - 1) // m * m


def _bf(v):
    return v.astype(jnp.bfloat16)


def _ln(v, g, b, inv_n):
    # torch LayerNorm semantics (fp32, biased variance, eps=1e-5) over the first
    # `1/inv_n` features; padded columns are exactly zero so plain sums are exact.
    v = v.astype(jnp.float32)
    s = jnp.sum(v, axis=-1, keepdims=True)
    ss = jnp.sum(v * v, axis=-1, keepdims=True)
    mean = s * inv_n
    var = ss * inv_n - mean * mean
    return (v - mean) * lax.rsqrt(var + _EPS) * g + b


# ----------------------------- fused kernel ---------------------------------

def _vit_kernel(x_ref,
                w1_ref, b1_ref, fg_ref, fb_ref, w2_ref, b2_ref,
                clspos_ref, postok_ref, preg_ref, preb_ref,
                postg_ref, postb_ref, proj_ref,
                wqkv_ref, bqkv_ref, wout_ref, bout_ref,
                ln1g_ref, ln1b_ref, ln2g_ref, ln2b_ref,
                wfc_ref, bfc_ref, wproj_ref, bproj_ref,
                out_ref,
                act_ref, qkv_ref, ctx_ref,
                *, n_head, hd_pad, seq, seq_pad, batch_block, d_valid, fc_valid):
    layer = pl.program_id(1)
    n_layers = pl.num_programs(1)
    L, Lp = seq, seq_pad
    P = L - 1
    H, HDP = n_head, hd_pad
    QKW = H * HDP                       # head-padded q/k/v width (lane aligned)
    DP = act_ref.shape[-1]
    inv_d = 1.0 / float(d_valid)
    inv_f = 1.0 / float(fc_valid)

    # ---- embedding: fc -> [cls ; tok] + pos -> ln_pre (first layer step only) ----
    @pl.when(layer == 0)
    def _embed():
        h = jnp.dot(x_ref[...], w1_ref[...],
                    preferred_element_type=jnp.float32) + b1_ref[...]
        h = _ln(h, fg_ref[...], fb_ref[...], inv_f)
        h = jnp.maximum(h, 0.0)
        tok = jnp.dot(_bf(h), w2_ref[...],
                      preferred_element_type=jnp.float32) + b2_ref[...]   # (BB*P, DP)
        pad_rows = jnp.zeros((Lp - L, DP), jnp.float32)
        for b in range(batch_block):            # static; one-time (layer 0) cost
            tok_b = tok[b * P:(b + 1) * P, :] + postok_ref[...]
            blk = jnp.concatenate([clspos_ref[...], tok_b, pad_rows], axis=0)
            # padded rows become ln_pre bias rows -> finite; their keys get masked
            act_ref[pl.ds(b * Lp, Lp), :] = _ln(blk, preg_ref[...], preb_ref[...],
                                                inv_d)

    # ---- residual attention block for this layer (runs every step) ----
    x = act_ref[...]                                                      # (BB*Lp, DP)

    h1 = _ln(x, ln1g_ref[0], ln1b_ref[0], inv_d)
    qkv = jnp.dot(_bf(h1), wqkv_ref[0],
                  preferred_element_type=jnp.float32) + bqkv_ref[0]       # (BB*Lp, 3*QKW)
    qkv_ref[...] = qkv.astype(jnp.bfloat16)

    # key-validity mask for the padded token rows (loop invariant)
    col_ids = lax.broadcasted_iota(jnp.int32, (1, Lp), 1)
    key_valid = col_ids < L

    def attn_batch(b, carry):
        r0 = pl.multiple_of(b * Lp, Lp)        # Lp multiple of 16 -> bf16-tile aligned
        for hh in range(H):                    # static: lane-aligned column slices
            cq = hh * HDP
            qh = qkv_ref[pl.ds(r0, Lp), pl.ds(cq, HDP)]                   # bf16
            kh = qkv_ref[pl.ds(r0, Lp), pl.ds(QKW + cq, HDP)]
            vh = qkv_ref[pl.ds(r0, Lp), pl.ds(2 * QKW + cq, HDP)]
            s = lax.dot_general(qh, kh, (((1,), (1,)), ((), ())),
                                preferred_element_type=jnp.float32)       # (Lp, Lp)
            s = jnp.where(key_valid, s, _NEG_INF)
            s = s - jnp.max(s, axis=-1, keepdims=True)
            p = jnp.exp(s)
            p = p * pl.reciprocal(jnp.sum(p, axis=-1, keepdims=True), approx=True)
            pv = jnp.dot(_bf(p), vh, preferred_element_type=jnp.float32)  # (Lp, HDP)
            ctx_ref[pl.ds(r0, Lp), pl.ds(cq, HDP)] = pv.astype(jnp.bfloat16)
        return carry

    lax.fori_loop(0, batch_block, attn_batch, 0, unroll=True)

    # single fused output projection: (BB*Lp, H*HDP) @ (H*HDP, DP)
    attn = jnp.dot(ctx_ref[...], wout_ref[0], preferred_element_type=jnp.float32)
    x = x + attn + bout_ref[0]

    h2 = _ln(x, ln2g_ref[0], ln2b_ref[0], inv_d)
    m = jnp.dot(_bf(h2), wfc_ref[0],
                preferred_element_type=jnp.float32) + bfc_ref[0]
    m = m * jax.nn.sigmoid(1.702 * m)                                     # QuickGELU
    x = x + jnp.dot(_bf(m), wproj_ref[0],
                    preferred_element_type=jnp.float32) + bproj_ref[0]
    act_ref[...] = x

    # ---- head: ln_post on the class tokens, then @ proj (last layer step only) ----
    @pl.when(layer == n_layers - 1)
    def _head():
        cls_rows = jnp.concatenate(
            [x[b * Lp:b * Lp + 1, :] for b in range(batch_block)], axis=0)  # (BB, DP)
        hc = _ln(cls_rows, postg_ref[...], postb_ref[...], inv_d)
        out_ref[...] = jnp.dot(_bf(hc), proj_ref[...],
                               preferred_element_type=jnp.float32)


# -------------------- parameter padding / re-layout (host side) --------------

_CONST_ARGS = ("fc_w1", "fc_b1", "fc_g", "fc_b", "fc_w2", "fc_b2",
               "cls_pos", "pos_tok", "lnpre_g", "lnpre_b",
               "lnpost_g", "lnpost_b", "proj")
_LAYER_ARGS = ("w_qkv", "b_qkv", "w_out", "b_out",
               "ln1_g", "ln1_b", "ln2_g", "ln2_b",
               "w_fc", "b_fc", "w_proj", "b_proj")
_ARG_ORDER = _CONST_ARGS + _LAYER_ARGS


def prepare_padded_params(params, heads):
    """Zero-pad width 224->256, head_dim 56->128 (lane-aligned per-head tiles),
    fc hidden 56->128, out_dim ->128; fold the q scale, cast weights to bf16 and
    stack per-layer tensors on a leading layer axis."""
    D = params["proj"].shape[0]
    out_dim = params["proj"].shape[1]
    L = params["positional_embedding"].shape[0]
    P = L - 1
    n_layers = len(params["layers"])
    H = heads
    hd = D // H
    DP = _round_up(D, 128)
    HDP = _round_up(hd, 128)            # one 128-lane tile per head
    QKW = H * HDP
    FF = _round_up(4 * D, 128)
    fc = params["fc"]
    IN = fc["w1"].shape[0]
    IN_PAD = _round_up(IN, 128)
    FH = _round_up(fc["w1"].shape[1], 128)
    OUTP = _round_up(out_dim, 128)
    Lp = _round_up(L, 16)               # bf16 (16,128) tile-aligned row blocks
    f32, bf16 = jnp.float32, jnp.bfloat16

    def pad2(a, rows, cols, dt=f32):
        return jnp.pad(a, ((0, rows - a.shape[0]), (0, cols - a.shape[1]))).astype(dt)

    def head_cols(w):   # (r, D) -> (r, QKW): per-head column re-layout + zero pad
        r = w.shape[0]
        w = w.reshape(r, H, hd)
        w = jnp.pad(w, ((0, 0), (0, 0), (0, HDP - hd)))
        return w.reshape(r, QKW)

    def head_rows(w):   # (D, c) -> (QKW, c): per-head row re-layout + zero pad
        c = w.shape[1]
        w = w.reshape(H, hd, c)
        w = jnp.pad(w, ((0, 0), (0, HDP - hd), (0, 0)))
        return w.reshape(QKW, c)

    q_scale = 1.0 / float(hd) ** 0.5

    per_layer = {k: [] for k in _LAYER_ARGS}
    for lp in params["layers"]:
        wq, wk, wv = lp["w_qkv"][:, :D], lp["w_qkv"][:, D:2 * D], lp["w_qkv"][:, 2 * D:]
        bq, bk, bv = lp["b_qkv"][:, :D], lp["b_qkv"][:, D:2 * D], lp["b_qkv"][:, 2 * D:]
        wq = wq * q_scale                # fold 1/sqrt(head_dim) into q projection
        bq = bq * q_scale
        per_layer["w_qkv"].append(jnp.concatenate(
            [pad2(head_cols(w), DP, QKW, bf16) for w in (wq, wk, wv)], axis=1))
        per_layer["b_qkv"].append(jnp.concatenate(
            [head_cols(b) for b in (bq, bk, bv)], axis=1).astype(f32))
        per_layer["w_out"].append(pad2(head_rows(lp["w_out"]), QKW, DP, bf16))
        per_layer["b_out"].append(pad2(lp["b_out"], 1, DP))
        per_layer["ln1_g"].append(pad2(lp["ln1_g"], 1, DP))
        per_layer["ln1_b"].append(pad2(lp["ln1_b"], 1, DP))
        per_layer["ln2_g"].append(pad2(lp["ln2_g"], 1, DP))
        per_layer["ln2_b"].append(pad2(lp["ln2_b"], 1, DP))
        per_layer["w_fc"].append(pad2(lp["w_fc"], DP, FF, bf16))
        per_layer["b_fc"].append(pad2(lp["b_fc"], 1, FF))
        per_layer["w_proj"].append(pad2(lp["w_proj"], FF, DP, bf16))
        per_layer["b_proj"].append(pad2(lp["b_proj"], 1, DP))

    pos = params["positional_embedding"]
    padded = {
        "fc_w1": pad2(fc["w1"], IN_PAD, FH, bf16),
        "fc_b1": pad2(fc["b1"], 1, FH),
        "fc_g": pad2(fc["ln_g"], 1, FH),
        "fc_b": pad2(fc["ln_b"], 1, FH),
        "fc_w2": pad2(fc["w2"], FH, DP, bf16),
        "fc_b2": pad2(fc["b2"], 1, DP),
        "cls_pos": pad2((params["class_embedding"] + pos[0])[None, :], 1, DP),
        "pos_tok": pad2(pos[1:], P, DP),
        "lnpre_g": pad2(params["ln_pre"]["g"], 1, DP),
        "lnpre_b": pad2(params["ln_pre"]["b"], 1, DP),
        "lnpost_g": pad2(params["ln_post"]["g"], 1, DP),
        "lnpost_b": pad2(params["ln_post"]["b"], 1, DP),
        "proj": pad2(params["proj"], DP, OUTP, bf16),
    }
    for k, v in per_layer.items():
        padded[k] = jnp.stack(v, axis=0)

    dims = dict(D=D, DP=DP, HDP=HDP, QKW=QKW, FF=FF, FH=FH,
                FC_HID=fc["w1"].shape[1], IN=IN, IN_PAD=IN_PAD,
                L=L, Lp=Lp, P=P, out_dim=out_dim, OUTP=OUTP,
                n_layers=n_layers, heads=H)
    return padded, dims


# ------------------------------ fused forward --------------------------------

def vit_forward(x, padded, dims, *, batch_size, batch_blocks=1, weight_buffers=2):
    L, Lp, P = dims["L"], dims["Lp"], dims["P"]
    DP, HDP, QKW, FF = dims["DP"], dims["HDP"], dims["QKW"], dims["FF"]
    IN, IN_PAD = dims["IN"], dims["IN_PAD"]
    OUTP, out_dim = dims["OUTP"], dims["out_dim"]
    n_layers, H = dims["n_layers"], dims["heads"]

    assert batch_size % batch_blocks == 0
    bblk = batch_size // batch_blocks
    assert x.shape[0] == batch_size * P and x.shape[1] == IN
    if batch_blocks > 1:
        # keep per-block row counts sublane aligned when splitting the batch
        assert bblk % 8 == 0 and (bblk * P) % 8 == 0
    R = bblk * Lp

    # lane-friendly bf16 input (halves input DMA; unmasked vector loads)
    x_pad = jnp.pad(x, ((0, 0), (0, IN_PAD - IN))).astype(jnp.bfloat16)

    ordered = [padded[k] for k in _ARG_ORDER]

    def const_spec(a):
        nd = a.ndim
        return pl.BlockSpec(a.shape, lambda bb, l, _nd=nd: (0,) * _nd)

    def layer_spec(a):
        if weight_buffers != 2:
            # v5e: deepen buffering if layer-weight DMA is exposed in profiles
            return pl.BlockSpec((1,) + a.shape[1:], lambda bb, l: (l, 0, 0),
                                pipeline_mode=pl.Buffered(weight_buffers))
        return pl.BlockSpec((1,) + a.shape[1:], lambda bb, l: (l, 0, 0))

    in_specs = [pl.BlockSpec((bblk * P, IN_PAD), lambda bb, l: (bb, 0))]
    for name, arr in zip(_ARG_ORDER, ordered):
        in_specs.append(layer_spec(arr) if name in _LAYER_ARGS else const_spec(arr))
    out_specs = pl.BlockSpec((bblk, OUTP), lambda bb, l: (bb, 0))

    # advisory cost estimate (helps XLA schedule around the fused custom call)
    per_layer_flops = (2 * batch_size * Lp * DP * 3 * QKW
                       + 4 * batch_size * H * Lp * Lp * HDP
                       + 2 * batch_size * Lp * QKW * DP
                       + 4 * batch_size * Lp * DP * FF)
    flops = int(n_layers * per_layer_flops
                + 2 * batch_size * P * (IN_PAD * dims["FH"] + dims["FH"] * DP)
                + 2 * batch_size * DP * OUTP)
    transcendentals = int(n_layers * batch_size * (H * Lp * Lp + Lp * FF))
    bytes_accessed = int(x_pad.size * 2 + batch_size * OUTP * 4
                         + sum(int(a.size) * a.dtype.itemsize for a in ordered))

    kernel = functools.partial(
        _vit_kernel, n_head=H, hd_pad=HDP, seq=L, seq_pad=Lp,
        batch_block=bblk, d_valid=dims["D"], fc_valid=dims["FC_HID"])

    out = pl.pallas_call(
        kernel,
        out_shape=jax.ShapeDtypeStruct((batch_size, OUTP), jnp.float32),
        grid=(batch_blocks, n_layers),
        in_specs=in_specs,
        out_specs=out_specs,
        scratch_shapes=[
            pltpu.VMEM((R, DP), jnp.float32),          # activation, carried over layers
            pltpu.VMEM((R, 3 * QKW), jnp.bfloat16),    # head-padded q|k|v
            pltpu.VMEM((R, QKW), jnp.bfloat16),        # attention context
        ],
        compiler_params=pltpu.CompilerParams(
            dimension_semantics=("parallel", "arbitrary"),
            vmem_limit_bytes=32 * 1024 * 1024),        # explicit cap (fits v7x 64 MiB)
        cost_estimate=pl.CostEstimate(flops=flops, transcendentals=transcendentals,
                                      bytes_accessed=bytes_accessed),
    )(x_pad, *ordered)
    return out[:, :out_dim]


# --------------------------- reference & init --------------------------------

def _reference_forward(x, p, batch_size, heads):
    """Pure-JAX f32 reference mirroring the PyTorch module exactly (unpadded)."""
    def ln(v, g, b):
        v = v.astype(jnp.float32)
        m = jnp.mean(v, -1, keepdims=True)
        var = jnp.mean((v - m) ** 2, -1, keepdims=True)
        return (v - m) / jnp.sqrt(var + _EPS) * g + b

    fc = p["fc"]
    h = x @ fc["w1"] + fc["b1"]
    h = ln(h, fc["ln_g"], fc["ln_b"])
    h = jnp.maximum(h, 0.0)
    tok = h @ fc["w2"] + fc["b2"]
    D = tok.shape[-1]
    tok = tok.reshape(batch_size, -1, D)
    cls = jnp.broadcast_to(p["class_embedding"][None, None, :], (batch_size, 1, D))
    z = jnp.concatenate([cls, tok], axis=1) + p["positional_embedding"][None]
    z = ln(z, p["ln_pre"]["g"], p["ln_pre"]["b"])
    B, L, _ = z.shape
    hd = D // heads
    for lp in p["layers"]:
        hln = ln(z, lp["ln1_g"], lp["ln1_b"])
        qkv = hln @ lp["w_qkv"] + lp["b_qkv"]
        q, k, v = qkv[..., :D], qkv[..., D:2 * D], qkv[..., 2 * D:]
        q = q.reshape(B, L, heads, hd).transpose(0, 2, 1, 3) / jnp.sqrt(hd)
        k = k.reshape(B, L, heads, hd).transpose(0, 2, 1, 3)
        v = v.reshape(B, L, heads, hd).transpose(0, 2, 1, 3)
        s = jnp.einsum('bhld,bhmd->bhlm', q, k)
        a = jax.nn.softmax(s, axis=-1)
        o = jnp.einsum('bhlm,bhmd->bhld', a, v).transpose(0, 2, 1, 3).reshape(B, L, D)
        z = z + o @ lp["w_out"] + lp["b_out"]
        h2 = ln(z, lp["ln2_g"], lp["ln2_b"])
        m = h2 @ lp["w_fc"] + lp["b_fc"]
        m = m * jax.nn.sigmoid(1.702 * m)
        z = z + m @ lp["w_proj"] + lp["b_proj"]
    cls_out = ln(z[:, 0, :], p["ln_post"]["g"], p["ln_post"]["b"])
    return cls_out @ p["proj"]


def init_params(key, width, layers, heads, patch_size, output_dim):
    keys = iter(jax.random.split(key, 64))

    def nrm(shape, s=0.02):
        return (s * jax.random.normal(next(keys), shape)).astype(jnp.float32)

    def ones(shape):
        return jnp.ones(shape, jnp.float32)

    def zeros(shape):
        return jnp.zeros(shape, jnp.float32)

    scale = width ** (-0.5)
    L = patch_size ** 2 + 1
    params = {
        "fc": dict(w1=nrm((11, 56)), b1=zeros((1, 56)),
                   ln_g=ones((1, 56)), ln_b=zeros((1, 56)),
                   w2=nrm((56, 224)), b2=zeros((1, 224))),
        "class_embedding": (scale * jax.random.normal(next(keys), (width,))
                            ).astype(jnp.float32),
        "positional_embedding": (scale * jax.random.normal(next(keys), (L, width))
                                 ).astype(jnp.float32),
        "ln_pre": dict(g=ones((1, width)), b=zeros((1, width))),
        "ln_post": dict(g=ones((1, width)), b=zeros((1, width))),
        "proj": (scale * jax.random.normal(next(keys), (width, output_dim))
                 ).astype(jnp.float32),
        "layers": [],
    }
    for _ in range(layers):
        params["layers"].append(dict(
            ln1_g=ones((1, width)), ln1_b=zeros((1, width)),
            w_qkv=nrm((width, 3 * width)), b_qkv=zeros((1, 3 * width)),
            w_out=nrm((width, width)), b_out=zeros((1, width)),
            ln2_g=ones((1, width)), ln2_b=zeros((1, width)),
            w_fc=nrm((width, 4 * width)), b_fc=zeros((1, 4 * width)),
            w_proj=nrm((4 * width, width)), b_proj=zeros((1, width)),
        ))
    return params


if __name__ == "__main__":
    # forward() hard-wires width == 224 (fc output and class-token broadcast).
    batch_size = 2
    patch_size = 4            # -> 16 tokens + 1 class token = 17 (padded to 32)
    width = 224
    layers = 2
    heads = 4                 # head_dim = 56 (padded to a 128-lane tile per head)
    output_dim = 32

    params = init_params(jax.random.PRNGKey(0), width, layers, heads,
                         patch_size, output_dim)
    n_rows = batch_size * patch_size ** 2
    x = jax.random.normal(jax.random.PRNGKey(1), (n_rows, 11), dtype=jnp.float32)

    padded, dims = prepare_padded_params(params, heads)
    # batch_blocks=1 on v5e/v6e (single TensorCore; never re-fetch weights);
    # use batch_blocks=2 on v7x for large, compute-bound batches.
    out = vit_forward(x, padded, dims, batch_size=batch_size, batch_blocks=1)
    out = jax.block_until_ready(out)
    assert out.shape == (batch_size, output_dim), out.shape
    assert bool(jnp.all(jnp.isfinite(out)))

    # correctness check against an unpadded pure-JAX reference
    ref = jax.block_until_ready(_reference_forward(x, params, batch_size, heads))
    err = float(jnp.max(jnp.abs(out - ref)))
    assert err < 1e-1, f"kernel vs reference max abs err = {err}"
    print("KERNEL_OK")
</pallas_src>

<mosaic_0001>
module attributes {stable_mosaic.version = 11 : i64} {
  func.func @_vit_kernel(%arg0: i32, %arg1: i32, %arg2: memref<32x128xbf16, #tpu.memory_space<vmem>>, %arg3: memref<128x128xbf16, #tpu.memory_space<vmem>>, %arg4: memref<1x128xf32, #tpu.memory_space<vmem>>, %arg5: memref<1x128xf32, #tpu.memory_space<vmem>>, %arg6: memref<1x128xf32, #tpu.memory_space<vmem>>, %arg7: memref<128x256xbf16, #tpu.memory_space<vmem>>, %arg8: memref<1x256xf32, #tpu.memory_space<vmem>>, %arg9: memref<1x256xf32, #tpu.memory_space<vmem>>, %arg10: memref<16x256xf32, #tpu.memory_space<vmem>>, %arg11: memref<1x256xf32, #tpu.memory_space<vmem>>, %arg12: memref<1x256xf32, #tpu.memory_space<vmem>>, %arg13: memref<1x256xf32, #tpu.memory_space<vmem>>, %arg14: memref<1x256xf32, #tpu.memory_space<vmem>>, %arg15: memref<256x128xbf16, #tpu.memory_space<vmem>>, %arg16: memref<1x256x1536xbf16, #tpu.memory_space<vmem>>, %arg17: memref<1x1x1536xf32, #tpu.memory_space<vmem>>, %arg18: memref<1x512x256xbf16, #tpu.memory_space<vmem>>, %arg19: memref<1x1x256xf32, #tpu.memory_space<vmem>>, %arg20: memref<1x1x256xf32, #tpu.memory_space<vmem>>, %arg21: memref<1x1x256xf32, #tpu.memory_space<vmem>>, %arg22: memref<1x1x256xf32, #tpu.memory_space<vmem>>, %arg23: memref<1x1x256xf32, #tpu.memory_space<vmem>>, %arg24: memref<1x256x896xbf16, #tpu.memory_space<vmem>>, %arg25: memref<1x1x896xf32, #tpu.memory_space<vmem>>, %arg26: memref<1x896x256xbf16, #tpu.memory_space<vmem>>, %arg27: memref<1x1x256xf32, #tpu.memory_space<vmem>>, %arg28: memref<2x128xf32, #tpu.memory_space<vmem>>, %arg29: memref<64x256xf32, #tpu.memory_space<vmem>>, %arg30: memref<64x1536xbf16, #tpu.memory_space<vmem>>, %arg31: memref<64x512xbf16, #tpu.memory_space<vmem>>) attributes {dimension_semantics = [#tpu.dimension_semantics<parallel>, #tpu.dimension_semantics<arbitrary>], iteration_bounds = array<i64: 1, 2>, scalar_prefetch = 0 : i64, scratch_operands = 3 : i64, tpu.core_type = #tpu.core_type<tc>, window_params = [{transform_indices = @transform_0, window_bounds = array<i64: 32, 128>}, {pipeline_mode = #tpu.pipeline_mode<synchronous>, transform_indices = @transform_1, window_bounds = array<i64: 128, 128>}, {pipeline_mode = #tpu.pipeline_mode<synchronous>, transform_indices = @transform_2, window_bounds = array<i64: 1, 128>}, {pipeline_mode = #tpu.pipeline_mode<synchronous>, transform_indices = @transform_3, window_bounds = array<i64: 1, 128>}, {pipeline_mode = #tpu.pipeline_mode<synchronous>, transform_indices = @transform_4, window_bounds = array<i64: 1, 128>}, {pipeline_mode = #tpu.pipeline_mode<synchronous>, transform_indices = @transform_5, window_bounds = array<i64: 128, 256>}, {pipeline_mode = #tpu.pipeline_mode<synchronous>, transform_indices = @transform_6, window_bounds = array<i64: 1, 256>}, {pipeline_mode = #tpu.pipeline_mode<synchronous>, transform_indices = @transform_7, window_bounds = array<i64: 1, 256>}, {pipeline_mode = #tpu.pipeline_mode<synchronous>, transform_indices = @transform_8, window_bounds = array<i64: 16, 256>}, {pipeline_mode = #tpu.pipeline_mode<synchronous>, transform_indices = @transform_9, window_bounds = array<i64: 1, 256>}, {pipeline_mode = #tpu.pipeline_mode<synchronous>, transform_indices = @transform_10, window_bounds = array<i64: 1, 256>}, {pipeline_mode = #tpu.pipeline_mode<synchronous>, transform_indices = @transform_11, window_bounds = array<i64: 1, 256>}, {pipeline_mode = #tpu.pipeline_mode<synchronous>, transform_indices = @transform_12, window_bounds = array<i64: 1, 256>}, {pipeline_mode = #tpu.pipeline_mode<synchronous>, transform_indices = @transform_13, window_bounds = array<i64: 256, 128>}, {transform_indices = @transform_14, window_bounds = array<i64: 1, 256, 1536>}, {transform_indices = @transform_15, window_bounds = array<i64: 1, 1, 1536>}, {transform_indices = @transform_16, window_bounds = array<i64: 1, 512, 256>}, {transform_indices = @transform_17, window_bounds = array<i64: 1, 1, 256>}, {transform_indices = @transform_18, window_bounds = array<i64: 1, 1, 256>}, {transform_indices = @transform_19, window_bounds = array<i64: 1, 1, 256>}, {transform_indices = @transform_20, window_bounds = array<i64: 1, 1, 256>}, {transform_indices = @transform_21, window_bounds = array<i64: 1, 1, 256>}, {transform_indices = @transform_22, window_bounds = array<i64: 1, 256, 896>}, {transform_indices = @transform_23, window_bounds = array<i64: 1, 1, 896>}, {transform_indices = @transform_24, window_bounds = array<i64: 1, 896, 256>}, {transform_indices = @transform_25, window_bounds = array<i64: 1, 1, 256>}, {transform_indices = @transform_26, window_bounds = array<i64: 2, 128>}]} {
    %c0_i32 = arith.constant 0 : i32
    %0 = arith.cmpi eq, %arg1, %c0_i32 : i32
    %1 = arith.extui %0 : i1 to i32
    %c0_i32_0 = arith.constant 0 : i32
    %2 = arith.cmpi ne, %1, %c0_i32_0 : i32
    scf.if %2 {
      %c0_124 = arith.constant 0 : index
      %c0_125 = arith.constant 0 : index
      %319 = vector.load %arg2[%c0_124, %c0_125] : memref<32x128xbf16, #tpu.memory_space<vmem>>, vector<32x128xbf16>
      %c0_126 = arith.constant 0 : index
      %c0_127 = arith.constant 0 : index
      %320 = vector.load %arg3[%c0_126, %c0_127] : memref<128x128xbf16, #tpu.memory_space<vmem>>, vector<128x128xbf16>
      %cst_128 = arith.constant dense<0.000000e+00> : vector<32x128xf32>
      %321 = tpu.matmul %319, %320, %cst_128 {dimension_numbers = #tpu.dot_dimension_numbers<[1], [0], [0], [1], [0, 0, 1, 1], [], []>} : vector<32x128xbf16>, vector<128x128xbf16>, vector<32x128xf32> -> vector<32x128xf32>
      %c0_129 = arith.constant 0 : index
      %c0_130 = arith.constant 0 : index
      %322 = vector.load %arg4[%c0_129, %c0_130] : memref<1x128xf32, #tpu.memory_space<vmem>>, vector<1x128xf32>
      %323 = vector.broadcast %322 : vector<1x128xf32> to vector<32x128xf32>
      %324 = arith.addf %321, %323 : vector<32x128xf32>
      %c0_131 = arith.constant 0 : index
      %c0_132 = arith.constant 0 : index
      %325 = vector.load %arg5[%c0_131, %c0_132] : memref<1x128xf32, #tpu.memory_space<vmem>>, vector<1x128xf32>
      %c0_133 = arith.constant 0 : index
      %c0_134 = arith.constant 0 : index
      %326 = vector.load %arg6[%c0_133, %c0_134] : memref<1x128xf32, #tpu.memory_space<vmem>>, vector<1x128xf32>
      %cst_135 = arith.constant dense<0.000000e+00> : vector<32xf32>
      %327 = vector.multi_reduction <add>, %324, %cst_135 [1] : vector<32x128xf32> to vector<32xf32>
      %328 = vector.shape_cast %327 : vector<32xf32> to vector<32x1xf32>
      %329 = arith.mulf %324, %324 : vector<32x128xf32>
      %cst_136 = arith.constant dense<0.000000e+00> : vector<32xf32>
      %330 = vector.multi_reduction <add>, %329, %cst_136 [1] : vector<32x128xf32> to vector<32xf32>
      %331 = vector.shape_cast %330 : vector<32xf32> to vector<32x1xf32>
      %cst_137 = arith.constant 0.0178571437 : f32
      %332 = vector.broadcast %cst_137 : f32 to vector<32x1xf32>
      %333 = arith.mulf %328, %332 : vector<32x1xf32>
      %cst_138 = arith.constant 0.0178571437 : f32
      %334 = vector.broadcast %cst_138 : f32 to vector<32x1xf32>
      %335 = arith.mulf %331, %334 : vector<32x1xf32>
      %336 = arith.mulf %333, %333 : vector<32x1xf32>
      %337 = arith.subf %335, %336 : vector<32x1xf32>
      %338 = vector.broadcast %333 : vector<32x1xf32> to vector<32x128xf32>
      %339 = arith.subf %324, %338 : vector<32x128xf32>
      %cst_139 = arith.constant 9.99999974E-6 : f32
      %340 = vector.broadcast %cst_139 : f32 to vector<32x1xf32>
      %341 = arith.addf %337, %340 : vector<32x1xf32>
      %342 = math.rsqrt %341 : vector<32x1xf32>
      %343 = vector.broadcast %342 : vector<32x1xf32> to vector<32x128xf32>
      %344 = arith.mulf %339, %343 : vector<32x128xf32>
      %345 = vector.broadcast %325 : vector<1x128xf32> to vector<32x128xf32>
      %346 = arith.mulf %344, %345 : vector<32x128xf32>
      %347 = vector.broadcast %326 : vector<1x128xf32> to vector<32x128xf32>
      %348 = arith.addf %346, %347 : vector<32x128xf32>
      %cst_140 = arith.constant 0.000000e+00 : f32
      %349 = vector.broadcast %cst_140 : f32 to vector<32x128xf32>
      %350 = arith.maximumf %348, %349 : vector<32x128xf32>
      %351 = arith.truncf %350 : vector<32x128xf32> to vector<32x128xbf16>
      %c0_141 = arith.constant 0 : index
      %c0_142 = arith.constant 0 : index
      %352 = vector.load %arg7[%c0_141, %c0_142] : memref<128x256xbf16, #tpu.memory_space<vmem>>, vector<128x256xbf16>
      %cst_143 = arith.constant dense<0.000000e+00> : vector<32x256xf32>
      %353 = tpu.matmul %351, %352, %cst_143 {dimension_numbers = #tpu.dot_dimension_numbers<[1], [0], [0], [1], [0, 0, 1, 1], [], []>} : vector<32x128xbf16>, vector<128x256xbf16>, vector<32x256xf32> -> vector<32x256xf32>
      %c0_144 = arith.constant 0 : index
      %c0_145 = arith.constant 0 : index
      %354 = vector.load %arg8[%c0_144, %c0_145] : memref<1x256xf32, #tpu.memory_space<vmem>>, vector<1x256xf32>
      %355 = vector.broadcast %354 : vector<1x256xf32> to vector<32x256xf32>
      %356 = arith.addf %353, %355 : vector<32x256xf32>
      %cst_146 = arith.constant 0.000000e+00 : f32
      %357 = vector.broadcast %cst_146 : f32 to vector<15x256xf32>
      %358 = vector.extract_strided_slice %356 {offsets = [0, 0], sizes = [16, 256], strides = [1, 1]} : vector<32x256xf32> to vector<16x256xf32>
      %c0_147 = arith.constant 0 : index
      %c0_148 = arith.constant 0 : index
      %359 = vector.load %arg10[%c0_147, %c0_148] : memref<16x256xf32, #tpu.memory_space<vmem>>, vector<16x256xf32>
      %360 = arith.addf %358, %359 : vector<16x256xf32>
      %c0_149 = arith.constant 0 : index
      %c0_150 = arith.constant 0 : index
      %361 = vector.load %arg9[%c0_149, %c0_150] : memref<1x256xf32, #tpu.memory_space<vmem>>, vector<1x256xf32>
      %362 = tpu.concatenate %361, %360, %357 in 0 : vector<1x256xf32>, vector<16x256xf32>, vector<15x256xf32> -> vector<32x256xf32>
      %c0_151 = arith.constant 0 : index
      %c0_152 = arith.constant 0 : index
      %363 = vector.load %arg11[%c0_151, %c0_152] : memref<1x256xf32, #tpu.memory_space<vmem>>, vector<1x256xf32>
      %c0_153 = arith.constant 0 : index
      %c0_154 = arith.constant 0 : index
      %364 = vector.load %arg12[%c0_153, %c0_154] : memref<1x256xf32, #tpu.memory_space<vmem>>, vector<1x256xf32>
      %cst_155 = arith.constant dense<0.000000e+00> : vector<32xf32>
      %365 = vector.multi_reduction <add>, %362, %cst_155 [1] : vector<32x256xf32> to vector<32xf32>
      %366 = vector.shape_cast %365 : vector<32xf32> to vector<32x1xf32>
      %367 = arith.mulf %362, %362 : vector<32x256xf32>
      %cst_156 = arith.constant dense<0.000000e+00> : vector<32xf32>
      %368 = vector.multi_reduction <add>, %367, %cst_156 [1] : vector<32x256xf32> to vector<32xf32>
      %369 = vector.shape_cast %368 : vector<32xf32> to vector<32x1xf32>
      %cst_157 = arith.constant 0.00446428591 : f32
      %370 = vector.broadcast %cst_157 : f32 to vector<32x1xf32>
      %371 = arith.mulf %366, %370 : vector<32x1xf32>
      %cst_158 = arith.constant 0.00446428591 : f32
      %372 = vector.broadcast %cst_158 : f32 to vector<32x1xf32>
      %373 = arith.mulf %369, %372 : vector<32x1xf32>
      %374 = arith.mulf %371, %371 : vector<32x1xf32>
      %375 = arith.subf %373, %374 : vector<32x1xf32>
      %376 = vector.broadcast %371 : vector<32x1xf32> to vector<32x256xf32>
      %377 = arith.subf %362, %376 : vector<32x256xf32>
      %cst_159 = arith.constant 9.99999974E-6 : f32
      %378 = vector.broadcast %cst_159 : f32 to vector<32x1xf32>
      %379 = arith.addf %375, %378 : vector<32x1xf32>
      %380 = math.rsqrt %379 : vector<32x1xf32>
      %381 = vector.broadcast %380 : vector<32x1xf32> to vector<32x256xf32>
      %382 = arith.mulf %377, %381 : vector<32x256xf32>
      %383 = vector.broadcast %363 : vector<1x256xf32> to vector<32x256xf32>
      %384 = arith.mulf %382, %383 : vector<32x256xf32>
      %385 = vector.broadcast %364 : vector<1x256xf32> to vector<32x256xf32>
      %386 = arith.addf %384, %385 : vector<32x256xf32>
      %c0_160 = arith.constant 0 : index
      %c0_161 = arith.constant 0 : index
      %387 = vector.load %arg29[%c0_160, %c0_161] : memref<64x256xf32, #tpu.memory_space<vmem>>, vector<32x256xf32>
      tpu.vector_store %arg29[%c0_160, %c0_161], %386 {strides = array<i32>} : memref<64x256xf32, #tpu.memory_space<vmem>>, vector<32x256xf32>,
      %388 = vector.extract_strided_slice %356 {offsets = [16, 0], sizes = [16, 256], strides = [1, 1]} : vector<32x256xf32> to vector<16x256xf32>
      %c0_162 = arith.constant 0 : index
      %c0_163 = arith.constant 0 : index
      %389 = vector.load %arg10[%c0_162, %c0_163] : memref<16x256xf32, #tpu.memory_space<vmem>>, vector<16x256xf32>
      %390 = arith.addf %388, %389 : vector<16x256xf32>
      %c0_164 = arith.constant 0 : index
      %c0_165 = arith.constant 0 : index
      %391 = vector.load %arg9[%c0_164, %c0_165] : memref<1x256xf32, #tpu.memory_space<vmem>>, vector<1x256xf32>
      %392 = tpu.concatenate %391, %390, %357 in 0 : vector<1x256xf32>, vector<16x256xf32>, vector<15x256xf32> -> vector<32x256xf32>
      %c0_166 = arith.constant 0 : index
      %c0_167 = arith.constant 0 : index
      %393 = vector.load %arg11[%c0_166, %c0_167] : memref<1x256xf32, #tpu.memory_space<vmem>>, vector<1x256xf32>
      %c0_168 = arith.constant 0 : index
      %c0_169 = arith.constant 0 : index
      %394 = vector.load %arg12[%c0_168, %c0_169] : memref<1x256xf32, #tpu.memory_space<vmem>>, vector<1x256xf32>
      %cst_170 = arith.constant dense<0.000000e+00> : vector<32xf32>
      %395 = vector.multi_reduction <add>, %392, %cst_170 [1] : vector<32x256xf32> to vector<32xf32>
      %396 = vector.shape_cast %395 : vector<32xf32> to vector<32x1xf32>
      %397 = arith.mulf %392, %392 : vector<32x256xf32>
      %cst_171 = arith.constant dense<0.000000e+00> : vector<32xf32>
      %398 = vector.multi_reduction <add>, %397, %cst_171 [1] : vector<32x256xf32> to vector<32xf32>
      %399 = vector.shape_cast %398 : vector<32xf32> to vector<32x1xf32>
      %cst_172 = arith.constant 0.00446428591 : f32
      %400 = vector.broadcast %cst_172 : f32 to vector<32x1xf32>
      %401 = arith.mulf %396, %400 : vector<32x1xf32>
      %cst_173 = arith.constant 0.00446428591 : f32
      %402 = vector.broadcast %cst_173 : f32 to vector<32x1xf32>
      %403 = arith.mulf %399, %402 : vector<32x1xf32>
      %404 = arith.mulf %401, %401 : vector<32x1xf32>
      %405 = arith.subf %403, %404 : vector<32x1xf32>
      %406 = vector.broadcast %401 : vector<32x1xf32> to vector<32x256xf32>
      %407 = arith.subf %392, %406 : vector<32x256xf32>
      %cst_174 = arith.constant 9.99999974E-6 : f32
      %408 = vector.broadcast %cst_174 : f32 to vector<32x1xf32>
      %409 = arith.addf %405, %408 : vector<32x1xf32>
      %410 = math.rsqrt %409 : vector<32x1xf32>
      %411 = vector.broadcast %410 : vector<32x1xf32> to vector<32x256xf32>
      %412 = arith.mulf %407, %411 : vector<32x256xf32>
      %413 = vector.broadcast %393 : vector<1x256xf32> to vector<32x256xf32>
      %414 = arith.mulf %412, %413 : vector<32x256xf32>
      %415 = vector.broadcast %394 : vector<1x256xf32> to vector<32x256xf32>
      %416 = arith.addf %414, %415 : vector<32x256xf32>
      %c32 = arith.constant 32 : index
      %c0_175 = arith.constant 0 : index
      %417 = vector.load %arg29[%c32, %c0_175] : memref<64x256xf32, #tpu.memory_space<vmem>>, vector<32x256xf32>
      tpu.vector_store %arg29[%c32, %c0_175], %416 {strides = array<i32>} : memref<64x256xf32, #tpu.memory_space<vmem>>, vector<32x256xf32>,
    } else {
    }
    %c0 = arith.constant 0 : index
    %c0_1 = arith.constant 0 : index
    %3 = vector.load %arg29[%c0, %c0_1] : memref<64x256xf32, #tpu.memory_space<vmem>>, vector<64x256xf32>
    %c0_2 = arith.constant 0 : index
    %c0_3 = arith.constant 0 : index
    %c0_4 = arith.constant 0 : index
    %4 = vector.load %arg20[%c0_2, %c0_3, %c0_4] : memref<1x1x256xf32, #tpu.memory_space<vmem>>, vector<1x1x256xf32>
    %5 = vector.shape_cast %4 : vector<1x1x256xf32> to vector<1x256xf32>
    %c0_5 = arith.constant 0 : index
    %c0_6 = arith.constant 0 : index
    %c0_7 = arith.constant 0 : index
    %6 = vector.load %arg21[%c0_5, %c0_6, %c0_7] : memref<1x1x256xf32, #tpu.memory_space<vmem>>, vector<1x1x256xf32>
    %7 = vector.shape_cast %6 : vector<1x1x256xf32> to vector<1x256xf32>
    %cst = arith.constant dense<0.000000e+00> : vector<64xf32>
    %8 = vector.multi_reduction <add>, %3, %cst [1] : vector<64x256xf32> to vector<64xf32>
    %9 = vector.shape_cast %8 : vector<64xf32> to vector<64x1xf32>
    %10 = arith.mulf %3, %3 : vector<64x256xf32>
    %cst_8 = arith.constant dense<0.000000e+00> : vector<64xf32>
    %11 = vector.multi_reduction <add>, %10, %cst_8 [1] : vector<64x256xf32> to vector<64xf32>
    %12 = vector.shape_cast %11 : vector<64xf32> to vector<64x1xf32>
    %cst_9 = arith.constant 0.00446428591 : f32
    %13 = vector.broadcast %cst_9 : f32 to vector<64x1xf32>
    %14 = arith.mulf %9, %13 : vector<64x1xf32>
    %cst_10 = arith.constant 0.00446428591 : f32
    %15 = vector.broadcast %cst_10 : f32 to vector<64x1xf32>
    %16 = arith.mulf %12, %15 : vector<64x1xf32>
    %17 = arith.mulf %14, %14 : vector<64x1xf32>
    %18 = arith.subf %16, %17 : vector<64x1xf32>
    %19 = vector.broadcast %14 : vector<64x1xf32> to vector<64x256xf32>
    %20 = arith.subf %3, %19 : vector<64x256xf32>
    %cst_11 = arith.constant 9.99999974E-6 : f32
    %21 = vector.broadcast %cst_11 : f32 to vector<64x1xf32>
    %22 = arith.addf %18, %21 : vector<64x1xf32>
    %23 = math.rsqrt %22 : vector<64x1xf32>
    %24 = vector.broadcast %23 : vector<64x1xf32> to vector<64x256xf32>
    %25 = arith.mulf %20, %24 : vector<64x256xf32>
    %26 = vector.broadcast %5 : vector<1x256xf32> to vector<64x256xf32>
    %27 = arith.mulf %25, %26 : vector<64x256xf32>
    %28 = vector.broadcast %7 : vector<1x256xf32> to vector<64x256xf32>
    %29 = arith.addf %27, %28 : vector<64x256xf32>
    %30 = arith.truncf %29 : vector<64x256xf32> to vector<64x256xbf16>
    %c0_12 = arith.constant 0 : index
    %c0_13 = arith.constant 0 : index
    %c0_14 = arith.constant 0 : index
    %31 = vector.load %arg16[%c0_12, %c0_13, %c0_14] : memref<1x256x1536xbf16, #tpu.memory_space<vmem>>, vector<1x256x1536xbf16>
    %32 = vector.shape_cast %31 : vector<1x256x1536xbf16> to vector<256x1536xbf16>
    %cst_15 = arith.constant dense<0.000000e+00> : vector<64x1536xf32>
    %33 = tpu.matmul %30, %32, %cst_15 {dimension_numbers = #tpu.dot_dimension_numbers<[1], [0], [0], [1], [0, 0, 1, 1], [], []>} : vector<64x256xbf16>, vector<256x1536xbf16>, vector<64x1536xf32> -> vector<64x1536xf32>
    %c0_16 = arith.constant 0 : index
    %c0_17 = arith.constant 0 : index
    %c0_18 = arith.constant 0 : index
    %34 = vector.load %arg17[%c0_16, %c0_17, %c0_18] : memref<1x1x1536xf32, #tpu.memory_space<vmem>>, vector<1x1x1536xf32>
    %35 = vector.shape_cast %34 : vector<1x1x1536xf32> to vector<1x1536xf32>
    %36 = vector.broadcast %35 : vector<1x1536xf32> to vector<64x1536xf32>
    %37 = arith.addf %33, %36 : vector<64x1536xf32>
    %38 = arith.truncf %37 : vector<64x1536xf32> to vector<64x1536xbf16>
    %c0_19 = arith.constant 0 : index
    %c0_20 = arith.constant 0 : index
    %39 = vector.load %arg30[%c0_19, %c0_20] : memref<64x1536xbf16, #tpu.memory_space<vmem>>, vector<64x1536xbf16>
    tpu.vector_store %arg30[%c0_19, %c0_20], %38 {strides = array<i32>} : memref<64x1536xbf16, #tpu.memory_space<vmem>>, vector<64x1536xbf16>,
    %40 = tpu.iota {dimensions = array<i32: 1>} : vector<1x32xi32>
    %c17_i32 = arith.constant 17 : i32
    %41 = vector.broadcast %c17_i32 : i32 to vector<1x32xi32>
    %42 = arith.cmpi slt, %40, %41 : vector<1x32xi32>
    %c0_i32_21 = arith.constant 0 : i32
    %c32_i32 = arith.constant 32 : i32
    %43 = arith.muli %c0_i32_21, %c32_i32 : i32
    %44 = tpu.assume_multiple %43, 32 : i32
    %45 = arith.index_cast %44 : i32 to index
    %c0_22 = arith.constant 0 : index
    %46 = vector.load %arg30[%45, %c0_22] : memref<64x1536xbf16, #tpu.memory_space<vmem>>, vector<32x128xbf16>
    %47 = arith.index_cast %44 : i32 to index
    %c512 = arith.constant 512 : index
    %48 = vector.load %arg30[%47, %c512] : memref<64x1536xbf16, #tpu.memory_space<vmem>>, vector<32x128xbf16>
    %49 = arith.index_cast %44 : i32 to index
    %c1024 = arith.constant 1024 : index
    %50 = vector.load %arg30[%49, %c1024] : memref<64x1536xbf16, #tpu.memory_space<vmem>>, vector<32x128xbf16>
    %cst_23 = arith.constant dense<0.000000e+00> : vector<32x32xf32>
    %51 = tpu.matmul %46, %48, %cst_23 {dimension_numbers = #tpu.dot_dimension_numbers<[1], [1], [0], [0], [0, 0, 1, 0], [], []>} : vector<32x128xbf16>, vector<32x128xbf16>, vector<32x32xf32> -> vector<32x32xf32>
    %cst_24 = arith.constant -1.000000e+30 : f32
    %52 = vector.shape_cast %42 : vector<1x32xi1> to vector<1x32xi1>
    %53 = vector.broadcast %52 : vector<1x32xi1> to vector<32x32xi1>
    %54 = vector.broadcast %cst_24 : f32 to vector<32x32xf32>
    %55 = arith.select %53, %51, %54 : vector<32x32xi1>, vector<32x32xf32>
    %cst_25 = arith.constant dense<0xFF800000> : vector<32xf32>
    %56 = vector.multi_reduction <maximumf>, %55, %cst_25 [1] : vector<32x32xf32> to vector<32xf32>
    %57 = vector.shape_cast %56 : vector<32xf32> to vector<32x1xf32>
    %58 = vector.broadcast %57 : vector<32x1xf32> to vector<32x32xf32>
    %59 = arith.subf %55, %58 : vector<32x32xf32>
    %60 = math.exp %59 : vector<32x32xf32>
    %cst_26 = arith.constant dense<0.000000e+00> : vector<32xf32>
    %61 = vector.multi_reduction <add>, %60, %cst_26 [1] : vector<32x32xf32> to vector<32xf32>
    %62 = vector.shape_cast %61 : vector<32xf32> to vector<32x1xf32>
    %63 = tpu.reciprocal %62 {approx = true} : vector<32x1xf32> -> vector<32x1xf32>
    %64 = vector.broadcast %63 : vector<32x1xf32> to vector<32x32xf32>
    %65 = arith.mulf %60, %64 : vector<32x32xf32>
    %66 = arith.truncf %65 : vector<32x32xf32> to vector<32x32xbf16>
    %cst_27 = arith.constant dense<0.000000e+00> : vector<32x128xf32>
    %67 = tpu.matmul %66, %50, %cst_27 {dimension_numbers = #tpu.dot_dimension_numbers<[1], [0], [0], [1], [0, 0, 1, 1], [], []>} : vector<32x32xbf16>, vector<32x128xbf16>, vector<32x128xf32> -> vector<32x128xf32>
    %68 = arith.truncf %67 : vector<32x128xf32> to vector<32x128xbf16>
    %69 = arith.index_cast %44 : i32 to index
    %c0_28 = arith.constant 0 : index
    %70 = vector.load %arg31[%69, %c0_28] : memref<64x512xbf16, #tpu.memory_space<vmem>>, vector<32x128xbf16>
    tpu.vector_store %arg31[%69, %c0_28], %68 {strides = array<i32>} : memref<64x512xbf16, #tpu.memory_space<vmem>>, vector<32x128xbf16>,
    %71 = arith.index_cast %44 : i32 to index
    %c128 = arith.constant 128 : index
    %72 = vector.load %arg30[%71, %c128] : memref<64x1536xbf16, #tpu.memory_space<vmem>>, vector<32x128xbf16>
    %73 = arith.index_cast %44 : i32 to index
    %c640 = arith.constant 640 : index
    %74 = vector.load %arg30[%73, %c640] : memref<64x1536xbf16, #tpu.memory_space<vmem>>, vector<32x128xbf16>
    %75 = arith.index_cast %44 : i32 to index
    %c1152 = arith.constant 1152 : index
    %76 = vector.load %arg30[%75, %c1152] : memref<64x1536xbf16, #tpu.memory_space<vmem>>, vector<32x128xbf16>
    %cst_29 = arith.constant dense<0.000000e+00> : vector<32x32xf32>
    %77 = tpu.matmul %72, %74, %cst_29 {dimension_numbers = #tpu.dot_dimension_numbers<[1], [1], [0], [0], [0, 0, 1, 0], [], []>} : vector<32x128xbf16>, vector<32x128xbf16>, vector<32x32xf32> -> vector<32x32xf32>
    %cst_30 = arith.constant -1.000000e+30 : f32
    %78 = vector.shape_cast %42 : vector<1x32xi1> to vector<1x32xi1>
    %79 = vector.broadcast %78 : vector<1x32xi1> to vector<32x32xi1>
    %80 = vector.broadcast %cst_30 : f32 to vector<32x32xf32>
    %81 = arith.select %79, %77, %80 : vector<32x32xi1>, vector<32x32xf32>
    %cst_31 = arith.constant dense<0xFF800000> : vector<32xf32>
    %82 = vector.multi_reduction <maximumf>, %81, %cst_31 [1] : vector<32x32xf32> to vector<32xf32>
    %83 = vector.shape_cast %82 : vector<32xf32> to vector<32x1xf32>
    %84 = vector.broadcast %83 : vector<32x1xf32> to vector<32x32xf32>
    %85 = arith.subf %81, %84 : vector<32x32xf32>
    %86 = math.exp %85 : vector<32x32xf32>
    %cst_32 = arith.constant dense<0.000000e+00> : vector<32xf32>
    %87 = vector.multi_reduction <add>, %86, %cst_32 [1] : vector<32x32xf32> to vector<32xf32>
    %88 = vector.shape_cast %87 : vector<32xf32> to vector<32x1xf32>
    %89 = tpu.reciprocal %88 {approx = true} : vector<32x1xf32> -> vector<32x1xf32>
    %90 = vector.broadcast %89 : vector<32x1xf32> to vector<32x32xf32>
    %91 = arith.mulf %86, %90 : vector<32x32xf32>
    %92 = arith.truncf %91 : vector<32x32xf32> to vector<32x32xbf16>
    %cst_33 = arith.constant dense<0.000000e+00> : vector<32x128xf32>
    %93 = tpu.matmul %92, %76, %cst_33 {dimension_numbers = #tpu.dot_dimension_numbers<[1], [0], [0], [1], [0, 0, 1, 1], [], []>} : vector<32x32xbf16>, vector<32x128xbf16>, vector<32x128xf32> -> vector<32x128xf32>
    %94 = arith.truncf %93 : vector<32x128xf32> to vector<32x128xbf16>
    %95 = arith.index_cast %44 : i32 to index
    %c128_34 = arith.constant 128 : index
    %96 = vector.load %arg31[%95, %c128_34] : memref<64x512xbf16, #tpu.memory_space<vmem>>, vector<32x128xbf16>
    tpu.vector_store %arg31[%95, %c128_34], %94 {strides = array<i32>} : memref<64x512xbf16, #tpu.memory_space<vmem>>, vector<32x128xbf16>,
    %97 = arith.index_cast %44 : i32 to index
    %c256 = arith.constant 256 : index
    %98 = vector.load %arg30[%97, %c256] : memref<64x1536xbf16, #tpu.memory_space<vmem>>, vector<32x128xbf16>
    %99 = arith.index_cast %44 : i32 to index
    %c768 = arith.constant 768 : index
    %100 = vector.load %arg30[%99, %c768] : memref<64x1536xbf16, #tpu.memory_space<vmem>>, vector<32x128xbf16>
    %101 = arith.index_cast %44 : i32 to index
    %c1280 = arith.constant 1280 : index
    %102 = vector.load %arg30[%101, %c1280] : memref<64x1536xbf16, #tpu.memory_space<vmem>>, vector<32x128xbf16>
    %cst_35 = arith.constant dense<0.000000e+00> : vector<32x32xf32>
    %103 = tpu.matmul %98, %100, %cst_35 {dimension_numbers = #tpu.dot_dimension_numbers<[1], [1], [0], [0], [0, 0, 1, 0], [], []>} : vector<32x128xbf16>, vector<32x128xbf16>, vector<32x32xf32> -> vector<32x32xf32>
    %cst_36 = arith.constant -1.000000e+30 : f32
    %104 = vector.shape_cast %42 : vector<1x32xi1> to vector<1x32xi1>
    %105 = vector.broadcast %104 : vector<1x32xi1> to vector<32x32xi1>
    %106 = vector.broadcast %cst_36 : f32 to vector<32x32xf32>
    %107 = arith.select %105, %103, %106 : vector<32x32xi1>, vector<32x32xf32>
    %cst_37 = arith.constant dense<0xFF800000> : vector<32xf32>
    %108 = vector.multi_reduction <maximumf>, %107, %cst_37 [1] : vector<32x32xf32> to vector<32xf32>
    %109 = vector.shape_cast %108 : vector<32xf32> to vector<32x1xf32>
    %110 = vector.broadcast %109 : vector<32x1xf32> to vector<32x32xf32>
    %111 = arith.subf %107, %110 : vector<32x32xf32>
    %112 = math.exp %111 : vector<32x32xf32>
    %cst_38 = arith.constant dense<0.000000e+00> : vector<32xf32>
    %113 = vector.multi_reduction <add>, %112, %cst_38 [1] : vector<32x32xf32> to vector<32xf32>
    %114 = vector.shape_cast %113 : vector<32xf32> to vector<32x1xf32>
    %115 = tpu.reciprocal %114 {approx = true} : vector<32x1xf32> -> vector<32x1xf32>
    %116 = vector.broadcast %115 : vector<32x1xf32> to vector<32x32xf32>
    %117 = arith.mulf %112, %116 : vector<32x32xf32>
    %118 = arith.truncf %117 : vector<32x32xf32> to vector<32x32xbf16>
    %cst_39 = arith.constant dense<0.000000e+00> : vector<32x128xf32>
    %119 = tpu.matmul %118, %102, %cst_39 {dimension_numbers = #tpu.dot_dimension_numbers<[1], [0], [0], [1], [0, 0, 1, 1], [], []>} : vector<32x32xbf16>, vector<32x128xbf16>, vector<32x128xf32> -> vector<32x128xf32>
    %120 = arith.truncf %119 : vector<32x128xf32> to vector<32x128xbf16>
    %121 = arith.index_cast %44 : i32 to index
    %c256_40 = arith.constant 256 : index
    %122 = vector.load %arg31[%121, %c256_40] : memref<64x512xbf16, #tpu.memory_space<vmem>>, vector<32x128xbf16>
    tpu.vector_store %arg31[%121, %c256_40], %120 {strides = array<i32>} : memref<64x512xbf16, #tpu.memory_space<vmem>>, vector<32x128xbf16>,
    %123 = arith.index_cast %44 : i32 to index
    %c384 = arith.constant 384 : index
    %124 = vector.load %arg30[%123, %c384] : memref<64x1536xbf16, #tpu.memory_space<vmem>>, vector<32x128xbf16>
    %125 = arith.index_cast %44 : i32 to index
    %c896 = arith.constant 896 : index
    %126 = vector.load %arg30[%125, %c896] : memref<64x1536xbf16, #tpu.memory_space<vmem>>, vector<32x128xbf16>
    %127 = arith.index_cast %44 : i32 to index
    %c1408 = arith.constant 1408 : index
    %128 = vector.load %arg30[%127, %c1408] : memref<64x1536xbf16, #tpu.memory_space<vmem>>, vector<32x128xbf16>
    %cst_41 = arith.constant dense<0.000000e+00> : vector<32x32xf32>
    %129 = tpu.matmul %124, %126, %cst_41 {dimension_numbers = #tpu.dot_dimension_numbers<[1], [1], [0], [0], [0, 0, 1, 0], [], []>} : vector<32x128xbf16>, vector<32x128xbf16>, vector<32x32xf32> -> vector<32x32xf32>
    %cst_42 = arith.constant -1.000000e+30 : f32
    %130 = vector.shape_cast %42 : vector<1x32xi1> to vector<1x32xi1>
    %131 = vector.broadcast %130 : vector<1x32xi1> to vector<32x32xi1>
    %132 = vector.broadcast %cst_42 : f32 to vector<32x32xf32>
    %133 = arith.select %131, %129, %132 : vector<32x32xi1>, vector<32x32xf32>
    %cst_43 = arith.constant dense<0xFF800000> : vector<32xf32>
    %134 = vector.multi_reduction <maximumf>, %133, %cst_43 [1] : vector<32x32xf32> to vector<32xf32>
    %135 = vector.shape_cast %134 : vector<32xf32> to vector<32x1xf32>
    %136 = vector.broadcast %135 : vector<32x1xf32> to vector<32x32xf32>
    %137 = arith.subf %133, %136 : vector<32x32xf32>
    %138 = math.exp %137 : vector<32x32xf32>
    %cst_44 = arith.constant dense<0.000000e+00> : vector<32xf32>
    %139 = vector.multi_reduction <add>, %138, %cst_44 [1] : vector<32x32xf32> to vector<32xf32>
    %140 = vector.shape_cast %139 : vector<32xf32> to vector<32x1xf32>
    %141 = tpu.reciprocal %140 {approx = true} : vector<32x1xf32> -> vector<32x1xf32>
    %142 = vector.broadcast %141 : vector<32x1xf32> to vector<32x32xf32>
    %143 = arith.mulf %138, %142 : vector<32x32xf32>
    %144 = arith.truncf %143 : vector<32x32xf32> to vector<32x32xbf16>
    %cst_45 = arith.constant dense<0.000000e+00> : vector<32x128xf32>
    %145 = tpu.matmul %144, %128, %cst_45 {dimension_numbers = #tpu.dot_dimension_numbers<[1], [0], [0], [1], [0, 0, 1, 1], [], []>} : vector<32x32xbf16>, vector<32x128xbf16>, vector<32x128xf32> -> vector<32x128xf32>
    %146 = arith.truncf %145 : vector<32x128xf32> to vector<32x128xbf16>
    %147 = arith.index_cast %44 : i32 to index
    %c384_46 = arith.constant 384 : index
    %148 = vector.load %arg31[%147, %c384_46] : memref<64x512xbf16, #tpu.memory_space<vmem>>, vector<32x128xbf16>
    tpu.vector_store %arg31[%147, %c384_46], %146 {strides = array<i32>} : memref<64x512xbf16, #tpu.memory_space<vmem>>, vector<32x128xbf16>,
    %c1_i32 = arith.constant 1 : i32
    %c32_i32_47 = arith.constant 32 : i32
    %149 = arith.muli %c1_i32, %c32_i32_47 : i32
    %150 = tpu.assume_multiple %149, 32 : i32
    %151 = arith.index_cast %150 : i32 to index
    %c0_48 = arith.constant 0 : index
    %152 = vector.load %arg30[%151, %c0_48] : memref<64x1536xbf16, #tpu.memory_space<vmem>>, vector<32x128xbf16>
    %153 = arith.index_cast %150 : i32 to index
    %c512_49 = arith.constant 512 : index
    %154 = vector.load %arg30[%153, %c512_49] : memref<64x1536xbf16, #tpu.memory_space<vmem>>, vector<32x128xbf16>
    %155 = arith.index_cast %150 : i32 to index
    %c1024_50 = arith.constant 1024 : index
    %156 = vector.load %arg30[%155, %c1024_50] : memref<64x1536xbf16, #tpu.memory_space<vmem>>, vector<32x128xbf16>
    %cst_51 = arith.constant dense<0.000000e+00> : vector<32x32xf32>
    %157 = tpu.matmul %152, %154, %cst_51 {dimension_numbers = #tpu.dot_dimension_numbers<[1], [1], [0], [0], [0, 0, 1, 0], [], []>} : vector<32x128xbf16>, vector<32x128xbf16>, vector<32x32xf32> -> vector<32x32xf32>
    %cst_52 = arith.constant -1.000000e+30 : f32
    %158 = vector.shape_cast %42 : vector<1x32xi1> to vector<1x32xi1>
    %159 = vector.broadcast %158 : vector<1x32xi1> to vector<32x32xi1>
    %160 = vector.broadcast %cst_52 : f32 to vector<32x32xf32>
    %161 = arith.select %159, %157, %160 : vector<32x32xi1>, vector<32x32xf32>
    %cst_53 = arith.constant dense<0xFF800000> : vector<32xf32>
    %162 = vector.multi_reduction <maximumf>, %161, %cst_53 [1] : vector<32x32xf32> to vector<32xf32>
    %163 = vector.shape_cast %162 : vector<32xf32> to vector<32x1xf32>
    %164 = vector.broadcast %163 : vector<32x1xf32> to vector<32x32xf32>
    %165 = arith.subf %161, %164 : vector<32x32xf32>
    %166 = math.exp %165 : vector<32x32xf32>
    %cst_54 = arith.constant dense<0.000000e+00> : vector<32xf32>
    %167 = vector.multi_reduction <add>, %166, %cst_54 [1] : vector<32x32xf32> to vector<32xf32>
    %168 = vector.shape_cast %167 : vector<32xf32> to vector<32x1xf32>
    %169 = tpu.reciprocal %168 {approx = true} : vector<32x1xf32> -> vector<32x1xf32>
    %170 = vector.broadcast %169 : vector<32x1xf32> to vector<32x32xf32>
    %171 = arith.mulf %166, %170 : vector<32x32xf32>
    %172 = arith.truncf %171 : vector<32x32xf32> to vector<32x32xbf16>
    %cst_55 = arith.constant dense<0.000000e+00> : vector<32x128xf32>
    %173 = tpu.matmul %172, %156, %cst_55 {dimension_numbers = #tpu.dot_dimension_numbers<[1], [0], [0], [1], [0, 0, 1, 1], [], []>} : vector<32x32xbf16>, vector<32x128xbf16>, vector<32x128xf32> -> vector<32x128xf32>
    %174 = arith.truncf %173 : vector<32x128xf32> to vector<32x128xbf16>
    %175 = arith.index_cast %150 : i32 to index
    %c0_56 = arith.constant 0 : index
    %176 = vector.load %arg31[%175, %c0_56] : memref<64x512xbf16, #tpu.memory_space<vmem>>, vector<32x128xbf16>
    tpu.vector_store %arg31[%175, %c0_56], %174 {strides = array<i32>} : memref<64x512xbf16, #tpu.memory_space<vmem>>, vector<32x128xbf16>,
    %177 = arith.index_cast %150 : i32 to index
    %c128_57 = arith.constant 128 : index
    %178 = vector.load %arg30[%177, %c128_57] : memref<64x1536xbf16, #tpu.memory_space<vmem>>, vector<32x128xbf16>
    %179 = arith.index_cast %150 : i32 to index
    %c640_58 = arith.constant 640 : index
    %180 = vector.load %arg30[%179, %c640_58] : memref<64x1536xbf16, #tpu.memory_space<vmem>>, vector<32x128xbf16>
    %181 = arith.index_cast %150 : i32 to index
    %c1152_59 = arith.constant 1152 : index
    %182 = vector.load %arg30[%181, %c1152_59] : memref<64x1536xbf16, #tpu.memory_space<vmem>>, vector<32x128xbf16>
    %cst_60 = arith.constant dense<0.000000e+00> : vector<32x32xf32>
    %183 = tpu.matmul %178, %180, %cst_60 {dimension_numbers = #tpu.dot_dimension_numbers<[1], [1], [0], [0], [0, 0, 1, 0], [], []>} : vector<32x128xbf16>, vector<32x128xbf16>, vector<32x32xf32> -> vector<32x32xf32>
    %cst_61 = arith.constant -1.000000e+30 : f32
    %184 = vector.shape_cast %42 : vector<1x32xi1> to vector<1x32xi1>
    %185 = vector.broadcast %184 : vector<1x32xi1> to vector<32x32xi1>
    %186 = vector.broadcast %cst_61 : f32 to vector<32x32xf32>
    %187 = arith.select %185, %183, %186 : vector<32x32xi1>, vector<32x32xf32>
    %cst_62 = arith.constant dense<0xFF800000> : vector<32xf32>
    %188 = vector.multi_reduction <maximumf>, %187, %cst_62 [1] : vector<32x32xf32> to vector<32xf32>
    %189 = vector.shape_cast %188 : vector<32xf32> to vector<32x1xf32>
    %190 = vector.broadcast %189 : vector<32x1xf32> to vector<32x32xf32>
    %191 = arith.subf %187, %190 : vector<32x32xf32>
    %192 = math.exp %191 : vector<32x32xf32>
    %cst_63 = arith.constant dense<0.000000e+00> : vector<32xf32>
    %193 = vector.multi_reduction <add>, %192, %cst_63 [1] : vector<32x32xf32> to vector<32xf32>
    %194 = vector.shape_cast %193 : vector<32xf32> to vector<32x1xf32>
    %195 = tpu.reciprocal %194 {approx = true} : vector<32x1xf32> -> vector<32x1xf32>
    %196 = vector.broadcast %195 : vector<32x1xf32> to vector<32x32xf32>
    %197 = arith.mulf %192, %196 : vector<32x32xf32>
    %198 = arith.truncf %197 : vector<32x32xf32> to vector<32x32xbf16>
    %cst_64 = arith.constant dense<0.000000e+00> : vector<32x128xf32>
    %199 = tpu.matmul %198, %182, %cst_64 {dimension_numbers = #tpu.dot_dimension_numbers<[1], [0], [0], [1], [0, 0, 1, 1], [], []>} : vector<32x32xbf16>, vector<32x128xbf16>, vector<32x128xf32> -> vector<32x128xf32>
    %200 = arith.truncf %199 : vector<32x128xf32> to vector<32x128xbf16>
    %201 = arith.index_cast %150 : i32 to index
    %c128_65 = arith.constant 128 : index
    %202 = vector.load %arg31[%201, %c128_65] : memref<64x512xbf16, #tpu.memory_space<vmem>>, vector<32x128xbf16>
    tpu.vector_store %arg31[%201, %c128_65], %200 {strides = array<i32>} : memref<64x512xbf16, #tpu.memory_space<vmem>>, vector<32x128xbf16>,
    %203 = arith.index_cast %150 : i32 to index
    %c256_66 = arith.constant 256 : index
    %204 = vector.load %arg30[%203, %c256_66] : memref<64x1536xbf16, #tpu.memory_space<vmem>>, vector<32x128xbf16>
    %205 = arith.index_cast %150 : i32 to index
    %c768_67 = arith.constant 768 : index
    %206 = vector.load %arg30[%205, %c768_67] : memref<64x1536xbf16, #tpu.memory_space<vmem>>, vector<32x128xbf16>
    %207 = arith.index_cast %150 : i32 to index
    %c1280_68 = arith.constant 1280 : index
    %208 = vector.load %arg30[%207, %c1280_68] : memref<64x1536xbf16, #tpu.memory_space<vmem>>, vector<32x128xbf16>
    %cst_69 = arith.constant dense<0.000000e+00> : vector<32x32xf32>
    %209 = tpu.matmul %204, %206, %cst_69 {dimension_numbers = #tpu.dot_dimension_numbers<[1], [1], [0], [0], [0, 0, 1, 0], [], []>} : vector<32x128xbf16>, vector<32x128xbf16>, vector<32x32xf32> -> vector<32x32xf32>
    %cst_70 = arith.constant -1.000000e+30 : f32
    %210 = vector.shape_cast %42 : vector<1x32xi1> to vector<1x32xi1>
    %211 = vector.broadcast %210 : vector<1x32xi1> to vector<32x32xi1>
    %212 = vector.broadcast %cst_70 : f32 to vector<32x32xf32>
    %213 = arith.select %211, %209, %212 : vector<32x32xi1>, vector<32x32xf32>
    %cst_71 = arith.constant dense<0xFF800000> : vector<32xf32>
    %214 = vector.multi_reduction <maximumf>, %213, %cst_71 [1] : vector<32x32xf32> to vector<32xf32>
    %215 = vector.shape_cast %214 : vector<32xf32> to vector<32x1xf32>
    %216 = vector.broadcast %215 : vector<32x1xf32> to vector<32x32xf32>
    %217 = arith.subf %213, %216 : vector<32x32xf32>
    %218 = math.exp %217 : vector<32x32xf32>
    %cst_72 = arith.constant dense<0.000000e+00> : vector<32xf32>
    %219 = vector.multi_reduction <add>, %218, %cst_72 [1] : vector<32x32xf32> to vector<32xf32>
    %220 = vector.shape_cast %219 : vector<32xf32> to vector<32x1xf32>
    %221 = tpu.reciprocal %220 {approx = true} : vector<32x1xf32> -> vector<32x1xf32>
    %222 = vector.broadcast %221 : vector<32x1xf32> to vector<32x32xf32>
    %223 = arith.mulf %218, %222 : vector<32x32xf32>
    %224 = arith.truncf %223 : vector<32x32xf32> to vector<32x32xbf16>
    %cst_73 = arith.constant dense<0.000000e+00> : vector<32x128xf32>
    %225 = tpu.matmul %224, %208, %cst_73 {dimension_numbers = #tpu.dot_dimension_numbers<[1], [0], [0], [1], [0, 0, 1, 1], [], []>} : vector<32x32xbf16>, vector<32x128xbf16>, vector<32x128xf32> -> vector<32x128xf32>
    %226 = arith.truncf %225 : vector<32x128xf32> to vector<32x128xbf16>
    %227 = arith.index_cast %150 : i32 to index
    %c256_74 = arith.constant 256 : index
    %228 = vector.load %arg31[%227, %c256_74] : memref<64x512xbf16, #tpu.memory_space<vmem>>, vector<32x128xbf16>
    tpu.vector_store %arg31[%227, %c256_74], %226 {strides = array<i32>} : memref<64x512xbf16, #tpu.memory_space<vmem>>, vector<32x128xbf16>,
    %229 = arith.index_cast %150 : i32 to index
    %c384_75 = arith.constant 384 : index
    %230 = vector.load %arg30[%229, %c384_75] : memref<64x1536xbf16, #tpu.memory_space<vmem>>, vector<32x128xbf16>
    %231 = arith.index_cast %150 : i32 to index
    %c896_76 = arith.constant 896 : index
    %232 = vector.load %arg30[%231, %c896_76] : memref<64x1536xbf16, #tpu.memory_space<vmem>>, vector<32x128xbf16>
    %233 = arith.index_cast %150 : i32 to index
    %c1408_77 = arith.constant 1408 : index
    %234 = vector.load %arg30[%233, %c1408_77] : memref<64x1536xbf16, #tpu.memory_space<vmem>>, vector<32x128xbf16>
    %cst_78 = arith.constant dense<0.000000e+00> : vector<32x32xf32>
    %235 = tpu.matmul %230, %232, %cst_78 {dimension_numbers = #tpu.dot_dimension_numbers<[1], [1], [0], [0], [0, 0, 1, 0], [], []>} : vector<32x128xbf16>, vector<32x128xbf16>, vector<32x32xf32> -> vector<32x32xf32>
    %cst_79 = arith.constant -1.000000e+30 : f32
    %236 = vector.shape_cast %42 : vector<1x32xi1> to vector<1x32xi1>
    %237 = vector.broadcast %236 : vector<1x32xi1> to vector<32x32xi1>
    %238 = vector.broadcast %cst_79 : f32 to vector<32x32xf32>
    %239 = arith.select %237, %235, %238 : vector<32x32xi1>, vector<32x32xf32>
    %cst_80 = arith.constant dense<0xFF800000> : vector<32xf32>
    %240 = vector.multi_reduction <maximumf>, %239, %cst_80 [1] : vector<32x32xf32> to vector<32xf32>
    %241 = vector.shape_cast %240 : vector<32xf32> to vector<32x1xf32>
    %242 = vector.broadcast %241 : vector<32x1xf32> to vector<32x32xf32>
    %243 = arith.subf %239, %242 : vector<32x32xf32>
    %244 = math.exp %243 : vector<32x32xf32>
    %cst_81 = arith.constant dense<0.000000e+00> : vector<32xf32>
    %245 = vector.multi_reduction <add>, %244, %cst_81 [1] : vector<32x32xf32> to vector<32xf32>
    %246 = vector.shape_cast %245 : vector<32xf32> to vector<32x1xf32>
    %247 = tpu.reciprocal %246 {approx = true} : vector<32x1xf32> -> vector<32x1xf32>
    %248 = vector.broadcast %247 : vector<32x1xf32> to vector<32x32xf32>
    %249 = arith.mulf %244, %248 : vector<32x32xf32>
    %250 = arith.truncf %249 : vector<32x32xf32> to vector<32x32xbf16>
    %cst_82 = arith.constant dense<0.000000e+00> : vector<32x128xf32>
    %251 = tpu.matmul %250, %234, %cst_82 {dimension_numbers = #tpu.dot_dimension_numbers<[1], [0], [0], [1], [0, 0, 1, 1], [], []>} : vector<32x32xbf16>, vector<32x128xbf16>, vector<32x128xf32> -> vector<32x128xf32>
    %252 = arith.truncf %251 : vector<32x128xf32> to vector<32x128xbf16>
    %253 = arith.index_cast %150 : i32 to index
    %c384_83 = arith.constant 384 : index
    %254 = vector.load %arg31[%253, %c384_83] : memref<64x512xbf16, #tpu.memory_space<vmem>>, vector<32x128xbf16>
    tpu.vector_store %arg31[%253, %c384_83], %252 {strides = array<i32>} : memref<64x512xbf16, #tpu.memory_space<vmem>>, vector<32x128xbf16>,
    %c2_i32 = arith.constant 2 : i32
    %c0_84 = arith.constant 0 : index
    %c0_85 = arith.constant 0 : index
    %255 = vector.load %arg31[%c0_84, %c0_85] : memref<64x512xbf16, #tpu.memory_space<vmem>>, vector<64x512xbf16>
    %c0_86 = arith.constant 0 : index
    %c0_87 = arith.constant 0 : index
    %c0_88 = arith.constant 0 : index
    %256 = vector.load %arg18[%c0_86, %c0_87, %c0_88] : memref<1x512x256xbf16, #tpu.memory_space<vmem>>, vector<1x512x256xbf16>
    %257 = vector.shape_cast %256 : vector<1x512x256xbf16> to vector<512x256xbf16>
    %cst_89 = arith.constant dense<0.000000e+00> : vector<64x256xf32>
    %258 = tpu.matmul %255, %257, %cst_89 {dimension_numbers = #tpu.dot_dimension_numbers<[1], [0], [0], [1], [0, 0, 1, 1], [], []>} : vector<64x512xbf16>, vector<512x256xbf16>, vector<64x256xf32> -> vector<64x256xf32>
    %259 = arith.addf %3, %258 : vector<64x256xf32>
    %c0_90 = arith.constant 0 : index
    %c0_91 = arith.constant 0 : index
    %c0_92 = arith.constant 0 : index
    %260 = vector.load %arg19[%c0_90, %c0_91, %c0_92] : memref<1x1x256xf32, #tpu.memory_space<vmem>>, vector<1x1x256xf32>
    %261 = vector.shape_cast %260 : vector<1x1x256xf32> to vector<1x256xf32>
    %262 = vector.broadcast %261 : vector<1x256xf32> to vector<64x256xf32>
    %263 = arith.addf %259, %262 : vector<64x256xf32>
    %c0_93 = arith.constant 0 : index
    %c0_94 = arith.constant 0 : index
    %c0_95 = arith.constant 0 : index
    %264 = vector.load %arg22[%c0_93, %c0_94, %c0_95] : memref<1x1x256xf32, #tpu.memory_space<vmem>>, vector<1x1x256xf32>
    %265 = vector.shape_cast %264 : vector<1x1x256xf32> to vector<1x256xf32>
    %c0_96 = arith.constant 0 : index
    %c0_97 = arith.constant 0 : index
    %c0_98 = arith.constant 0 : index
    %266 = vector.load %arg23[%c0_96, %c0_97, %c0_98] : memref<1x1x256xf32, #tpu.memory_space<vmem>>, vector<1x1x256xf32>
    %267 = vector.shape_cast %266 : vector<1x1x256xf32> to vector<1x256xf32>
    %cst_99 = arith.constant dense<0.000000e+00> : vector<64xf32>
    %268 = vector.multi_reduction <add>, %263, %cst_99 [1] : vector<64x256xf32> to vector<64xf32>
    %269 = vector.shape_cast %268 : vector<64xf32> to vector<64x1xf32>
    %270 = arith.mulf %263, %263 : vector<64x256xf32>
    %cst_100 = arith.constant dense<0.000000e+00> : vector<64xf32>
    %271 = vector.multi_reduction <add>, %270, %cst_100 [1] : vector<64x256xf32> to vector<64xf32>
    %272 = vector.shape_cast %271 : vector<64xf32> to vector<64x1xf32>
    %cst_101 = arith.constant 0.00446428591 : f32
    %273 = vector.broadcast %cst_101 : f32 to vector<64x1xf32>
    %274 = arith.mulf %269, %273 : vector<64x1xf32>
    %cst_102 = arith.constant 0.00446428591 : f32
    %275 = vector.broadcast %cst_102 : f32 to vector<64x1xf32>
    %276 = arith.mulf %272, %275 : vector<64x1xf32>
    %277 = arith.mulf %274, %274 : vector<64x1xf32>
    %278 = arith.subf %276, %277 : vector<64x1xf32>
    %279 = vector.broadcast %274 : vector<64x1xf32> to vector<64x256xf32>
    %280 = arith.subf %263, %279 : vector<64x256xf32>
    %cst_103 = arith.constant 9.99999974E-6 : f32
    %281 = vector.broadcast %cst_103 : f32 to vector<64x1xf32>
    %282 = arith.addf %278, %281 : vector<64x1xf32>
    %283 = math.rsqrt %282 : vector<64x1xf32>
    %284 = vector.broadcast %283 : vector<64x1xf32> to vector<64x256xf32>
    %285 = arith.mulf %280, %284 : vector<64x256xf32>
    %286 = vector.broadcast %265 : vector<1x256xf32> to vector<64x256xf32>
    %287 = arith.mulf %285, %286 : vector<64x256xf32>
    %288 = vector.broadcast %267 : vector<1x256xf32> to vector<64x256xf32>
    %289 = arith.addf %287, %288 : vector<64x256xf32>
    %290 = arith.truncf %289 : vector<64x256xf32> to vector<64x256xbf16>
    %c0_104 = arith.constant 0 : index
    %c0_105 = arith.constant 0 : index
    %c0_106 = arith.constant 0 : index
    %291 = vector.load %arg24[%c0_104, %c0_105, %c0_106] : memref<1x256x896xbf16, #tpu.memory_space<vmem>>, vector<1x256x896xbf16>
    %292 = vector.shape_cast %291 : vector<1x256x896xbf16> to vector<256x896xbf16>
    %cst_107 = arith.constant dense<0.000000e+00> : vector<64x896xf32>
    %293 = tpu.matmul %290, %292, %cst_107 {dimension_numbers = #tpu.dot_dimension_numbers<[1], [0], [0], [1], [0, 0, 1, 1], [], []>} : vector<64x256xbf16>, vector<256x896xbf16>, vector<64x896xf32> -> vector<64x896xf32>
    %c0_108 = arith.constant 0 : index
    %c0_109 = arith.constant 0 : index
    %c0_110 = arith.constant 0 : index
    %294 = vector.load %arg25[%c0_108, %c0_109, %c0_110] : memref<1x1x896xf32, #tpu.memory_space<vmem>>, vector<1x1x896xf32>
    %295 = vector.shape_cast %294 : vector<1x1x896xf32> to vector<1x896xf32>
    %296 = vector.broadcast %295 : vector<1x896xf32> to vector<64x896xf32>
    %297 = arith.addf %293, %296 : vector<64x896xf32>
    %cst_111 = arith.constant 1.702000e+00 : f32
    %298 = vector.broadcast %cst_111 : f32 to vector<64x896xf32>
    %299 = arith.mulf %298, %297 : vector<64x896xf32>
    %300 = arith.negf %299 : vector<64x896xf32>
    %301 = math.exp %300 : vector<64x896xf32>
    %cst_112 = arith.constant 1.000000e+00 : f32
    %302 = vector.broadcast %cst_112 : f32 to vector<64x896xf32>
    %303 = arith.addf %302, %301 : vector<64x896xf32>
    %304 = arith.divf %302, %303 : vector<64x896xf32>
    %305 = arith.mulf %297, %304 : vector<64x896xf32>
    %306 = arith.truncf %305 : vector<64x896xf32> to vector<64x896xbf16>
    %c0_113 = arith.constant 0 : index
    %c0_114 = arith.constant 0 : index
    %c0_115 = arith.constant 0 : index
    %307 = vector.load %arg26[%c0_113, %c0_114, %c0_115] : memref<1x896x256xbf16, #tpu.memory_space<vmem>>, vector<1x896x256xbf16>
    %308 = vector.shape_cast %307 : vector<1x896x256xbf16> to vector<896x256xbf16>
    %cst_116 = arith.constant dense<0.000000e+00> : vector<64x256xf32>
    %309 = tpu.matmul %306, %308, %cst_116 {dimension_numbers = #tpu.dot_dimension_numbers<[1], [0], [0], [1], [0, 0, 1, 1], [], []>} : vector<64x896xbf16>, vector<896x256xbf16>, vector<64x256xf32> -> vector<64x256xf32>
    %310 = arith.addf %263, %309 : vector<64x256xf32>
    %c0_117 = arith.constant 0 : index
    %c0_118 = arith.constant 0 : index
    %c0_119 = arith.constant 0 : index
    %311 = vector.load %arg27[%c0_117, %c0_118, %c0_119] : memref<1x1x256xf32, #tpu.memory_space<vmem>>, vector<1x1x256xf32>
    %312 = vector.shape_cast %311 : vector<1x1x256xf32> to vector<1x256xf32>
    %313 = vector.broadcast %312 : vector<1x256xf32> to vector<64x256xf32>
    %314 = arith.addf %310, %313 : vector<64x256xf32>
    %c0_120 = arith.constant 0 : index
    %c0_121 = arith.constant 0 : index
    %315 = vector.load %arg29[%c0_120, %c0_121] : memref<64x256xf32, #tpu.memory_space<vmem>>, vector<64x256xf32>
    tpu.vector_store %arg29[%c0_120, %c0_121], %314 {strides = array<i32>} : memref<64x256xf32, #tpu.memory_space<vmem>>, vector<64x256xf32>,
    %c1_i32_122 = arith.constant 1 : i32
    %316 = arith.cmpi eq, %arg1, %c1_i32_122 : i32
    %317 = arith.extui %316 : i1 to i32
    %c0_i32_123 = arith.constant 0 : i32
    %318 = arith.cmpi ne, %317, %c0_i32_123 : i32
    scf.if %318 {
      %319 = vector.extract_strided_slice %314 {offsets = [0, 0], sizes = [1, 256], strides = [1, 1]} : vector<64x256xf32> to vector<1x256xf32>
      %320 = vector.extract_strided_slice %314 {offsets = [32, 0], sizes = [1, 256], strides = [1, 1]} : vector<64x256xf32> to vector<1x256xf32>
      %321 = tpu.concatenate %319, %320 in 0 : vector<1x256xf32>, vector<1x256xf32> -> vector<2x256xf32>
      %c0_124 = arith.constant 0 : index
      %c0_125 = arith.constant 0 : index
      %322 = vector.load %arg13[%c0_124, %c0_125] : memref<1x256xf32, #tpu.memory_space<vmem>>, vector<1x256xf32>
      %c0_126 = arith.constant 0 : index
      %c0_127 = arith.constant 0 : index
      %323 = vector.load %arg14[%c0_126, %c0_127] : memref<1x256xf32, #tpu.memory_space<vmem>>, vector<1x256xf32>
      %cst_128 = arith.constant dense<0.000000e+00> : vector<2xf32>
      %324 = vector.multi_reduction <add>, %321, %cst_128 [1] : vector<2x256xf32> to vector<2xf32>
      %325 = vector.shape_cast %324 : vector<2xf32> to vector<2x1xf32>
      %326 = arith.mulf %321, %321 : vector<2x256xf32>
      %cst_129 = arith.constant dense<0.000000e+00> : vector<2xf32>
      %327 = vector.multi_reduction <add>, %326, %cst_129 [1] : vector<2x256xf32> to vector<2xf32>
      %328 = vector.shape_cast %327 : vector<2xf32> to vector<2x1xf32>
      %cst_130 = arith.constant 0.00446428591 : f32
      %329 = vector.broadcast %cst_130 : f32 to vector<2x1xf32>
      %330 = arith.mulf %325, %329 : vector<2x1xf32>
      %cst_131 = arith.constant 0.00446428591 : f32
      %331 = vector.broadcast %cst_131 : f32 to vector<2x1xf32>
      %332 = arith.mulf %328, %331 : vector<2x1xf32>
      %333 = arith.mulf %330, %330 : vector<2x1xf32>
      %334 = arith.subf %332, %333 : vector<2x1xf32>
      %335 = vector.broadcast %330 : vector<2x1xf32> to vector<2x256xf32>
      %336 = arith.subf %321, %335 : vector<2x256xf32>
      %cst_132 = arith.constant 9.99999974E-6 : f32
      %337 = vector.broadcast %cst_132 : f32 to vector<2x1xf32>
      %338 = arith.addf %334, %337 : vector<2x1xf32>
      %339 = math.rsqrt %338 : vector<2x1xf32>
      %340 = vector.broadcast %339 : vector<2x1xf32> to vector<2x256xf32>
      %341 = arith.mulf %336, %340 : vector<2x256xf32>
      %342 = vector.broadcast %322 : vector<1x256xf32> to vector<2x256xf32>
      %343 = arith.mulf %341, %342 : vector<2x256xf32>
      %344 = vector.broadcast %323 : vector<1x256xf32> to vector<2x256xf32>
      %345 = arith.addf %343, %344 : vector<2x256xf32>
      %346 = arith.truncf %345 : vector<2x256xf32> to vector<2x256xbf16>
      %c0_133 = arith.constant 0 : index
      %c0_134 = arith.constant 0 : index
      %347 = vector.load %arg15[%c0_133, %c0_134] : memref<256x128xbf16, #tpu.memory_space<vmem>>, vector<256x128xbf16>
      %cst_135 = arith.constant dense<0.000000e+00> : vector<2x128xf32>
      %348 = tpu.matmul %346, %347, %cst_135 {dimension_numbers = #tpu.dot_dimension_numbers<[1], [0], [0], [1], [0, 0, 1, 1], [], []>} : vector<2x256xbf16>, vector<256x128xbf16>, vector<2x128xf32> -> vector<2x128xf32>
      %c0_136 = arith.constant 0 : index
      %c0_137 = arith.constant 0 : index
      %349 = vector.load %arg28[%c0_136, %c0_137] : memref<2x128xf32, #tpu.memory_space<vmem>>, vector<2x128xf32>
      tpu.vector_store %arg28[%c0_136, %c0_137], %348 {strides = array<i32>} : memref<2x128xf32, #tpu.memory_space<vmem>>, vector<2x128xf32>,
    } else {
    }
    return
  }
  func.func @transform_0(%arg0: i32, %arg1: i32) -> (i32, i32) {
    %c0_i32 = arith.constant 0 : i32
    %c0_i32_0 = arith.constant 0 : i32
    return %arg0, %c0_i32 : i32, i32
  }
  func.func @transform_1(%arg0: i32, %arg1: i32) -> (i32, i32) {
    %c0_i32 = arith.constant 0 : i32
    %c0_i32_0 = arith.constant 0 : i32
    %c0_i32_1 = arith.constant 0 : i32
    return %c0_i32, %c0_i32_0 : i32, i32
  }
  func.func @transform_2(%arg0: i32, %arg1: i32) -> (i32, i32) {
    %c0_i32 = arith.constant 0 : i32
    %c0_i32_0 = arith.constant 0 : i32
    %c0_i32_1 = arith.constant 0 : i32
    return %c0_i32, %c0_i32_0 : i32, i32
  }
  func.func @transform_3(%arg0: i32, %arg1: i32) -> (i32, i32) {
    %c0_i32 = arith.constant 0 : i32
    %c0_i32_0 = arith.constant 0 : i32
    %c0_i32_1 = arith.constant 0 : i32
    return %c0_i32, %c0_i32_0 : i32, i32
  }
  func.func @transform_4(%arg0: i32, %arg1: i32) -> (i32, i32) {
    %c0_i32 = arith.constant 0 : i32
    %c0_i32_0 = arith.constant 0 : i32
    %c0_i32_1 = arith.constant 0 : i32
    return %c0_i32, %c0_i32_0 : i32, i32
  }
  func.func @transform_5(%arg0: i32, %arg1: i32) -> (i32, i32) {
    %c0_i32 = arith.constant 0 : i32
    %c0_i32_0 = arith.constant 0 : i32
    %c0_i32_1 = arith.constant 0 : i32
    return %c0_i32, %c0_i32_0 : i32, i32
  }
  func.func @transform_6(%arg0: i32, %arg1: i32) -> (i32, i32) {
    %c0_i32 = arith.constant 0 : i32
    %c0_i32_0 = arith.constant 0 : i32
    %c0_i32_1 = arith.constant 0 : i32
    return %c0_i32, %c0_i32_0 : i32, i32
  }
  func.func @transform_7(%arg0: i32, %arg1: i32) -> (i32, i32) {
    %c0_i32 = arith.constant 0 : i32
    %c0_i32_0 = arith.constant 0 : i32
    %c0_i32_1 = arith.constant 0 : i32
    return %c0_i32, %c0_i32_0 : i32, i32
  }
  func.func @transform_8(%arg0: i32, %arg1: i32) -> (i32, i32) {
    %c0_i32 = arith.constant 0 : i32
    %c0_i32_0 = arith.constant 0 : i32
    %c0_i32_1 = arith.constant 0 : i32
    return %c0_i32, %c0_i32_0 : i32, i32
  }
  func.func @transform_9(%arg0: i32, %arg1: i32) -> (i32, i32) {
    %c0_i32 = arith.constant 0 : i32
    %c0_i32_0 = arith.constant 0 : i32
    %c0_i32_1 = arith.constant 0 : i32
    return %c0_i32, %c0_i32_0 : i32, i32
  }
  func.func @transform_10(%arg0: i32, %arg1: i32) -> (i32, i32) {
    %c0_i32 = arith.constant 0 : i32
    %c0_i32_0 = arith.constant 0 : i32
    %c0_i32_1 = arith.constant 0 : i32
    return %c0_i32, %c0_i32_0 : i32, i32
  }
  func.func @transform_11(%arg0: i32, %arg1: i32) -> (i32, i32) {
    %c0_i32 = arith.constant 0 : i32
    %c0_i32_0 = arith.constant 0 : i32
    %c0_i32_1 = arith.constant 0 : i32
    return %c0_i32, %c0_i32_0 : i32, i32
  }
  func.func @transform_12(%arg0: i32, %arg1: i32) -> (i32, i32) {
    %c0_i32 = arith.constant 0 : i32
    %c0_i32_0 = arith.constant 0 : i32
    %c0_i32_1 = arith.constant 0 : i32
    return %c0_i32, %c0_i32_0 : i32, i32
  }
  func.func @transform_13(%arg0: i32, %arg1: i32) -> (i32, i32) {
    %c0_i32 = arith.constant 0 : i32
    %c0_i32_0 = arith.constant 0 : i32
    %c0_i32_1 = arith.constant 0 : i32
    return %c0_i32, %c0_i32_0 : i32, i32
  }
  func.func @transform_14(%arg0: i32, %arg1: i32) -> (i32, i32, i32) {
    %c0_i32 = arith.constant 0 : i32
    %c0_i32_0 = arith.constant 0 : i32
    %c0_i32_1 = arith.constant 0 : i32
    return %arg1, %c0_i32, %c0_i32_0 : i32, i32, i32
  }
  func.func @transform_15(%arg0: i32, %arg1: i32) -> (i32, i32, i32) {
    %c0_i32 = arith.constant 0 : i32
    %c0_i32_0 = arith.constant 0 : i32
    %c0_i32_1 = arith.constant 0 : i32
    return %arg1, %c0_i32, %c0_i32_0 : i32, i32, i32
  }
  func.func @transform_16(%arg0: i32, %arg1: i32) -> (i32, i32, i32) {
    %c0_i32 = arith.constant 0 : i32
    %c0_i32_0 = arith.constant 0 : i32
    %c0_i32_1 = arith.constant 0 : i32
    return %arg1, %c0_i32, %c0_i32_0 : i32, i32, i32
  }
  func.func @transform_17(%arg0: i32, %arg1: i32) -> (i32, i32, i32) {
    %c0_i32 = arith.constant 0 : i32
    %c0_i32_0 = arith.constant 0 : i32
    %c0_i32_1 = arith.constant 0 : i32
    return %arg1, %c0_i32, %c0_i32_0 : i32, i32, i32
  }
  func.func @transform_18(%arg0: i32, %arg1: i32) -> (i32, i32, i32) {
    %c0_i32 = arith.constant 0 : i32
    %c0_i32_0 = arith.constant 0 : i32
    %c0_i32_1 = arith.constant 0 : i32
    return %arg1, %c0_i32, %c0_i32_0 : i32, i32, i32
  }
  func.func @transform_19(%arg0: i32, %arg1: i32) -> (i32, i32, i32) {
    %c0_i32 = arith.constant 0 : i32
    %c0_i32_0 = arith.constant 0 : i32
    %c0_i32_1 = arith.constant 0 : i32
    return %arg1, %c0_i32, %c0_i32_0 : i32, i32, i32
  }
  func.func @transform_20(%arg0: i32, %arg1: i32) -> (i32, i32, i32) {
    %c0_i32 = arith.constant 0 : i32
    %c0_i32_0 = arith.constant 0 : i32
    %c0_i32_1 = arith.constant 0 : i32
    return %arg1, %c0_i32, %c0_i32_0 : i32, i32, i32
  }
  func.func @transform_21(%arg0: i32, %arg1: i32) -> (i32, i32, i32) {
    %c0_i32 = arith.constant 0 : i32
    %c0_i32_0 = arith.constant 0 : i32
    %c0_i32_1 = arith.constant 0 : i32
    return %arg1, %c0_i32, %c0_i32_0 : i32, i32, i32
  }
  func.func @transform_22(%arg0: i32, %arg1: i32) -> (i32, i32, i32) {
    %c0_i32 = arith.constant 0 : i32
    %c0_i32_0 = arith.constant 0 : i32
    %c0_i32_1 = arith.constant 0 : i32
    return %arg1, %c0_i32, %c0_i32_0 : i32, i32, i32
  }
  func.func @transform_23(%arg0: i32, %arg1: i32) -> (i32, i32, i32) {
    %c0_i32 = arith.constant 0 : i32
    %c0_i32_0 = arith.constant 0 : i32
    %c0_i32_1 = arith.constant 0 : i32
    return %arg1, %c0_i32, %c0_i32_0 : i32, i32, i32
  }
  func.func @transform_24(%arg0: i32, %arg1: i32) -> (i32, i32, i32) {
    %c0_i32 = arith.constant 0 : i32
    %c0_i32_0 = arith.constant 0 : i32
    %c0_i32_1 = arith.constant 0 : i32
    return %arg1, %c0_i32, %c0_i32_0 : i32, i32, i32
  }
  func.func @transform_25(%arg0: i32, %arg1: i32) -> (i32, i32, i32) {
    %c0_i32 = arith.constant 0 : i32
    %c0_i32_0 = arith.constant 0 : i32
    %c0_i32_1 = arith.constant 0 : i32
    return %arg1, %c0_i32, %c0_i32_0 : i32, i32, i32
  }
  func.func @transform_26(%arg0: i32, %arg1: i32) -> (i32, i32) {
    %c0_i32 = arith.constant 0 : i32
    %c0_i32_0 = arith.constant 0 : i32
    return %arg0, %c0_i32 : i32, i32
  }
}

</mosaic_0001>

<bundles_post_ra>
// kernel: tpu_custom_call.1
= control target key start
LH: loop header
LB: loop body
LE: loop exit
PB: predicated region body
PF: predicated region fallthrough
CT: control target
= control target key end

     0   :  { %s15856_s0 = inlined_call_operand.hbm [shape: bf16[32,128], index: 0, kind: input, shape index: {}]   ;;  %s15857_s1 = inlined_call_operand.hbm [shape: bf16[128,128], index: 1, kind: input, shape index: {}]   ;;  %s15858_s2 = inlined_call_operand.hbm [shape: f32[1,128], index: 2, kind: input, shape index: {}]   ;;  %s15859_s3 = inlined_call_operand.hbm [shape: f32[1,128], index: 3, kind: input, shape index: {}]   ;;  %s15860_s4 = inlined_call_operand.hbm [shape: f32[1,128], index: 4, kind: input, shape index: {}]   ;;  %s15861_s5 = inlined_call_operand.hbm [shape: bf16[128,256], index: 5, kind: input, shape index: {}]   ;;  %s15862_s6 = inlined_call_operand.hbm [shape: f32[1,256], index: 6, kind: input, shape index: {}]   ;;  %s15863_s7 = inlined_call_operand.hbm [shape: f32[1,256], index: 7, kind: input, shape index: {}]   ;;  %s15864_s8 = inlined_call_operand.hbm [shape: f32[16,256], index: 8, kind: input, shape index: {}]   ;;  %s15865_s9 = inlined_call_operand.hbm [shape: f32[1,256], index: 9, kind: input, shape index: {}]   ;;  %s15866_s10 = inlined_call_operand.hbm [shape: f32[1,256], index: 10, kind: input, shape index: {}]   ;;  %s15867_s11 = inlined_call_operand.hbm [shape: f32[1,256], index: 11, kind: input, shape index: {}]   ;;  %s15868_s12 = inlined_call_operand.hbm [shape: f32[1,256], index: 12, kind: input, shape index: {}]   ;;  %s15869_s13 = inlined_call_operand.hbm [shape: bf16[256,128], index: 13, kind: input, shape index: {}]   ;;  %s15870_s14 = inlined_call_operand.hbm [shape: bf16[2,256,1536], index: 14, kind: input, shape index: {}]   ;;  %s15871_s15 = inlined_call_operand.hbm [shape: f32[2,1,1536], index: 15, kind: input, shape index: {}]   ;;  %s15872_s16 = inlined_call_operand.hbm [shape: bf16[2,512,256], index: 16, kind: input, shape index: {}]   ;;  %s15873_s17 = inlined_call_operand.hbm [shape: f32[2,1,256], index: 17, kind: input, shape index: {}]   ;;  %s15874_s18 = inlined_call_operand.hbm [shape: f32[2,1,256], index: 18, kind: input, shape index: {}]   ;;  %s15875_s19 = inlined_call_operand.hbm [shape: f32[2,1,256], index: 19, kind: input, shape index: {}]   ;;  %s15876_s20 = inlined_call_operand.hbm [shape: f32[2,1,256], index: 20, kind: input, shape index: {}]   ;;  %s15877_s21 = inlined_call_operand.hbm [shape: f32[2,1,256], index: 21, kind: input, shape index: {}]   ;;  %s15878_s22 = inlined_call_operand.hbm [shape: bf16[2,256,896], index: 22, kind: input, shape index: {}]   ;;  %s15879_s23 = inlined_call_operand.hbm [shape: f32[2,1,896], index: 23, kind: input, shape index: {}]   ;;  %s15880_s24 = inlined_call_operand.hbm [shape: bf16[2,896,256], index: 24, kind: input, shape index: {}]   ;;  %s15881_s25 = inlined_call_operand.hbm [shape: f32[2,1,256], index: 25, kind: input, shape index: {}]   ;;  %s15882_s26 = inlined_call_operand.hbm [shape: f32[2,128], index: 26, kind: output, shape index: {}]  }
   0x1   :  { %15997 = sst [smem:[#allocation89_spill]] %s15856_s0 }
   0x2   :  { %15998 = sst [smem:[#allocation90_spill]] %s15857_s1 }
   0x3   :  { %15999 = sst [smem:[#allocation91_spill]] %s15858_s2 }
   0x4   :  { %16000 = sst [smem:[#allocation92_spill]] %s15859_s3 }
   0x5   :  { %16001 = sst [smem:[#allocation93_spill]] %s15860_s4 }
   0x6   :  { %16002 = sst [smem:[#allocation94_spill]] %s15861_s5 }
   0x7   :  { %16003 = sst [smem:[#allocation95_spill]] %s15862_s6 }
   0x8   :  { %16004 = sst [smem:[#allocation96_spill]] %s15863_s7 }
   0x9   :  { %16005 = sst [smem:[#allocation97_spill]] %s15864_s8 }
   0xa   :  { %16006 = sst [smem:[#allocation98_spill]] %s15865_s9 }
   0xb   :  { %16007 = sst [smem:[#allocation99_spill]] %s15866_s10 }
   0xc   :  { %16008 = sst [smem:[#allocation100_spill]] %s15867_s11 }
   0xd   :  { %16009 = sst [smem:[#allocation101_spill]] %s15868_s12 }
   0xe   :  { %16010 = sst [smem:[#allocation102_spill]] %s15869_s13 }
   0xf   :  { %16011 = sst [smem:[#allocation103_spill]] %s15870_s14 }
  0x10   :  { %16012 = sst [smem:[#allocation104_spill]] %s15871_s15 }
  0x11   :  { %16013 = sst [smem:[#allocation105_spill]] %s15872_s16 }
  0x12   :  { %16014 = sst [smem:[#allocation106_spill]] %s15873_s17 }
  0x13   :  { %16015 = sst [smem:[#allocation107_spill]] %s15874_s18 }
  0x14   :  { %16016 = sst [smem:[#allocation108_spill]] %s15875_s19 }
  0x15   :  { %16017 = sst [smem:[#allocation109_spill]] %s15876_s20 }
  0x16   :  { %16018 = sst [smem:[#allocation110_spill]] %s15877_s21 }
  0x17   :  { %16019 = sst [smem:[#allocation111_spill]] %s15878_s22 }
  0x18   :  { %16020 = sst [smem:[#allocation112_spill]] %s15880_s24 }
  0x19   :  { %16021 = sst [smem:[#allocation113_spill]] %s15881_s25 }
  0x1a   :  { %16022 = sst [smem:[#allocation114_spill]] %s15882_s26 }
  0x1b   :  { %31 = vsyncpa [#allocation6], 0 }
  0x1c   :  { %32 = vsyncpa [#allocation9], 0 }
  0x1d   :  { %33 = vsyncpa [#allocation12], 0 }
  0x1e   :  { %34 = vsyncpa [#allocation15], 0 }
  0x1f   :  { %35 = vsyncpa [#allocation18], 0 }
  0x20   :  { %36 = vsyncpa [#allocation21], 0 }
  0x21   :  { %37 = vsyncpa [#allocation24], 0 }
  0x22   :  { %38 = vsyncpa [#allocation27], 0 }
  0x23   :  { %39 = vsyncpa [#allocation7], 0  ;;  %s12914_s27 = smov 0   ;;  %s12916_s3 = smov 0  }
  0x24   :  { %s12918_s7 = smov 0   ;;  %s12920_s28 = smov 0  }
  0x25   :  { %s12922_s8 = smov 0   ;;  %s12924_s4 = smov 0  }
  0x26 LB: > { %16023 = sst [smem:[#allocation51_spill]] %s12721_s3  ;;  %s12945_s29 = sadd.s32 4294967295, %s12737_s4   ;;  %s12737_s4 = sphi %s12924_s4, %s45_s4   ;;  %s12733_s8 = sphi %s12922_s8, %s16226_s8   ;;  %s12729_s28 = sphi %s12920_s28, %s16225_s28   ;;  %s12725_s7 = sphi %s12918_s7, %s16223_s7   ;;  %s12721_s3 = sphi %s12916_s3, %s16222_s3   ;;  %s12717_s27 = sphi %s12914_s27, %s16221_s27  }
  0x27   : > { %16024 = sst [smem:[#allocation52_spill]] %s12725_s7  ;;  %p9364_p0 = scmp.ge.s32.totalorder %s12737_s4, 1 }
  0x28   : > { %16025 = sst [smem:[#allocation53_spill]] %s12729_s28  ;;  %p15897_p1 = scmp.eq.s32.totalorder %s12945_s29, 0 }
  0x29   : > { %16026 = sst [smem:[#allocation54_spill]] %s12737_s4  ;;  %p699_p2 = scmp.lt.s32.totalorder %s12737_s4, 3 }
  0x2a   : > { %16027 = sst [smem:[#allocation55_spill]] %s12945_s29  ;;  %s12739_s9 = smov [#allocation5]  }
  0x2b   : > { %p12950_p3 = pnand %p9364_p0, %p699_p2  ;;  %s714_s30 = sshll.u32 %s12739_s9, 4  ;;  %s715_s30 = int_to_ptr.vmem [resolvable:$true] %s714_s30 }
  0x2c   : > { %s16032_s6 = sld [smem:[#allocation89_spill]] }
  0x2d   : > { %s16028_s0 = scalar_select %p12950_p3, 1, 0 }
  0x2e   : > { %p10484_p4 = pneg %p12950_p3 }
  0x2f   : > { %16029 = sst [smem:[#allocation56_spill]] %s16028_s0 }
  0x30   : > { %p12958_p5 = pnand %p10484_p4, %p15897_p1 }
  0x32   : > { %s16030_s2 = scalar_select %p12958_p5, 1, 0 }
  0x33   : > { %s11873_s1 = scalar_lea.hbm %s16032_s6, 256  ;;  %p12970_p7 = pneg %p12958_p5 }
  0x34   : > { %16031 = sst [smem:[#allocation57_spill]] %s16030_s2  ;;  %p11874_p6 = scmp.ne.s32.totalorder %s16032_s6, %s11873_s1 }
  0x35   : > { %s16033_s9 = scalar_select %p12970_p7, 1, 0 }
  0x36   : > { %p11876_p8 = pnand %p12970_p7, %p11874_p6  ;;  %p11880_p10 = scmp.lt.u32.totalorder %s11873_s1, %s16032_s6 }
  0x38   : > { %p11877_p9 = pneg %p11876_p8 }
  0x3a   : > { %p11882_p11 = pnand %p11880_p10, %p11877_p9 }
  0x3c   : > { %11885 = shalt.err (!%p11882_p11)
}
  0x3d   : > { %s11886_s5 = scalar_lea.vmem %s715_s30, 256  ;;  %p11894_p2 = scmp.lt.s32.totalorder %s715_s30, %s715_s30 }
  0x3e   : > { %p11887_p12 = scmp.ne.s32.totalorder %s715_s30, %s11886_s5  ;;  %p11895_p4 = scmp.lt.s32.totalorder %s11886_s5, %s11886_s5 }
  0x40   : > { %p11889_p13 = pnand %p11887_p12, %p12970_p7  ;;  %p11896_p1 = por %p11895_p4, %p11894_p2 }
  0x42   : > { %p11890_p0 = pneg %p11889_p13 }
  0x44   : > { %p11897_p3 = pnand %p11896_p1, %p11890_p0 }
  0x46   : > { %11900 = shalt.err (!%p11897_p3)
}
  0x47   : > { %s15900_s26 = smov 64   ;;  %s15902_s13 = smov 4  }
  0x48   : > { %10487 = dma.hbm_to_vmem [thread:$0]  (!%p12958_p5), %s16032_s6, 256, %s715_s30, [#allocation6], %s15900_s26, %s15900_s26, %s15902_s13  }
  0x49   : > { %s54_s10 = sadd.s32 1, %s12733_s8  ;;  %s363_s1 = sadd.s32 1, %s12725_s7 }
  0x4a   : > { %p55_p1 = scmp.ge.s32.totalorder %s54_s10, 2  ;;  %p370_p3 = scmp.ne.s32.totalorder %s12725_s7, %s12721_s3 }
  0x4b   : > { %p371_p6 = scmp.eq.s32.totalorder %s12737_s4, 0  ;;  %p376_p9 = scmp.ne.s32.totalorder %s12721_s3, %s12717_s27 }
  0x4c   : > { %s16228_s10 = smov (%p55_p1, %s54_s10), 0  ;;  %p10578_p10 = scmp.lt.s32.totalorder %s12737_s4, 2 }
  0x4d   : > { %16034 = sst [smem:[#allocation58_spill]] %s16228_s10  ;;  %p372_p8 = por %p371_p6, %p370_p3 }
  0x4e   : > { %s360_s5 = ssub.s32 %s12733_s8, %s16228_s10  ;;  %p16035_p12 = scmp.eq.s32.totalorder %s12945_s29, 0 }
  0x4f   : > { %p361_p11 = scmp.eq.s32.totalorder %s360_s5, 0  ;;  %s879_s30 = sand.u32 1, %s12737_s4  }
  0x50   : > { %p13003_p13 = por %p16035_p12, %p376_p9  ;;  %s13009_s28 = sand.u32 1, %s12725_s7  }
  0x51   : > { %s13012_s0 = scalar_select %p361_p11, %s12725_s7, %s363_s1  }
  0x52   : > { %s16036_s25 = scalar_select %p13003_p13, 1, 0 }
  0x53   : > { %16038 = sst [smem:[#allocation60_spill]] %s13012_s0  ;;  %s10386_s26 = smul.u32 1536, %s13009_s28 }
  0x54   : > { %16037 = sst [smem:[#allocation59_spill]] %s16036_s25  ;;  %s10387_s13 = smul.u32 24576, %s12733_s8 }
  0x55   : > { %p13016_p0 = pnand %p10578_p10, %p372_p8  ;;  %s16040_s14 = sld [smem:[#allocation103_spill]] }
  0x56   : > { %s883_s4 = scalar_lea.vmem [#allocation28], %s10386_s26  ;;  %s10388_s1 = smul.u32 12, %s13009_s28 }
  0x57   : > { %s16039_s6 = scalar_select %p13016_p0, 1, 0 }
  0x58   : > { %s890_s25 = sshll.u32 %s883_s4, 4  ;;  %s13028_s0 = scalar_lea.sflag [#allocation6], %s879_s30  ;;  %s13025_s25 = int_to_ptr.vmem [resolvable:$true] %s890_s25 }
  0x59   : > { %p13034_p4 = pneg %p13016_p0 }
  0x5b   : > { %s13023_s10 = scalar_lea.hbm %s16040_s14, %s10387_s13  ;;  %s11906_s4 = scalar_lea.hbm %s16040_s14, 49152 }
  0x5c   : > { %s11901_s7 = scalar_lea.hbm %s13023_s10, 24576  ;;  %p11907_p6 = scmp.lt.u32.totalorder %s13023_s10, %s16040_s14 }
  0x5d   : > { %p11902_p2 = scmp.ne.s32.totalorder %s13023_s10, %s11901_s7  ;;  %p11908_p8 = scmp.lt.u32.totalorder %s11906_s4, %s11901_s7 }
  0x5e   : > { %s16041_s3 = scalar_select %p13034_p4, 1, 0 }
  0x5f   : > { %p11904_p1 = pnand %p13034_p4, %p11902_p2  ;;  %p11909_p9 = por %p11908_p8, %p11907_p6 }
  0x60   : > { %p11910_p10 = scmp.lt.u32.totalorder %s11901_s7, %s13023_s10 }
  0x61   : > { %p11905_p3 = pneg %p11904_p1 }
  0x62   : > { %p11911_p11 = por %p11910_p10, %p11909_p9 }
  0x64   : > { %p11912_p12 = pnand %p11911_p11, %p11905_p3 }
  0x66   : > { %11915 = shalt.err (!%p11912_p12)
}
  0x67   : > { %s11916_s30 = scalar_lea.vmem %s13025_s25, 24576  ;;  %s12742_s13 = smov [#allocation28]  }
  0x68   : > { %p11917_p2 = scmp.ne.s32.totalorder %s13025_s25, %s11916_s30  ;;  %s11921_s27 = sshll.u32 %s12742_s13, 4  ;;  %s11922_s27 = int_to_ptr.vmem [resolvable:$false] %s11921_s27 }
  0x69   : > { %s11923_s26 = scalar_lea.vmem %s11922_s27, 49152  ;;  %p11924_p5 = scmp.lt.s32.totalorder %s13025_s25, %s11922_s27 }
  0x6a   : > { %p11919_p1 = pnand %p11917_p2, %p13034_p4  ;;  %p11925_p7 = scmp.lt.s32.totalorder %s11923_s26, %s11916_s30 }
  0x6c   : > { %p11920_p13 = pneg %p11919_p1  ;;  %p11926_p6 = por %p11925_p7, %p11924_p5 }
  0x6e   : > { %p11927_p8 = pnand %p11926_p6, %p11920_p13 }
  0x70   : > { %11930 = shalt.err (!%p11927_p8)
}
  0x71   : > { %s12743_s7 = smov 768   ;;  %s12744_s4 = smov 48  }
  0x72   : > { %10530 = dma.hbm_to_vmem [thread:$0]  (!%p13016_p0), %s13023_s10, 24576, %s13025_s25, %s13028_s0, %s12743_s7, %s12743_s7, %s12744_s4  }
  0x73   : > { %s10389_s5 = smul.u32 192, %s12733_s8  ;;  %s904_s13 = scalar_lea.vmem [#allocation29], %s10388_s1 }
  0x74   : > { %s912_s14 = sshll.u32 %s904_s13, 4  ;;  %s16042_s15 = sld [smem:[#allocation104_spill]]  ;;  %s913_s14 = int_to_ptr.vmem [resolvable:$true] %s912_s14 }
  0x7a   : > { %s910_s26 = scalar_lea.hbm %s16042_s15, %s10389_s5  ;;  %s11936_s11 = scalar_lea.hbm %s16042_s15, 384 }
  0x7b   : > { %s11931_s29 = scalar_lea.hbm %s910_s26, 192  ;;  %p11937_p3 = scmp.lt.u32.totalorder %s910_s26, %s16042_s15 }
  0x7c   : > { %p11932_p5 = scmp.ne.s32.totalorder %s910_s26, %s11931_s29  ;;  %p11938_p9 = scmp.lt.u32.totalorder %s11936_s11, %s11931_s29 }
  0x7d   : > { %p11940_p11 = scmp.lt.u32.totalorder %s11931_s29, %s910_s26 }
  0x7e   : > { %p11934_p7 = pnand %p11932_p5, %p13034_p4  ;;  %p11939_p10 = por %p11938_p9, %p11937_p3 }
  0x80   : > { %p11935_p13 = pneg %p11934_p7  ;;  %p11941_p12 = por %p11940_p11, %p11939_p10 }
  0x82   : > { %p11942_p2 = pnand %p11941_p12, %p11935_p13 }
  0x84   : > { %11945 = shalt.err (!%p11942_p2)
}
  0x85   : > { %s11946_s10 = scalar_lea.vmem %s913_s14, 192  ;;  %s12745_s1 = smov [#allocation29]  }
  0x86   : > { %p11947_p1 = scmp.ne.s32.totalorder %s913_s14, %s11946_s10  ;;  %s11951_s7 = sshll.u32 %s12745_s1, 4  ;;  %s11952_s7 = int_to_ptr.vmem [resolvable:$false] %s11951_s7 }
  0x87   : > { %s11953_s12 = scalar_lea.vmem %s11952_s7, 384  ;;  %p11954_p5 = scmp.lt.s32.totalorder %s913_s14, %s11952_s7 }
  0x88   : > { %p11949_p6 = pnand %p11947_p1, %p13034_p4  ;;  %p11955_p7 = scmp.lt.s32.totalorder %s11953_s12, %s11946_s10 }
  0x8a   : > { %p11950_p8 = pneg %p11949_p6  ;;  %p11956_p0 = por %p11955_p7, %p11954_p5 }
  0x8c   : > { %p11957_p3 = pnand %p11956_p0, %p11950_p8 }
  0x8e   : > { %11960 = shalt.err (!%p11957_p3)
}
  0x8f   : > { %p16043_p9 = scmp.ne.s32.totalorder %s16039_s6, 0  ;;  %s9382_s11 = sshll.u32 %s13009_s28, 9 }
  0x90   : > { %s10031_s24 = sshll.u32 %s12733_s8, 13  ;;  %s16044_s16 = sld [smem:[#allocation105_spill]] }
  0x91   : > { %10533 = dma.hbm_to_vmem [thread:$0]  (!%p16043_p9), %s910_s26, 192, %s913_s14, %s13028_s0  }
  0x92   : > { %s923_s5 = scalar_lea.vmem [#allocation30], %s9382_s11  ;;  %s13087_s27 = sshll.u32 %s13009_s28, 1 }
  0x93   : > { %s930_s13 = sshll.u32 %s923_s5, 4  ;;  %s13084_s13 = int_to_ptr.vmem [resolvable:$true] %s930_s13 }
  0x96   : > { %s13082_s4 = scalar_lea.hbm %s16044_s16, %s10031_s24  ;;  %s11966_s25 = scalar_lea.hbm %s16044_s16, 16384 }
  0x97   : > { %s11961_s30 = scalar_lea.hbm %s13082_s4, 8192  ;;  %p11967_p11 = scmp.lt.u32.totalorder %s13082_s4, %s16044_s16 }
  0x98   : > { %p11962_p0 = scmp.ne.s32.totalorder %s13082_s4, %s11961_s30  ;;  %p11968_p12 = scmp.lt.u32.totalorder %s11966_s25, %s11961_s30 }
  0x99   : > { %p11970_p1 = scmp.lt.u32.totalorder %s11961_s30, %s13082_s4 }
  0x9a   : > { %p11964_p13 = pnand %p11962_p0, %p13034_p4  ;;  %p11969_p2 = por %p11968_p12, %p11967_p11 }
  0x9c   : > { %p11965_p10 = pneg %p11964_p13  ;;  %p11971_p6 = por %p11970_p1, %p11969_p2 }
  0x9e   : > { %p11972_p8 = pnand %p11971_p6, %p11965_p10 }
  0xa0   : > { %11975 = shalt.err (!%p11972_p8)
}
  0xa1   : > { %s11976_s7 = scalar_lea.vmem %s13084_s13, 8192  ;;  %s12746_s12 = smov [#allocation30]  }
  0xa2   : > { %p11977_p5 = scmp.ne.s32.totalorder %s13084_s13, %s11976_s7  ;;  %s11981_s11 = sshll.u32 %s12746_s12, 4  ;;  %s11982_s11 = int_to_ptr.vmem [resolvable:$false] %s11981_s11 }
  0xa3   : > { %s11983_s24 = scalar_lea.vmem %s11982_s11, 16384  ;;  %p11984_p0 = scmp.lt.s32.totalorder %s13084_s13, %s11982_s11 }
  0xa4   : > { %p11979_p7 = pnand %p11977_p5, %p13034_p4  ;;  %p11985_p13 = scmp.lt.s32.totalorder %s11983_s24, %s11976_s7 }
  0xa6   : > { %p11980_p3 = pneg %p11979_p7  ;;  %p11986_p11 = por %p11985_p13, %p11984_p0 }
  0xa8   : > { %p11987_p12 = pnand %p11986_p11, %p11980_p3 }
  0xaa   : > { %11990 = shalt.err (!%p11987_p12)
}
  0xab   : > { %s15929_s29 = smov 128   ;;  %s15931_s2 = smov 8  }
  0xac   : > { %10536 = dma.hbm_to_vmem [thread:$0]  (!%p16043_p9), %s13082_s4, 8192, %s13084_s13, %s13028_s0, %s15929_s29, %s15929_s29, %s15931_s2  }
  0xad   : > { %s13115_s5 = sshll.u32 %s12733_s8, 5  ;;  %s16045_s17 = sld [smem:[#allocation106_spill]] }
  0xae   : > { %s944_s25 = scalar_lea.vmem [#allocation31], %s13087_s27 }
  0xaf   : > { %s952_s10 = sshll.u32 %s944_s25, 4  ;;  %s953_s10 = int_to_ptr.vmem [resolvable:$true] %s952_s10 }
  0xb3   : > { %s13121_s26 = scalar_lea.hbm %s16045_s17, %s13115_s5  ;;  %s11996_s7 = scalar_lea.hbm %s16045_s17, 64 }
  0xb4   : > { %s11991_s1 = scalar_lea.hbm %s13121_s26, 32  ;;  %p11997_p6 = scmp.lt.u32.totalorder %s13121_s26, %s16045_s17 }
  0xb5   : > { %p11992_p10 = scmp.ne.s32.totalorder %s13121_s26, %s11991_s1  ;;  %p11998_p8 = scmp.lt.u32.totalorder %s11996_s7, %s11991_s1 }
  0xb6   : > { %p12000_p7 = scmp.lt.u32.totalorder %s11991_s1, %s13121_s26 }
  0xb7   : > { %p11994_p2 = pnand %p11992_p10, %p13034_p4  ;;  %p11999_p5 = por %p11998_p8, %p11997_p6 }
  0xb9   : > { %p11995_p1 = pneg %p11994_p2  ;;  %p12001_p3 = por %p12000_p7, %p11999_p5 }
  0xbb   : > { %p12002_p0 = pnand %p12001_p3, %p11995_p1 }
  0xbd   : > { %12005 = shalt.err (!%p12002_p0)
}
  0xbe   : > { %s12006_s24 = scalar_lea.vmem %s953_s10, 32  ;;  %s12749_s30 = smov [#allocation31]  }
  0xbf   : > { %p12007_p13 = scmp.ne.s32.totalorder %s953_s10, %s12006_s24  ;;  %s12011_s14 = sshll.u32 %s12749_s30, 4  ;;  %s12012_s14 = int_to_ptr.vmem [resolvable:$false] %s12011_s14 }
  0xc0   : > { %s12013_s25 = scalar_lea.vmem %s12012_s14, 64  ;;  %p12014_p10 = scmp.lt.s32.totalorder %s953_s10, %s12012_s14 }
  0xc1   : > { %p12009_p11 = pnand %p12007_p13, %p13034_p4  ;;  %p12015_p2 = scmp.lt.s32.totalorder %s12013_s25, %s12006_s24 }
  0xc3   : > { %p12010_p12 = pneg %p12009_p11  ;;  %p12016_p9 = por %p12015_p2, %p12014_p10 }
  0xc5   : > { %p12017_p6 = pnand %p12016_p9, %p12010_p12 }
  0xc7   : > { %12020 = shalt.err (!%p12017_p6)
}
  0xc8   : > { %p16046_p8 = scmp.ne.s32.totalorder %s16039_s6, 0  ;;  %s16047_s18 = sld [smem:[#allocation107_spill]] }
  0xc9   : > { %s963_s7 = scalar_lea.vmem [#allocation32], %s13087_s27 }
  0xca   : > { %10539 = dma.hbm_to_vmem [thread:$0]  (!%p16046_p8), %s13121_s26, 32, %s953_s10, %s13028_s0  }
  0xcb   : > { %s971_s12 = sshll.u32 %s963_s7, 4  ;;  %s972_s12 = int_to_ptr.vmem [resolvable:$true] %s971_s12 }
  0xce   : > { %s13146_s13 = scalar_lea.hbm %s16047_s18, %s13115_s5  ;;  %s12026_s26 = scalar_lea.hbm %s16047_s18, 64 }
  0xcf   : > { %s12021_s11 = scalar_lea.hbm %s13146_s13, 32  ;;  %p12027_p7 = scmp.lt.u32.totalorder %s13146_s13, %s16047_s18 }
  0xd0   : > { %p12022_p9 = scmp.ne.s32.totalorder %s13146_s13, %s12021_s11  ;;  %p12028_p3 = scmp.lt.u32.totalorder %s12026_s26, %s12021_s11 }
  0xd1   : > { %p12030_p13 = scmp.lt.u32.totalorder %s12021_s11, %s13146_s13 }
  0xd2   : > { %p12024_p1 = pnand %p12022_p9, %p13034_p4  ;;  %p12029_p0 = por %p12028_p3, %p12027_p7 }
  0xd4   : > { %p12025_p5 = pneg %p12024_p1  ;;  %p12031_p11 = por %p12030_p13, %p12029_p0 }
  0xd6   : > { %p12032_p12 = pnand %p12031_p11, %p12025_p5 }
  0xd8   : > { %12035 = shalt.err (!%p12032_p12)
}
  0xd9   : > { %s12036_s25 = scalar_lea.vmem %s972_s12, 32  ;;  %s12750_s1 = smov [#allocation32]  }
  0xda   : > { %p12037_p10 = scmp.ne.s32.totalorder %s972_s12, %s12036_s25  ;;  %s12041_s4 = sshll.u32 %s12750_s1, 4  ;;  %s12042_s4 = int_to_ptr.vmem [resolvable:$false] %s12041_s4 }
  0xdb   : > { %s12043_s7 = scalar_lea.vmem %s12042_s4, 64  ;;  %p12044_p9 = scmp.lt.s32.totalorder %s972_s12, %s12042_s4 }
  0xdc   : > { %p12039_p2 = pnand %p12037_p10, %p13034_p4  ;;  %p12045_p1 = scmp.lt.s32.totalorder %s12043_s7, %s12036_s25 }
  0xde   : > { %p12040_p6 = pneg %p12039_p2  ;;  %p12046_p8 = por %p12045_p1, %p12044_p9 }
  0xe0   : > { %p12047_p3 = pnand %p12046_p8, %p12040_p6 }
  0xe2   : > { %12050 = shalt.err (!%p12047_p3)
}
  0xe3   : > { %p16048_p7 = scmp.ne.s32.totalorder %s16039_s6, 0  ;;  %s16049_s19 = sld [smem:[#allocation108_spill]] }
  0xe4   : > { %s982_s26 = scalar_lea.vmem [#allocation33], %s13087_s27 }
  0xe5   : > { %10542 = dma.hbm_to_vmem [thread:$0]  (!%p16048_p7), %s13146_s13, 32, %s972_s12, %s13028_s0  }
  0xe6   : > { %s990_s10 = sshll.u32 %s982_s26, 4  ;;  %s991_s10 = int_to_ptr.vmem [resolvable:$true] %s990_s10 }
  0xe9   : > { %s13171_s30 = scalar_lea.hbm %s16049_s19, %s13115_s5  ;;  %s12056_s13 = scalar_lea.hbm %s16049_s19, 64 }
  0xea   : > { %s12051_s14 = scalar_lea.hbm %s13171_s30, 32  ;;  %p12057_p13 = scmp.lt.u32.totalorder %s13171_s30, %s16049_s19 }
  0xeb   : > { %p12052_p8 = scmp.ne.s32.totalorder %s13171_s30, %s12051_s14  ;;  %p12058_p11 = scmp.lt.u32.totalorder %s12056_s13, %s12051_s14 }
  0xec   : > { %p12060_p10 = scmp.lt.u32.totalorder %s12051_s14, %s13171_s30 }
  0xed   : > { %p12054_p5 = pnand %p12052_p8, %p13034_p4  ;;  %p12059_p12 = por %p12058_p11, %p12057_p13 }
  0xef   : > { %p12055_p0 = pneg %p12054_p5  ;;  %p12061_p2 = por %p12060_p10, %p12059_p12 }
  0xf1   : > { %p12062_p6 = pnand %p12061_p2, %p12055_p0 }
  0xf3   : > { %12065 = shalt.err (!%p12062_p6)
}
  0xf4   : > { %s12066_s7 = scalar_lea.vmem %s991_s10, 32  ;;  %s12751_s11 = smov [#allocation33]  }
  0xf5   : > { %p12067_p9 = scmp.ne.s32.totalorder %s991_s10, %s12066_s7  ;;  %s12071_s24 = sshll.u32 %s12751_s11, 4  ;;  %s12072_s24 = int_to_ptr.vmem [resolvable:$false] %s12071_s24 }
  0xf6   : > { %s12073_s26 = scalar_lea.vmem %s12072_s24, 64  ;;  %p12074_p8 = scmp.lt.s32.totalorder %s991_s10, %s12072_s24 }
  0xf7   : > { %p12069_p1 = pnand %p12067_p9, %p13034_p4  ;;  %p12075_p5 = scmp.lt.s32.totalorder %s12073_s26, %s12066_s7 }
  0xf9   : > { %p12070_p3 = pneg %p12069_p1  ;;  %p12076_p7 = por %p12075_p5, %p12074_p8 }
  0xfb   : > { %p12077_p11 = pnand %p12076_p7, %p12070_p3 }
  0xfd   : > { %12080 = shalt.err (!%p12077_p11)
}
  0xfe   : > { %p16050_p13 = scmp.ne.s32.totalorder %s16039_s6, 0  ;;  %s16051_s20 = sld [smem:[#allocation109_spill]] }
  0xff   : > { %s1001_s13 = scalar_lea.vmem [#allocation34], %s13087_s27 }
 0x100   : > { %10545 = dma.hbm_to_vmem [thread:$0]  (!%p16050_p13), %s13171_s30, 32, %s991_s10, %s13028_s0  }
 0x101   : > { %s1009_s12 = sshll.u32 %s1001_s13, 4  ;;  %s1010_s12 = int_to_ptr.vmem [resolvable:$true] %s1009_s12 }
 0x104   : > { %s13196_s1 = scalar_lea.hbm %s16051_s20, %s13115_s5  ;;  %s12086_s30 = scalar_lea.hbm %s16051_s20, 64 }
 0x105   : > { %s12081_s4 = scalar_lea.hbm %s13196_s1, 32  ;;  %p12087_p10 = scmp.lt.u32.totalorder %s13196_s1, %s16051_s20 }
 0x106   : > { %p12082_p7 = scmp.ne.s32.totalorder %s13196_s1, %s12081_s4  ;;  %p12088_p2 = scmp.lt.u32.totalorder %s12086_s30, %s12081_s4 }
 0x107   : > { %p12090_p9 = scmp.lt.u32.totalorder %s12081_s4, %s13196_s1 }
 0x108   : > { %p12084_p0 = pnand %p12082_p7, %p13034_p4  ;;  %p12089_p6 = por %p12088_p2, %p12087_p10 }
 0x10a   : > { %p12085_p12 = pneg %p12084_p0  ;;  %p12091_p1 = por %p12090_p9, %p12089_p6 }
 0x10c   : > { %p12092_p3 = pnand %p12091_p1, %p12085_p12 }
 0x10e   : > { %12095 = shalt.err (!%p12092_p3)
}
 0x10f   : > { %s12096_s26 = scalar_lea.vmem %s1010_s12, 32  ;;  %s12752_s14 = smov [#allocation34]  }
 0x110   : > { %p12097_p8 = scmp.ne.s32.totalorder %s1010_s12, %s12096_s26  ;;  %s12101_s25 = sshll.u32 %s12752_s14, 4  ;;  %s12102_s25 = int_to_ptr.vmem [resolvable:$false] %s12101_s25 }
 0x111   : > { %s12103_s13 = scalar_lea.vmem %s12102_s25, 64  ;;  %p12104_p7 = scmp.lt.s32.totalorder %s1010_s12, %s12102_s25 }
 0x112   : > { %p12099_p5 = pnand %p12097_p8, %p13034_p4  ;;  %p12105_p0 = scmp.lt.s32.totalorder %s12103_s13, %s12096_s26 }
 0x114   : > { %p12100_p11 = pneg %p12099_p5  ;;  %p12106_p13 = por %p12105_p0, %p12104_p7 }
 0x116   : > { %p12107_p2 = pnand %p12106_p13, %p12100_p11 }
 0x118   : > { %12110 = shalt.err (!%p12107_p2)
}
 0x119   : > { %p16052_p10 = scmp.ne.s32.totalorder %s16039_s6, 0  ;;  %s16053_s21 = sld [smem:[#allocation110_spill]] }
 0x11a   : > { %s1020_s30 = scalar_lea.vmem [#allocation35], %s13087_s27  ;;  %s15927_s24 = smul.u32 896, %s13009_s28 }
 0x11b   : > { %10548 = dma.hbm_to_vmem [thread:$0]  (!%p16052_p10), %s13196_s1, 32, %s1010_s12, %s13028_s0  }
 0x11c   : > { %s1028_s10 = sshll.u32 %s1020_s30, 4  ;;  %s1029_s10 = int_to_ptr.vmem [resolvable:$true] %s1028_s10 }
 0x11f   : > { %s13221_s11 = scalar_lea.hbm %s16053_s21, %s13115_s5  ;;  %s12116_s12 = scalar_lea.hbm %s16053_s21, 64 }
 0x120   : > { %s12111_s26 = scalar_lea.hbm %s13221_s11, 32  ;;  %p12117_p9 = scmp.lt.u32.totalorder %s13221_s11, %s16053_s21 }
 0x121   : > { %p12112_p13 = scmp.ne.s32.totalorder %s13221_s11, %s12111_s26  ;;  %p12118_p1 = scmp.lt.u32.totalorder %s12116_s12, %s12111_s26 }
 0x122   : > { %p12120_p8 = scmp.lt.u32.totalorder %s12111_s26, %s13221_s11 }
 0x123   : > { %p12114_p12 = pnand %p12112_p13, %p13034_p4  ;;  %p12119_p3 = por %p12118_p1, %p12117_p9 }
 0x125   : > { %p12115_p6 = pneg %p12114_p12  ;;  %p12121_p5 = por %p12120_p8, %p12119_p3 }
 0x127   : > { %p12122_p11 = pnand %p12121_p5, %p12115_p6 }
 0x129   : > { %12125 = shalt.err (!%p12122_p11)
}
 0x12a   : > { %s12126_s4 = scalar_lea.vmem %s1029_s10, 32  ;;  %s12753_s7 = smov [#allocation35]  }
 0x12b   : > { %p12127_p7 = scmp.ne.s32.totalorder %s1029_s10, %s12126_s4  ;;  %s12131_s30 = sshll.u32 %s12753_s7, 4  ;;  %s12132_s30 = int_to_ptr.vmem [resolvable:$false] %s12131_s30 }
 0x12c   : > { %s12133_s14 = scalar_lea.vmem %s12132_s30, 64  ;;  %p12134_p13 = scmp.lt.s32.totalorder %s1029_s10, %s12132_s30 }
 0x12d   : > { %p12129_p0 = pnand %p12127_p7, %p13034_p4  ;;  %p12135_p12 = scmp.lt.s32.totalorder %s12133_s14, %s12126_s4 }
 0x12f   : > { %p12130_p2 = pneg %p12129_p0  ;;  %p12136_p10 = por %p12135_p12, %p12134_p13 }
 0x131   : > { %p12137_p1 = pnand %p12136_p10, %p12130_p2 }
 0x133   : > { %12140 = shalt.err (!%p12137_p1)
}
 0x134   : > { %p16054_p9 = scmp.ne.s32.totalorder %s16039_s6, 0  ;;  %s15928_s26 = smul.u32 14336, %s12733_s8 }
 0x135   : > { %s1039_s1 = scalar_lea.vmem [#allocation36], %s15927_s24  ;;  %s16055_s22 = sld [smem:[#allocation111_spill]] }
 0x136   : > { %10551 = dma.hbm_to_vmem [thread:$0]  (!%p16054_p9), %s13221_s11, 32, %s1029_s10, %s13028_s0  }
 0x137   : > { %s1046_s12 = sshll.u32 %s1039_s1, 4  ;;  %s10392_s7 = smul.u32 7, %s13009_s28  ;;  %s13253_s12 = int_to_ptr.vmem [resolvable:$true] %s1046_s12 }
 0x13b   : > { %s13251_s4 = scalar_lea.hbm %s16055_s22, %s15928_s26  ;;  %s12146_s14 = scalar_lea.hbm %s16055_s22, 28672 }
 0x13c   : > { %s12141_s30 = scalar_lea.hbm %s13251_s4, 14336  ;;  %p12147_p8 = scmp.lt.u32.totalorder %s13251_s4, %s16055_s22 }
 0x13d   : > { %p12142_p10 = scmp.ne.s32.totalorder %s13251_s4, %s12141_s30  ;;  %p12148_p5 = scmp.lt.u32.totalorder %s12146_s14, %s12141_s30 }
 0x13e   : > { %p12150_p7 = scmp.lt.u32.totalorder %s12141_s30, %s13251_s4 }
 0x13f   : > { %p12144_p6 = pnand %p12142_p10, %p13034_p4  ;;  %p12149_p11 = por %p12148_p5, %p12147_p8 }
 0x141   : > { %p12145_p3 = pneg %p12144_p6  ;;  %p12151_p0 = por %p12150_p7, %p12149_p11 }
 0x143   : > { %p12152_p2 = pnand %p12151_p0, %p12145_p3 }
 0x145   : > { %12155 = shalt.err (!%p12152_p2)
}
 0x146   : > { %s12156_s13 = scalar_lea.vmem %s13253_s12, 14336  ;;  %s12754_s11 = smov [#allocation36]  }
 0x147   : > { %p12157_p13 = scmp.ne.s32.totalorder %s13253_s12, %s12156_s13  ;;  %s12161_s10 = sshll.u32 %s12754_s11, 4  ;;  %s12162_s10 = int_to_ptr.vmem [resolvable:$false] %s12161_s10 }
 0x148   : > { %s12163_s1 = scalar_lea.vmem %s12162_s10, 28672  ;;  %p12164_p10 = scmp.lt.s32.totalorder %s13253_s12, %s12162_s10 }
 0x149   : > { %p12159_p12 = pnand %p12157_p13, %p13034_p4  ;;  %p12165_p6 = scmp.lt.s32.totalorder %s12163_s1, %s12156_s13 }
 0x14b   : > { %p12160_p1 = pneg %p12159_p12  ;;  %p12166_p8 = por %p12165_p6, %p12164_p10 }
 0x14d   : > { %p12167_p5 = pnand %p12166_p8, %p12160_p1 }
 0x14f   : > { %12170 = shalt.err (!%p12167_p5)
}
 0x150   : > { %s12755_s30 = smov 448   ;;  %s12756_s14 = smov 28  }
 0x151   : > { %10554 = dma.hbm_to_vmem [thread:$0]  (!%p16054_p9), %s13251_s4, 14336, %s13253_s12, %s13028_s0, %s12755_s30, %s12755_s30, %s12756_s14  }
 0x152   : > { %s10393_s25 = smul.u32 112, %s12733_s8  ;;  %s1060_s11 = scalar_lea.vmem [#allocation37], %s10392_s7 }
 0x153   : > { %s1068_s24 = sshll.u32 %s1060_s11, 4  ;;  %s12176_s15 = scalar_lea.hbm %s15879_s23, 224  ;;  %s1069_s24 = int_to_ptr.vmem [resolvable:$true] %s1068_s24 }
 0x154   : > { %s1066_s1 = scalar_lea.hbm %s15879_s23, %s10393_s25 }
 0x155   : > { %s12171_s26 = scalar_lea.hbm %s1066_s1, 112  ;;  %p12177_p0 = scmp.lt.u32.totalorder %s1066_s1, %s15879_s23 }
 0x156   : > { %p12172_p3 = scmp.ne.s32.totalorder %s1066_s1, %s12171_s26  ;;  %p12178_p2 = scmp.lt.u32.totalorder %s12176_s15, %s12171_s26 }
 0x157   : > { %p12180_p12 = scmp.lt.u32.totalorder %s12171_s26, %s1066_s1 }
 0x158   : > { %p12174_p11 = pnand %p12172_p3, %p13034_p4  ;;  %p12179_p13 = por %p12178_p2, %p12177_p0 }
 0x15a   : > { %p12175_p7 = pneg %p12174_p11  ;;  %p12181_p1 = por %p12180_p12, %p12179_p13 }
 0x15c   : > { %p12182_p10 = pnand %p12181_p1, %p12175_p7 }
 0x15e   : > { %12185 = shalt.err (!%p12182_p10)
}
 0x15f   : > { %s12186_s4 = scalar_lea.vmem %s1069_s24, 112  ;;  %s12757_s7 = smov [#allocation37]  }
 0x160   : > { %p12187_p6 = scmp.ne.s32.totalorder %s1069_s24, %s12186_s4  ;;  %s12191_s30 = sshll.u32 %s12757_s7, 4  ;;  %s12192_s30 = int_to_ptr.vmem [resolvable:$false] %s12191_s30 }
 0x161   : > { %s12193_s29 = scalar_lea.vmem %s12192_s30, 224  ;;  %p12194_p3 = scmp.lt.s32.totalorder %s1069_s24, %s12192_s30 }
 0x162   : > { %p12189_p8 = pnand %p12187_p6, %p13034_p4  ;;  %p12195_p11 = scmp.lt.s32.totalorder %s12193_s29, %s12186_s4 }
 0x164   : > { %p12190_p5 = pneg %p12189_p8  ;;  %p12196_p9 = por %p12195_p11, %p12194_p3 }
 0x166   : > { %p12197_p0 = pnand %p12196_p9, %p12190_p5 }
 0x168   : > { %12200 = shalt.err (!%p12197_p0)
}
 0x169   : > { %p16056_p2 = scmp.ne.s32.totalorder %s16039_s6, 0  ;;  %s12758_s15 = smov [#allocation8]  }
 0x16a   : > { %s727_s16 = sshll.u32 %s12758_s15, 4  ;;  %s12759_s2 = smov [#allocation11]   ;;  %s728_s16 = int_to_ptr.vmem [resolvable:$true] %s727_s16 }
 0x16b   : > { %10557 = dma.hbm_to_vmem [thread:$0]  (!%p16056_p2), %s1066_s1, 112, %s1069_s24, %s13028_s0  }
 0x16c   : > { %s752_s26 = sshll.u32 %s12759_s2, 4  ;;  %s16057_s11 = sld [smem:[#allocation90_spill]]  ;;  %s753_s26 = int_to_ptr.vmem [resolvable:$true] %s752_s26 }
 0x16d   : > { %p16058_p9 = scmp.ne.s32.totalorder %s16033_s9, 0 }
 0x172   : > { %s12201_s10 = scalar_lea.hbm %s16057_s11, 1024 }
 0x173   : > { %p12202_p7 = scmp.ne.s32.totalorder %s16057_s11, %s12201_s10  ;;  %p12208_p1 = scmp.lt.u32.totalorder %s12201_s10, %s16057_s11 }
 0x175   : > { %p12204_p13 = pnand %p12202_p7, %p16058_p9 }
 0x177   : > { %p12205_p12 = pneg %p12204_p13 }
 0x179   : > { %p12210_p10 = pnand %p12208_p1, %p12205_p12 }
 0x17b   : > { %12213 = shalt.err (!%p12210_p10)
}
 0x17c   : > { %s12214_s24 = scalar_lea.vmem %s728_s16, 1024  ;;  %p12222_p3 = scmp.lt.s32.totalorder %s728_s16, %s728_s16 }
 0x17d   : > { %p12215_p6 = scmp.ne.s32.totalorder %s728_s16, %s12214_s24  ;;  %p12223_p11 = scmp.lt.s32.totalorder %s12214_s24, %s12214_s24 }
 0x17f   : > { %p12217_p8 = pnand %p12215_p6, %p16058_p9  ;;  %p12224_p0 = por %p12223_p11, %p12222_p3 }
 0x181   : > { %p12218_p5 = pneg %p12217_p8 }
 0x183   : > { %p12225_p2 = pnand %p12224_p0, %p12218_p5 }
 0x185   : > { %12228 = shalt.err (!%p12225_p2)
}
 0x186   : > { %s16059_s1 = sld [smem:[#allocation57_spill]]  ;;  %s16061_s30 = smov 4  }
 0x187   : > { %s16062_s29 = smov 64   ;;  %s16063_s10 = sld [smem:[#allocation92_spill]] }
 0x18c   : > { %p16060_p7 = scmp.ne.s32.totalorder %s16059_s1, 0 }
 0x18d   : > { %s12229_s13 = scalar_lea.hbm %s16063_s10, 16 }
 0x18e   : > { %10490 = dma.hbm_to_vmem [thread:$0]  (!%p16060_p7), %s16057_s11, 1024, %s728_s16, [#allocation9], %s16062_s29, %s16062_s29, %s16061_s30  }
 0x18f   : > { %p12230_p13 = scmp.ne.s32.totalorder %s16063_s10, %s12229_s13  ;;  %p12236_p1 = scmp.lt.u32.totalorder %s12229_s13, %s16063_s10 }
 0x191   : > { %p12232_p2 = pnand %p12230_p13, %p16058_p9 }
 0x193   : > { %p12233_p12 = pneg %p12232_p2 }
 0x195   : > { %p12238_p10 = pnand %p12236_p1, %p12233_p12 }
 0x197   : > { %12241 = shalt.err (!%p12238_p10)
}
 0x198   : > { %s12242_s15 = scalar_lea.vmem %s753_s26, 16  ;;  %s12249_s16 = scalar_lea.vmem %s753_s26, 32 }
 0x199   : > { %p12243_p6 = scmp.ne.s32.totalorder %s753_s26, %s12242_s15  ;;  %p12250_p3 = scmp.lt.s32.totalorder %s753_s26, %s753_s26 }
 0x19a   : > { %p12251_p11 = scmp.lt.s32.totalorder %s12249_s16, %s12242_s15 }
 0x19b   : > { %p12245_p8 = pnand %p12243_p6, %p16058_p9 }
 0x19c   : > { %p12252_p0 = por %p12251_p11, %p12250_p3 }
 0x19d   : > { %p12246_p5 = pneg %p12245_p8 }
 0x19f   : > { %p12253_p4 = pnand %p12252_p0, %p12246_p5 }
 0x1a1   : > { %12256 = shalt.err (!%p12253_p4)
}
 0x1a2   : > { %10496 = dma.hbm_to_vmem [thread:$0]  (!%p16060_p7), %s16063_s10, 16, %s753_s26, [#allocation12]  }
 0x1a3   : > { %s12760_s25 = smov [#allocation14]   ;;  %s12761_s12 = smov [#allocation17]  }
 0x1a4   : > { %s773_s13 = sshll.u32 %s12760_s25, 4  ;;  %s798_s4 = sshll.u32 %s12761_s12, 4  ;;  %s774_s13 = int_to_ptr.vmem [resolvable:$true] %s773_s13  ;;  %s799_s4 = int_to_ptr.vmem [resolvable:$true] %s798_s4 }
 0x1a5   : > { %s16064_s11 = sld [smem:[#allocation94_spill]] }
 0x1ab   : > { %s12257_s17 = scalar_lea.hbm %s16064_s11, 2048 }
 0x1ac   : > { %p12258_p4 = scmp.ne.s32.totalorder %s16064_s11, %s12257_s17  ;;  %p12264_p12 = scmp.lt.u32.totalorder %s12257_s17, %s16064_s11 }
 0x1ae   : > { %p12260_p13 = pnand %p12258_p4, %p16058_p9 }
 0x1b0   : > { %p12261_p2 = pneg %p12260_p13 }
 0x1b2   : > { %p12266_p1 = pnand %p12264_p12, %p12261_p2 }
 0x1b4   : > { %12269 = shalt.err (!%p12266_p1)
}
 0x1b5   : > { %s12270_s26 = scalar_lea.vmem %s774_s13, 2048  ;;  %p12278_p5 = scmp.lt.s32.totalorder %s774_s13, %s774_s13 }
 0x1b6   : > { %p12271_p10 = scmp.ne.s32.totalorder %s774_s13, %s12270_s26  ;;  %p12279_p3 = scmp.lt.s32.totalorder %s12270_s26, %s12270_s26 }
 0x1b8   : > { %p12273_p6 = pnand %p12271_p10, %p16058_p9  ;;  %p12280_p11 = por %p12279_p3, %p12278_p5 }
 0x1ba   : > { %p12274_p8 = pneg %p12273_p6 }
 0x1bc   : > { %p12281_p0 = pnand %p12280_p11, %p12274_p8 }
 0x1be   : > { %12284 = shalt.err (!%p12281_p0)
}
 0x1bf   : > { %s16065_s14 = smov 8   ;;  %s16066_s25 = smov 128  }
 0x1c0   : > { %10502 = dma.hbm_to_vmem [thread:$0]  (!%p16060_p7), %s16064_s11, 2048, %s774_s13, [#allocation15], %s16066_s25, %s16066_s25, %s16065_s14  }
 0x1c1   : > { %s16067_s24 = sld [smem:[#allocation96_spill]] }
 0x1c7   : > { %s12285_s15 = scalar_lea.hbm %s16067_s24, 32 }
 0x1c8   : > { %p12286_p4 = scmp.ne.s32.totalorder %s16067_s24, %s12285_s15  ;;  %p12292_p12 = scmp.lt.u32.totalorder %s12285_s15, %s16067_s24 }
 0x1ca   : > { %p12288_p13 = pnand %p12286_p4, %p16058_p9 }
 0x1cc   : > { %p12289_p2 = pneg %p12288_p13 }
 0x1ce   : > { %p12294_p1 = pnand %p12292_p12, %p12289_p2 }
 0x1d0   : > { %12297 = shalt.err (!%p12294_p1)
}
 0x1d1   : > { %s12298_s18 = scalar_lea.vmem %s799_s4, 32  ;;  %p12306_p5 = scmp.lt.s32.totalorder %s799_s4, %s799_s4 }
 0x1d2   : > { %p12299_p10 = scmp.ne.s32.totalorder %s799_s4, %s12298_s18  ;;  %p12307_p3 = scmp.lt.s32.totalorder %s12298_s18, %s12298_s18 }
 0x1d4   : > { %p12301_p6 = pnand %p12299_p10, %p16058_p9  ;;  %p12308_p11 = por %p12307_p3, %p12306_p5 }
 0x1d6   : > { %p12302_p8 = pneg %p12301_p6 }
 0x1d8   : > { %p12309_p0 = pnand %p12308_p11, %p12302_p8 }
 0x1da   : > { %12312 = shalt.err (!%p12309_p0)
}
 0x1db   : > { %10508 = dma.hbm_to_vmem [thread:$0]  (!%p16060_p7), %s16067_s24, 32, %s799_s4, [#allocation18]  }
 0x1dc   : > { %s12762_s10 = smov [#allocation20]   ;;  %s12763_s7 = smov [#allocation23]  }
 0x1dd   : > { %s822_s12 = sshll.u32 %s12762_s10, 4  ;;  %s844_s15 = sshll.u32 %s12763_s7, 4  ;;  %s823_s12 = int_to_ptr.vmem [resolvable:$true] %s822_s12  ;;  %s845_s15 = int_to_ptr.vmem [resolvable:$true] %s844_s15 }
 0x1de   : > { %s16068_s26 = sld [smem:[#allocation98_spill]] }
 0x1e4   : > { %s12313_s11 = scalar_lea.hbm %s16068_s26, 32 }
 0x1e5   : > { %p12314_p4 = scmp.ne.s32.totalorder %s16068_s26, %s12313_s11  ;;  %p12320_p12 = scmp.lt.u32.totalorder %s12313_s11, %s16068_s26 }
 0x1e7   : > { %p12316_p13 = pnand %p12314_p4, %p16058_p9 }
 0x1e9   : > { %p12317_p2 = pneg %p12316_p13 }
 0x1eb   : > { %p12322_p1 = pnand %p12320_p12, %p12317_p2 }
 0x1ed   : > { %12325 = shalt.err (!%p12322_p1)
}
 0x1ee   : > { %s12326_s4 = scalar_lea.vmem %s823_s12, 32  ;;  %p12334_p5 = scmp.lt.s32.totalorder %s823_s12, %s823_s12 }
 0x1ef   : > { %p12327_p10 = scmp.ne.s32.totalorder %s823_s12, %s12326_s4  ;;  %p12335_p3 = scmp.lt.s32.totalorder %s12326_s4, %s12326_s4 }
 0x1f1   : > { %p12329_p6 = pnand %p12327_p10, %p16058_p9  ;;  %p12336_p11 = por %p12335_p3, %p12334_p5 }
 0x1f3   : > { %p12330_p8 = pneg %p12329_p6 }
 0x1f5   : > { %p12337_p0 = pnand %p12336_p11, %p12330_p8 }
 0x1f7   : > { %12340 = shalt.err (!%p12337_p0)
}
 0x1f8   : > { %10514 = dma.hbm_to_vmem [thread:$0]  (!%p16060_p7), %s16068_s26, 32, %s823_s12, [#allocation21]  }
 0x1f9   : > { %s16069_s10 = sld [smem:[#allocation100_spill]] }
 0x1ff   : > { %s12341_s7 = scalar_lea.hbm %s16069_s10, 32 }
 0x200   : > { %p12342_p4 = scmp.ne.s32.totalorder %s16069_s10, %s12341_s7  ;;  %p12348_p12 = scmp.lt.u32.totalorder %s12341_s7, %s16069_s10 }
 0x202   : > { %p12344_p13 = pnand %p12342_p4, %p16058_p9 }
 0x204   : > { %p12345_p2 = pneg %p12344_p13 }
 0x206   : > { %p12350_p1 = pnand %p12348_p12, %p12345_p2 }
 0x208   : > { %12353 = shalt.err (!%p12350_p1)
}
 0x209   : > { %s12354_s4 = scalar_lea.vmem %s845_s15, 32  ;;  %p12362_p5 = scmp.lt.s32.totalorder %s845_s15, %s845_s15 }
 0x20a   : > { %p12355_p10 = scmp.ne.s32.totalorder %s845_s15, %s12354_s4  ;;  %p12363_p3 = scmp.lt.s32.totalorder %s12354_s4, %s12354_s4 }
 0x20c   : > { %p12357_p6 = pnand %p12355_p10, %p16058_p9  ;;  %p12364_p11 = por %p12363_p3, %p12362_p5 }
 0x20e   : > { %p12358_p8 = pneg %p12357_p6 }
 0x210   : > { %p12365_p0 = pnand %p12364_p11, %p12358_p8 }
 0x212   : > { %12368 = shalt.err (!%p12365_p0)
}
 0x213   : > { %10520 = dma.hbm_to_vmem [thread:$0]  (!%p16060_p7), %s16069_s10, 32, %s845_s15, [#allocation24]  }
 0x214   : > { %s16070_s17 = smul.u32 14336, %s12733_s8  ;;  %s16071_s7 = sld [smem:[#allocation112_spill]] }
 0x215   : > { %s16073_s18 = smul.u32 896, %s13009_s28  ;;  %p16074_p13 = scmp.ne.s32.totalorder %s16041_s3, 0 }
 0x217   : > { %s1079_s13 = scalar_lea.vmem [#allocation38], %s16073_s18 }
 0x218   : > { %s1086_s4 = sshll.u32 %s1079_s13, 4  ;;  %s13420_s4 = int_to_ptr.vmem [resolvable:$true] %s1086_s4 }
 0x21a   : > { %s16072_s16 = smov %s16071_s7  ;;  %s13416_s2 = scalar_lea.hbm %s16071_s7, %s16070_s17 }
 0x21b   : > { %s12369_s12 = scalar_lea.hbm %s13416_s2, 14336  ;;  %s12374_s20 = scalar_lea.hbm %s16072_s16, 28672 }
 0x21c   : > { %p12370_p4 = scmp.ne.s32.totalorder %s13416_s2, %s12369_s12  ;;  %p12375_p1 = scmp.lt.u32.totalorder %s13416_s2, %s16072_s16 }
 0x21d   : > { %p12376_p10 = scmp.lt.u32.totalorder %s12374_s20, %s12369_s12  ;;  %p12378_p8 = scmp.lt.u32.totalorder %s12369_s12, %s13416_s2 }
 0x21e   : > { %p12372_p2 = pnand %p12370_p4, %p16074_p13 }
 0x21f   : > { %p12377_p6 = por %p12376_p10, %p12375_p1 }
 0x220   : > { %p12373_p12 = pneg %p12372_p2 }
 0x221   : > { %p12379_p5 = por %p12378_p8, %p12377_p6 }
 0x223   : > { %p12380_p3 = pnand %p12379_p5, %p12373_p12 }
 0x225   : > { %12383 = shalt.err (!%p12380_p3)
}
 0x226   : > { %s12384_s28 = scalar_lea.vmem %s13420_s4, 14336  ;;  %s12764_s7 = smov [#allocation38]  }
 0x227   : > { %p12385_p11 = scmp.ne.s32.totalorder %s13420_s4, %s12384_s28  ;;  %s12389_s18 = sshll.u32 %s12764_s7, 4  ;;  %s12390_s18 = int_to_ptr.vmem [resolvable:$false] %s12389_s18 }
 0x228   : > { %s12391_s13 = scalar_lea.vmem %s12390_s18, 28672  ;;  %p12392_p2 = scmp.lt.s32.totalorder %s13420_s4, %s12390_s18 }
 0x229   : > { %p12387_p0 = pnand %p12385_p11, %p16074_p13  ;;  %p12393_p7 = scmp.lt.s32.totalorder %s12391_s13, %s12384_s28 }
 0x22b   : > { %p12388_p4 = pneg %p12387_p0  ;;  %p12394_p1 = por %p12393_p7, %p12392_p2 }
 0x22d   : > { %p12395_p10 = pnand %p12394_p1, %p12388_p4 }
 0x22f   : > { %12398 = shalt.err (!%p12395_p10)
}
 0x230   : > { %p16075_p12 = scmp.ne.s32.totalorder %s16039_s6, 0  ;;  %s12765_s12 = smov [#allocation10]  }
 0x231   : > { %s741_s15 = sshll.u32 %s12765_s12, 4  ;;  %s12766_s19 = smov [#allocation13]   ;;  %s742_s15 = int_to_ptr.vmem [resolvable:$true] %s741_s15 }
 0x232   : > { %10560 = dma.hbm_to_vmem [thread:$0]  (!%p16075_p12), %s13416_s2, 14336, %s13420_s4, %s13028_s0, %s16066_s25, %s16066_s25, %s16065_s14  }
 0x233   : > { %s763_s20 = sshll.u32 %s12766_s19, 4  ;;  %s16076_s28 = sld [smem:[#allocation91_spill]]  ;;  %s764_s20 = int_to_ptr.vmem [resolvable:$true] %s763_s20 }
 0x239   : > { %s16077_s18 = smov %s16076_s28  ;;  %s12399_s7 = scalar_lea.hbm %s16076_s28, 16 }
 0x23a   : > { %p12400_p7 = scmp.ne.s32.totalorder %s16077_s18, %s12399_s7  ;;  %p12406_p5 = scmp.lt.u32.totalorder %s12399_s7, %s16077_s18 }
 0x23c   : > { %p12402_p6 = pnand %p12400_p7, %p16058_p9 }
 0x23e   : > { %p12403_p8 = pneg %p12402_p6 }
 0x240   : > { %p12408_p3 = pnand %p12406_p5, %p12403_p8 }
 0x242   : > { %12411 = shalt.err (!%p12408_p3)
}
 0x243   : > { %s12412_s14 = scalar_lea.vmem %s742_s15, 16  ;;  %s12419_s25 = scalar_lea.vmem %s742_s15, 32 }
 0x244   : > { %p12413_p11 = scmp.ne.s32.totalorder %s742_s15, %s12412_s14  ;;  %p12420_p2 = scmp.lt.s32.totalorder %s742_s15, %s742_s15 }
 0x245   : > { %p12421_p1 = scmp.lt.s32.totalorder %s12419_s25, %s12412_s14 }
 0x246   : > { %p12415_p0 = pnand %p12413_p11, %p16058_p9 }
 0x247   : > { %p12422_p10 = por %p12421_p1, %p12420_p2 }
 0x248   : > { %p12416_p4 = pneg %p12415_p0 }
 0x24a   : > { %p12423_p12 = pnand %p12422_p10, %p12416_p4 }
 0x24c   : > { %12426 = shalt.err (!%p12423_p12)
}
 0x24d   : > { %p16078_p7 = scmp.ne.s32.totalorder %s16059_s1, 0  ;;  %s16079_s4 = sld [smem:[#allocation93_spill]] }
 0x24f   : > { %10493 = dma.hbm_to_vmem [thread:$0]  (!%p16078_p7), %s16077_s18, 16, %s742_s15, [#allocation9]  }
 0x253   : > { %s16080_s12 = smov %s16079_s4  ;;  %s12427_s19 = scalar_lea.hbm %s16079_s4, 16 }
 0x254   : > { %p12428_p6 = scmp.ne.s32.totalorder %s16080_s12, %s12427_s19  ;;  %p12434_p12 = scmp.lt.u32.totalorder %s12427_s19, %s16080_s12 }
 0x256   : > { %p12430_p8 = pnand %p12428_p6, %p16058_p9 }
 0x258   : > { %p12431_p5 = pneg %p12430_p8 }
 0x25a   : > { %p12436_p3 = pnand %p12434_p12, %p12431_p5 }
 0x25c   : > { %12439 = shalt.err (!%p12436_p3)
}
 0x25d   : > { %s12440_s13 = scalar_lea.vmem %s764_s20, 16  ;;  %s12447_s15 = scalar_lea.vmem %s764_s20, 32 }
 0x25e   : > { %p12441_p11 = scmp.ne.s32.totalorder %s764_s20, %s12440_s13  ;;  %p12448_p2 = scmp.lt.s32.totalorder %s764_s20, %s764_s20 }
 0x25f   : > { %p12449_p1 = scmp.lt.s32.totalorder %s12447_s15, %s12440_s13 }
 0x260   : > { %p12443_p0 = pnand %p12441_p11, %p16058_p9 }
 0x261   : > { %p12450_p10 = por %p12449_p1, %p12448_p2 }
 0x262   : > { %p12444_p4 = pneg %p12443_p0 }
 0x264   : > { %p12451_p13 = pnand %p12450_p10, %p12444_p4 }
 0x266   : > { %12454 = shalt.err (!%p12451_p13)
}
 0x267   : > { %10499 = dma.hbm_to_vmem [thread:$0]  (!%p16078_p7), %s16080_s12, 16, %s764_s20, [#allocation12]  }
 0x268   : > { %s12767_s10 = smov [#allocation16]   ;;  %s12768_s21 = smov [#allocation19]  }
 0x269   : > { %s787_s2 = sshll.u32 %s12767_s10, 4  ;;  %s808_s16 = sshll.u32 %s12768_s21, 4  ;;  %s788_s2 = int_to_ptr.vmem [resolvable:$true] %s787_s2  ;;  %s809_s16 = int_to_ptr.vmem [resolvable:$true] %s808_s16 }
 0x26a   : > { %s16081_s17 = sld [smem:[#allocation95_spill]] }
 0x270   : > { %s12455_s11 = scalar_lea.hbm %s16081_s17, 32 }
 0x271   : > { %p12456_p13 = scmp.ne.s32.totalorder %s16081_s17, %s12455_s11  ;;  %p12462_p5 = scmp.lt.u32.totalorder %s12455_s11, %s16081_s17 }
 0x273   : > { %p12458_p6 = pnand %p12456_p13, %p16058_p9 }
 0x275   : > { %p12459_p8 = pneg %p12458_p6 }
 0x277   : > { %p12464_p12 = pnand %p12462_p5, %p12459_p8 }
 0x279   : > { %12467 = shalt.err (!%p12464_p12)
}
 0x27a   : > { %s12468_s20 = scalar_lea.vmem %s788_s2, 32  ;;  %p12476_p4 = scmp.lt.s32.totalorder %s788_s2, %s788_s2 }
 0x27b   : > { %p12469_p3 = scmp.ne.s32.totalorder %s788_s2, %s12468_s20  ;;  %p12477_p2 = scmp.lt.s32.totalorder %s12468_s20, %s12468_s20 }
 0x27d   : > { %p12471_p11 = pnand %p12469_p3, %p16058_p9  ;;  %p12478_p1 = por %p12477_p2, %p12476_p4 }
 0x27f   : > { %p12472_p0 = pneg %p12471_p11 }
 0x281   : > { %p12479_p10 = pnand %p12478_p1, %p12472_p0 }
 0x283   : > { %12482 = shalt.err (!%p12479_p10)
}
 0x284   : > { %10505 = dma.hbm_to_vmem [thread:$0]  (!%p16078_p7), %s16081_s17, 32, %s788_s2, [#allocation15]  }
 0x285   : > { %s16082_s4 = sld [smem:[#allocation97_spill]] }
 0x28b   : > { %s16083_s19 = smov %s16082_s4  ;;  %s12483_s11 = scalar_lea.hbm %s16082_s4, 512 }
 0x28c   : > { %p12484_p13 = scmp.ne.s32.totalorder %s16083_s19, %s12483_s11  ;;  %p12490_p5 = scmp.lt.u32.totalorder %s12483_s11, %s16083_s19 }
 0x28e   : > { %p12486_p6 = pnand %p12484_p13, %p16058_p9 }
 0x290   : > { %p12487_p8 = pneg %p12486_p6 }
 0x292   : > { %p12492_p12 = pnand %p12490_p5, %p12487_p8 }
 0x294   : > { %12495 = shalt.err (!%p12492_p12)
}
 0x295   : > { %s12496_s20 = scalar_lea.vmem %s809_s16, 512  ;;  %p12504_p4 = scmp.lt.s32.totalorder %s809_s16, %s809_s16 }
 0x296   : > { %p12497_p3 = scmp.ne.s32.totalorder %s809_s16, %s12496_s20  ;;  %p12505_p2 = scmp.lt.s32.totalorder %s12496_s20, %s12496_s20 }
 0x298   : > { %p12499_p11 = pnand %p12497_p3, %p16058_p9  ;;  %p12506_p1 = por %p12505_p2, %p12504_p4 }
 0x29a   : > { %p12500_p0 = pneg %p12499_p11 }
 0x29c   : > { %p12507_p10 = pnand %p12506_p1, %p12500_p0 }
 0x29e   : > { %12510 = shalt.err (!%p12507_p10)
}
 0x29f   : > { %s12769_s2 = smov 256   ;;  %s12770_s14 = smov 16  }
 0x2a0   : > { %10511 = dma.hbm_to_vmem [thread:$0]  (!%p16078_p7), %s16083_s19, 512, %s809_s16, [#allocation18], %s12769_s2, %s12769_s2, %s12770_s14  }
 0x2a1   : > { %s12771_s21 = smov [#allocation22]   ;;  %s12772_s11 = smov [#allocation25]  }
 0x2a2   : > { %s833_s4 = sshll.u32 %s12771_s21, 4  ;;  %s855_s28 = sshll.u32 %s12772_s11, 4  ;;  %s834_s4 = int_to_ptr.vmem [resolvable:$true] %s833_s4  ;;  %s856_s28 = int_to_ptr.vmem [resolvable:$true] %s855_s28 }
 0x2a3   : > { %s16084_s15 = sld [smem:[#allocation99_spill]] }
 0x2a9   : > { %s12511_s20 = scalar_lea.hbm %s16084_s15, 32 }
 0x2aa   : > { %p12512_p13 = scmp.ne.s32.totalorder %s16084_s15, %s12511_s20  ;;  %p12518_p5 = scmp.lt.u32.totalorder %s12511_s20, %s16084_s15 }
 0x2ac   : > { %p12514_p6 = pnand %p12512_p13, %p16058_p9 }
 0x2ae   : > { %p12515_p8 = pneg %p12514_p6 }
 0x2b0   : > { %p12520_p12 = pnand %p12518_p5, %p12515_p8 }
 0x2b2   : > { %12523 = shalt.err (!%p12520_p12)
}
 0x2b3   : > { %s12524_s16 = scalar_lea.vmem %s834_s4, 32  ;;  %p12532_p4 = scmp.lt.s32.totalorder %s834_s4, %s834_s4 }
 0x2b4   : > { %p12525_p3 = scmp.ne.s32.totalorder %s834_s4, %s12524_s16  ;;  %p12533_p2 = scmp.lt.s32.totalorder %s12524_s16, %s12524_s16 }
 0x2b6   : > { %p12527_p11 = pnand %p12525_p3, %p16058_p9  ;;  %p12534_p1 = por %p12533_p2, %p12532_p4 }
 0x2b8   : > { %p12528_p0 = pneg %p12527_p11 }
 0x2ba   : > { %p12535_p10 = pnand %p12534_p1, %p12528_p0 }
 0x2bc   : > { %12538 = shalt.err (!%p12535_p10)
}
 0x2bd   : > { %10517 = dma.hbm_to_vmem [thread:$0]  (!%p16078_p7), %s16084_s15, 32, %s834_s4, [#allocation21]  }
 0x2be   : > { %s16085_s2 = sld [smem:[#allocation101_spill]] }
 0x2c4   : > { %s12539_s14 = scalar_lea.hbm %s16085_s2, 32 }
 0x2c5   : > { %p12540_p13 = scmp.ne.s32.totalorder %s16085_s2, %s12539_s14  ;;  %p12546_p5 = scmp.lt.u32.totalorder %s12539_s14, %s16085_s2 }
 0x2c7   : > { %p12542_p6 = pnand %p12540_p13, %p16058_p9 }
 0x2c9   : > { %p12543_p8 = pneg %p12542_p6 }
 0x2cb   : > { %p12548_p12 = pnand %p12546_p5, %p12543_p8 }
 0x2cd   : > { %12551 = shalt.err (!%p12548_p12)
}
 0x2ce   : > { %s12552_s7 = scalar_lea.vmem %s856_s28, 32  ;;  %p12560_p4 = scmp.lt.s32.totalorder %s856_s28, %s856_s28 }
 0x2cf   : > { %p12553_p3 = scmp.ne.s32.totalorder %s856_s28, %s12552_s7  ;;  %p12561_p2 = scmp.lt.s32.totalorder %s12552_s7, %s12552_s7 }
 0x2d1   : > { %p12555_p11 = pnand %p12553_p3, %p16058_p9  ;;  %p12562_p1 = por %p12561_p2, %p12560_p4 }
 0x2d3   : > { %p12556_p0 = pneg %p12555_p11 }
 0x2d5   : > { %p12563_p10 = pnand %p12562_p1, %p12556_p0 }
 0x2d7   : > { %12566 = shalt.err (!%p12563_p10)
}
 0x2d8   : > { %10523 = dma.hbm_to_vmem [thread:$0]  (!%p16078_p7), %s16085_s2, 32, %s856_s28, [#allocation24]  }
 0x2d9   : > { %s12773_s20 = smov [#allocation26]   ;;  %s16086_s22 = sld [smem:[#allocation113_spill]] }
 0x2da   : > { %s865_s16 = sshll.u32 %s12773_s20, 4  ;;  %s16087_s10 = sld [smem:[#allocation102_spill]]  ;;  %s866_s16 = int_to_ptr.vmem [resolvable:$true] %s865_s16 }
 0x2df   : > { %s13559_s18 = scalar_lea.hbm %s16086_s22, %s13115_s5 }
 0x2e0   : > { %s12567_s21 = scalar_lea.hbm %s16087_s10, 2048 }
 0x2e1   : > { %p12568_p13 = scmp.ne.s32.totalorder %s16087_s10, %s12567_s21  ;;  %p12574_p5 = scmp.lt.u32.totalorder %s12567_s21, %s16087_s10 }
 0x2e3   : > { %p12570_p6 = pnand %p12568_p13, %p16058_p9 }
 0x2e5   : > { %p12571_p8 = pneg %p12570_p6 }
 0x2e7   : > { %p12576_p12 = pnand %p12574_p5, %p12571_p8 }
 0x2e9   : > { %12579 = shalt.err (!%p12576_p12)
}
 0x2ea   : > { %s12580_s13 = scalar_lea.vmem %s866_s16, 2048  ;;  %p12588_p4 = scmp.lt.s32.totalorder %s866_s16, %s866_s16 }
 0x2eb   : > { %p12581_p3 = scmp.ne.s32.totalorder %s866_s16, %s12580_s13  ;;  %p12589_p2 = scmp.lt.s32.totalorder %s12580_s13, %s12580_s13 }
 0x2ed   : > { %p12583_p11 = pnand %p12581_p3, %p16058_p9  ;;  %p12590_p1 = por %p12589_p2, %p12588_p4 }
 0x2ef   : > { %p12584_p0 = pneg %p12583_p11 }
 0x2f1   : > { %p12591_p10 = pnand %p12590_p1, %p12584_p0 }
 0x2f3   : > { %12594 = shalt.err (!%p12591_p10)
}
 0x2f4   : > { %10526 = dma.hbm_to_vmem [thread:$0]  (!%p16078_p7), %s16087_s10, 2048, %s866_s16, [#allocation27], %s16062_s29, %s16062_s29, %s16061_s30  }
 0x2f5   : > { %s1100_s9 = scalar_lea.vmem [#allocation39], %s13087_s27  ;;  %s12595_s17 = scalar_lea.hbm %s13559_s18, 32 }
 0x2f6   : > { %s1108_s12 = sshll.u32 %s1100_s9, 4  ;;  %p12596_p9 = scmp.ne.s32.totalorder %s13559_s18, %s12595_s17  ;;  %s1109_s12 = int_to_ptr.vmem [resolvable:$true] %s1108_s12 }
 0x2f7   : > { %p16088_p13 = scmp.ne.s32.totalorder %s16041_s3, 0  ;;  %s12600_s25 = scalar_lea.hbm %s16086_s22, 64 }
 0x2f8   : > { %p12601_p5 = scmp.lt.u32.totalorder %s13559_s18, %s16086_s22  ;;  %p12602_p12 = scmp.lt.u32.totalorder %s12600_s25, %s12595_s17 }
 0x2f9   : > { %p12598_p6 = pnand %p12596_p9, %p16088_p13  ;;  %p12604_p11 = scmp.lt.u32.totalorder %s12595_s17, %s13559_s18 }
 0x2fa   : > { %p12603_p3 = por %p12602_p12, %p12601_p5 }
 0x2fb   : > { %p12599_p8 = pneg %p12598_p6 }
 0x2fc   : > { %p12605_p7 = por %p12604_p11, %p12603_p3 }
 0x2fe   : > { %p12606_p0 = pnand %p12605_p7, %p12599_p8 }
 0x300   : > { %12609 = shalt.err (!%p12606_p0)
}
 0x301   : > { %s12610_s27 = scalar_lea.vmem %s1109_s12, 32  ;;  %s12774_s30 = smov [#allocation39]  }
 0x302   : > { %p12611_p4 = scmp.ne.s32.totalorder %s1109_s12, %s12610_s27  ;;  %s12615_s29 = sshll.u32 %s12774_s30, 4  ;;  %s12616_s29 = int_to_ptr.vmem [resolvable:$false] %s12615_s29 }
 0x303   : > { %s12617_s16 = scalar_lea.vmem %s12616_s29, 64  ;;  %p12618_p10 = scmp.lt.s32.totalorder %s1109_s12, %s12616_s29 }
 0x304   : > { %p12613_p2 = pnand %p12611_p4, %p16088_p13  ;;  %p12619_p9 = scmp.lt.s32.totalorder %s12617_s16, %s12610_s27 }
 0x306   : > { %p12614_p1 = pneg %p12613_p2  ;;  %p12620_p6 = por %p12619_p9, %p12618_p10 }
 0x308   : > { %p12621_p5 = pnand %p12620_p6, %p12614_p1 }
 0x30a   : > { %12624 = shalt.err (!%p12621_p5)
}
 0x30b   : > { %p16089_p12 = scmp.ne.s32.totalorder %s16039_s6, 0  ;;  %s16090_s7 = sld [smem:[#allocation56_spill]] }
 0x30d   : > { %10563 = dma.hbm_to_vmem [thread:$0]  (!%p16089_p12), %s13559_s18, 32, %s1109_s12, %s13028_s0  }
 0x311   : > { %p16091_p8 = scmp.ne.s32.totalorder %s16090_s7, 0 }
 0x313   : > { %1117 = sbr.rel (%p16091_p8) target bundleno = 7621 (0x1dc5), region = 124 }
 0x31a   : > { %s16092_s3 = sld [smem:[#allocation55_spill]] }
 0x320   : > { %p16093_p13 = scmp.eq.s32.totalorder %s16092_s3, 0 }
 0x322   : > { %12676 = dma.done.wait (%p16093_p13), [#allocation6], 256   ;;  %p16094_p3 = pmov %p16093_p13 }
 0x324   : > { %12678 = vsyncadd (%p16094_p3), [#allocation6], 4294967040  ;;  %p16095_p11 = pmov %p16094_p3 }
 0x325   : > { %p16096_p7 = pmov %p16094_p3 }
 0x326   : > { %12680 = dma.done.wait (%p16095_p11), [#allocation9], 1040  }
 0x327   : > { %12682 = vsyncadd (%p16096_p7), [#allocation9], 4294966256  ;;  %p16097_p0 = pmov %p16094_p3 }
 0x329   : > { %12684 = dma.done.wait (%p16097_p0), [#allocation12], 32   ;;  %p16098_p4 = pmov %p16097_p0 }
 0x32a   : > { %p16099_p2 = pmov %p16097_p0 }
 0x32b   : > { %12686 = vsyncadd (%p16098_p4), [#allocation12], 4294967264 }
 0x32c   : > { %12688 = dma.done.wait (%p16099_p2), [#allocation15], 2080   ;;  %p16100_p1 = pmov %p16097_p0 }
 0x32d   : > { %p16101_p10 = pmov %p16097_p0 }
 0x32e   : > { %12690 = vsyncadd (%p16100_p1), [#allocation15], 4294965216 }
 0x32f   : > { %12692 = dma.done.wait (%p16101_p10), [#allocation18], 544   ;;  %p16102_p9 = pmov %p16097_p0 }
 0x330   : > { %p16103_p6 = pmov %p16097_p0 }
 0x331   : > { %12694 = vsyncadd (%p16102_p9), [#allocation18], 4294966752 }
 0x332   : > { %12696 = dma.done.wait (%p16103_p6), [#allocation21], 64   ;;  %p16104_p5 = pmov %p16097_p0 }
 0x333   : > { %p16105_p12 = pmov %p16097_p0 }
 0x334   : > { %12698 = vsyncadd (%p16104_p5), [#allocation21], 4294967232 }
 0x335   : > { %12700 = dma.done.wait (%p16105_p12), [#allocation24], 64   ;;  %p16106_p8 = pmov %p16097_p0 }
 0x336   : > { %p16107_p13 = pmov %p16097_p0 }
 0x337   : > { %12702 = vsyncadd (%p16106_p8), [#allocation24], 4294967232 }
 0x338   : > { %12704 = dma.done.wait (%p16107_p13), [#allocation27], 2048   ;;  %p16108_p3 = pmov %p16097_p0 }
 0x339   : > { %s16109_s6 = sld [smem:[#allocation51_spill]]  ;;  %s16110_s0 = sld [smem:[#allocation59_spill]] }
 0x33a   : > { %12706 = vsyncadd (%p16108_p3), [#allocation27], 4294965248  ;;  %s1175_s18 = sand.u32 1, %s16092_s3  }
 0x33b   : > { %s1176_s13 = scalar_lea.sflag [#allocation6], %s1175_s18 }
 0x33f   : > { %s1177_s28 = sand.u32 1, %s16109_s6   ;;  %p16111_p11 = scmp.ne.s32.totalorder %s16110_s0, 0 }
 0x340   : > { %s10396_s4 = smul.u32 1536, %s1177_s28 }
 0x342   : > { %s13637_s5 = scalar_lea.vmem [#allocation28], %s10396_s4 }
 0x343   : > { %12708 = dma.done.wait (%p16111_p11), %s1176_s13, 61936  }
 0x344   : > { %12710 = vsyncadd (%p16111_p11), %s1176_s13, 4294905360  ;;  %s10397_s20 = smul.u32 12, %s1177_s28  ;;  %s9421_s9 = sshll.u32 %s1177_s28, 9 }
 0x345   : > { %s13643_s12 = sshll.u32 %s1177_s28, 1  ;;  %s10398_s17 = smul.u32 896, %s1177_s28 }
 0x346   : > { %s10399_s1 = smul.u32 7, %s1177_s28  ;;  %s13645_s14 = scalar_lea.vmem [#allocation29], %s10397_s20 }
 0x347   : > { %s13647_s25 = scalar_lea.vmem [#allocation30], %s9421_s9  ;;  %s1206_s21 = scalar_lea.vmem [#allocation31], %s13643_s12 }
 0x348   : > { %s1215_s11 = scalar_lea.vmem [#allocation32], %s13643_s12  ;;  %s1224_s27 = scalar_lea.vmem [#allocation33], %s13643_s12 }
 0x349   : > { %s1233_s30 = scalar_lea.vmem [#allocation34], %s13643_s12  ;;  %s1242_s29 = scalar_lea.vmem [#allocation35], %s13643_s12 }
 0x34a   : > { %s13654_s16 = scalar_lea.vmem [#allocation36], %s10398_s17  ;;  %s13656_s7 = scalar_lea.vmem [#allocation37], %s10399_s1 }
 0x34b   : > { %s13658_s3 = scalar_lea.vmem [#allocation38], %s10398_s17  ;;  %s1278_s6 = scalar_lea.vmem [#allocation39], %s13643_s12 }
 0x34c   : > { %s16112_s0 = sld [smem:[#allocation53_spill]] }
 0x352   : > { %p9428_p7 = scmp.ne.s32.totalorder %s16112_s0, 0 }
 0x353   : > { %v10671_v0 = vld [vmem:[#allocation8] sm:$0xff] (!%p9428_p7)   ;;  %v10672_v1 = vld [vmem:[#allocation8 + $0x8] sm:$0xff] (!%p9428_p7)   ;;  %v10673_v2 = vld [vmem:[#allocation8 + $0x10] sm:$0xff] (!%p9428_p7)   ;;  %v12775_v37 = vmov (!%p9428_p7), 0   ;;  %v12776_v40 = vmov (!%p9428_p7), 0.0   ;;  %vm1804_vm0 = vcmask (!%p9428_p7), 1040384  }
 0x354   : > { %1402 = sbr.rel (%p9428_p7) target bundleno = 1687 (0x697), region = 232  ;;  %10174 = vmatprep.subr.bf16.mxu0 (!%p9428_p7), %v10671_v0  ;;  %v10674_v3 = vld [vmem:[#allocation8 + $0x18] sm:$0xff] (!%p9428_p7)   ;;  %v10679_v4 = vld [vmem:[#allocation5] sm:$0xff] (!%p9428_p7)   ;;  %v10675_v5 = vld [vmem:[#allocation8 + $0x20] sm:$0xff] (!%p9428_p7)   ;;  %1759 = vmatprep.mubr.bf16.mxu1 (!%p9428_p7), %v12775_v37 }
 0x355   : > { %10175 = vmatpush3.bf16.msra.mxu0 (!%p9428_p7), %v10671_v0  ;;  %10190 = vmatprep.mubr.bf16.mxu0 (!%p9428_p7), %v10679_v4  ;;  %v10676_v6 = vld [vmem:[#allocation8 + $0x28] sm:$0xff] (!%p9428_p7)   ;;  %v10677_v7 = vld [vmem:[#allocation8 + $0x30] sm:$0xff] (!%p9428_p7)   ;;  %v10678_v8 = vld [vmem:[#allocation8 + $0x38] sm:$0xff] (!%p9428_p7)  }
 0x356   : > { %10176 = vmatprep.subr.bf16.mxu0 (!%p9428_p7), %v10672_v1  ;;  %v10680_v9 = vld [vmem:[#allocation5 + $0x8] sm:$0xff] (!%p9428_p7)   ;;  %v9429_v10 = vld [vmem:[#allocation10] ss:$0 sm:$0xff] (!%p9428_p7)  ;;  %v10681_v23 = vld [vmem:[#allocation14 + $0x4] ss:$8 sps:$4 sm:$0xff] (!%p9428_p7)  }
 0x357   : > { %v10683_v24 = vld [vmem:[#allocation14] ss:$8 sps:$4 sm:$0xff] (!%p9428_p7)   ;;  %1727 = vmatprep.subr.bf16.mxu1 (!%p9428_p7), %v10681_v23  ;;  %v10684_v25 = vld [vmem:[#allocation14 + $0x14] ss:$8 sps:$4 sm:$0xff] (!%p9428_p7)   ;;  %v10686_v26 = vld [vmem:[#allocation14 + $0x10] ss:$8 sps:$4 sm:$0xff] (!%p9428_p7)  }
 0x358   : > { %1728 = vmatpush1.bf16.msra.mxu1 (!%p9428_p7), %v10683_v24  ;;  %v10687_v27 = vld [vmem:[#allocation14 + $0x24] ss:$8 sps:$4 sm:$0xff] (!%p9428_p7)   ;;  %v10689_v28 = vld [vmem:[#allocation14 + $0x20] ss:$8 sps:$4 sm:$0xff] (!%p9428_p7)   ;;  %v10690_v29 = vld [vmem:[#allocation14 + $0x34] ss:$8 sps:$4 sm:$0xff] (!%p9428_p7)  }
 0x359   : > { %10177 = vmatpush3.bf16.msra.mxu0 (!%p9428_p7), %v10672_v1  ;;  %1729 = vmatprep.subr.bf16.mxu1 (!%p9428_p7), %v10684_v25  ;;  %v10692_v30 = vld [vmem:[#allocation14 + $0x30] ss:$8 sps:$4 sm:$0xff] (!%p9428_p7)   ;;  %v10693_v31 = vld [vmem:[#allocation14 + $0x44] ss:$8 sps:$4 sm:$0xff] (!%p9428_p7)   ;;  %v10695_v32 = vld [vmem:[#allocation14 + $0x40] ss:$8 sps:$4 sm:$0xff] (!%p9428_p7)  }
 0x35a   : > { %10178 = vmatprep.subr.bf16.mxu0 (!%p9428_p7), %v10673_v2  ;;  %v10696_v33 = vld [vmem:[#allocation14 + $0x54] ss:$8 sps:$4 sm:$0xff] (!%p9428_p7)   ;;  %v10698_v34 = vld [vmem:[#allocation14 + $0x50] ss:$8 sps:$4 sm:$0xff] (!%p9428_p7)   ;;  %v10699_v35 = vld [vmem:[#allocation14 + $0x64] ss:$8 sps:$4 sm:$0xff] (!%p9428_p7)  }
 0x35b   : > { %v10701_v36 = vld [vmem:[#allocation14 + $0x60] ss:$8 sps:$4 sm:$0xff]   ;;  %v10702_v38 = vld [vmem:[#allocation14 + $0x74] ss:$8 sps:$4 sm:$0xff]   ;;  %v10704_v39 = vld [vmem:[#allocation14 + $0x70] ss:$8 sps:$4 sm:$0xff]  }
 0x35c   : > { %1730 = vmatpush1.bf16.msra.mxu1 %v10686_v26 }
 0x35d   : > { %10179 = vmatpush3.bf16.msra.mxu0 %v10673_v2  ;;  %1731 = vmatprep.subr.bf16.mxu1 %v10687_v27 }
 0x35e   : > { %10180 = vmatprep.subr.bf16.mxu0 %v10674_v3 }
 0x360   : > { %1732 = vmatpush1.bf16.msra.mxu1 %v10689_v28 }
 0x361   : > { %10181 = vmatpush3.bf16.msra.mxu0 %v10674_v3  ;;  %1733 = vmatprep.subr.bf16.mxu1 %v10690_v29 }
 0x362   : > { %10182 = vmatprep.subr.bf16.mxu0 %v10675_v5 }
 0x364   : > { %1734 = vmatpush1.bf16.msra.mxu1 %v10692_v30 }
 0x365   : > { %10183 = vmatpush3.bf16.msra.mxu0 %v10675_v5  ;;  %1735 = vmatprep.subr.bf16.mxu1 %v10693_v31 }
 0x366   : > { %10184 = vmatprep.subr.bf16.mxu0 %v10676_v6 }
 0x368   : > { %1736 = vmatpush1.bf16.msra.mxu1 %v10695_v32 }
 0x369   : > { %10185 = vmatpush3.bf16.msra.mxu0 %v10676_v6  ;;  %1737 = vmatprep.subr.bf16.mxu1 %v10696_v33 }
 0x36a   : > { %10186 = vmatprep.subr.bf16.mxu0 %v10677_v7 }
 0x36c   : > { %1738 = vmatpush1.bf16.msra.mxu1 %v10698_v34 }
 0x36d   : > { %10187 = vmatpush3.bf16.msra.mxu0 %v10677_v7  ;;  %1739 = vmatprep.subr.bf16.mxu1 %v10699_v35  ;;  %v9440_v7 = vld [vmem:[#allocation11] ss:$0 sm:$0xff] }
 0x36e   : > { %10188 = vmatprep.subr.bf16.mxu0 %v10678_v8 }
 0x370   : > { %1740 = vmatpush1.bf16.msra.mxu1 %v10701_v36 }
 0x371   : > { %10189 = vmatpush3.bf16.msra.mxu0 %v10678_v8  ;;  %1741 = vmatprep.subr.bf16.mxu1 %v10702_v38 }
 0x374   : > { %10191 = vmatmul.mubr.bf16.vlgmr.msra.gmra.mrb[0].mxu0 %v10680_v9  ;;  %1742 = vmatpush1.bf16.msra.mxu1 %v10704_v39  ;;  %v1637_v39 = vlaneseq }
 0x447   : > { %v10192_v11 = vpop.f32.mrb[0].mxu0 }
 0x448   : > { %v1524_v12 = vpop.f32.mrb[1].mxu0  ;;  %v13672_v19 = vadd.f32 %v10192_v11, %v9429_v10 }
 0x449   : > { %v13662_v13 = vadd.f32 %v9429_v10, %v1524_v12  ;;  %v10193_v14 = vpop.f32.mrb[2].mxu0  ;;  %v9441_v12 = vld [vmem:[#allocation13] ss:$0 sm:$0xff] }
 0x44a   : > { %v1527_v15 = vpop.f32.mrb[3].mxu0  ;;  %v13674_v20 = vadd.f32 %v10193_v14, %v9429_v10  ;;  %v1551_v21 = vmul.f32 %v13672_v19, %v13672_v19 }
 0x44b   : > { %v13664_v16 = vadd.f32 %v9429_v10, %v1527_v15  ;;  %1541 = vadd.xlane.f32.xlu0 %v13662_v13  ;;  %v1549_v17 = vmul.f32 %v13662_v13, %v13662_v13 }
 0x44c   : > { %v1552_v22 = vmul.f32 %v13674_v20, %v13674_v20 }
 0x44d   : > { %1553 = vadd.xlane.f32.xlu1 %v1549_v17  ;;  %v1550_v18 = vmul.f32 %v13664_v16, %v13664_v16 }
 0x44f   : > { %1543 = vadd.xlane.f32.xlu0 %v13664_v16 }
 0x451   : > { %1555 = vadd.xlane.f32.xlu1 %v1550_v18 }
 0x453   : > { %1545 = vadd.xlane.f32.xlu0 %v13672_v19 }
 0x455   : > { %1547 = vadd.xlane.f32.xlu1 %v13674_v20 }
 0x457   : > { %1557 = vadd.xlane.f32.xlu0 %v1551_v21 }
 0x459   : > { %1559 = vadd.xlane.f32.xlu1 %v1552_v22 }
 0x45d   : > { %1832 = vadd.xlane.f32.xlu1 %v12776_v40  ;;  %v1638_v40 = vshrl.u32 %v1637_v39, 7 }
 0x4d8   : > { %v1542_v41 = vpop.xlane.xlu0 %1541 }
 0x4d9   : > { %v1561_v42 = vmul.f32 0.017857144, %v1542_v41  ;;  %v1821_v41 = vld [vmem:[#allocation20] sm:$0x3] }
 0x4da   : > { %v1554_v43 = vpop.xlane.xlu1 %1553 }
 0x4db   : > { %v1569_v44 = vmul.f32 %v1561_v42, %v1561_v42  ;;  %v1565_v45 = vmul.f32 0.017857144, %v1554_v43  ;;  %v1577_v4 = vsub.f32 %v13662_v13, %v1561_v42  ;;  %v1972_v42 = vld [vmem:[#allocation20] sm:$0x3]  ;;  %v13688_v43 = vsub.s32 0, %v1638_v40 }
 0x4dc   : > { %v1544_v46 = vpop.xlane.xlu0 %1543 }
 0x4dd   : > { %v1573_v47 = vsub.f32 %v1565_v45, %v1569_v44  ;;  %v1562_v48 = vmul.f32 0.017857144, %v1544_v46  ;;  %v13690_v44 = vsub.s32 1, %v1638_v40  ;;  %v1973_v46 = vld [vmem:[#allocation22] sm:$0x3] }
 0x4de   : > { %v1556_v49 = vpop.xlane.xlu1 %1555 }
 0x4df   : > { %v1581_v50 = vadd.f32 1e-05, %v1573_v47  ;;  %v1570_v51 = vmul.f32 %v1562_v48, %v1562_v48  ;;  %v1566_v52 = vmul.f32 0.017857144, %v1556_v49  ;;  %v1578_v9 = vsub.f32 %v13664_v16, %v1562_v48 }
 0x4e0   : > { %v1546_v53 = vpop.xlane.xlu0 %1545  ;;  %v13693_v47 = vrot.slane %v1821_v41, %v13688_v43  ;;  %v13696_v48 = vrot.slane %v1821_v41, %v13690_v44  ;;  %v13699_v49 = vrot.slane %v1972_v42, %v13688_v43 }
 0x4e1   : > { %10705 = vrsqrt.f32 %v1581_v50  ;;  %v1574_v54 = vsub.f32 %v1566_v52, %v1570_v51  ;;  %v1563_v55 = vmul.f32 0.017857144, %v1546_v53  ;;  %v13702_v50 = vrot.slane %v1972_v42, %v13690_v44 }
 0x4e2   : > { %v1548_v56 = vpop.xlane.xlu1 %1547 }
 0x4e3   : > { %v1582_v57 = vadd.f32 1e-05, %v1574_v54  ;;  %v1564_v58 = vmul.f32 0.017857144, %v1548_v56  ;;  %v1571_v60 = vmul.f32 %v1563_v55, %v1563_v55  ;;  %v1579_v18 = vsub.f32 %v13672_v19, %v1563_v55 }
 0x4e4   : > { %v1558_v59 = vpop.xlane.xlu0 %1557  ;;  %v13711_v54 = vrot.slane %v1973_v46, %v13688_v43  ;;  %v13714_v55 = vrot.slane %v1973_v46, %v13690_v44 }
 0x4e5   : > { %10707 = vrsqrt.f32 %v1582_v57  ;;  %v1567_v61 = vmul.f32 0.017857144, %v1558_v59  ;;  %v1572_v63 = vmul.f32 %v1564_v58, %v1564_v58  ;;  %v1580_v13 = vsub.f32 %v13674_v20, %v1564_v58 }
 0x4e6   : > { %v1560_v62 = vpop.xlane.xlu1 %1559 }
 0x4e7   : > { %v1575_v0 = vsub.f32 %v1567_v61, %v1571_v60  ;;  %v1568_v1 = vmul.f32 0.017857144, %v1560_v62 }
 0x4e9   : > { %v1583_v2 = vadd.f32 1e-05, %v1575_v0  ;;  %v1576_v3 = vsub.f32 %v1568_v1, %v1572_v63  ;;  %v1635_v1 = vld [vmem:[#allocation16] sm:$0x3] }
 0x4ea   : > { %v1833_v34 = vpop.xlane.xlu1 %1832 }
 0x4eb   : > { %v10706_v5 = vpop.eup %10705  ;;  %10709 = vrsqrt.f32 %v1583_v2  ;;  %v1584_v6 = vadd.f32 1e-05, %v1576_v3  ;;  %v1852_v35 = vmul.f32 0.004464286, %v1833_v34  ;;  %v1640_v2 = vrot.slane %v1635_v1, %v13688_v43 }
 0x4ec   : > { %v1589_v8 = vmul.f32 %v10706_v5, %v1577_v4  ;;  %v1644_v3 = vrot.slane %v1635_v1, %v13690_v44  ;;  %v1780_v5 = vld [vmem:[#allocation19] sm:$0xff] }
 0x4ed   : > { %10711 = vrsqrt.f32 %v1584_v6  ;;  %v1859_v20 = vmul.f32 %v1852_v35, %v1852_v35  ;;  %v1870_v45 = vsub.f32 0.0, %v1852_v35  ;;  %v1788_v6 = vld [vmem:[#allocation17] sm:$0x3] }
 0x4ee   : > { %v1599_v10 = vmul.f32 %v9440_v7, %v1589_v8 }
 0x4ef   : > { %v10708_v11 = vpop.eup %10707  ;;  %v1863_v36 = vsub.f32 %v1852_v35, %v1859_v20  ;;  %v1940_v20 = vld [vmem:[#allocation17] sm:$0x3] }
 0x4f0   : > { %v1590_v14 = vmul.f32 %v10708_v11, %v1578_v9  ;;  %v1609_v17 = vadd.f32 %v9441_v12, %v1599_v10  ;;  %v1781_v9 = vld [vmem:[#allocation19 + $0x8] sm:$0xff] }
 0x4f1   : > { %v1874_v38 = vadd.f32 1e-05, %v1863_v36 }
 0x4f2   : > { %v1600_v15 = vmul.f32 %v9440_v7, %v1590_v14  ;;  %v1613_v23 = vmax.f32 %v1609_v17, 0.0 }
 0x4f3   : > { %10713 = vrsqrt.f32 %v1874_v38 }
 0x4f4   : > { %v1610_v21 = vadd.f32 %v9441_v12, %v1600_v15 }
 0x4f5   : > { %v10710_v22 = vpop.eup %10709 }
 0x4f6   : > { %v1614_v24 = vmax.f32 %v1610_v21, 0.0  ;;  %v1591_v25 = vmul.f32 %v10710_v22, %v1579_v18  ;;  %v1783_v18 = vld [vmem:[#allocation19 + $0x18] sm:$0xff]  ;;  %v1793_v21 = vrot.slane %v1788_v6, %v13688_v43 }
 0x4f7   : > { %v10712_v26 = vpop.eup %10711 }
 0x4f8   : > { %v1617_v27 = vpack.c.bf16 %v1614_v24, %v1613_v23  ;;  %v1592_v28 = vmul.f32 %v10712_v26, %v1580_v13  ;;  %v1601_v29 = vmul.f32 %v9440_v7, %v1591_v25  ;;  %v1797_v23 = vrot.slane %v1788_v6, %v13690_v44 }
 0x4fa   : > { %1760 = vmatmul.mubr.bf16.vlgmr.msra.gmra.mrb[0].mxu1 %v1617_v27  ;;  %v1602_v16 = vmul.f32 %v9440_v7, %v1592_v28  ;;  %v1611_v30 = vadd.f32 %v9441_v12, %v1601_v29 }
 0x4fb   : > { %1769 = vmatprep.mubr.bf16.mxu1 %v12775_v37  ;;  %v1822_v37 = vld [vmem:[#allocation22] sm:$0x3] }
 0x4fc   : > { %v1612_v31 = vadd.f32 %v9441_v12, %v1602_v16  ;;  %v1615_v32 = vmax.f32 %v1611_v30, 0.0  ;;  %v13705_v52 = vrot.slane %v1822_v37, %v13688_v43  ;;  %v13708_v53 = vrot.slane %v1822_v37, %v13690_v44  ;;  %v1782_v12 = vld [vmem:[#allocation19 + $0x10] sm:$0xff] }
 0x4fd   : > { %v10714_v51 = vpop.eup %10713 }
 0x4fe   : > { %v1616_v33 = vmax.f32 %v1612_v31, 0.0  ;;  %v1885_v56 = vmul.f32 %v10714_v51, %v1870_v45 }
 0x500   : > { %v1618_v19 = vpack.c.bf16 %v1616_v33, %v1615_v32  ;;  %v1903_v57 = vmul.f32 %v13693_v47, %v1885_v56  ;;  %v1904_v58 = vmul.f32 %v13696_v48, %v1885_v56  ;;  %v2045_v59 = vmul.f32 %v13699_v49, %v1885_v56 }
 0x501   : > { %v2046_v60 = vmul.f32 %v13702_v50, %v1885_v56 }
 0x502   : > { %1770 = vmatmul.mubr.bf16.gmra.mrb[4].mxu1 %v1618_v19  ;;  %v1922_v61 = vadd.f32 %v13705_v52, %v1903_v57  ;;  %v1923_v62 = vadd.f32 %v13708_v53, %v1904_v58  ;;  %v2064_v63 = vadd.f32 %v13711_v54, %v2045_v59  ;;  %v1949_v58 = vrot.slane %v1940_v20, %v13690_v44 }
 0x503   : > { %v2065_v0 = vadd.f32 %v13714_v55, %v2046_v60 }
 0x504   : > { %1930 = vst [vmem:[#allocation2 + $0x30] sm:$0xff] %v1922_v61  ;;  %1931 = vst [vmem:[#allocation2 + $0x38] sm:$0xff] %v1923_v62 }
 0x505   : > { %2072 = vst [vmem:[#allocation2 + $0x70] sm:$0xff] %v2064_v63  ;;  %2073 = vst [vmem:[#allocation2 + $0x78] sm:$0xff] %v2065_v0 }
 0x5cd   : > { %v1761_v4 = vpop.f32.mrb[0].mxu1 }
 0x5ce   : > { %v1762_v7 = vadd.f32 %v1761_v4, %v1640_v2  ;;  %v1763_v8 = vpop.f32.mrb[1].mxu1 }
 0x5cf   : > { %v1764_v10 = vadd.f32 %v1763_v8, %v1644_v3  ;;  %v1765_v11 = vpop.f32.mrb[2].mxu1 }
 0x5d0   : > { %v1784_v14 = vadd.f32 %v1780_v5, %v1762_v7  ;;  %v1766_v15 = vadd.f32 %v1765_v11, %v1640_v2  ;;  %v1767_v17 = vpop.f32.mrb[3].mxu1 }
 0x5d1   : > { %v1785_v22 = vadd.f32 %v1781_v9, %v1764_v10  ;;  %v1768_v13 = vadd.f32 %v1767_v17, %v1644_v3 }
 0x5d2   : > { %v1805_v24 = vrot.slane %v1784_v14, 7  ;;  %v1786_v25 = vadd.f32 %v1782_v12, %v1766_v15 }
 0x5d3   : > { %v1806_v26 = vrot.slane %v1785_v22, 7  ;;  %v1787_v27 = vadd.f32 %v1783_v18, %v1768_v13 }
 0x5d4   : > { %v1807_v28 = vrot.slane %v1786_v25, 7  ;;  %v13729_v29 = vsel %vm1804_vm0, %v1793_v21, %v1805_v24 }
 0x5d5   : > { %v1809_v16 = vrot.slane %v1787_v27, 7  ;;  %v1771_v30 = vpop.f32.mrb[4].mxu1  ;;  %v13732_v31 = vsel %vm1804_vm0, %v1797_v23, %v1806_v26  ;;  %v1834_v35 = vmul.f32 %v13729_v29, %v13729_v29 }
 0x5d6   : > { %v1772_v32 = vadd.f32 %v1771_v30, %v1640_v2  ;;  %v1773_v33 = vpop.f32.mrb[5].mxu1  ;;  %v1823_v19 = vadd.f32 %v13732_v31, %v13729_v29  ;;  %v13737_v34 = vsel %vm1804_vm0, %v1805_v24, %v1807_v28  ;;  %v13745_v40 = vsel %vm1804_vm0, %v1807_v28, 0.0 }
 0x5d7   : > { %v1774_v36 = vadd.f32 %v1773_v33, %v1644_v3  ;;  %v1775_v38 = vpop.f32.mrb[6].mxu1  ;;  %v13742_v39 = vsel %vm1804_vm0, %v1806_v26, %v1809_v16  ;;  %v13748_v41 = vsel %vm1804_vm0, %v1809_v16, 0.0  ;;  %v1835_v51 = vmul.f32 %v13732_v31, %v13732_v31 }
 0x5d8   : > { %v1936_v42 = vadd.f32 %v1780_v5, %v1772_v32  ;;  %v1776_v37 = vadd.f32 %v1775_v38, %v1640_v2  ;;  %1824 = vadd.xlane.f32.xlu0 %v1823_v19  ;;  %v1777_v45 = vpop.f32.mrb[7].mxu1  ;;  %v1826_v46 = vadd.f32 %v13742_v39, %v13737_v34  ;;  %v1829_v60 = vadd.f32 %v13748_v41, %v13745_v40 }
 0x5d9   : > { %v1937_v56 = vadd.f32 %v1781_v9, %v1774_v36  ;;  %v1778_v57 = vadd.f32 %v1777_v45, %v1644_v3  ;;  %v1836_v61 = vmul.f32 %v13737_v34, %v13737_v34  ;;  %v1837_v62 = vmul.f32 %v13742_v39, %v13742_v39 }
 0x5da   : > { %v1938_v59 = vadd.f32 %v1782_v12, %v1776_v37  ;;  %1827 = vadd.xlane.f32.xlu1 %v1826_v46  ;;  %v1956_v63 = vrot.slane %v1936_v42, 7  ;;  %v1945_v2 = vrot.slane %v1940_v20, %v13688_v43  ;;  %v1840_v3 = vadd.f32 %v1835_v51, %v1834_v35 }
 0x5db   : > { %v1957_v0 = vrot.slane %v1937_v56, 7  ;;  %v1939_v1 = vadd.f32 %v1783_v18, %v1778_v57  ;;  %v1838_v44 = vmul.f32 %v13745_v40, %v13745_v40  ;;  %v1839_v5 = vmul.f32 %v13748_v41, %v13748_v41 }
 0x5dc   : > { %v1958_v4 = vrot.slane %v1938_v59, 7  ;;  %1830 = vadd.xlane.f32.xlu0 %v1829_v60  ;;  %v1843_v8 = vadd.f32 %v1837_v62, %v1836_v61  ;;  %v13773_v43 = vsel %vm1804_vm0, %v1945_v2, %v1956_v63 }
 0x5dd   : > { %v1960_v6 = vrot.slane %v1939_v1, 7  ;;  %v13767_v7 = vsel %vm1804_vm0, %v1949_v58, %v1957_v0  ;;  %v1846_v11 = vadd.f32 %v1839_v5, %v1838_v44  ;;  %v1983_v13 = vmul.f32 %v13773_v43, %v13773_v43 }
 0x5de   : > { %1841 = vadd.xlane.f32.xlu1 %v1840_v3  ;;  %v13770_v9 = vsel %vm1804_vm0, %v1956_v63, %v1958_v4  ;;  %v1974_v12 = vadd.f32 %v13767_v7, %v13773_v43  ;;  %v13781_v14 = vsel %vm1804_vm0, %v1958_v4, 0.0  ;;  %v1984_v23 = vmul.f32 %v13767_v7, %v13767_v7 }
 0x5df   : > { %v13776_v10 = vsel %vm1804_vm0, %v1957_v0, %v1960_v6  ;;  %v13784_v15 = vsel %vm1804_vm0, %v1960_v6, 0.0  ;;  %v1985_v18 = vmul.f32 %v13770_v9, %v13770_v9  ;;  %v1987_v26 = vmul.f32 %v13781_v14, %v13781_v14 }
 0x5e0   : > { %1844 = vadd.xlane.f32.xlu0 %v1843_v8  ;;  %v1977_v17 = vadd.f32 %v13776_v10, %v13770_v9  ;;  %v1986_v21 = vmul.f32 %v13776_v10, %v13776_v10  ;;  %v1980_v22 = vadd.f32 %v13784_v15, %v13781_v14  ;;  %v1989_v25 = vadd.f32 %v1984_v23, %v1983_v13 }
 0x5e1   : > { %v1988_v27 = vmul.f32 %v13784_v15, %v13784_v15 }
 0x5e2   : > { %1847 = vadd.xlane.f32.xlu1 %v1846_v11  ;;  %v1992_v24 = vadd.f32 %v1986_v21, %v1985_v18 }
 0x5e3   : > { %v1995_v28 = vadd.f32 %v1988_v27, %v1987_v26 }
 0x5e4   : > { %1975 = vadd.xlane.f32.xlu0 %v1974_v12 }
 0x5e6   : > { %1978 = vadd.xlane.f32.xlu1 %v1977_v17 }
 0x5e8   : > { %1981 = vadd.xlane.f32.xlu0 %v1980_v22 }
 0x5ea   : > { %1993 = vadd.xlane.f32.xlu1 %v1992_v24 }
 0x5ec   : > { %1990 = vadd.xlane.f32.xlu0 %v1989_v25 }
 0x5f0   : > { %1996 = vadd.xlane.f32.xlu0 %v1995_v28 }
 0x665   : > { %v1825_v16 = vpop.xlane.xlu0 %1824 }
 0x666   : > { %v1849_v32 = vmul.f32 0.004464286, %v1825_v16 }
 0x667   : > { %v1828_v30 = vpop.xlane.xlu1 %1827 }
 0x668   : > { %v1850_v19 = vmul.f32 0.004464286, %v1828_v30  ;;  %v1856_v36 = vmul.f32 %v1849_v32, %v1849_v32  ;;  %v1864_v18 = vsub.f32 %v13729_v29, %v1849_v32  ;;  %v1865_v21 = vsub.f32 %v13732_v31, %v1849_v32 }
 0x669   : > { %v1831_v33 = vpop.xlane.xlu0 %1830 }
 0x66a   : > { %v1851_v20 = vmul.f32 0.004464286, %v1831_v33  ;;  %v1857_v46 = vmul.f32 %v1850_v19, %v1850_v19  ;;  %v1866_v24 = vsub.f32 %v13737_v34, %v1850_v19  ;;  %v1867_v25 = vsub.f32 %v13742_v39, %v1850_v19 }
 0x66b   : > { %v1842_v35 = vpop.xlane.xlu1 %1841 }
 0x66c   : > { %v1853_v38 = vmul.f32 0.004464286, %v1842_v35  ;;  %v1858_v58 = vmul.f32 %v1851_v20, %v1851_v20  ;;  %v1868_v34 = vsub.f32 %v13745_v40, %v1851_v20  ;;  %v1869_v39 = vsub.f32 %v13748_v41, %v1851_v20 }
 0x66d   : > { %v1845_v42 = vpop.xlane.xlu0 %1844 }
 0x66e   : > { %v1860_v37 = vsub.f32 %v1853_v38, %v1856_v36  ;;  %v1854_v45 = vmul.f32 0.004464286, %v1845_v42 }
 0x66f   : > { %v1848_v51 = vpop.xlane.xlu1 %1847 }
 0x670   : > { %v1871_v56 = vadd.f32 1e-05, %v1860_v37  ;;  %v1861_v57 = vsub.f32 %v1854_v45, %v1857_v46  ;;  %v1855_v59 = vmul.f32 0.004464286, %v1848_v51 }
 0x671   : > { %v1976_v60 = vpop.xlane.xlu0 %1975 }
 0x672   : > { %10715 = vrsqrt.f32 %v1871_v56  ;;  %v1872_v61 = vadd.f32 1e-05, %v1861_v57  ;;  %v1862_v62 = vsub.f32 %v1855_v59, %v1858_v58  ;;  %v13804_v4 = vmul.f32 0.004464286, %v1976_v60 }
 0x673   : > { %v1979_v63 = vpop.xlane.xlu1 %1978 }
 0x674   : > { %10717 = vrsqrt.f32 %v1872_v61  ;;  %v1873_v0 = vadd.f32 1e-05, %v1862_v62  ;;  %v13802_v1 = vmul.f32 0.004464286, %v1979_v63  ;;  %v2004_v12 = vmul.f32 %v13804_v4, %v13804_v4 }
 0x675   : > { %v1982_v2 = vpop.xlane.xlu0 %1981 }
 0x676   : > { %10719 = vrsqrt.f32 %v1873_v0  ;;  %v2005_v44 = vmul.f32 %v13802_v1, %v13802_v1  ;;  %v13808_v8 = vmul.f32 0.004464286, %v1982_v2  ;;  %v2012_v61 = vsub.f32 %v13770_v9, %v13802_v1 }
 0x677   : > { %v1994_v3 = vpop.xlane.xlu1 %1993  ;;  %v2013_v62 = vsub.f32 %v13776_v10, %v13802_v1 }
 0x678   : > { %v2002_v5 = vmul.f32 0.004464286, %v1994_v3  ;;  %v2006_v33 = vmul.f32 %v13808_v8, %v13808_v8  ;;  %v2014_v10 = vsub.f32 %v13781_v14, %v13808_v8  ;;  %v2015_v1 = vsub.f32 %v13784_v15, %v13808_v8 }
 0x679   : > { %v1991_v6 = vpop.xlane.xlu0 %1990 }
 0x67a   : > { %v2008_v11 = vsub.f32 %v2002_v5, %v2005_v44  ;;  %v2001_v17 = vmul.f32 0.004464286, %v1991_v6 }
 0x67c   : > { %v10716_v22 = vpop.eup %10715  ;;  %v2017_v13 = vadd.f32 1e-05, %v2008_v11  ;;  %v2007_v23 = vsub.f32 %v2001_v17, %v2004_v12 }
 0x67d   : > { %v1879_v26 = vmul.f32 %v10716_v22, %v1864_v18  ;;  %v1880_v27 = vmul.f32 %v10716_v22, %v1865_v21  ;;  %v1997_v28 = vpop.xlane.xlu0 %1996 }
 0x67e   : > { %v10718_v16 = vpop.eup %10717  ;;  %10721 = vrsqrt.f32 %v2017_v13  ;;  %v2016_v30 = vadd.f32 1e-05, %v2007_v23  ;;  %v2003_v35 = vmul.f32 0.004464286, %v1997_v28 }
 0x67f   : > { %v1897_v29 = vmul.f32 %v13693_v47, %v1879_v26  ;;  %v1898_v31 = vmul.f32 %v13696_v48, %v1880_v27  ;;  %v1881_v32 = vmul.f32 %v10718_v16, %v1866_v24  ;;  %v1882_v36 = vmul.f32 %v10718_v16, %v1867_v25 }
 0x680   : > { %v10720_v38 = vpop.eup %10719  ;;  %10723 = vrsqrt.f32 %v2016_v30  ;;  %v2009_v19 = vsub.f32 %v2003_v35, %v2006_v33 }
 0x681   : > { %v1916_v42 = vadd.f32 %v13705_v52, %v1897_v29  ;;  %v1917_v37 = vadd.f32 %v13708_v53, %v1898_v31  ;;  %v1899_v45 = vmul.f32 %v13693_v47, %v1881_v32  ;;  %v1900_v46 = vmul.f32 %v13696_v48, %v1882_v36 }
 0x682   : > { %v1883_v51 = vmul.f32 %v10720_v38, %v1868_v34  ;;  %v1884_v56 = vmul.f32 %v10720_v38, %v1869_v39  ;;  %v2018_v57 = vadd.f32 1e-05, %v2009_v19 }
 0x683   : > { %1924 = vst [vmem:[#allocation2] sm:$0xff] %v1916_v42  ;;  %1925 = vst [vmem:[#allocation2 + $0x8] sm:$0xff] %v1917_v37  ;;  %v1918_v58 = vadd.f32 %v13705_v52, %v1899_v45  ;;  %v1919_v40 = vadd.f32 %v13708_v53, %v1900_v46 }
 0x684   : > { %v1901_v41 = vmul.f32 %v13693_v47, %v1883_v51  ;;  %v1902_v20 = vmul.f32 %v13696_v48, %v1884_v56  ;;  %10725 = vrsqrt.f32 %v2018_v57  ;;  %v2010_v47 = vsub.f32 %v13773_v43, %v13804_v4 }
 0x685   : > { %1926 = vst [vmem:[#allocation2 + $0x10] sm:$0xff] %v1918_v58  ;;  %1927 = vst [vmem:[#allocation2 + $0x18] sm:$0xff] %v1919_v40  ;;  %v2011_v48 = vsub.f32 %v13767_v7, %v13804_v4 }
 0x686   : > { %v1920_v59 = vadd.f32 %v13705_v52, %v1901_v41  ;;  %v1921_v60 = vadd.f32 %v13708_v53, %v1902_v20 }
 0x688   : > { %v10722_v63 = vpop.eup %10721  ;;  %1928 = vst [vmem:[#allocation2 + $0x20] sm:$0xff] %v1920_v59  ;;  %1929 = vst [vmem:[#allocation2 + $0x28] sm:$0xff] %v1921_v60 }
 0x689   : > { %v2024_v0 = vmul.f32 %v10722_v63, %v2012_v61  ;;  %v2025_v2 = vmul.f32 %v10722_v63, %v2013_v62 }
 0x68a   : > { %v10724_v52 = vpop.eup %10723 }
 0x68b   : > { %v2041_v53 = vmul.f32 %v13699_v49, %v2024_v0  ;;  %v2042_v3 = vmul.f32 %v13702_v50, %v2025_v2  ;;  %v2022_v9 = vmul.f32 %v10724_v52, %v2010_v47  ;;  %v2023_v44 = vmul.f32 %v10724_v52, %v2011_v48 }
 0x68d   : > { %v2060_v43 = vadd.f32 %v13711_v54, %v2041_v53  ;;  %v2061_v5 = vadd.f32 %v13714_v55, %v2042_v3  ;;  %v2039_v7 = vmul.f32 %v13699_v49, %v2022_v9  ;;  %v2040_v4 = vmul.f32 %v13702_v50, %v2023_v44 }
 0x68e   : > { %v10726_v6 = vpop.eup %10725 }
 0x68f   : > { %2068 = vst [vmem:[#allocation2 + $0x50] sm:$0xff] %v2060_v43  ;;  %2069 = vst [vmem:[#allocation2 + $0x58] sm:$0xff] %v2061_v5  ;;  %v2058_v11 = vadd.f32 %v13711_v54, %v2039_v7  ;;  %v2059_v12 = vadd.f32 %v13714_v55, %v2040_v4  ;;  %v2026_v17 = vmul.f32 %v10726_v6, %v2014_v10 }
 0x690   : > { %v2027_v14 = vmul.f32 %v10726_v6, %v2015_v1 }
 0x691   : > { %2066 = vst [vmem:[#allocation2 + $0x40] sm:$0xff] %v2058_v11  ;;  %2067 = vst [vmem:[#allocation2 + $0x48] sm:$0xff] %v2059_v12  ;;  %v2043_v15 = vmul.f32 %v13699_v49, %v2026_v17 }
 0x692   : > { %v2044_v8 = vmul.f32 %v13702_v50, %v2027_v14 }
 0x693   : > { %v2062_v18 = vadd.f32 %v13711_v54, %v2043_v15 }
 0x694   : > { %v2063_v21 = vadd.f32 %v13714_v55, %v2044_v8 }
 0x695   : > { %2070 = vst [vmem:[#allocation2 + $0x60] sm:$0xff] %v2062_v18 }
 0x696   : > { %2071 = vst [vmem:[#allocation2 + $0x68] sm:$0xff] %v2063_v21 }
 0x697 PF: > { %v2074_v22 = vld [vmem:[#allocation2] sm:$0xff]  ;;  %v2075_v13 = vld [vmem:[#allocation2 + $0x8] sm:$0xff]  ;;  %v2076_v23 = vld [vmem:[#allocation2 + $0x10] sm:$0xff]  ;;  %vm4115_vm2 = vcmask 261120   ;;  %s16215_s18 = sld [smem:[#allocation53_spill]] }
 0x698   : > { %v2092_v24 = vadd.f32 %v2075_v13, %v2074_v22  ;;  %v2116_v25 = vmul.f32 %v2074_v22, %v2074_v22  ;;  %v2117_v26 = vmul.f32 %v2075_v13, %v2075_v13  ;;  %v2077_v27 = vld [vmem:[#allocation2 + $0x18] sm:$0xff]  ;;  %v2118_v28 = vmul.f32 %v2076_v23, %v2076_v23  ;;  %v2078_v55 = vld [vmem:[#allocation2 + $0x20] sm:$0xff]  ;;  %v2079_v16 = vld [vmem:[#allocation2 + $0x28] sm:$0xff] }
 0x699   : > { %v2119_v49 = vmul.f32 %v2077_v27, %v2077_v27  ;;  %v2095_v54 = vadd.f32 %v2077_v27, %v2076_v23  ;;  %v2080_v30 = vld [vmem:[#allocation2 + $0x30] sm:$0xff]  ;;  %v2081_v35 = vld [vmem:[#allocation2 + $0x38] sm:$0xff]  ;;  %v2098_v31 = vadd.f32 %v2079_v16, %v2078_v55  ;;  %v2120_v32 = vmul.f32 %v2078_v55, %v2078_v55  ;;  %v2082_v51 = vld [vmem:[#allocation2 + $0x40] sm:$0xff] }
 0x69a   : > { %2093 = vadd.xlane.f32.xlu0 %v2092_v24  ;;  %v2132_v50 = vadd.f32 %v2117_v26, %v2116_v25  ;;  %v10727_v29 = vld [vmem:[%s13637_s5 + $0x4] ss:$48 sps:$4 sm:$0xff]   ;;  %v2121_v36 = vmul.f32 %v2079_v16, %v2079_v16  ;;  %v10731_v34 = vld [vmem:[%s13637_s5] ss:$48 sps:$4 sm:$0xff]   ;;  %v2101_v42 = vadd.f32 %v2081_v35, %v2080_v30  ;;  %v2122_v37 = vmul.f32 %v2080_v30, %v2080_v30 }
 0x69b   : > { %v2135_v33 = vadd.f32 %v2119_v49, %v2118_v28  ;;  %v10729_v38 = vld [vmem:[%s13637_s5 + $0x14] ss:$48 sps:$4 sm:$0xff]   ;;  %v10732_v39 = vld [vmem:[%s13637_s5 + $0x10] ss:$48 sps:$4 sm:$0xff]   ;;  %3514 = vmatprep.subr.bf16.mxu1 %v10727_v29  ;;  %v2123_v45 = vmul.f32 %v2081_v35, %v2081_v35  ;;  %v2124_v48 = vmul.f32 %v2082_v51, %v2082_v51 }
 0x69c   : > { %2133 = vadd.xlane.f32.xlu1 %v2132_v50  ;;  %v10733_v19 = vld [vmem:[%s13637_s5 + $0x64] ss:$48 sps:$4 sm:$0xff]   ;;  %3660 = vmatprep.subr.bf16.mxu0 %v10729_v38  ;;  %v10737_v56 = vld [vmem:[%s13637_s5 + $0x60] ss:$48 sps:$4 sm:$0xff]   ;;  %v2138_v58 = vadd.f32 %v2121_v36, %v2120_v32 }
 0x69d   : > { %v10735_v46 = vld [vmem:[%s13637_s5 + $0x74] ss:$48 sps:$4 sm:$0xff]   ;;  %3515 = vmatpush1.bf16.msra.mxu1 %v10731_v34  ;;  %3661 = vmatpush1.bf16.msra.mxu0 %v10732_v39  ;;  %v10738_v57 = vld [vmem:[%s13637_s5 + $0x70] ss:$48 sps:$4 sm:$0xff]   ;;  %v2141_v61 = vadd.f32 %v2123_v45, %v2122_v37  ;;  %p10010_p0 = scmp.ne.s32.totalorder %s16215_s18, 1 }
 0x69e   : > { %2096 = vadd.xlane.f32.xlu0 %v2095_v54  ;;  %3516 = vmatprep.subr.bf16.mxu1 %v10733_v19  ;;  %v10739_v40 = vld [vmem:[%s13637_s5 + $0xc4] ss:$48 sps:$4 sm:$0xff]   ;;  %v10743_v62 = vld [vmem:[%s13637_s5 + $0xc0] ss:$48 sps:$4 sm:$0xff]   ;;  %vm8711_vm3 = vcmask (!%p10010_p0), 1040384   ;;  %vm8716_vm4 = vcmask (!%p10010_p0), 1041408  }
 0x69f   : > { %v2084_v41 = vld [vmem:[#allocation2 + $0x50] sm:$0xff]  ;;  %v2085_v20 = vld [vmem:[#allocation2 + $0x58] sm:$0xff]  ;;  %v2083_v59 = vld [vmem:[#allocation2 + $0x48] sm:$0xff]  ;;  %3662 = vmatprep.subr.bf16.mxu0 %v10735_v46 }
 0x6a0   : > { %2136 = vadd.xlane.f32.xlu1 %v2135_v33  ;;  %v10741_v60 = vld [vmem:[%s13637_s5 + $0xd4] ss:$48 sps:$4 sm:$0xff]   ;;  %v10744_v63 = vld [vmem:[%s13637_s5 + $0xd0] ss:$48 sps:$4 sm:$0xff]   ;;  %v2104_v47 = vadd.f32 %v2083_v59, %v2082_v51  ;;  %v2125_v0 = vmul.f32 %v2083_v59, %v2083_v59  ;;  %v2107_v53 = vadd.f32 %v2085_v20, %v2084_v41  ;;  %v2126_v3 = vmul.f32 %v2084_v41, %v2084_v41 }
 0x6a1   : > { %3517 = vmatpush1.bf16.msra.mxu1 %v10737_v56  ;;  %3663 = vmatpush1.bf16.msra.mxu0 %v10738_v57  ;;  %v10745_v2 = vld [vmem:[%s13637_s5 + $0x124] ss:$48 sps:$4 sm:$0xff]   ;;  %v2127_v9 = vmul.f32 %v2085_v20, %v2085_v20  ;;  %v10749_v10 = vld [vmem:[%s13637_s5 + $0x120] ss:$48 sps:$4 sm:$0xff]  }
 0x6a2   : > { %2099 = vadd.xlane.f32.xlu0 %v2098_v31  ;;  %3518 = vmatprep.subr.bf16.mxu1 %v10739_v40  ;;  %v10747_v52 = vld [vmem:[%s13637_s5 + $0x134] ss:$48 sps:$4 sm:$0xff]   ;;  %v10750_v1 = vld [vmem:[%s13637_s5 + $0x130] ss:$48 sps:$4 sm:$0xff]   ;;  %v2144_v43 = vadd.f32 %v2125_v0, %v2124_v48 }
 0x6a3   : > { %3664 = vmatprep.subr.bf16.mxu0 %v10741_v60  ;;  %v2086_v44 = vld [vmem:[#allocation2 + $0x60] sm:$0xff]  ;;  %v2088_v7 = vld [vmem:[#allocation2 + $0x70] sm:$0xff]  ;;  %v2089_v4 = vld [vmem:[#allocation2 + $0x78] sm:$0xff]  ;;  %v2147_v12 = vadd.f32 %v2127_v9, %v2126_v3 }
 0x6a4   : > { %2102 = vadd.xlane.f32.xlu1 %v2101_v42  ;;  %v10751_v5 = vld [vmem:[%s13637_s5 + $0x184] ss:$48 sps:$4 sm:$0xff]   ;;  %v10755_v17 = vld [vmem:[%s13637_s5 + $0x180] ss:$48 sps:$4 sm:$0xff]   ;;  %v2128_v8 = vmul.f32 %v2086_v44, %v2086_v44  ;;  %v2113_v13 = vadd.f32 %v2089_v4, %v2088_v7  ;;  %v2130_v23 = vmul.f32 %v2088_v7, %v2088_v7  ;;  %v2131_v24 = vmul.f32 %v2089_v4, %v2089_v4 }
 0x6a5   : > { %3519 = vmatpush1.bf16.msra.mxu1 %v10743_v62  ;;  %3665 = vmatpush1.bf16.msra.mxu0 %v10744_v63  ;;  %v2087_v6 = vld [vmem:[#allocation2 + $0x68] sm:$0xff]  ;;  %v10756_v14 = vld [vmem:[%s13637_s5 + $0x190] ss:$48 sps:$4 sm:$0xff]  }
 0x6a6   : > { %2139 = vadd.xlane.f32.xlu0 %v2138_v58  ;;  %3520 = vmatprep.subr.bf16.mxu1 %v10745_v2  ;;  %v10753_v11 = vld [vmem:[%s13637_s5 + $0x194] ss:$48 sps:$4 sm:$0xff]   ;;  %v2110_v15 = vadd.f32 %v2087_v6, %v2086_v44  ;;  %v2129_v18 = vmul.f32 %v2087_v6, %v2087_v6  ;;  %v10761_v25 = vld [vmem:[%s13637_s5 + $0x1e0] ss:$48 sps:$4 sm:$0xff]   ;;  %v2153_v50 = vadd.f32 %v2131_v24, %v2130_v23  ;;  %v10825_v44 = vld [vmem:[%s13637_s5 + $0xc] ss:$48 sps:$4 sm:$0xff]  }
 0x6a7   : > { %3666 = vmatprep.subr.bf16.mxu0 %v10747_v52  ;;  %v10757_v21 = vld [vmem:[%s13637_s5 + $0x1e4] ss:$48 sps:$4 sm:$0xff]   ;;  %v10762_v26 = vld [vmem:[%s13637_s5 + $0x1f0] ss:$48 sps:$4 sm:$0xff]  }
 0x6a8   : > { %2142 = vadd.xlane.f32.xlu1 %v2141_v61  ;;  %v10759_v22 = vld [vmem:[%s13637_s5 + $0x1f4] ss:$48 sps:$4 sm:$0xff]   ;;  %v2150_v27 = vadd.f32 %v2129_v18, %v2128_v8  ;;  %v10767_v54 = vld [vmem:[%s13637_s5 + $0x240] ss:$48 sps:$4 sm:$0xff]  }
 0x6a9   : > { %3521 = vmatpush1.bf16.msra.mxu1 %v10749_v10  ;;  %3667 = vmatpush1.bf16.msra.mxu0 %v10750_v1  ;;  %v10763_v28 = vld [vmem:[%s13637_s5 + $0x244] ss:$48 sps:$4 sm:$0xff]   ;;  %v10768_v55 = vld [vmem:[%s13637_s5 + $0x250] ss:$48 sps:$4 sm:$0xff]  }
 0x6aa   : > { %2105 = vadd.xlane.f32.xlu0 %v2104_v47  ;;  %3522 = vmatprep.subr.bf16.mxu1 %v10751_v5  ;;  %v10765_v49 = vld [vmem:[%s13637_s5 + $0x254] ss:$48 sps:$4 sm:$0xff]   ;;  %v10773_v33 = vld [vmem:[%s13637_s5 + $0x2a0] ss:$48 sps:$4 sm:$0xff]  }
 0x6ab   : > { %3668 = vmatprep.subr.bf16.mxu0 %v10753_v11  ;;  %v10769_v16 = vld [vmem:[%s13637_s5 + $0x2a4] ss:$48 sps:$4 sm:$0xff]   ;;  %v10774_v35 = vld [vmem:[%s13637_s5 + $0x2b0] ss:$48 sps:$4 sm:$0xff]  }
 0x6ac   : > { %2108 = vadd.xlane.f32.xlu1 %v2107_v53  ;;  %v10771_v30 = vld [vmem:[%s13637_s5 + $0x2b4] ss:$48 sps:$4 sm:$0xff]   ;;  %v10779_v32 = vld [vmem:[%s13637_s5 + $0x300] ss:$48 sps:$4 sm:$0xff]  }
 0x6ad   : > { %3523 = vmatpush1.bf16.msra.mxu1 %v10755_v17  ;;  %3669 = vmatpush1.bf16.msra.mxu0 %v10756_v14  ;;  %v10775_v29 = vld [vmem:[%s13637_s5 + $0x304] ss:$48 sps:$4 sm:$0xff]   ;;  %v10780_v36 = vld [vmem:[%s13637_s5 + $0x310] ss:$48 sps:$4 sm:$0xff]   ;;  %v15949_v14 = vlaneseq }
 0x6ae   : > { %2145 = vadd.xlane.f32.xlu0 %v2144_v43  ;;  %3524 = vmatprep.subr.bf16.mxu1 %v10757_v21  ;;  %v10777_v31 = vld [vmem:[%s13637_s5 + $0x314] ss:$48 sps:$4 sm:$0xff]   ;;  %v10785_v39 = vld [vmem:[%s13637_s5 + $0x360] ss:$48 sps:$4 sm:$0xff]  }
 0x6af   : > { %3670 = vmatprep.subr.bf16.mxu0 %v10759_v22  ;;  %v10781_v38 = vld [vmem:[%s13637_s5 + $0x364] ss:$48 sps:$4 sm:$0xff]   ;;  %v10786_v19 = vld [vmem:[%s13637_s5 + $0x370] ss:$48 sps:$4 sm:$0xff]   ;;  %v13929_v24 = vshrl.u32 %v15949_v14, 7 }
 0x6b0   : > { %2148 = vadd.xlane.f32.xlu1 %v2147_v12  ;;  %v10783_v34 = vld [vmem:[%s13637_s5 + $0x374] ss:$48 sps:$4 sm:$0xff]   ;;  %v10791_v45 = vld [vmem:[%s13637_s5 + $0x3c0] ss:$48 sps:$4 sm:$0xff]  }
 0x6b1   : > { %3525 = vmatpush1.bf16.msra.mxu1 %v10761_v25  ;;  %3671 = vmatpush1.bf16.msra.mxu0 %v10762_v26  ;;  %v10787_v42 = vld [vmem:[%s13637_s5 + $0x3c4] ss:$48 sps:$4 sm:$0xff]   ;;  %v10792_v46 = vld [vmem:[%s13637_s5 + $0x3d0] ss:$48 sps:$4 sm:$0xff]   ;;  %16113 = vst [vmem:[#allocation61_spill] sm:$0xff] %v13929_v24 }
 0x6b2   : > { %2111 = vadd.xlane.f32.xlu0 %v2110_v15  ;;  %3526 = vmatprep.subr.bf16.mxu1 %v10763_v28  ;;  %v10789_v37 = vld [vmem:[%s13637_s5 + $0x3d4] ss:$48 sps:$4 sm:$0xff]   ;;  %v10797_v57 = vld [vmem:[%s13637_s5 + $0x420] ss:$48 sps:$4 sm:$0xff]  }
 0x6b3   : > { %3672 = vmatprep.subr.bf16.mxu0 %v10765_v49  ;;  %v10793_v51 = vld [vmem:[%s13637_s5 + $0x424] ss:$48 sps:$4 sm:$0xff]   ;;  %v10798_v58 = vld [vmem:[%s13637_s5 + $0x430] ss:$48 sps:$4 sm:$0xff]  }
 0x6b4   : > { %2114 = vadd.xlane.f32.xlu1 %v2113_v13  ;;  %v10795_v56 = vld [vmem:[%s13637_s5 + $0x434] ss:$48 sps:$4 sm:$0xff]   ;;  %v10803_v20 = vld [vmem:[%s13637_s5 + $0x480] ss:$48 sps:$4 sm:$0xff]  }
 0x6b5   : > { %3527 = vmatpush1.bf16.msra.mxu1 %v10767_v54  ;;  %3673 = vmatpush1.bf16.msra.mxu0 %v10768_v55  ;;  %v10799_v40 = vld [vmem:[%s13637_s5 + $0x484] ss:$48 sps:$4 sm:$0xff]   ;;  %v10804_v59 = vld [vmem:[%s13637_s5 + $0x490] ss:$48 sps:$4 sm:$0xff]   ;;  %v13936_v54 = vsub.s32 0, %v13929_v24 }
 0x6b6   : > { %2151 = vadd.xlane.f32.xlu0 %v2150_v27  ;;  %3528 = vmatprep.subr.bf16.mxu1 %v10769_v16  ;;  %v10801_v41 = vld [vmem:[%s13637_s5 + $0x494] ss:$48 sps:$4 sm:$0xff]   ;;  %v10809_v62 = vld [vmem:[%s13637_s5 + $0x4e0] ss:$48 sps:$4 sm:$0xff]  }
 0x6b7   : > { %3674 = vmatprep.subr.bf16.mxu0 %v10771_v30  ;;  %v10805_v60 = vld [vmem:[%s13637_s5 + $0x4e4] ss:$48 sps:$4 sm:$0xff]   ;;  %v10810_v63 = vld [vmem:[%s13637_s5 + $0x4f0] ss:$48 sps:$4 sm:$0xff]   ;;  %16114 = vst [vmem:[#allocation62_spill] sm:$0xff] %v13936_v54 }
 0x6b8   : > { %2154 = vadd.xlane.f32.xlu1 %v2153_v50  ;;  %v10807_v61 = vld [vmem:[%s13637_s5 + $0x4f4] ss:$48 sps:$4 sm:$0xff]   ;;  %v10815_v0 = vld [vmem:[%s13637_s5 + $0x540] ss:$48 sps:$4 sm:$0xff]  }
 0x6b9   : > { %3529 = vmatpush1.bf16.msra.mxu1 %v10773_v33  ;;  %3675 = vmatpush1.bf16.msra.mxu0 %v10774_v35  ;;  %v10811_v47 = vld [vmem:[%s13637_s5 + $0x544] ss:$48 sps:$4 sm:$0xff]   ;;  %v10816_v2 = vld [vmem:[%s13637_s5 + $0x550] ss:$48 sps:$4 sm:$0xff]   ;;  %v2090_v33 = vld [vmem:[%s1215_s11] sm:$0x3] }
 0x6ba   : > { %3530 = vmatprep.subr.bf16.mxu1 %v10775_v29  ;;  %3676 = vmatprep.subr.bf16.mxu0 %v10777_v31  ;;  %v10813_v48 = vld [vmem:[%s13637_s5 + $0x554] ss:$48 sps:$4 sm:$0xff]   ;;  %v10821_v3 = vld [vmem:[%s13637_s5 + $0x5a0] ss:$48 sps:$4 sm:$0xff]   ;;  %v13943_v35 = vsub.s32 1, %v13929_v24 }
 0x6bb   : > { %v10817_v52 = vld [vmem:[%s13637_s5 + $0x5a4] ss:$48 sps:$4 sm:$0xff]   ;;  %v10822_v9 = vld [vmem:[%s13637_s5 + $0x5b0] ss:$48 sps:$4 sm:$0xff]  }
 0x6bc   : > { %v10819_v53 = vld [vmem:[%s13637_s5 + $0x5b4] ss:$48 sps:$4 sm:$0xff]   ;;  %16115 = vst [vmem:[#allocation63_spill] sm:$0xff] %v13943_v35 }
 0x6bd   : > { %3531 = vmatpush1.bf16.msra.mxu1 %v10779_v32  ;;  %3677 = vmatpush1.bf16.msra.mxu0 %v10780_v36  ;;  %v10828_v10 = vld [vmem:[%s13637_s5 + $0x24] ss:$48 sps:$4 sm:$0xff]  }
 0x6be   : > { %3532 = vmatprep.subr.bf16.mxu1 %v10781_v38  ;;  %3678 = vmatprep.subr.bf16.mxu0 %v10783_v34  ;;  %v11823_v38 = vld [vmem:[#allocation2] sm:$0xff] }
 0x6c1   : > { %3533 = vmatpush1.bf16.msra.mxu1 %v10785_v39  ;;  %3679 = vmatpush1.bf16.msra.mxu0 %v10786_v19  ;;  %v11824_v39 = vld [vmem:[#allocation2 + $0x8] sm:$0xff] }
 0x6c2   : > { %3534 = vmatprep.subr.bf16.mxu1 %v10787_v42  ;;  %3680 = vmatprep.subr.bf16.mxu0 %v10789_v37 }
 0x6c5   : > { %3535 = vmatpush1.bf16.msra.mxu1 %v10791_v45  ;;  %3681 = vmatpush1.bf16.msra.mxu0 %v10792_v46  ;;  %v13948_v45 = vrot.slane %v2090_v33, %v13936_v54 }
 0x6c6   : > { %3536 = vmatprep.subr.bf16.mxu1 %v10793_v51  ;;  %3682 = vmatprep.subr.bf16.mxu0 %v10795_v56  ;;  %v2091_v56 = vld [vmem:[%s1224_s27] sm:$0x3] }
 0x6c9   : > { %3537 = vmatpush1.bf16.msra.mxu1 %v10797_v57  ;;  %3683 = vmatpush1.bf16.msra.mxu0 %v10798_v58  ;;  %v13955_v57 = vrot.slane %v2090_v33, %v13943_v35  ;;  %v11830_v33 = vld [vmem:[#allocation2 + $0x38] sm:$0xff] }
 0x6ca   : > { %3538 = vmatprep.subr.bf16.mxu1 %v10799_v40  ;;  %3684 = vmatprep.subr.bf16.mxu0 %v10801_v41 }
 0x6cd   : > { %3539 = vmatpush1.bf16.msra.mxu1 %v10803_v20  ;;  %3685 = vmatpush1.bf16.msra.mxu0 %v10804_v59 }
 0x6ce   : > { %3540 = vmatprep.subr.bf16.mxu1 %v10805_v60  ;;  %3686 = vmatprep.subr.bf16.mxu0 %v10807_v61 }
 0x6d1   : > { %3541 = vmatpush1.bf16.msra.mxu1 %v10809_v62  ;;  %3687 = vmatpush1.bf16.msra.mxu0 %v10810_v63  ;;  %v13962_v62 = vrot.slane %v2091_v56, %v13936_v54  ;;  %v11825_v63 = vld [vmem:[#allocation2 + $0x10] sm:$0xff] }
 0x6d2   : > { %3542 = vmatprep.subr.bf16.mxu1 %v10811_v47  ;;  %3688 = vmatprep.subr.bf16.mxu0 %v10813_v48  ;;  %v11826_v48 = vld [vmem:[#allocation2 + $0x18] sm:$0xff] }
 0x6d5   : > { %3543 = vmatpush1.bf16.msra.mxu1 %v10815_v0  ;;  %3689 = vmatpush1.bf16.msra.mxu0 %v10816_v2 }
 0x6d6   : > { %3544 = vmatprep.subr.bf16.mxu1 %v10817_v52  ;;  %3690 = vmatprep.subr.bf16.mxu0 %v10819_v53  ;;  %v13967_v53 = vrot.slane %v2091_v56, %v13943_v35 }
 0x6d9   : > { %3545 = vmatpush1.bf16.msra.mxu1 %v10821_v3  ;;  %3691 = vmatpush1.bf16.msra.mxu0 %v10822_v9 }
 0x6da   : > { %3587 = vmatprep.subr.bf16.mxu1 %v10825_v44  ;;  %3806 = vmatprep.subr.bf16.mxu0 %v10828_v10 }
 0x727   : > { %v2094_v1 = vpop.xlane.xlu0 %2093 }
 0x728   : > { %v2156_v43 = vmul.f32 0.004464286, %v2094_v1 }
 0x729   : > { %v2134_v5 = vpop.xlane.xlu1 %2133 }
 0x72a   : > { %v2164_v7 = vmul.f32 0.004464286, %v2134_v5  ;;  %v2172_v4 = vmul.f32 %v2156_v43, %v2156_v43  ;;  %v2188_v34 = vsub.f32 %v11823_v38, %v2156_v43  ;;  %v2189_v19 = vsub.f32 %v11824_v39, %v2156_v43  ;;  %v10826_v39 = vld [vmem:[%s13637_s5 + $0x20] ss:$48 sps:$4 sm:$0xff]  }
 0x72b   : > { %v2097_v6 = vpop.xlane.xlu0 %2096 }
 0x72c   : > { %v2180_v11 = vsub.f32 %v2164_v7, %v2172_v4  ;;  %v13922_v12 = vmul.f32 0.004464286, %v2097_v6  ;;  %v11827_v4 = vld [vmem:[#allocation2 + $0x20] sm:$0xff] }
 0x72d   : > { %v2137_v17 = vpop.xlane.xlu1 %2136 }
 0x72e   : > { %v2204_v15 = vadd.f32 1e-05, %v2180_v11  ;;  %v2165_v8 = vmul.f32 0.004464286, %v2137_v17  ;;  %v2173_v18 = vmul.f32 %v13922_v12, %v13922_v12  ;;  %v2190_v47 = vsub.f32 %v11825_v63, %v13922_v12  ;;  %v11828_v11 = vld [vmem:[#allocation2 + $0x28] sm:$0xff] }
 0x72f   : > { %v2100_v21 = vpop.xlane.xlu0 %2099  ;;  %v2191_v0 = vsub.f32 %v11826_v48, %v13922_v12  ;;  %v10829_v48 = vld [vmem:[%s13637_s5 + $0x68] ss:$48 sps:$4 sm:$0xff]  }
 0x730   : > { %11439 = vrsqrt.f32 %v2204_v15  ;;  %v13926_v22 = vmul.f32 0.004464286, %v2100_v21  ;;  %v2181_v13 = vsub.f32 %v2165_v8, %v2173_v18 }
 0x731   : > { %v2103_v23 = vpop.xlane.xlu1 %2102 }
 0x732   : > { %v13931_v25 = vmul.f32 0.004464286, %v2103_v23  ;;  %v2174_v26 = vmul.f32 %v13926_v22, %v13926_v22  ;;  %v2205_v27 = vadd.f32 1e-05, %v2181_v13  ;;  %v2192_v6 = vsub.f32 %v11827_v4, %v13926_v22 }
 0x733   : > { %v2140_v28 = vpop.xlane.xlu0 %2139  ;;  %v2193_v12 = vsub.f32 %v11828_v11, %v13926_v22 }
 0x734   : > { %v2166_v49 = vmul.f32 0.004464286, %v2140_v28  ;;  %11441 = vrsqrt.f32 %v2205_v27  ;;  %v2175_v16 = vmul.f32 %v13931_v25, %v13931_v25  ;;  %v11829_v27 = vld [vmem:[#allocation2 + $0x30] sm:$0xff] }
 0x735   : > { %v2143_v50 = vpop.xlane.xlu1 %2142  ;;  %v2194_v28 = vsub.f32 %v11829_v27, %v13931_v25 }
 0x736   : > { %v2182_v55 = vsub.f32 %v2166_v49, %v2174_v26  ;;  %v2167_v30 = vmul.f32 0.004464286, %v2143_v50 }
 0x737   : > { %v2106_v29 = vpop.xlane.xlu0 %2105 }
 0x738   : > { %v2206_v31 = vadd.f32 1e-05, %v2182_v55  ;;  %v2183_v32 = vsub.f32 %v2167_v30, %v2175_v16  ;;  %v13945_v36 = vmul.f32 0.004464286, %v2106_v29  ;;  %v10823_v30 = vld [vmem:[%s13637_s5 + $0x8] ss:$48 sps:$4 sm:$0xff]   ;;  %v2195_v29 = vsub.f32 %v11830_v33, %v13931_v25 }
 0x739   : > { %v2109_v42 = vpop.xlane.xlu1 %2108  ;;  %v10841_v33 = vld [vmem:[%s13637_s5 + $0x128] ss:$48 sps:$4 sm:$0xff]  }
 0x73a   : > { %v11440_v37 = vpop.eup %11439  ;;  %11443 = vrsqrt.f32 %v2206_v31  ;;  %v2207_v46 = vadd.f32 1e-05, %v2183_v32  ;;  %v13950_v51 = vmul.f32 0.004464286, %v2109_v42  ;;  %v2176_v41 = vmul.f32 %v13945_v36, %v13945_v36 }
 0x73b   : > { %v2220_v58 = vmul.f32 %v11440_v37, %v2188_v34  ;;  %v2221_v40 = vmul.f32 %v11440_v37, %v2189_v19  ;;  %v2146_v20 = vpop.xlane.xlu0 %2145  ;;  %v10831_v19 = vld [vmem:[%s13637_s5 + $0x6c] ss:$48 sps:$4 sm:$0xff]  }
 0x73c   : > { %11445 = vrsqrt.f32 %v2207_v46  ;;  %v2177_v59 = vmul.f32 %v13950_v51, %v13950_v51  ;;  %v2168_v61 = vmul.f32 0.004464286, %v2146_v20 }
 0x73d   : > { %v2149_v60 = vpop.xlane.xlu1 %2148  ;;  %v2247_v3 = vmul.f32 %v13948_v45, %v2220_v58  ;;  %v2248_v9 = vmul.f32 %v13955_v57, %v2221_v40  ;;  %v10834_v40 = vld [vmem:[%s13637_s5 + $0x84] ss:$48 sps:$4 sm:$0xff]  }
 0x73e   : > { %v2169_v2 = vmul.f32 0.004464286, %v2149_v60  ;;  %v11442_v52 = vpop.eup %11441  ;;  %v2184_v44 = vsub.f32 %v2168_v61, %v2176_v41  ;;  %v11831_v60 = vld [vmem:[#allocation2 + $0x40] sm:$0xff] }
 0x73f   : > { %v2112_v10 = vpop.xlane.xlu0 %2111  ;;  %v2222_v1 = vmul.f32 %v11442_v52, %v2190_v47  ;;  %v2223_v43 = vmul.f32 %v11442_v52, %v2191_v0  ;;  %v2274_v23 = vadd.f32 %v13962_v62, %v2247_v3  ;;  %v2275_v26 = vadd.f32 %v13967_v53, %v2248_v9  ;;  %v11832_v52 = vld [vmem:[#allocation2 + $0x50] sm:$0xff]  ;;  %v11833_v9 = vld [vmem:[#allocation2 + $0x48] sm:$0xff] }
 0x740   : > { %v2185_v5 = vsub.f32 %v2169_v2, %v2177_v59  ;;  %v13971_v7 = vmul.f32 0.004464286, %v2112_v10  ;;  %v2208_v17 = vadd.f32 1e-05, %v2184_v44  ;;  %v2196_v61 = vsub.f32 %v11831_v60, %v13945_v36  ;;  %v10832_v10 = vld [vmem:[%s13637_s5 + $0x80] ss:$48 sps:$4 sm:$0xff]  }
 0x741   : > { %v2115_v15 = vpop.xlane.xlu1 %2114  ;;  %v2249_v8 = vmul.f32 %v13948_v45, %v2222_v1  ;;  %v2250_v18 = vmul.f32 %v13955_v57, %v2223_v43  ;;  %v2198_v3 = vsub.f32 %v11832_v52, %v13950_v51  ;;  %v2197_v44 = vsub.f32 %v11833_v9, %v13945_v36  ;;  %v11834_v43 = vld [vmem:[#allocation2 + $0x58] sm:$0xff]  ;;  %v11838_v60 = vld [vmem:[#allocation2 + $0x68] sm:$0xff] }
 0x742   : > { %v2209_v21 = vadd.f32 1e-05, %v2185_v5  ;;  %v13977_v13 = vmul.f32 0.004464286, %v2115_v15  ;;  %11447 = vrsqrt.f32 %v2208_v17  ;;  %v2178_v16 = vmul.f32 %v13971_v7, %v13971_v7  ;;  %v10837_v17 = vld [vmem:[%s13637_s5 + $0xcc] ss:$48 sps:$4 sm:$0xff]  }
 0x743   : > { %v2152_v22 = vpop.xlane.xlu0 %2151  ;;  %v2276_v50 = vadd.f32 %v13962_v62, %v2249_v8  ;;  %v2277_v55 = vadd.f32 %v13967_v53, %v2250_v18  ;;  %v2199_v5 = vsub.f32 %v11834_v43, %v13950_v51  ;;  %v10840_v15 = vld [vmem:[%s13637_s5 + $0xe4] ss:$48 sps:$4 sm:$0xff]   ;;  %v10835_v51 = vld [vmem:[%s13637_s5 + $0xc8] ss:$48 sps:$4 sm:$0xff]  }
 0x744   : > { %v11444_v49 = vpop.eup %11443  ;;  %11449 = vrsqrt.f32 %v2209_v21  ;;  %v2179_v38 = vmul.f32 %v13977_v13, %v13977_v13  ;;  %v2170_v46 = vmul.f32 0.004464286, %v2152_v22  ;;  %v10838_v21 = vld [vmem:[%s13637_s5 + $0xe0] ss:$48 sps:$4 sm:$0xff]  }
 0x745   : > { %v2224_v31 = vmul.f32 %v11444_v49, %v2192_v6  ;;  %v2225_v32 = vmul.f32 %v11444_v49, %v2193_v12  ;;  %v2155_v34 = vpop.xlane.xlu1 %2154  ;;  %v13992_v56 = vpack.c.bf16 %v2277_v55, %v2275_v26  ;;  %v13994_v58 = vpack.c.bf16 %v2276_v50, %v2274_v23  ;;  %v10843_v26 = vld [vmem:[%s13637_s5 + $0x12c] ss:$48 sps:$4 sm:$0xff]   ;;  %v10846_v49 = vld [vmem:[%s13637_s5 + $0x144] ss:$48 sps:$4 sm:$0xff]  }
 0x746   : > { %v11446_v42 = vpop.eup %11445  ;;  %v2171_v37 = vmul.f32 0.004464286, %v2155_v34  ;;  %v2186_v47 = vsub.f32 %v2170_v46, %v2178_v16  ;;  %v11836_v46 = vld [vmem:[#allocation2 + $0x78] sm:$0xff] }
 0x747   : > { %v2251_v41 = vmul.f32 %v13948_v45, %v2224_v31  ;;  %v2252_v25 = vmul.f32 %v13955_v57, %v2225_v32  ;;  %v2226_v20 = vmul.f32 %v11446_v42, %v2194_v28  ;;  %v2227_v59 = vmul.f32 %v11446_v42, %v2195_v29  ;;  %3546 = vmatprep.mubr.bf16.mxu1 %v13992_v56  ;;  %v10844_v32 = vld [vmem:[%s13637_s5 + $0x140] ss:$48 sps:$4 sm:$0xff]  }
 0x748   : > { %v2187_v63 = vsub.f32 %v2171_v37, %v2179_v38  ;;  %3692 = vmatprep.mubr.bf16.mxu0 %v13992_v56  ;;  %3547 = vmatmul.mubr.bf16.vlgmr.msra.gmra.mrb[0].mxu1 %v13994_v58  ;;  %v2210_v6 = vadd.f32 1e-05, %v2186_v47 }
 0x749   : > { %v2253_v0 = vmul.f32 %v13948_v45, %v2226_v20  ;;  %v2254_v2 = vmul.f32 %v13955_v57, %v2227_v59  ;;  %v2278_v1 = vadd.f32 %v13962_v62, %v2251_v41  ;;  %3588 = vmatpush1.bf16.msra.mxu1 %v10823_v30  ;;  %3693 = vmatmul.mubr.bf16.vlgmr.msra.gmra.mrb[0].mxu0 %v13994_v58  ;;  %v10849_v41 = vld [vmem:[%s13637_s5 + $0x18c] ss:$48 sps:$4 sm:$0xff]  }
 0x74a   : > { %v2211_v4 = vadd.f32 1e-05, %v2187_v63  ;;  %v2279_v11 = vadd.f32 %v13967_v53, %v2252_v25  ;;  %3807 = vmatpush1.bf16.msra.mxu0 %v10826_v39  ;;  %3589 = vmatprep.subr.bf16.mxu1 %v10831_v19  ;;  %v11835_v39 = vld [vmem:[#allocation2 + $0x70] sm:$0xff]  ;;  %v11837_v20 = vld [vmem:[#allocation2 + $0x60] sm:$0xff]  ;;  %v10847_v63 = vld [vmem:[%s13637_s5 + $0x188] ss:$48 sps:$4 sm:$0xff]  }
 0x74b   : > { %v2280_v36 = vadd.f32 %v13962_v62, %v2253_v0  ;;  %v2281_v12 = vadd.f32 %v13967_v53, %v2254_v2  ;;  %3808 = vmatprep.subr.bf16.mxu0 %v10834_v40  ;;  %v2202_v19 = vsub.f32 %v11835_v39, %v13977_v13  ;;  %v2203_v40 = vsub.f32 %v11836_v46, %v13977_v13  ;;  %v10852_v25 = vld [vmem:[%s13637_s5 + $0x1a4] ss:$48 sps:$4 sm:$0xff]   ;;  %v10855_v13 = vld [vmem:[%s13637_s5 + $0x1ec] ss:$48 sps:$4 sm:$0xff]  }
 0x74c   : > { %11451 = vrsqrt.f32 %v2211_v4  ;;  %v11448_v8 = vpop.eup %11447  ;;  %v2200_v59 = vsub.f32 %v11837_v20, %v13971_v7  ;;  %v10856_v4 = vld [vmem:[%s13637_s5 + $0x200] ss:$48 sps:$4 sm:$0xff]   ;;  %v10891_v39 = vld [vmem:[%s13637_s5 + $0x42c] ss:$48 sps:$4 sm:$0xff]  }
 0x74d   : > { %11453 = vrsqrt.f32 %v2210_v6  ;;  %v14018_v18 = vpack.c.bf16 %v2281_v12, %v2279_v11  ;;  %v14021_v23 = vpack.c.bf16 %v2280_v36, %v2278_v1  ;;  %v2228_v28 = vmul.f32 %v11448_v8, %v2196_v61  ;;  %3590 = vmatpush1.bf16.msra.mxu1 %v10829_v48  ;;  %v10850_v48 = vld [vmem:[%s13637_s5 + $0x1a0] ss:$48 sps:$4 sm:$0xff]   ;;  %v10858_v1 = vld [vmem:[%s13637_s5 + $0x204] ss:$48 sps:$4 sm:$0xff]   ;;  %v10897_v46 = vld [vmem:[%s13637_s5 + $0x48c] ss:$48 sps:$4 sm:$0xff]  }
 0x74e   : > { %v11450_v27 = vpop.eup %11449  ;;  %v2229_v22 = vmul.f32 %v11448_v8, %v2197_v44  ;;  %3809 = vmatpush1.bf16.msra.mxu0 %v10832_v10  ;;  %3591 = vmatprep.subr.bf16.mxu1 %v10837_v17  ;;  %v2201_v61 = vsub.f32 %v11838_v60, %v13971_v7  ;;  %v10853_v10 = vld [vmem:[%s13637_s5 + $0x1e8] ss:$48 sps:$4 sm:$0xff]   ;;  %v10861_v17 = vld [vmem:[%s13637_s5 + $0x24c] ss:$48 sps:$4 sm:$0xff]   ;;  %v10862_v8 = vld [vmem:[%s13637_s5 + $0x260] ss:$48 sps:$4 sm:$0xff]  }
 0x74f   : > { %v2230_v50 = vmul.f32 %v11450_v27, %v2198_v3  ;;  %v2231_v55 = vmul.f32 %v11450_v27, %v2199_v5  ;;  %3556 = vmatprep.mubr.bf16.mxu1 %v14018_v18  ;;  %v2255_v16 = vmul.f32 %v13948_v45, %v2228_v28  ;;  %3702 = vmatprep.mubr.bf16.mxu0 %v14018_v18  ;;  %v10868_v27 = vld [vmem:[%s13637_s5 + $0x2c0] ss:$48 sps:$4 sm:$0xff]   ;;  %v10870_v28 = vld [vmem:[%s13637_s5 + $0x2c4] ss:$48 sps:$4 sm:$0xff]   ;;  %v10903_v20 = vld [vmem:[%s13637_s5 + $0x4ec] ss:$48 sps:$4 sm:$0xff]  }
 0x750   : > { %v2256_v30 = vmul.f32 %v13955_v57, %v2229_v22  ;;  %3810 = vmatprep.subr.bf16.mxu0 %v10840_v15  ;;  %3557 = vmatmul.mubr.bf16.gmra.mrb[4].mxu1 %v14021_v23  ;;  %v10864_v15 = vld [vmem:[%s13637_s5 + $0x264] ss:$48 sps:$4 sm:$0xff]   ;;  %v10873_v22 = vld [vmem:[%s13637_s5 + $0x30c] ss:$48 sps:$4 sm:$0xff]   ;;  %v10901_v60 = vld [vmem:[%s13637_s5 + $0x4e8] ss:$48 sps:$4 sm:$0xff]  }
 0x751   : > { %v2257_v29 = vmul.f32 %v13948_v45, %v2230_v50  ;;  %v2258_v31 = vmul.f32 %v13955_v57, %v2231_v55  ;;  %v2282_v38 = vadd.f32 %v13962_v62, %v2255_v16  ;;  %3592 = vmatpush1.bf16.msra.mxu1 %v10835_v51  ;;  %3703 = vmatmul.mubr.bf16.gmra.mrb[4].mxu0 %v14021_v23  ;;  %v10871_v50 = vld [vmem:[%s13637_s5 + $0x308] ss:$48 sps:$4 sm:$0xff]   ;;  %v10874_v55 = vld [vmem:[%s13637_s5 + $0x320] ss:$48 sps:$4 sm:$0xff]   ;;  %v10879_v16 = vld [vmem:[%s13637_s5 + $0x36c] ss:$48 sps:$4 sm:$0xff]  }
 0x752   : > { %v2283_v34 = vadd.f32 %v13967_v53, %v2256_v30  ;;  %3811 = vmatpush1.bf16.msra.mxu0 %v10838_v21  ;;  %3593 = vmatprep.subr.bf16.mxu1 %v10843_v26  ;;  %v10882_v30 = vld [vmem:[%s13637_s5 + $0x384] ss:$48 sps:$4 sm:$0xff]  }
 0x753   : > { %v2284_v42 = vadd.f32 %v13962_v62, %v2257_v29  ;;  %v2285_v37 = vadd.f32 %v13967_v53, %v2258_v31  ;;  %3812 = vmatprep.subr.bf16.mxu0 %v10846_v49  ;;  %v10876_v49 = vld [vmem:[%s13637_s5 + $0x324] ss:$48 sps:$4 sm:$0xff]   ;;  %v10880_v29 = vld [vmem:[%s13637_s5 + $0x380] ss:$48 sps:$4 sm:$0xff]   ;;  %v10885_v31 = vld [vmem:[%s13637_s5 + $0x3cc] ss:$48 sps:$4 sm:$0xff]  }
 0x755   : > { %v14046_v47 = vpack.c.bf16 %v2285_v37, %v2283_v34  ;;  %v14049_v0 = vpack.c.bf16 %v2284_v42, %v2282_v38  ;;  %3594 = vmatpush1.bf16.msra.mxu1 %v10841_v33  ;;  %v10877_v33 = vld [vmem:[%s13637_s5 + $0x368] ss:$48 sps:$4 sm:$0xff]   ;;  %v10886_v34 = vld [vmem:[%s13637_s5 + $0x3e0] ss:$48 sps:$4 sm:$0xff]  }
 0x756   : > { %v11452_v2 = vpop.eup %11451  ;;  %3813 = vmatpush1.bf16.msra.mxu0 %v10844_v32  ;;  %3595 = vmatprep.subr.bf16.mxu1 %v10849_v41  ;;  %v10888_v32 = vld [vmem:[%s13637_s5 + $0x3e4] ss:$48 sps:$4 sm:$0xff]   ;;  %v10883_v38 = vld [vmem:[%s13637_s5 + $0x3c8] ss:$48 sps:$4 sm:$0xff]   ;;  %v10892_v37 = vld [vmem:[%s13637_s5 + $0x440] ss:$48 sps:$4 sm:$0xff]  }
 0x757   : > { %v11454_v52 = vpop.eup %11453  ;;  %v2234_v3 = vmul.f32 %v11452_v2, %v2202_v19  ;;  %v2235_v9 = vmul.f32 %v11452_v2, %v2203_v40  ;;  %3566 = vmatprep.mubr.bf16.mxu1 %v14046_v47  ;;  %3712 = vmatprep.mubr.bf16.mxu0 %v14046_v47  ;;  %v10894_v19 = vld [vmem:[%s13637_s5 + $0x444] ss:$48 sps:$4 sm:$0xff]   ;;  %v10889_v42 = vld [vmem:[%s13637_s5 + $0x428] ss:$48 sps:$4 sm:$0xff]   ;;  %v10910_v2 = vld [vmem:[%s13637_s5 + $0x560] ss:$48 sps:$4 sm:$0xff]  }
 0x758   : > { %v2232_v7 = vmul.f32 %v11454_v52, %v2200_v59  ;;  %v2233_v44 = vmul.f32 %v11454_v52, %v2201_v61  ;;  %3814 = vmatprep.subr.bf16.mxu0 %v10852_v25  ;;  %3567 = vmatmul.mubr.bf16.gmra.mrb[8].mxu1 %v14049_v0  ;;  %v10900_v40 = vld [vmem:[%s13637_s5 + $0x4a4] ss:$48 sps:$4 sm:$0xff]   ;;  %v10895_v41 = vld [vmem:[%s13637_s5 + $0x488] ss:$48 sps:$4 sm:$0xff]   ;;  %v10898_v25 = vld [vmem:[%s13637_s5 + $0x4a0] ss:$48 sps:$4 sm:$0xff]  }
 0x759   : > { %v2261_v43 = vmul.f32 %v13948_v45, %v2234_v3  ;;  %v2262_v5 = vmul.f32 %v13955_v57, %v2235_v9  ;;  %3596 = vmatpush1.bf16.msra.mxu1 %v10847_v63  ;;  %3713 = vmatmul.mubr.bf16.gmra.mrb[8].mxu0 %v14049_v0  ;;  %v10906_v59 = vld [vmem:[%s13637_s5 + $0x504] ss:$48 sps:$4 sm:$0xff]   ;;  %v10904_v61 = vld [vmem:[%s13637_s5 + $0x500] ss:$48 sps:$4 sm:$0xff]   ;;  %v10909_v63 = vld [vmem:[%s13637_s5 + $0x54c] ss:$48 sps:$4 sm:$0xff]  }
 0x75a   : > { %v2259_v6 = vmul.f32 %v13948_v45, %v2232_v7  ;;  %v2260_v11 = vmul.f32 %v13955_v57, %v2233_v44  ;;  %3815 = vmatpush1.bf16.msra.mxu0 %v10850_v48  ;;  %3597 = vmatprep.subr.bf16.mxu1 %v10855_v13  ;;  %v10859_v57 = vld [vmem:[%s13637_s5 + $0x248] ss:$48 sps:$4 sm:$0xff]   ;;  %v10912_v48 = vld [vmem:[%s13637_s5 + $0x564] ss:$48 sps:$4 sm:$0xff]   ;;  %v10915_v52 = vld [vmem:[%s13637_s5 + $0x5ac] ss:$48 sps:$4 sm:$0xff]  }
 0x75b   : > { %v2288_v36 = vadd.f32 %v13962_v62, %v2261_v43  ;;  %v2289_v12 = vadd.f32 %v13967_v53, %v2262_v5  ;;  %3816 = vmatprep.subr.bf16.mxu0 %v10858_v1  ;;  %v10907_v13 = vld [vmem:[%s13637_s5 + $0x548] ss:$48 sps:$4 sm:$0xff]   ;;  %v10918_v3 = vld [vmem:[%s13637_s5 + $0x5c4] ss:$48 sps:$4 sm:$0xff]   ;;  %v10916_v7 = vld [vmem:[%s13637_s5 + $0x5c0] ss:$48 sps:$4 sm:$0xff]  }
 0x75c   : > { %v2286_v51 = vadd.f32 %v13962_v62, %v2259_v6  ;;  %v2287_v45 = vadd.f32 %v13967_v53, %v2260_v11  ;;  %v10865_v62 = vld [vmem:[%s13637_s5 + $0x2a8] ss:$48 sps:$4 sm:$0xff]   ;;  %v10867_v53 = vld [vmem:[%s13637_s5 + $0x2ac] ss:$48 sps:$4 sm:$0xff]  }
 0x75d   : > { %3598 = vmatpush1.bf16.msra.mxu1 %v10853_v10  ;;  %v10913_v9 = vld [vmem:[%s13637_s5 + $0x5a8] ss:$48 sps:$4 sm:$0xff]   ;;  %v10921_v44 = vld [vmem:[%s13637_s5 + $0x1c] ss:$48 sps:$4 sm:$0xff]  }
 0x75e   : > { %v14071_v21 = vpack.c.bf16 %v2289_v12, %v2287_v45  ;;  %v14073_v26 = vpack.c.bf16 %v2288_v36, %v2286_v51  ;;  %3817 = vmatpush1.bf16.msra.mxu0 %v10856_v4  ;;  %3599 = vmatprep.subr.bf16.mxu1 %v10861_v17  ;;  %v10919_v10 = vld [vmem:[%s13637_s5 + $0x18] ss:$48 sps:$4 sm:$0xff]   ;;  %v10924_v1 = vld [vmem:[%s13637_s5 + $0x7c] ss:$48 sps:$4 sm:$0xff]  }
 0x75f   : > { %3818 = vmatprep.subr.bf16.mxu0 %v10864_v15  ;;  %v10922_v43 = vld [vmem:[%s13637_s5 + $0x78] ss:$48 sps:$4 sm:$0xff]   ;;  %v10927_v5 = vld [vmem:[%s13637_s5 + $0xdc] ss:$48 sps:$4 sm:$0xff]  }
 0x760   : > { %3576 = vmatprep.mubr.bf16.mxu1 %v14071_v21  ;;  %3722 = vmatprep.mubr.bf16.mxu0 %v14071_v21  ;;  %v10925_v4 = vld [vmem:[%s13637_s5 + $0xd8] ss:$48 sps:$4 sm:$0xff]   ;;  %v10930_v6 = vld [vmem:[%s13637_s5 + $0x13c] ss:$48 sps:$4 sm:$0xff]  }
 0x761   : > { %3577 = vmatmul.mubr.bf16.gmra.mrb[12].mxu1 %v14073_v26  ;;  %3723 = vmatmul.mubr.bf16.gmra.mrb[12].mxu0 %v14073_v26  ;;  %v10928_v11 = vld [vmem:[%s13637_s5 + $0x138] ss:$48 sps:$4 sm:$0xff]   ;;  %v10933_v36 = vld [vmem:[%s13637_s5 + $0x19c] ss:$48 sps:$4 sm:$0xff]  }
 0x762   : > { %3600 = vmatpush1.bf16.msra.mxu1 %v10859_v57  ;;  %3819 = vmatpush1.bf16.msra.mxu0 %v10862_v8  ;;  %v10931_v12 = vld [vmem:[%s13637_s5 + $0x198] ss:$48 sps:$4 sm:$0xff]   ;;  %v10936_v17 = vld [vmem:[%s13637_s5 + $0x1fc] ss:$48 sps:$4 sm:$0xff]  }
 0x763   : > { %3619 = vmatprep.mubr.bf16.mxu1 %v13992_v56  ;;  %3838 = vmatprep.mubr.bf16.mxu0 %v13992_v56  ;;  %v10934_v15 = vld [vmem:[%s13637_s5 + $0x1f8] ss:$48 sps:$4 sm:$0xff]   ;;  %v10939_v51 = vld [vmem:[%s13637_s5 + $0x25c] ss:$48 sps:$4 sm:$0xff]  }
 0x764   : > { %3601 = vmatprep.subr.bf16.mxu1 %v10867_v53  ;;  %3820 = vmatprep.subr.bf16.mxu0 %v10870_v28  ;;  %v10937_v45 = vld [vmem:[%s13637_s5 + $0x258] ss:$48 sps:$4 sm:$0xff]   ;;  %v10942_v57 = vld [vmem:[%s13637_s5 + $0x2bc] ss:$48 sps:$4 sm:$0xff]  }
 0x765   : > { %v10940_v8 = vld [vmem:[%s13637_s5 + $0x2b8] ss:$48 sps:$4 sm:$0xff]  }
 0x766   : > { %3602 = vmatpush1.bf16.msra.mxu1 %v10865_v62  ;;  %3821 = vmatpush1.bf16.msra.mxu0 %v10868_v27  ;;  %v10945_v62 = vld [vmem:[%s13637_s5 + $0x31c] ss:$48 sps:$4 sm:$0xff]   ;;  %v10943_v53 = vld [vmem:[%s13637_s5 + $0x318] ss:$48 sps:$4 sm:$0xff]  }
 0x767   : > { %3603 = vmatprep.subr.bf16.mxu1 %v10873_v22  ;;  %3822 = vmatprep.subr.bf16.mxu0 %v10876_v49  ;;  %v10948_v27 = vld [vmem:[%s13637_s5 + $0x37c] ss:$48 sps:$4 sm:$0xff]   ;;  %v10946_v28 = vld [vmem:[%s13637_s5 + $0x378] ss:$48 sps:$4 sm:$0xff]  }
 0x768   : > { %v10951_v22 = vld [vmem:[%s13637_s5 + $0x3dc] ss:$48 sps:$4 sm:$0xff]   ;;  %v10949_v49 = vld [vmem:[%s13637_s5 + $0x3d8] ss:$48 sps:$4 sm:$0xff]  }
 0x76a   : > { %3604 = vmatpush1.bf16.msra.mxu1 %v10871_v50  ;;  %3823 = vmatpush1.bf16.msra.mxu0 %v10874_v55  ;;  %v10954_v50 = vld [vmem:[%s13637_s5 + $0x43c] ss:$48 sps:$4 sm:$0xff]   ;;  %v10952_v55 = vld [vmem:[%s13637_s5 + $0x438] ss:$48 sps:$4 sm:$0xff]  }
 0x76b   : > { %3605 = vmatprep.subr.bf16.mxu1 %v10879_v16  ;;  %3824 = vmatprep.subr.bf16.mxu0 %v10882_v30  ;;  %v10957_v16 = vld [vmem:[%s13637_s5 + $0x49c] ss:$48 sps:$4 sm:$0xff]   ;;  %v10955_v30 = vld [vmem:[%s13637_s5 + $0x498] ss:$48 sps:$4 sm:$0xff]  }
 0x76e   : > { %3606 = vmatpush1.bf16.msra.mxu1 %v10877_v33  ;;  %3825 = vmatpush1.bf16.msra.mxu0 %v10880_v29  ;;  %v10960_v33 = vld [vmem:[%s13637_s5 + $0x4fc] ss:$48 sps:$4 sm:$0xff]   ;;  %v10958_v29 = vld [vmem:[%s13637_s5 + $0x4f8] ss:$48 sps:$4 sm:$0xff]  }
 0x76f   : > { %3607 = vmatprep.subr.bf16.mxu1 %v10885_v31  ;;  %3826 = vmatprep.subr.bf16.mxu0 %v10888_v32  ;;  %v10963_v31 = vld [vmem:[%s13637_s5 + $0x55c] ss:$48 sps:$4 sm:$0xff]   ;;  %v10961_v32 = vld [vmem:[%s13637_s5 + $0x558] ss:$48 sps:$4 sm:$0xff]  }
 0x772   : > { %3608 = vmatpush1.bf16.msra.mxu1 %v10883_v38  ;;  %3827 = vmatpush1.bf16.msra.mxu0 %v10886_v34  ;;  %v10966_v38 = vld [vmem:[%s13637_s5 + $0x5bc] ss:$48 sps:$4 sm:$0xff]   ;;  %v10964_v34 = vld [vmem:[%s13637_s5 + $0x5b8] ss:$48 sps:$4 sm:$0xff]  }
 0x773   : > { %3609 = vmatprep.subr.bf16.mxu1 %v10891_v39  ;;  %3828 = vmatprep.subr.bf16.mxu0 %v10894_v19  ;;  %v10969_v39 = vld [vmem:[%s13637_s5 + $0x2c] ss:$48 sps:$4 sm:$0xff]   ;;  %v10967_v19 = vld [vmem:[%s13637_s5 + $0x28] ss:$48 sps:$4 sm:$0xff]  }
 0x776   : > { %3610 = vmatpush1.bf16.msra.mxu1 %v10889_v42  ;;  %3829 = vmatpush1.bf16.msra.mxu0 %v10892_v37  ;;  %v10972_v42 = vld [vmem:[%s13637_s5 + $0x8c] ss:$48 sps:$4 sm:$0xff]   ;;  %v10970_v37 = vld [vmem:[%s13637_s5 + $0x88] ss:$48 sps:$4 sm:$0xff]  }
 0x777   : > { %3611 = vmatprep.subr.bf16.mxu1 %v10897_v46  ;;  %3830 = vmatprep.subr.bf16.mxu0 %v10900_v40  ;;  %v10975_v46 = vld [vmem:[%s13637_s5 + $0xec] ss:$48 sps:$4 sm:$0xff]   ;;  %v10973_v40 = vld [vmem:[%s13637_s5 + $0xe8] ss:$48 sps:$4 sm:$0xff]  }
 0x77a   : > { %3612 = vmatpush1.bf16.msra.mxu1 %v10895_v41  ;;  %3831 = vmatpush1.bf16.msra.mxu0 %v10898_v25  ;;  %v10978_v41 = vld [vmem:[%s13637_s5 + $0x14c] ss:$48 sps:$4 sm:$0xff]   ;;  %v10976_v25 = vld [vmem:[%s13637_s5 + $0x148] ss:$48 sps:$4 sm:$0xff]  }
 0x77b   : > { %3613 = vmatprep.subr.bf16.mxu1 %v10903_v20  ;;  %3832 = vmatprep.subr.bf16.mxu0 %v10906_v59  ;;  %v10981_v20 = vld [vmem:[%s13637_s5 + $0x1ac] ss:$48 sps:$4 sm:$0xff]   ;;  %v10979_v59 = vld [vmem:[%s13637_s5 + $0x1a8] ss:$48 sps:$4 sm:$0xff]  }
 0x77e   : > { %3614 = vmatpush1.bf16.msra.mxu1 %v10901_v60  ;;  %3833 = vmatpush1.bf16.msra.mxu0 %v10904_v61  ;;  %v10984_v60 = vld [vmem:[%s13637_s5 + $0x20c] ss:$48 sps:$4 sm:$0xff]   ;;  %v10982_v61 = vld [vmem:[%s13637_s5 + $0x208] ss:$48 sps:$4 sm:$0xff]  }
 0x77f   : > { %3615 = vmatprep.subr.bf16.mxu1 %v10909_v63  ;;  %3834 = vmatprep.subr.bf16.mxu0 %v10912_v48  ;;  %v10987_v63 = vld [vmem:[%s13637_s5 + $0x26c] ss:$48 sps:$4 sm:$0xff]   ;;  %v10985_v48 = vld [vmem:[%s13637_s5 + $0x268] ss:$48 sps:$4 sm:$0xff]  }
 0x782   : > { %3616 = vmatpush1.bf16.msra.mxu1 %v10907_v13  ;;  %3835 = vmatpush1.bf16.msra.mxu0 %v10910_v2  ;;  %v10990_v13 = vld [vmem:[%s13637_s5 + $0x2cc] ss:$48 sps:$4 sm:$0xff]   ;;  %v10988_v2 = vld [vmem:[%s13637_s5 + $0x2c8] ss:$48 sps:$4 sm:$0xff]  }
 0x783   : > { %3617 = vmatprep.subr.bf16.mxu1 %v10915_v52  ;;  %3836 = vmatprep.subr.bf16.mxu0 %v10918_v3  ;;  %v10993_v52 = vld [vmem:[%s13637_s5 + $0x32c] ss:$48 sps:$4 sm:$0xff]   ;;  %v10991_v3 = vld [vmem:[%s13637_s5 + $0x328] ss:$48 sps:$4 sm:$0xff]  }
 0x786   : > { %3618 = vmatpush1.bf16.msra.mxu1 %v10913_v9  ;;  %3837 = vmatpush1.bf16.msra.mxu0 %v10916_v7  ;;  %v10996_v9 = vld [vmem:[%s13637_s5 + $0x38c] ss:$48 sps:$4 sm:$0xff]   ;;  %v10994_v7 = vld [vmem:[%s13637_s5 + $0x388] ss:$48 sps:$4 sm:$0xff]  }
 0x787   : > { %3733 = vmatprep.subr.bf16.mxu1 %v10921_v44  ;;  %v10999_v44 = vld [vmem:[%s13637_s5 + $0x3ec] ss:$48 sps:$4 sm:$0xff]  }
 0x789   : > { %3620 = vmatmul.mubr.bf16.vlgmr.msra.gmra.mrb[16].mxu1 %v13994_v58  ;;  %3839 = vmatmul.mubr.bf16.vlgmr.msra.gmra.mrb[16].mxu0 %v13994_v58 }
 0x78a   : > { %3629 = vmatprep.mubr.bf16.mxu1 %v14018_v18  ;;  %3734 = vmatpush1.bf16.msra.mxu1 %v10919_v10  ;;  %v10997_v10 = vld [vmem:[%s13637_s5 + $0x3e8] ss:$48 sps:$4 sm:$0xff]  }
 0x78b   : > { %3848 = vmatprep.mubr.bf16.mxu0 %v14018_v18  ;;  %3735 = vmatprep.subr.bf16.mxu1 %v10924_v1  ;;  %v11000_v1 = vld [vmem:[%s13637_s5 + $0x448] ss:$48 sps:$4 sm:$0xff]  }
 0x78e   : > { %3736 = vmatpush1.bf16.msra.mxu1 %v10922_v43  ;;  %v11005_v43 = vld [vmem:[%s13637_s5 + $0x4ac] ss:$48 sps:$4 sm:$0xff]  }
 0x78f   : > { %3737 = vmatprep.subr.bf16.mxu1 %v10927_v5  ;;  %v11003_v5 = vld [vmem:[%s13637_s5 + $0x4a8] ss:$48 sps:$4 sm:$0xff]  }
 0x791   : > { %3630 = vmatmul.mubr.bf16.gmra.mrb[20].mxu1 %v14021_v23  ;;  %3849 = vmatmul.mubr.bf16.gmra.mrb[20].mxu0 %v14021_v23 }
 0x792   : > { %3639 = vmatprep.mubr.bf16.mxu1 %v14046_v47  ;;  %3738 = vmatpush1.bf16.msra.mxu1 %v10925_v4  ;;  %v11008_v4 = vld [vmem:[%s13637_s5 + $0x50c] ss:$48 sps:$4 sm:$0xff]  }
 0x793   : > { %3858 = vmatprep.mubr.bf16.mxu0 %v14046_v47  ;;  %3739 = vmatprep.subr.bf16.mxu1 %v10930_v6  ;;  %v11006_v6 = vld [vmem:[%s13637_s5 + $0x508] ss:$48 sps:$4 sm:$0xff]  }
 0x796   : > { %3740 = vmatpush1.bf16.msra.mxu1 %v10928_v11  ;;  %v11011_v11 = vld [vmem:[%s13637_s5 + $0x56c] ss:$48 sps:$4 sm:$0xff]  }
 0x797   : > { %3741 = vmatprep.subr.bf16.mxu1 %v10933_v36  ;;  %v11009_v36 = vld [vmem:[%s13637_s5 + $0x568] ss:$48 sps:$4 sm:$0xff]  }
 0x799   : > { %3640 = vmatmul.mubr.bf16.gmra.mrb[24].mxu1 %v14049_v0  ;;  %3859 = vmatmul.mubr.bf16.gmra.mrb[24].mxu0 %v14049_v0 }
 0x79a   : > { %3649 = vmatprep.mubr.bf16.mxu1 %v14071_v21  ;;  %3742 = vmatpush1.bf16.msra.mxu1 %v10931_v12  ;;  %v11014_v12 = vld [vmem:[%s13637_s5 + $0x5cc] ss:$48 sps:$4 sm:$0xff]  }
 0x79b   : > { %3868 = vmatprep.mubr.bf16.mxu0 %v14071_v21  ;;  %3743 = vmatprep.subr.bf16.mxu1 %v10936_v17  ;;  %v11012_v17 = vld [vmem:[%s13637_s5 + $0x5c8] ss:$48 sps:$4 sm:$0xff]  }
 0x79e   : > { %3744 = vmatpush1.bf16.msra.mxu1 %v10934_v15  ;;  %v14209_v15 = vld [vmem:[%s13645_s14] sm:$0xff] }
 0x79f   : > { %3745 = vmatprep.subr.bf16.mxu1 %v10939_v51  ;;  %v15947_v51 = vsub.s32 4, %v13929_v24 }
 0x7a1   : > { %3650 = vmatmul.mubr.bf16.gmra.mrb[28].mxu1 %v14073_v26  ;;  %3869 = vmatmul.mubr.bf16.gmra.mrb[28].mxu0 %v14073_v26 }
 0x7a2   : > { %3765 = vmatprep.mubr.bf16.mxu1 %v13992_v56  ;;  %3746 = vmatpush1.bf16.msra.mxu1 %v10937_v45  ;;  %v15946_v45 = vsub.s32 5, %v13929_v24 }
 0x7a3   : > { %3747 = vmatprep.subr.bf16.mxu1 %v10942_v57  ;;  %v14217_v57 = vrot.slane %v14209_v15, %v13936_v54 }
 0x7a6   : > { %3748 = vmatpush1.bf16.msra.mxu1 %v10940_v8 }
 0x7a7   : > { %3749 = vmatprep.subr.bf16.mxu1 %v10945_v62 }
 0x7aa   : > { %3750 = vmatpush1.bf16.msra.mxu1 %v10943_v53 }
 0x7ab   : > { %3751 = vmatprep.subr.bf16.mxu1 %v10948_v27 }
 0x7ae   : > { %3752 = vmatpush1.bf16.msra.mxu1 %v10946_v28 }
 0x7af   : > { %3753 = vmatprep.subr.bf16.mxu1 %v10951_v22 }
 0x7b2   : > { %3754 = vmatpush1.bf16.msra.mxu1 %v10949_v49 }
 0x7b3   : > { %3755 = vmatprep.subr.bf16.mxu1 %v10954_v50 }
 0x7b6   : > { %3756 = vmatpush1.bf16.msra.mxu1 %v10952_v55 }
 0x7b7   : > { %3757 = vmatprep.subr.bf16.mxu1 %v10957_v16 }
 0x7ba   : > { %3758 = vmatpush1.bf16.msra.mxu1 %v10955_v30 }
 0x7bb   : > { %3759 = vmatprep.subr.bf16.mxu1 %v10960_v33 }
 0x7be   : > { %3760 = vmatpush1.bf16.msra.mxu1 %v10958_v29 }
 0x7bf   : > { %3761 = vmatprep.subr.bf16.mxu1 %v10963_v31 }
 0x7c2   : > { %3762 = vmatpush1.bf16.msra.mxu1 %v10961_v32 }
 0x7c3   : > { %3763 = vmatprep.subr.bf16.mxu1 %v10966_v38 }
 0x7c6   : > { %3764 = vmatpush1.bf16.msra.mxu1 %v10964_v34 }
 0x7c7   : > { %3879 = vmatprep.subr.bf16.mxu1 %v10969_v39 }
 0x7c9   : > { %3766 = vmatmul.mubr.bf16.vlgmr.msra.gmra.mrb[32].mxu1 %v13994_v58 }
 0x7ca   : > { %3775 = vmatprep.mubr.bf16.mxu1 %v14018_v18  ;;  %3880 = vmatpush1.bf16.msra.mxu1 %v10967_v19 }
 0x7cb   : > { %3881 = vmatprep.subr.bf16.mxu1 %v10972_v42 }
 0x7ce   : > { %3882 = vmatpush1.bf16.msra.mxu1 %v10970_v37 }
 0x7cf   : > { %3883 = vmatprep.subr.bf16.mxu1 %v10975_v46 }
 0x7d1   : > { %3776 = vmatmul.mubr.bf16.gmra.mrb[36].mxu1 %v14021_v23 }
 0x7d2   : > { %3884 = vmatpush1.bf16.msra.mxu1 %v10973_v40  ;;  %3785 = vmatprep.mubr.bf16.mxu1 %v14046_v47 }
 0x7d3   : > { %3885 = vmatprep.subr.bf16.mxu1 %v10978_v41 }
 0x7d6   : > { %3886 = vmatpush1.bf16.msra.mxu1 %v10976_v25 }
 0x7d7   : > { %3887 = vmatprep.subr.bf16.mxu1 %v10981_v20 }
 0x7d9   : > { %3786 = vmatmul.mubr.bf16.gmra.mrb[40].mxu1 %v14049_v0 }
 0x7da   : > { %3888 = vmatpush1.bf16.msra.mxu1 %v10979_v59  ;;  %3795 = vmatprep.mubr.bf16.mxu1 %v14071_v21 }
 0x7db   : > { %3889 = vmatprep.subr.bf16.mxu1 %v10984_v60 }
 0x7de   : > { %3890 = vmatpush1.bf16.msra.mxu1 %v10982_v61 }
 0x7df   : > { %3891 = vmatprep.subr.bf16.mxu1 %v10987_v63 }
 0x7e1   : > { %3796 = vmatmul.mubr.bf16.gmra.mrb[44].mxu1 %v14073_v26 }
 0x7e2   : > { %3892 = vmatpush1.bf16.msra.mxu1 %v10985_v48  ;;  %3911 = vmatprep.mubr.bf16.mxu1 %v13992_v56  ;;  %v11002_v56 = vld [vmem:[%s13637_s5 + $0x44c] ss:$48 sps:$4 sm:$0xff]  }
 0x7e3   : > { %3893 = vmatprep.subr.bf16.mxu1 %v10990_v13 }
 0x7e6   : > { %3894 = vmatpush1.bf16.msra.mxu1 %v10988_v2 }
 0x7e7   : > { %3895 = vmatprep.subr.bf16.mxu1 %v10993_v52 }
 0x7ea   : > { %3896 = vmatpush1.bf16.msra.mxu1 %v10991_v3 }
 0x7eb   : > { %3897 = vmatprep.subr.bf16.mxu1 %v10996_v9 }
 0x7ee   : > { %3898 = vmatpush1.bf16.msra.mxu1 %v10994_v7 }
 0x7ef   : > { %3899 = vmatprep.subr.bf16.mxu1 %v10999_v44 }
 0x7f2   : > { %3900 = vmatpush1.bf16.msra.mxu1 %v10997_v10 }
 0x7f3   : > { %3901 = vmatprep.subr.bf16.mxu1 %v11002_v56 }
 0x7f6   : > { %3902 = vmatpush1.bf16.msra.mxu1 %v11000_v1 }
 0x7f7   : > { %3903 = vmatprep.subr.bf16.mxu1 %v11005_v43 }
 0x7fa   : > { %3904 = vmatpush1.bf16.msra.mxu1 %v11003_v5 }
 0x7fb   : > { %3905 = vmatprep.subr.bf16.mxu1 %v11008_v4 }
 0x7fe   : > { %3906 = vmatpush1.bf16.msra.mxu1 %v11006_v6 }
 0x7ff   : > { %3907 = vmatprep.subr.bf16.mxu1 %v11011_v11 }
 0x802   : > { %3908 = vmatpush1.bf16.msra.mxu1 %v11009_v36 }
 0x803   : > { %3909 = vmatprep.subr.bf16.mxu1 %v11014_v12 }
 0x806   : > { %3910 = vmatpush1.bf16.msra.mxu1 %v11012_v17 }
 0x809   : > { %3912 = vmatmul.mubr.bf16.vlgmr.msra.gmra.mrb[48].mxu1 %v13994_v58 }
 0x80a   : > { %3921 = vmatprep.mubr.bf16.mxu1 %v14018_v18  ;;  %v14222_v18 = vrot.slane %v14209_v15, %v15947_v51 }
 0x811   : > { %3922 = vmatmul.mubr.bf16.gmra.mrb[52].mxu1 %v14021_v23  ;;  %v14226_v23 = vrot.slane %v14209_v15, %v13943_v35 }
 0x812   : > { %3931 = vmatprep.mubr.bf16.mxu1 %v14046_v47 }
 0x819   : > { %3932 = vmatmul.mubr.bf16.gmra.mrb[56].mxu1 %v14049_v0  ;;  %v14231_v0 = vrot.slane %v14209_v15, %v15946_v45 }
 0x81a   : > { %3941 = vmatprep.mubr.bf16.mxu1 %v14071_v21 }
 0x81b   : > { %v3548_v58 = vpop.f32.mrb[0].mxu1 }
 0x81c   : > { %v3694_v47 = vpop.f32.mrb[0].mxu0  ;;  %v3550_v8 = vpop.f32.mrb[1].mxu1  ;;  %v3549_v53 = vadd.f32 %v3548_v58, %v14217_v57 }
 0x81d   : > { %v3696_v21 = vpop.f32.mrb[1].mxu0  ;;  %v3552_v62 = vpop.f32.mrb[2].mxu1  ;;  %v3695_v49 = vadd.f32 %v3694_v47, %v14222_v18  ;;  %v3551_v50 = vadd.f32 %v3550_v8, %v14226_v23 }
 0x81e   : > { %v3553_v27 = vadd.f32 %v3552_v62, %v14217_v57  ;;  %v3698_v28 = vpop.f32.mrb[2].mxu0  ;;  %v3554_v22 = vpop.f32.mrb[3].mxu1  ;;  %v3697_v33 = vadd.f32 %v3696_v21, %v14231_v0 }
 0x81f   : > { %v3699_v55 = vadd.f32 %v3698_v28, %v14222_v18  ;;  %v3555_v16 = vadd.f32 %v3554_v22, %v14226_v23  ;;  %v3700_v30 = vpop.f32.mrb[3].mxu0 }
 0x820   : > { %v3952_v29 = vpack.c.bf16 %v3553_v27, %v3549_v53  ;;  %v3701_v31 = vadd.f32 %v3700_v30, %v14231_v0 }
 0x821   : > { %v3956_v32 = vpack.c.bf16 %v3699_v55, %v3695_v49  ;;  %v3953_v38 = vpack.c.bf16 %v3555_v16, %v3551_v50  ;;  %3942 = vmatmul.mubr.bf16.gmra.mrb[60].mxu1 %v14073_v26 }
 0x822   : > { %v3957_v34 = vpack.c.bf16 %v3701_v31, %v3697_v33  ;;  %10198 = vmatprep.mubr.bf16.mxu0 %v3952_v29 }
 0x823   : > { %10194 = vmatprep.subr.bf16.mxu0 %v3956_v32  ;;  %v3558_v39 = vpop.f32.mrb[4].mxu1 }
 0x824   : > { %v3704_v19 = vpop.f32.mrb[4].mxu0  ;;  %10195 = vmatpush3.bf16.xpose.msra.mxu0 %v3956_v32  ;;  %v3560_v42 = vpop.f32.mrb[5].mxu1  ;;  %v3559_v40 = vadd.f32 %v3558_v39, %v14217_v57 }
 0x825   : > { %v3706_v37 = vpop.f32.mrb[5].mxu0  ;;  %v3562_v46 = vpop.f32.mrb[6].mxu1  ;;  %v3705_v59 = vadd.f32 %v3704_v19, %v14222_v18  ;;  %v3561_v60 = vadd.f32 %v3560_v42, %v14226_v23 }
 0x826   : > { %v3563_v41 = vadd.f32 %v3562_v46, %v14217_v57  ;;  %v3708_v25 = vpop.f32.mrb[6].mxu0  ;;  %v3564_v20 = vpop.f32.mrb[7].mxu1  ;;  %v3707_v48 = vadd.f32 %v3706_v37, %v14231_v0 }
 0x827   : > { %v3709_v26 = vadd.f32 %v3708_v25, %v14222_v18  ;;  %v3565_v61 = vadd.f32 %v3564_v20, %v14226_v23  ;;  %v3710_v63 = vpop.f32.mrb[7].mxu0 }
 0x828   : > { %v3964_v13 = vpack.c.bf16 %v3563_v41, %v3559_v40  ;;  %v3711_v2 = vadd.f32 %v3710_v63, %v14231_v0  ;;  %v14305_v41 = vld [vmem:[%s13645_s14 + $0x8] sm:$0xf] }
 0x829   : > { %v3968_v52 = vpack.c.bf16 %v3709_v26, %v3705_v59  ;;  %v3965_v3 = vpack.c.bf16 %v3565_v61, %v3561_v60  ;;  %v14313_v20 = vrot.slane %v14305_v41, %v13936_v54  ;;  %v14321_v61 = vrot.slane %v14305_v41, %v13943_v35 }
 0x82a   : > { %v3969_v9 = vpack.c.bf16 %v3711_v2, %v3707_v48 }
 0x82b   : > { %10196 = vmatprep.subr.bf16.mxu0 %v3968_v52  ;;  %v3568_v7 = vpop.f32.mrb[8].mxu1 }
 0x82c   : > { %10197 = vmatpush3.bf16.xpose.msra.mxu0 %v3968_v52  ;;  %v14251_v44 = vadd.f32 %v3568_v7, %v14217_v57  ;;  %v3714_v10 = vpop.f32.mrb[8].mxu0  ;;  %v3570_v56 = vpop.f32.mrb[9].mxu1 }
 0x82d   : > { %10210 = vmatprep.subr.bf16.mxu0 %v3957_v34  ;;  %v3715_v1 = vadd.f32 %v3714_v10, %v14222_v18  ;;  %v14255_v43 = vadd.f32 %v3570_v56, %v14226_v23  ;;  %v3716_v5 = vpop.f32.mrb[9].mxu0  ;;  %v3572_v4 = vpop.f32.mrb[10].mxu1 }
 0x82e   : > { %v3717_v6 = vadd.f32 %v3716_v5, %v14231_v0  ;;  %v14259_v11 = vadd.f32 %v3572_v4, %v14217_v57  ;;  %v3718_v36 = vpop.f32.mrb[10].mxu0  ;;  %v3574_v12 = vpop.f32.mrb[11].mxu1 }
 0x82f   : > { %v3719_v17 = vadd.f32 %v3718_v36, %v14222_v18  ;;  %v14263_v58 = vadd.f32 %v3574_v12, %v14226_v23  ;;  %v3720_v47 = vpop.f32.mrb[11].mxu0 }
 0x830   : > { %v3721_v21 = vadd.f32 %v3720_v47, %v14231_v0 }
 0x831   : > { %v14268_v62 = vpack.c.bf16 %v3719_v17, %v3715_v1 }
 0x832   : > { %v14272_v27 = vpack.c.bf16 %v3721_v21, %v3717_v6 }
 0x833   : > { %10199 = vmatmul.mubr.bf16.vlgmr.msra.gmra.mrb[32].mxu0 %v3964_v13 }
 0x834   : > { %v3578_v28 = vpop.f32.mrb[12].mxu1  ;;  %10211 = vmatpush3.bf16.xpose.msra.mxu0 %v3957_v34  ;;  %10214 = vmatprep.mubr.bf16.mxu0 %v3953_v38  ;;  %v3724_v49 = vpop.f32.mrb[12].mxu0 }
 0x835   : > { %v14275_v22 = vadd.f32 %v3578_v28, %v14217_v57  ;;  %v3580_v50 = vpop.f32.mrb[13].mxu1  ;;  %10212 = vmatprep.subr.bf16.mxu0 %v3969_v9  ;;  %v3725_v55 = vadd.f32 %v3724_v49, %v14222_v18  ;;  %v3726_v30 = vpop.f32.mrb[13].mxu0 }
 0x836   : > { %v14279_v16 = vadd.f32 %v3580_v50, %v14226_v23  ;;  %v3582_v33 = vpop.f32.mrb[14].mxu1  ;;  %v3727_v29 = vadd.f32 %v3726_v30, %v14231_v0  ;;  %v3728_v32 = vpop.f32.mrb[14].mxu0 }
 0x837   : > { %v14283_v31 = vadd.f32 %v3582_v33, %v14217_v57  ;;  %v3584_v38 = vpop.f32.mrb[15].mxu1  ;;  %v3729_v34 = vadd.f32 %v3728_v32, %v14222_v18  ;;  %v3730_v19 = vpop.f32.mrb[15].mxu0  ;;  %v14299_v18 = vsub.s32 2, %v13929_v24 }
 0x838   : > { %v14287_v39 = vadd.f32 %v3584_v38, %v14226_v23  ;;  %v3731_v37 = vadd.f32 %v3730_v19, %v14231_v0  ;;  %v14302_v23 = vsub.s32 3, %v13929_v24 }
 0x839   : > { %v14292_v46 = vpack.c.bf16 %v3729_v34, %v3725_v55  ;;  %16116 = vst [vmem:[#allocation64_spill] sm:$0xff] %v14299_v18  ;;  %v14309_v0 = vrot.slane %v14209_v15, %v14299_v18 }
 0x83a   : > { %v14296_v57 = vpack.c.bf16 %v3731_v37, %v3727_v29  ;;  %16117 = vst [vmem:[#allocation65_spill] sm:$0xff] %v14302_v23  ;;  %v14317_v59 = vrot.slane %v14209_v15, %v14302_v23 }
 0x83c   : > { %10213 = vmatpush3.bf16.xpose.msra.mxu0 %v3969_v9 }
 0x843   : > { %10215 = vmatmul.mubr.bf16.vlgmr.msra.gmra.mrb[36].mxu0 %v3965_v3 }
 0x85c   : > { %v3621_v25 = vpop.f32.mrb[16].mxu1  ;;  %v3840_v60 = vpop.f32.mrb[16].mxu0 }
 0x85d   : > { %v3623_v26 = vpop.f32.mrb[17].mxu1  ;;  %v3842_v63 = vpop.f32.mrb[17].mxu0  ;;  %v14324_v13 = vadd.f32 %v3621_v25, %v14309_v0  ;;  %v3841_v9 = vadd.f32 %v3840_v60, %v14313_v20 }
 0x85e   : > { %v3625_v48 = vpop.f32.mrb[18].mxu1  ;;  %v3844_v52 = vpop.f32.mrb[18].mxu0  ;;  %v14331_v7 = vadd.f32 %v3623_v26, %v14317_v59  ;;  %v3843_v5 = vadd.f32 %v3842_v63, %v14321_v61 }
 0x85f   : > { %v14327_v2 = vadd.f32 %v3625_v48, %v14309_v0  ;;  %v3627_v3 = vpop.f32.mrb[19].mxu1  ;;  %v3845_v10 = vadd.f32 %v3844_v52, %v14313_v20  ;;  %v3846_v1 = vpop.f32.mrb[19].mxu0 }
 0x860   : > { %v14335_v56 = vadd.f32 %v3627_v3, %v14317_v59  ;;  %v3847_v6 = vadd.f32 %v3846_v1, %v14321_v61 }
 0x861   : > { %v3960_v36 = vpack.c.bf16 %v3845_v10, %v3841_v9 }
 0x862   : > { %v14343_v17 = vpack.c.bf16 %v3847_v6, %v3843_v5 }
 0x863   : > { %10202 = vmatprep.subr.bf16.mxu1 %v3960_v36 }
 0x864   : > { %v3631_v47 = vpop.f32.mrb[20].mxu1  ;;  %v3850_v21 = vpop.f32.mrb[20].mxu0  ;;  %10203 = vmatpush3.bf16.msra.mxu1 %v3960_v36 }
 0x865   : > { %v3633_v28 = vpop.f32.mrb[21].mxu1  ;;  %v3852_v49 = vpop.f32.mrb[21].mxu0  ;;  %v14346_v55 = vadd.f32 %v3631_v47, %v14309_v0  ;;  %v3851_v38 = vadd.f32 %v3850_v21, %v14313_v20 }
 0x866   : > { %v3635_v50 = vpop.f32.mrb[22].mxu1  ;;  %v3853_v30 = vadd.f32 %v3852_v49, %v14321_v61  ;;  %v3854_v29 = vpop.f32.mrb[22].mxu0  ;;  %v14354_v34 = vadd.f32 %v3633_v28, %v14317_v59 }
 0x867   : > { %v14350_v33 = vadd.f32 %v3635_v50, %v14309_v0  ;;  %v3637_v32 = vpop.f32.mrb[23].mxu1  ;;  %v3855_v19 = vadd.f32 %v3854_v29, %v14313_v20  ;;  %v3856_v25 = vpop.f32.mrb[23].mxu0 }
 0x868   : > { %v14358_v37 = vadd.f32 %v3637_v32, %v14317_v59  ;;  %v3857_v26 = vadd.f32 %v3856_v25, %v14321_v61 }
 0x869   : > { %v3972_v63 = vpack.c.bf16 %v3855_v19, %v3851_v38 }
 0x86a   : > { %v14365_v52 = vpack.c.bf16 %v3857_v26, %v3853_v30 }
 0x86b   : > { %10204 = vmatprep.subr.bf16.mxu1 %v3972_v63 }
 0x86c   : > { %v3641_v3 = vpop.f32.mrb[24].mxu1  ;;  %10205 = vmatpush3.bf16.msra.mxu1 %v3972_v63  ;;  %v3860_v1 = vpop.f32.mrb[24].mxu0 }
 0x86d   : > { %v14368_v9 = vadd.f32 %v3641_v3, %v14309_v0  ;;  %v3643_v10 = vpop.f32.mrb[25].mxu1  ;;  %10218 = vmatprep.subr.bf16.mxu1 %v14343_v17  ;;  %v3861_v36 = vadd.f32 %v3860_v1, %v14313_v20  ;;  %v3862_v47 = vpop.f32.mrb[25].mxu0 }
 0x86e   : > { %v14372_v5 = vadd.f32 %v3643_v10, %v14317_v59  ;;  %v3645_v6 = vpop.f32.mrb[26].mxu1  ;;  %v3863_v49 = vadd.f32 %v3862_v47, %v14321_v61  ;;  %v3864_v50 = vpop.f32.mrb[26].mxu0 }
 0x86f   : > { %v14376_v21 = vadd.f32 %v3645_v6, %v14309_v0  ;;  %v3647_v28 = vpop.f32.mrb[27].mxu1  ;;  %v3865_v29 = vadd.f32 %v3864_v50, %v14313_v20  ;;  %v3866_v32 = vpop.f32.mrb[27].mxu0 }
 0x870   : > { %16118 = vst [vmem:[#allocation66_spill] sm:$0xff] %v14372_v5  ;;  %v14380_v30 = vadd.f32 %v3647_v28, %v14317_v59  ;;  %v3867_v19 = vadd.f32 %v3866_v32, %v14321_v61 }
 0x871   : > { %v14388_v26 = vpack.c.bf16 %v3865_v29, %v3861_v36 }
 0x872   : > { %16119 = vst [vmem:[#allocation67_spill] sm:$0xff] %v14380_v30  ;;  %v14390_v63 = vpack.c.bf16 %v3867_v19, %v3863_v49 }
 0x874   : > { %v3651_v3 = vpop.f32.mrb[28].mxu1  ;;  %v3870_v6 = vpop.f32.mrb[28].mxu0 }
 0x875   : > { %v14393_v10 = vadd.f32 %v3651_v3, %v14309_v0  ;;  %v3653_v1 = vpop.f32.mrb[29].mxu1  ;;  %v3871_v50 = vadd.f32 %v3870_v6, %v14313_v20  ;;  %v3872_v32 = vpop.f32.mrb[29].mxu0 }
 0x876   : > { %v14396_v47 = vadd.f32 %v3653_v1, %v14317_v59  ;;  %v3655_v28 = vpop.f32.mrb[30].mxu1  ;;  %v3873_v49 = vadd.f32 %v3872_v32, %v14321_v61  ;;  %v3874_v29 = vpop.f32.mrb[30].mxu0  ;;  %v15948_v32 = vsub.s32 6, %v13929_v24 }
 0x877   : > { %16120 = vst [vmem:[#allocation68_spill] sm:$0xff] %v14393_v10  ;;  %v14400_v45 = vadd.f32 %v3655_v28, %v14309_v0  ;;  %v3657_v36 = vpop.f32.mrb[31].mxu1  ;;  %v3875_v3 = vadd.f32 %v3874_v29, %v14313_v20  ;;  %v3876_v51 = vpop.f32.mrb[31].mxu0 }
 0x878   : > { %16121 = vst [vmem:[#allocation69_spill] sm:$0xff] %v14396_v47  ;;  %v14404_v19 = vadd.f32 %v3657_v36, %v14317_v59  ;;  %v3877_v25 = vadd.f32 %v3876_v51, %v14321_v61  ;;  %v2524_v59 = vsub.s32 7, %v13929_v24  ;;  %v2521_v20 = vrot.slane %v14209_v15, %v15948_v32 }
 0x879   : > { %16122 = vst [vmem:[#allocation70_spill] sm:$0xff] %v14400_v45  ;;  %v14412_v0 = vpack.c.bf16 %v3875_v3, %v3871_v50 }
 0x87a   : > { %16123 = vst [vmem:[#allocation71_spill] sm:$0xff] %v14404_v19  ;;  %v14414_v28 = vpack.c.bf16 %v3877_v25, %v3873_v49  ;;  %v2525_v29 = vrot.slane %v14209_v15, %v2524_v59 }
 0x89c   : > { %v3767_v36 = vpop.f32.mrb[32].mxu1 }
 0x89d   : > { %v3769_v1 = vpop.f32.mrb[33].mxu1  ;;  %v3768_v61 = vadd.f32 %v3767_v36, %v2521_v20 }
 0x89e   : > { %v3771_v51 = vpop.f32.mrb[34].mxu1  ;;  %v3770_v50 = vadd.f32 %v3769_v1, %v2525_v29 }
 0x89f   : > { %v3772_v38 = vadd.f32 %v3771_v51, %v2521_v20  ;;  %v3773_v6 = vpop.f32.mrb[35].mxu1 }
 0x8a0   : > { %v3774_v3 = vadd.f32 %v3773_v6, %v2525_v29 }
 0x8a1   : > { %v14422_v25 = vpack.c.bf16 %v3772_v38, %v3768_v61 }
 0x8a2   : > { %v14424_v49 = vpack.c.bf16 %v3774_v3, %v3770_v50 }
 0x8a4   : > { %v3777_v40 = vpop.f32.mrb[36].mxu1 }
 0x8a5   : > { %v3779_v53 = vpop.f32.mrb[37].mxu1  ;;  %v3778_v48 = vadd.f32 %v3777_v40, %v2521_v20 }
 0x8a6   : > { %v3780_v42 = vadd.f32 %v3779_v53, %v2525_v29  ;;  %v3781_v8 = vpop.f32.mrb[38].mxu1 }
 0x8a7   : > { %v3782_v32 = vadd.f32 %v3781_v8, %v2521_v20  ;;  %v3783_v12 = vpop.f32.mrb[39].mxu1 }
 0x8a8   : > { %v3784_v60 = vadd.f32 %v3783_v12, %v2525_v29 }
 0x8a9   : > { %v14426_v15 = vpack.c.bf16 %v3782_v32, %v3778_v48 }
 0x8aa   : > { %v14428_v59 = vpack.c.bf16 %v3784_v60, %v3780_v42 }
 0x8ac   : > { %v3787_v36 = vpop.f32.mrb[40].mxu1 }
 0x8ad   : > { %v3788_v51 = vadd.f32 %v3787_v36, %v2521_v20  ;;  %v3789_v1 = vpop.f32.mrb[41].mxu1 }
 0x8ae   : > { %v3790_v6 = vadd.f32 %v3789_v1, %v2525_v29  ;;  %v3791_v38 = vpop.f32.mrb[42].mxu1  ;;  %v2537_v1 = vrot.slane %v14305_v41, %v14299_v18 }
 0x8af   : > { %v3792_v61 = vadd.f32 %v3791_v38, %v2521_v20  ;;  %v3793_v50 = vpop.f32.mrb[43].mxu1 }
 0x8b0   : > { %v3794_v3 = vadd.f32 %v3793_v50, %v2525_v29 }
 0x8b1   : > { %v14430_v4 = vpack.c.bf16 %v3792_v61, %v3788_v51  ;;  %v2541_v51 = vrot.slane %v14305_v41, %v14302_v23 }
 0x8b2   : > { %v14432_v53 = vpack.c.bf16 %v3794_v3, %v3790_v6 }
 0x8b4   : > { %v3797_v40 = vpop.f32.mrb[44].mxu1 }
 0x8b5   : > { %v3798_v8 = vadd.f32 %v3797_v40, %v2521_v20  ;;  %v3799_v14 = vpop.f32.mrb[45].mxu1 }
 0x8b6   : > { %v3800_v12 = vadd.f32 %v3799_v14, %v2525_v29  ;;  %v3801_v48 = vpop.f32.mrb[46].mxu1 }
 0x8b7   : > { %v3802_v32 = vadd.f32 %v3801_v48, %v2521_v20  ;;  %v3803_v42 = vpop.f32.mrb[47].mxu1 }
 0x8b8   : > { %v3804_v60 = vadd.f32 %v3803_v42, %v2525_v29 }
 0x8b9   : > { %v14434_v24 = vpack.c.bf16 %v3802_v32, %v3798_v8 }
 0x8ba   : > { %v14436_v36 = vpack.c.bf16 %v3804_v60, %v3800_v12 }
 0x8bc   : > { %16124 = vst [vmem:[#allocation72_spill] sm:$0xff] %v14436_v36 }
 0x8dc   : > { %v3913_v38 = vpop.f32.mrb[48].mxu1 }
 0x8dd   : > { %v3915_v6 = vpop.f32.mrb[49].mxu1  ;;  %v3914_v50 = vadd.f32 %v3913_v38, %v2537_v1 }
 0x8de   : > { %v3917_v61 = vpop.f32.mrb[50].mxu1  ;;  %v3916_v40 = vadd.f32 %v3915_v6, %v2541_v51 }
 0x8df   : > { %v3918_v3 = vadd.f32 %v3917_v61, %v2537_v1  ;;  %v3919_v14 = vpop.f32.mrb[51].mxu1 }
 0x8e0   : > { %v3920_v20 = vadd.f32 %v3919_v14, %v2541_v51 }
 0x8e1   : > { %v3962_v48 = vpack.c.bf16 %v3918_v3, %v3914_v50 }
 0x8e2   : > { %v14442_v29 = vpack.c.bf16 %v3920_v20, %v3916_v40 }
 0x8e3   : > { %10234 = vmatprep.subr.bf16.mxu0 %v3962_v48 }
 0x8e4   : > { %v3923_v8 = vpop.f32.mrb[52].mxu1  ;;  %10235 = vmatpush3.bf16.msra.mxu0 %v3962_v48 }
 0x8e5   : > { %v3925_v12 = vpop.f32.mrb[53].mxu1  ;;  %v3924_v42 = vadd.f32 %v3923_v8, %v2537_v1 }
 0x8e6   : > { %v3927_v32 = vpop.f32.mrb[54].mxu1  ;;  %v3926_v35 = vadd.f32 %v3925_v12, %v2541_v51 }
 0x8e7   : > { %v3928_v60 = vadd.f32 %v3927_v32, %v2537_v1  ;;  %v3929_v18 = vpop.f32.mrb[55].mxu1 }
 0x8e8   : > { %v3930_v41 = vadd.f32 %v3929_v18, %v2541_v51 }
 0x8e9   : > { %v3974_v23 = vpack.c.bf16 %v3928_v60, %v3924_v42 }
 0x8ea   : > { %v14444_v54 = vpack.c.bf16 %v3930_v41, %v3926_v35 }
 0x8eb   : > { %10236 = vmatprep.subr.bf16.mxu0 %v3974_v23 }
 0x8ec   : > { %v3933_v38 = vpop.f32.mrb[56].mxu1  ;;  %10237 = vmatpush3.bf16.msra.mxu0 %v3974_v23 }
 0x8ed   : > { %v3934_v6 = vadd.f32 %v3933_v38, %v2537_v1  ;;  %v3935_v61 = vpop.f32.mrb[57].mxu1  ;;  %10242 = vmatprep.subr.bf16.mxu0 %v14424_v49 }
 0x8ee   : > { %v3936_v50 = vadd.f32 %v3935_v61, %v2541_v51  ;;  %v3937_v3 = vpop.f32.mrb[58].mxu1  ;;  %v16127_v61 = vlaneseq }
 0x8ef   : > { %v3938_v14 = vadd.f32 %v3937_v3, %v2537_v1  ;;  %v3939_v40 = vpop.f32.mrb[59].mxu1 }
 0x8f0   : > { %v3940_v20 = vadd.f32 %v3939_v40, %v2541_v51  ;;  %v14456_v3 = vand.u32 127, %v16127_v61 }
 0x8f1   : > { %v14447_v48 = vpack.c.bf16 %v3938_v14, %v3934_v6 }
 0x8f2   : > { %v14449_v8 = vpack.c.bf16 %v3940_v20, %v3936_v50  ;;  %vm4050_vm1 = vcmp.lt.s32.totalorder %v14456_v3, 17 }
 0x8f4   : > { %16125 = vst [vmem:[#allocation73_spill] sm:$0xff] %v14449_v8  ;;  %v3943_v18 = vpop.f32.mrb[60].mxu1 }
 0x8f5   : > { %v3944_v12 = vadd.f32 %v3943_v18, %v2537_v1  ;;  %v3945_v35 = vpop.f32.mrb[61].mxu1 }
 0x8f6   : > { %v3946_v32 = vadd.f32 %v3945_v35, %v2541_v51  ;;  %v3947_v42 = vpop.f32.mrb[62].mxu1 }
 0x8f7   : > { %v3948_v60 = vadd.f32 %v3947_v42, %v2537_v1  ;;  %v3949_v23 = vpop.f32.mrb[63].mxu1 }
 0x8f8   : > { %v3950_v41 = vadd.f32 %v3949_v23, %v2541_v51 }
 0x8f9   : > { %v14451_v38 = vpack.c.bf16 %v3948_v60, %v3944_v12 }
 0x8fa   : > { %v14453_v47 = vpack.c.bf16 %v3950_v41, %v3946_v32 }
 0x8fc   : > { %16126 = vst [vmem:[#allocation74_spill] sm:$0xff] %v14453_v47 }
 0x906   : > { %v10200_v6 = vpop.f32.mrb[32].mxu0 }
 0x907   : > { %v4094_v50 = vpop.f32.mrb[33].mxu0  ;;  %v4113_v51 = vsel %vm4050_vm1, %v10200_v6, -1e+30 }
 0x908   : > { %v4111_v14 = vsel %vm4050_vm1, %v4094_v50, -1e+30  ;;  %v10201_v40 = vpop.f32.mrb[34].mxu0  ;;  %v4122_v32 = vsel %vm4115_vm2, %v4113_v51, -inf }
 0x909   : > { %v4097_v20 = vpop.f32.mrb[35].mxu0  ;;  %v4116_v1 = vsel %vm4115_vm2, %v4111_v14, -inf  ;;  %v4114_v35 = vsel %vm4050_vm1, %v10201_v40, -1e+30 }
 0x90a   : > { %v4112_v18 = vsel %vm4050_vm1, %v4097_v20, -1e+30  ;;  %4117 = vmax.xlane.f32.xlu0 %v4116_v1  ;;  %v4125_v42 = vsel %vm4115_vm2, %v4114_v35, -inf }
 0x90b   : > { %v4119_v12 = vsel %vm4115_vm2, %v4112_v18, -inf }
 0x90c   : > { %4120 = vmax.xlane.f32.xlu1 %v4119_v12 }
 0x90e   : > { %4123 = vmax.xlane.f32.xlu0 %v4122_v32 }
 0x910   : > { %4126 = vmax.xlane.f32.xlu1 %v4125_v42 }
 0x916   : > { %v10216_v60 = vpop.f32.mrb[36].mxu0 }
 0x917   : > { %v4264_v23 = vpop.f32.mrb[37].mxu0  ;;  %v4281_v20 = vsel %vm4050_vm1, %v10216_v60, -1e+30 }
 0x918   : > { %v4279_v41 = vsel %vm4050_vm1, %v4264_v23, -1e+30  ;;  %v10217_v61 = vpop.f32.mrb[38].mxu0  ;;  %v4289_v32 = vsel %vm4115_vm2, %v4281_v20, -inf }
 0x919   : > { %v4267_v6 = vpop.f32.mrb[39].mxu0  ;;  %v4283_v50 = vsel %vm4115_vm2, %v4279_v41, -inf  ;;  %v4282_v12 = vsel %vm4050_vm1, %v10217_v61, -1e+30 }
 0x91a   : > { %v4280_v40 = vsel %vm4050_vm1, %v4267_v6, -1e+30  ;;  %4284 = vmax.xlane.f32.xlu0 %v4283_v50  ;;  %v4292_v42 = vsel %vm4115_vm2, %v4282_v12, -inf }
 0x91b   : > { %v4286_v1 = vsel %vm4115_vm2, %v4280_v40, -inf }
 0x91c   : > { %4287 = vmax.xlane.f32.xlu1 %v4286_v1 }
 0x91e   : > { %4290 = vmax.xlane.f32.xlu0 %v4289_v32 }
 0x920   : > { %4293 = vmax.xlane.f32.xlu1 %v4292_v42 }
 0x997   : > { %v4118_v23 = vpop.xlane.xlu0 %4117 }
 0x998   : > { %v4128_v19 = vsub.f32 %v4111_v14, %v4118_v23 }
 0x999   : > { %v4121_v36 = vpop.xlane.xlu1 %4120 }
 0x99a   : > { %v4132_v60 = vmul.f32 1.442695, %v4128_v19  ;;  %v4129_v5 = vsub.f32 %v4112_v18, %v4121_v36 }
 0x99b   : > { %v4124_v30 = vpop.xlane.xlu0 %4123 }
 0x99c   : > { %11455 = vpow2.f32 %v4132_v60  ;;  %v4134_v6 = vmul.f32 1.442695, %v4129_v5  ;;  %v4130_v50 = vsub.f32 %v4113_v51, %v4124_v30 }
 0x99d   : > { %v4127_v47 = vpop.xlane.xlu1 %4126 }
 0x99e   : > { %11457 = vpow2.f32 %v4134_v6  ;;  %v4136_v10 = vmul.f32 1.442695, %v4130_v50  ;;  %v4131_v61 = vsub.f32 %v4114_v35, %v4127_v47 }
 0x9a0   : > { %11459 = vpow2.f32 %v4136_v10  ;;  %v4138_v1 = vmul.f32 1.442695, %v4131_v61 }
 0x9a2   : > { %11461 = vpow2.f32 %v4138_v1 }
 0x9a6   : > { %v11456_v32 = vpop.eup %11455 }
 0x9a7   : > { %v4285_v45 = vpop.xlane.xlu0 %4284  ;;  %v4140_v42 = vsel %vm4115_vm2, %v11456_v32, 0.0 }
 0x9a8   : > { %v11458_v8 = vpop.eup %11457  ;;  %v4295_v14 = vsub.f32 %v4279_v41, %v4285_v45  ;;  %4141 = vadd.xlane.f32.xlu0 %v4140_v42 }
 0x9a9   : > { %v4288_v19 = vpop.xlane.xlu1 %4287  ;;  %v4143_v36 = vsel %vm4115_vm2, %v11458_v8, 0.0 }
 0x9aa   : > { %v11460_v18 = vpop.eup %11459  ;;  %v4299_v5 = vmul.f32 1.442695, %v4295_v14  ;;  %v4296_v30 = vsub.f32 %v4280_v40, %v4288_v19  ;;  %4144 = vadd.xlane.f32.xlu1 %v4143_v36 }
 0x9ab   : > { %v4291_v51 = vpop.xlane.xlu0 %4290  ;;  %v4146_v47 = vsel %vm4115_vm2, %v11460_v18, 0.0 }
 0x9ac   : > { %v11462_v10 = vpop.eup %11461  ;;  %11463 = vpow2.f32 %v4299_v5  ;;  %v4301_v35 = vmul.f32 1.442695, %v4296_v30  ;;  %v4297_v23 = vsub.f32 %v4281_v20, %v4291_v51  ;;  %4147 = vadd.xlane.f32.xlu0 %v4146_v47 }
 0x9ad   : > { %v4294_v60 = vpop.xlane.xlu1 %4293  ;;  %v4149_v6 = vsel %vm4115_vm2, %v11462_v10, 0.0 }
 0x9ae   : > { %11465 = vpow2.f32 %v4301_v35  ;;  %v4303_v45 = vmul.f32 1.442695, %v4297_v23  ;;  %v4298_v41 = vsub.f32 %v4282_v12, %v4294_v60  ;;  %4150 = vadd.xlane.f32.xlu1 %v4149_v6 }
 0x9b0   : > { %11467 = vpow2.f32 %v4303_v45  ;;  %v4305_v50 = vmul.f32 1.442695, %v4298_v41 }
 0x9b2   : > { %11469 = vpow2.f32 %v4305_v50 }
 0x9b6   : > { %v11464_v40 = vpop.eup %11463 }
 0x9b7   : > { %v4307_v61 = vsel %vm4115_vm2, %v11464_v40, 0.0 }
 0x9b8   : > { %v11466_v1 = vpop.eup %11465  ;;  %4308 = vadd.xlane.f32.xlu0 %v4307_v61 }
 0x9b9   : > { %v4310_v42 = vsel %vm4115_vm2, %v11466_v1, 0.0 }
 0x9ba   : > { %v11468_v14 = vpop.eup %11467  ;;  %4311 = vadd.xlane.f32.xlu1 %v4310_v42 }
 0x9bb   : > { %v4313_v20 = vsel %vm4115_vm2, %v11468_v14, 0.0 }
 0x9bc   : > { %v11470_v19 = vpop.eup %11469  ;;  %4314 = vadd.xlane.f32.xlu0 %v4313_v20 }
 0x9bd   : > { %v4316_v36 = vsel %vm4115_vm2, %v11470_v19, 0.0 }
 0x9be   : > { %4317 = vadd.xlane.f32.xlu1 %v4316_v36 }
 0xa35   : > { %v4142_v12 = vpop.xlane.xlu0 %4141 }
 0xa36   : > { %11471 = vrcp.f32 %v4142_v12 }
 0xa37   : > { %v4145_v5 = vpop.xlane.xlu1 %4144 }
 0xa38   : > { %11473 = vrcp.f32 %v4145_v5 }
 0xa39   : > { %v4148_v30 = vpop.xlane.xlu0 %4147 }
 0xa3a   : > { %11475 = vrcp.f32 %v4148_v30 }
 0xa3b   : > { %v4151_v51 = vpop.xlane.xlu1 %4150 }
 0xa3c   : > { %11477 = vrcp.f32 %v4151_v51 }
 0xa40   : > { %v11472_v47 = vpop.eup %11471 }
 0xa41   : > { %v4156_v23 = vmul.f32 %v11472_v47, %v11456_v32 }
 0xa42   : > { %v11474_v35 = vpop.eup %11473 }
 0xa43   : > { %v4157_v60 = vmul.f32 %v11474_v35, %v11458_v8 }
 0xa44   : > { %v11476_v6 = vpop.eup %11475 }
 0xa45   : > { %v4309_v45 = vpop.xlane.xlu0 %4308  ;;  %v4160_v41 = vpack.c.bf16 %v4157_v60, %v4156_v23  ;;  %v4158_v61 = vmul.f32 %v11476_v6, %v11460_v18 }
 0xa46   : > { %v11478_v50 = vpop.eup %11477  ;;  %11479 = vrcp.f32 %v4309_v45 }
 0xa47   : > { %v4159_v42 = vmul.f32 %v11478_v50, %v11462_v10  ;;  %v4312_v20 = vpop.xlane.xlu1 %4311  ;;  %10206 = vmatprep.mubr.msk.bf16.mxu1 %vm4115_vm2, %v4160_v41 }
 0xa48   : > { %11481 = vrcp.f32 %v4312_v20 }
 0xa49   : > { %v4161_v36 = vpack.c.bf16 %v4159_v42, %v4158_v61  ;;  %v4315_v12 = vpop.xlane.xlu0 %4314 }
 0xa4a   : > { %11483 = vrcp.f32 %v4315_v12 }
 0xa4b   : > { %v4318_v5 = vpop.xlane.xlu1 %4317  ;;  %10207 = vmatmul.mubr.msk.bf16.vlgmr.msra.gmra.mrb[64].mxu1 %vm4115_vm2, %v4161_v36 }
 0xa4c   : > { %11485 = vrcp.f32 %v4318_v5  ;;  %10219 = vmatpush3.bf16.msra.mxu1 %v14343_v17  ;;  %v16128_v17 = vpack.c.bf16 %v14327_v2, %v14324_v13 }
 0xa4d   : > { %10220 = vmatprep.subr.bf16.mxu1 %v14365_v52 }
 0xa50   : > { %v11480_v8 = vpop.eup %11479  ;;  %10221 = vmatpush3.bf16.msra.mxu1 %v14365_v52  ;;  %v16129_v52 = vpack.c.bf16 %v14350_v33, %v14346_v55 }
 0xa51   : > { %10226 = vmatprep.subr.bf16.mxu1 %v14422_v25  ;;  %v4323_v18 = vmul.f32 %v11480_v8, %v11464_v40 }
 0xa52   : > { %v11482_v32 = vpop.eup %11481 }
 0xa53   : > { %v4324_v10 = vmul.f32 %v11482_v32, %v11466_v1 }
 0xa54   : > { %v11484_v30 = vpop.eup %11483 }
 0xa55   : > { %v4327_v51 = vpack.c.bf16 %v4324_v10, %v4323_v18  ;;  %v4325_v35 = vmul.f32 %v11484_v30, %v11468_v14 }
 0xa56   : > { %v11486_v47 = vpop.eup %11485 }
 0xa57   : > { %v4326_v23 = vmul.f32 %v11486_v47, %v11470_v19  ;;  %10222 = vmatprep.mubr.msk.bf16.mxu1 %vm4115_vm2, %v4327_v51 }
 0xa59   : > { %v4328_v60 = vpack.c.bf16 %v4326_v23, %v4325_v35 }
 0xa5b   : > { %10223 = vmatmul.mubr.msk.bf16.vlgmr.msra.gmra.mrb[68].mxu1 %vm4115_vm2, %v4328_v60 }
 0xa5c   : > { %10227 = vmatpush3.bf16.xpose.msra.mxu1 %v14422_v25  ;;  %10230 = vmatprep.mubr.bf16.mxu1 %v16128_v17 }
 0xa5d   : > { %10228 = vmatprep.subr.bf16.mxu1 %v14426_v15 }
 0xa64   : > { %10229 = vmatpush3.bf16.xpose.msra.mxu1 %v14426_v15 }
 0xa65   : > { %10250 = vmatprep.subr.bf16.mxu1 %v14442_v29 }
 0xa6b   : > { %10231 = vmatmul.mubr.bf16.vlgmr.msra.gmra.mrb[72].mxu1 %v16129_v52 }
 0xa6c   : > { %10251 = vmatpush3.bf16.msra.mxu1 %v14442_v29 }
 0xa6d   : > { %10252 = vmatprep.subr.bf16.mxu1 %v14444_v54 }
 0xa70   : > { %10253 = vmatpush3.bf16.msra.mxu1 %v14444_v54 }
 0xa71   : > { %10258 = vmatprep.subr.bf16.mxu1 %v14268_v62 }
 0xb1e   : > { %v14513_v13 = vpop.f32.mrb[64].mxu1 }
 0xb1f   : > { %v14515_v2 = vpop.f32.mrb[65].mxu1 }
 0xb20   : > { %v14517_v25 = vpop.f32.mrb[66].mxu1 }
 0xb21   : > { %v4218_v15 = vpack.c.bf16 %v14517_v25, %v14513_v13  ;;  %v14521_v40 = vpop.f32.mrb[67].mxu1  ;;  %v11078_v13 = vld [vmem:[%s13647_s25 + $0x150] ss:$8 sps:$4 sm:$0xff]   ;;  %v11083_v25 = vld [vmem:[%s13647_s25 + $0x164] ss:$8 sps:$4 sm:$0xff]  }
 0xb22   : > { %v4217_v55 = vpack.c.bf16 %v14521_v40, %v14515_v2  ;;  %v11072_v2 = vld [vmem:[%s13647_s25 + $0x130] ss:$8 sps:$4 sm:$0xff]   ;;  %v11077_v40 = vld [vmem:[%s13647_s25 + $0x144] ss:$8 sps:$4 sm:$0xff]  }
 0xb2e   : > { %v14525_v33 = vpop.f32.mrb[68].mxu1 }
 0xb2f   : > { %v14527_v29 = vpop.f32.mrb[69].mxu1 }
 0xb30   : > { %v14529_v54 = vpop.f32.mrb[70].mxu1 }
 0xb31   : > { %v4385_v1 = vpack.c.bf16 %v14529_v54, %v14525_v33  ;;  %v14533_v14 = vpop.f32.mrb[71].mxu1  ;;  %v11080_v33 = vld [vmem:[%s13647_s25 + $0x154] ss:$8 sps:$4 sm:$0xff]  }
 0xb32   : > { %v4384_v19 = vpack.c.bf16 %v14533_v14, %v14527_v29  ;;  %v11027_v29 = vld [vmem:[%s13647_s25 + $0x40] ss:$8 sps:$4 sm:$0xff]   ;;  %v11032_v14 = vld [vmem:[%s13647_s25 + $0x54] ss:$8 sps:$4 sm:$0xff]  }
 0xb33   : > { %v11086_v54 = vld [vmem:[%s13647_s25 + $0x174] ss:$8 sps:$4 sm:$0xff]  }
 0xb3e   : > { %v10232_v6 = vpop.f32.mrb[72].mxu1 }
 0xb3f   : > { %v4428_v45 = vpop.f32.mrb[73].mxu1  ;;  %v4445_v20 = vsel %vm4050_vm1, %v10232_v6, -1e+30 }
 0xb40   : > { %v4443_v41 = vsel %vm4050_vm1, %v4428_v45, -1e+30  ;;  %v10233_v50 = vpop.f32.mrb[74].mxu1  ;;  %v4453_v8 = vsel %vm4115_vm2, %v4445_v20, -inf }
 0xb41   : > { %v4431_v61 = vpop.f32.mrb[75].mxu1  ;;  %v4447_v42 = vsel %vm4115_vm2, %v4443_v41, -inf  ;;  %v4446_v5 = vsel %vm4050_vm1, %v10233_v50, -1e+30 }
 0xb42   : > { %v4444_v36 = vsel %vm4050_vm1, %v4431_v61, -1e+30  ;;  %4448 = vmax.xlane.f32.xlu0 %v4447_v42  ;;  %v4456_v32 = vsel %vm4115_vm2, %v4446_v5, -inf }
 0xb43   : > { %v4450_v12 = vsel %vm4115_vm2, %v4444_v36, -inf }
 0xb44   : > { %4451 = vmax.xlane.f32.xlu1 %v4450_v12 }
 0xb46   : > { %4454 = vmax.xlane.f32.xlu0 %v4453_v8 }
 0xb48   : > { %4457 = vmax.xlane.f32.xlu1 %v4456_v32 }
 0xbcf   : > { %v4449_v18 = vpop.xlane.xlu0 %4448 }
 0xbd0   : > { %v4459_v10 = vsub.f32 %v4443_v41, %v4449_v18 }
 0xbd1   : > { %v4452_v30 = vpop.xlane.xlu1 %4451 }
 0xbd2   : > { %v4463_v51 = vmul.f32 1.442695, %v4459_v10  ;;  %v4460_v47 = vsub.f32 %v4444_v36, %v4452_v30 }
 0xbd3   : > { %v4455_v35 = vpop.xlane.xlu0 %4454 }
 0xbd4   : > { %11487 = vpow2.f32 %v4463_v51  ;;  %v4465_v23 = vmul.f32 1.442695, %v4460_v47  ;;  %v4461_v60 = vsub.f32 %v4445_v20, %v4455_v35 }
 0xbd5   : > { %v4458_v17 = vpop.xlane.xlu1 %4457 }
 0xbd6   : > { %11489 = vpow2.f32 %v4465_v23  ;;  %v4467_v52 = vmul.f32 1.442695, %v4461_v60  ;;  %v4462_v6 = vsub.f32 %v4446_v5, %v4458_v17 }
 0xbd8   : > { %11491 = vpow2.f32 %v4467_v52  ;;  %v4469_v45 = vmul.f32 1.442695, %v4462_v6 }
 0xbda   : > { %11493 = vpow2.f32 %v4469_v45 }
 0xbde   : > { %v11488_v50 = vpop.eup %11487 }
 0xbdf   : > { %v4471_v61 = vsel %vm4115_vm2, %v11488_v50, 0.0 }
 0xbe0   : > { %v11490_v42 = vpop.eup %11489  ;;  %4472 = vadd.xlane.f32.xlu0 %v4471_v61  ;;  %v16130_v61 = vpack.c.bf16 %v14335_v56, %v14331_v7 }
 0xbe1   : > { %v4474_v41 = vsel %vm4115_vm2, %v11490_v42, 0.0 }
 0xbe2   : > { %v11492_v12 = vpop.eup %11491  ;;  %4475 = vadd.xlane.f32.xlu1 %v4474_v41 }
 0xbe3   : > { %v4477_v36 = vsel %vm4115_vm2, %v11492_v12, 0.0 }
 0xbe4   : > { %v11494_v8 = vpop.eup %11493  ;;  %4478 = vadd.xlane.f32.xlu0 %v4477_v36 }
 0xbe5   : > { %v4480_v20 = vsel %vm4115_vm2, %v11494_v8, 0.0 }
 0xbe6   : > { %4481 = vadd.xlane.f32.xlu1 %v4480_v20 }
 0xc6d   : > { %v4473_v5 = vpop.xlane.xlu0 %4472 }
 0xc6e   : > { %11495 = vrcp.f32 %v4473_v5 }
 0xc6f   : > { %v4476_v32 = vpop.xlane.xlu1 %4475 }
 0xc70   : > { %11497 = vrcp.f32 %v4476_v32 }
 0xc71   : > { %v4479_v18 = vpop.xlane.xlu0 %4478 }
 0xc72   : > { %11499 = vrcp.f32 %v4479_v18 }
 0xc73   : > { %v4482_v10 = vpop.xlane.xlu1 %4481 }
 0xc74   : > { %11501 = vrcp.f32 %v4482_v10 }
 0xc78   : > { %v11496_v30 = vpop.eup %11495 }
 0xc79   : > { %v4487_v47 = vmul.f32 %v11496_v30, %v11488_v50  ;;  %v16131_v50 = vpack.c.bf16 %v14358_v37, %v14354_v34 }
 0xc7a   : > { %v11498_v51 = vpop.eup %11497 }
 0xc7b   : > { %v4488_v35 = vmul.f32 %v11498_v51, %v11490_v42 }
 0xc7c   : > { %v11500_v23 = vpop.eup %11499 }
 0xc7d   : > { %v4491_v60 = vpack.c.bf16 %v4488_v35, %v4487_v47  ;;  %v4489_v52 = vmul.f32 %v11500_v23, %v11492_v12 }
 0xc7e   : > { %v11502_v17 = vpop.eup %11501 }
 0xc7f   : > { %v4490_v6 = vmul.f32 %v11502_v17, %v11494_v8  ;;  %10238 = vmatprep.mubr.msk.bf16.mxu0 %vm4115_vm2, %v4491_v60 }
 0xc81   : > { %v4492_v45 = vpack.c.bf16 %v4490_v6, %v4489_v52 }
 0xc83   : > { %10239 = vmatmul.mubr.msk.bf16.vlgmr.msra.gmra.mrb[40].mxu0 %vm4115_vm2, %v4492_v45 }
 0xc84   : > { %10243 = vmatpush3.bf16.xpose.msra.mxu0 %v14424_v49  ;;  %10246 = vmatprep.mubr.bf16.mxu0 %v16130_v61 }
 0xc85   : > { %10244 = vmatprep.subr.bf16.mxu0 %v14428_v59 }
 0xc8c   : > { %10245 = vmatpush3.bf16.xpose.msra.mxu0 %v14428_v59 }
 0xc8d   : > { %10266 = vmatprep.subr.bf16.mxu0 %v14388_v26 }
 0xc93   : > { %10247 = vmatmul.mubr.bf16.vlgmr.msra.gmra.mrb[44].mxu0 %v16131_v50 }
 0xc94   : > { %10267 = vmatpush3.bf16.msra.mxu0 %v14388_v26 }
 0xc95   : > { %10268 = vmatprep.subr.bf16.mxu0 %v14412_v0 }
 0xc98   : > { %10269 = vmatpush3.bf16.msra.mxu0 %v14412_v0 }
 0xc99   : > { %10274 = vmatprep.subr.bf16.mxu0 %v14272_v27 }
 0xd56   : > { %v14569_v7 = vpop.f32.mrb[40].mxu0 }
 0xd57   : > { %v14571_v56 = vpop.f32.mrb[41].mxu0 }
 0xd58   : > { %v14573_v49 = vpop.f32.mrb[42].mxu0 }
 0xd59   : > { %v4549_v59 = vpack.c.bf16 %v14573_v49, %v14569_v7  ;;  %v14577_v42 = vpop.f32.mrb[43].mxu0  ;;  %v11111_v7 = vld [vmem:[%s13654_s16] ss:$28 sps:$4 sm:$0xff]  }
 0xd5a   : > { %v4548_v34 = vpack.c.bf16 %v14577_v42, %v14571_v56  ;;  %v11113_v49 = vld [vmem:[%s13654_s16 + $0x4] ss:$28 sps:$4 sm:$0xff]   ;;  %v11116_v42 = vld [vmem:[%s13654_s16 + $0x14] ss:$28 sps:$4 sm:$0xff]  }
 0xd66   : > { %v10248_v37 = vpop.f32.mrb[44].mxu0 }
 0xd67   : > { %v4592_v26 = vpop.f32.mrb[45].mxu0  ;;  %v4609_v8 = vsel %vm4050_vm1, %v10248_v37, -1e+30 }
 0xd68   : > { %v4607_v0 = vsel %vm4050_vm1, %v4592_v26, -1e+30  ;;  %v10249_v41 = vpop.f32.mrb[46].mxu0  ;;  %v4617_v18 = vsel %vm4115_vm2, %v4609_v8, -inf }
 0xd69   : > { %v4595_v12 = vpop.f32.mrb[47].mxu0  ;;  %v4611_v36 = vsel %vm4115_vm2, %v4607_v0, -inf  ;;  %v4610_v32 = vsel %vm4050_vm1, %v10249_v41, -1e+30 }
 0xd6a   : > { %v4608_v20 = vsel %vm4050_vm1, %v4595_v12, -1e+30  ;;  %4612 = vmax.xlane.f32.xlu0 %v4611_v36  ;;  %v4620_v10 = vsel %vm4115_vm2, %v4610_v32, -inf }
 0xd6b   : > { %v4614_v5 = vsel %vm4115_vm2, %v4608_v20, -inf }
 0xd6c   : > { %4615 = vmax.xlane.f32.xlu1 %v4614_v5 }
 0xd6e   : > { %4618 = vmax.xlane.f32.xlu0 %v4617_v18 }
 0xd70   : > { %4621 = vmax.xlane.f32.xlu1 %v4620_v10 }
 0xdf7   : > { %v4613_v30 = vpop.xlane.xlu0 %4612 }
 0xdf8   : > { %v4623_v51 = vsub.f32 %v4607_v0, %v4613_v30 }
 0xdf9   : > { %v4616_v47 = vpop.xlane.xlu1 %4615 }
 0xdfa   : > { %v4627_v35 = vmul.f32 1.442695, %v4623_v51  ;;  %v4624_v23 = vsub.f32 %v4608_v20, %v4616_v47 }
 0xdfb   : > { %v4619_v60 = vpop.xlane.xlu0 %4618 }
 0xdfc   : > { %11503 = vpow2.f32 %v4627_v35  ;;  %v4629_v17 = vmul.f32 1.442695, %v4624_v23  ;;  %v4625_v52 = vsub.f32 %v4609_v8, %v4619_v60 }
 0xdfd   : > { %v4622_v6 = vpop.xlane.xlu1 %4621 }
 0xdfe   : > { %11505 = vpow2.f32 %v4629_v17  ;;  %v4631_v45 = vmul.f32 1.442695, %v4625_v52  ;;  %v4626_v61 = vsub.f32 %v4610_v32, %v4622_v6 }
 0xe00   : > { %11507 = vpow2.f32 %v4631_v45  ;;  %v4633_v50 = vmul.f32 1.442695, %v4626_v61  ;;  %v16132_v61 = vpack.c.bf16 %v14259_v11, %v14251_v44 }
 0xe02   : > { %11509 = vpow2.f32 %v4633_v50  ;;  %v16133_v50 = vpack.c.bf16 %v14283_v31, %v14275_v22 }
 0xe06   : > { %v11504_v37 = vpop.eup %11503 }
 0xe07   : > { %v4635_v26 = vsel %vm4115_vm2, %v11504_v37, 0.0 }
 0xe08   : > { %v11506_v41 = vpop.eup %11505  ;;  %4636 = vadd.xlane.f32.xlu0 %v4635_v26 }
 0xe09   : > { %v4638_v0 = vsel %vm4115_vm2, %v11506_v41, 0.0 }
 0xe0a   : > { %v11508_v12 = vpop.eup %11507  ;;  %4639 = vadd.xlane.f32.xlu1 %v4638_v0 }
 0xe0b   : > { %v4641_v36 = vsel %vm4115_vm2, %v11508_v12, 0.0 }
 0xe0c   : > { %v11510_v20 = vpop.eup %11509  ;;  %4642 = vadd.xlane.f32.xlu0 %v4641_v36 }
 0xe0d   : > { %v4644_v8 = vsel %vm4115_vm2, %v11510_v20, 0.0 }
 0xe0e   : > { %4645 = vadd.xlane.f32.xlu1 %v4644_v8 }
 0xe95   : > { %v4637_v5 = vpop.xlane.xlu0 %4636 }
 0xe96   : > { %11511 = vrcp.f32 %v4637_v5 }
 0xe97   : > { %v4640_v32 = vpop.xlane.xlu1 %4639 }
 0xe98   : > { %11513 = vrcp.f32 %v4640_v32 }
 0xe99   : > { %v4643_v18 = vpop.xlane.xlu0 %4642 }
 0xe9a   : > { %11515 = vrcp.f32 %v4643_v18 }
 0xe9b   : > { %v4646_v10 = vpop.xlane.xlu1 %4645 }
 0xe9c   : > { %11517 = vrcp.f32 %v4646_v10 }
 0xea0   : > { %v11512_v30 = vpop.eup %11511 }
 0xea1   : > { %v4651_v47 = vmul.f32 %v11512_v30, %v11504_v37 }
 0xea2   : > { %v11514_v51 = vpop.eup %11513 }
 0xea3   : > { %v4652_v35 = vmul.f32 %v11514_v51, %v11506_v41 }
 0xea4   : > { %v11516_v23 = vpop.eup %11515 }
 0xea5   : > { %v4655_v60 = vpack.c.bf16 %v4652_v35, %v4651_v47  ;;  %v4653_v52 = vmul.f32 %v11516_v23, %v11508_v12 }
 0xea6   : > { %v11518_v17 = vpop.eup %11517 }
 0xea7   : > { %v4654_v6 = vmul.f32 %v11518_v17, %v11510_v20  ;;  %10254 = vmatprep.mubr.msk.bf16.mxu1 %vm4115_vm2, %v4655_v60 }
 0xea9   : > { %v4656_v45 = vpack.c.bf16 %v4654_v6, %v4653_v52 }
 0xeab   : > { %10255 = vmatmul.mubr.msk.bf16.vlgmr.msra.gmra.mrb[76].mxu1 %vm4115_vm2, %v4656_v45 }
 0xeac   : > { %10259 = vmatpush3.bf16.xpose.msra.mxu1 %v14268_v62  ;;  %10262 = vmatprep.mubr.bf16.mxu1 %v16132_v61 }
 0xead   : > { %10260 = vmatprep.subr.bf16.mxu1 %v14292_v46 }
 0xeb4   : > { %10261 = vmatpush3.bf16.xpose.msra.mxu1 %v14292_v46 }
 0xeb5   : > { %10282 = vmatprep.subr.bf16.mxu1 %v14390_v63 }
 0xebb   : > { %10263 = vmatmul.mubr.bf16.vlgmr.msra.gmra.mrb[80].mxu1 %v16133_v50 }
 0xebc   : > { %10283 = vmatpush3.bf16.msra.mxu1 %v14390_v63 }
 0xebd   : > { %10284 = vmatprep.subr.bf16.mxu1 %v14414_v28 }
 0xec0   : > { %10285 = vmatpush3.bf16.msra.mxu1 %v14414_v28 }
 0xec1   : > { %10290 = vmatprep.subr.bf16.mxu1 %v14430_v4 }
 0xf7e   : > { %v14613_v44 = vpop.f32.mrb[76].mxu1 }
 0xf7f   : > { %v14615_v11 = vpop.f32.mrb[77].mxu1 }
 0xf80   : > { %v14617_v62 = vpop.f32.mrb[78].mxu1 }
 0xf81   : > { %v4713_v46 = vpack.c.bf16 %v14617_v62, %v14613_v44  ;;  %v14621_v37 = vpop.f32.mrb[79].mxu1  ;;  %v11122_v44 = vld [vmem:[%s13654_s16 + $0x4c] ss:$28 sps:$4 sm:$0xff]   ;;  %v11117_v62 = vld [vmem:[%s13654_s16 + $0x38] ss:$28 sps:$4 sm:$0xff]  }
 0xf82   : > { %v4712_v22 = vpack.c.bf16 %v14621_v37, %v14615_v11  ;;  %v11093_v11 = vld [vmem:[%s13647_s25 + $0x1a0] ss:$8 sps:$4 sm:$0xff]   ;;  %v11098_v37 = vld [vmem:[%s13647_s25 + $0x1b4] ss:$8 sps:$4 sm:$0xff]  }
 0xf8e   : > { %v10264_v31 = vpop.f32.mrb[80].mxu1 }
 0xf8f   : > { %v4759_v63 = vpop.f32.mrb[81].mxu1  ;;  %v4776_v12 = vsel %vm4050_vm1, %v10264_v31, -1e+30 }
 0xf90   : > { %v4774_v28 = vsel %vm4050_vm1, %v4759_v63, -1e+30  ;;  %v10265_v26 = vpop.f32.mrb[82].mxu1  ;;  %v4784_v5 = vsel %vm4115_vm2, %v4776_v12, -inf }
 0xf91   : > { %v4762_v41 = vpop.f32.mrb[83].mxu1  ;;  %v4778_v0 = vsel %vm4115_vm2, %v4774_v28, -inf  ;;  %v4777_v8 = vsel %vm4050_vm1, %v10265_v26, -1e+30 }
 0xf92   : > { %v4775_v36 = vsel %vm4050_vm1, %v4762_v41, -1e+30  ;;  %4779 = vmax.xlane.f32.xlu0 %v4778_v0  ;;  %v4787_v32 = vsel %vm4115_vm2, %v4777_v8, -inf }
 0xf93   : > { %v4781_v20 = vsel %vm4115_vm2, %v4775_v36, -inf }
 0xf94   : > { %4782 = vmax.xlane.f32.xlu1 %v4781_v20 }
 0xf96   : > { %4785 = vmax.xlane.f32.xlu0 %v4784_v5 }
 0xf98   : > { %4788 = vmax.xlane.f32.xlu1 %v4787_v32 }
0x101f   : > { %v4780_v18 = vpop.xlane.xlu0 %4779 }
0x1020   : > { %v4790_v10 = vsub.f32 %v4774_v28, %v4780_v18 }
0x1021   : > { %v4783_v30 = vpop.xlane.xlu1 %4782 }
0x1022   : > { %v4794_v51 = vmul.f32 1.442695, %v4790_v10  ;;  %v4791_v47 = vsub.f32 %v4775_v36, %v4783_v30 }
0x1023   : > { %v4786_v35 = vpop.xlane.xlu0 %4785 }
0x1024   : > { %11519 = vpow2.f32 %v4794_v51  ;;  %v4796_v23 = vmul.f32 1.442695, %v4791_v47  ;;  %v4792_v60 = vsub.f32 %v4776_v12, %v4786_v35 }
0x1025   : > { %v4789_v17 = vpop.xlane.xlu1 %4788 }
0x1026   : > { %11521 = vpow2.f32 %v4796_v23  ;;  %v4798_v52 = vmul.f32 1.442695, %v4792_v60  ;;  %v4793_v6 = vsub.f32 %v4777_v8, %v4789_v17  ;;  %v16134_v17 = vpack.c.bf16 %v14263_v58, %v14255_v43 }
0x1028   : > { %11523 = vpow2.f32 %v4798_v52  ;;  %v4800_v45 = vmul.f32 1.442695, %v4793_v6  ;;  %v16135_v52 = vpack.c.bf16 %v14287_v39, %v14279_v16 }
0x102a   : > { %11525 = vpow2.f32 %v4800_v45 }
0x102e   : > { %v11520_v61 = vpop.eup %11519 }
0x102f   : > { %v4802_v50 = vsel %vm4115_vm2, %v11520_v61, 0.0 }
0x1030   : > { %v11522_v31 = vpop.eup %11521  ;;  %4803 = vadd.xlane.f32.xlu0 %v4802_v50 }
0x1031   : > { %v4805_v63 = vsel %vm4115_vm2, %v11522_v31, 0.0 }
0x1032   : > { %v11524_v28 = vpop.eup %11523  ;;  %4806 = vadd.xlane.f32.xlu1 %v4805_v63 }
0x1033   : > { %v4808_v26 = vsel %vm4115_vm2, %v11524_v28, 0.0 }
0x1034   : > { %v11526_v41 = vpop.eup %11525  ;;  %4809 = vadd.xlane.f32.xlu0 %v4808_v26 }
0x1035   : > { %v4811_v0 = vsel %vm4115_vm2, %v11526_v41, 0.0 }
0x1036   : > { %4812 = vadd.xlane.f32.xlu1 %v4811_v0 }
0x10bd   : > { %v4804_v12 = vpop.xlane.xlu0 %4803 }
0x10be   : > { %11527 = vrcp.f32 %v4804_v12 }
0x10bf   : > { %v4807_v36 = vpop.xlane.xlu1 %4806 }
0x10c0   : > { %11529 = vrcp.f32 %v4807_v36 }
0x10c1   : > { %v4810_v20 = vpop.xlane.xlu0 %4809 }
0x10c2   : > { %11531 = vrcp.f32 %v4810_v20 }
0x10c3   : > { %v4813_v8 = vpop.xlane.xlu1 %4812 }
0x10c4   : > { %11533 = vrcp.f32 %v4813_v8 }
0x10c8   : > { %v11528_v5 = vpop.eup %11527 }
0x10c9   : > { %v4818_v18 = vmul.f32 %v11528_v5, %v11520_v61 }
0x10ca   : > { %v11530_v32 = vpop.eup %11529 }
0x10cb   : > { %v4819_v10 = vmul.f32 %v11530_v32, %v11522_v31 }
0x10cc   : > { %v11532_v30 = vpop.eup %11531 }
0x10cd   : > { %v4822_v51 = vpack.c.bf16 %v4819_v10, %v4818_v18  ;;  %v4820_v35 = vmul.f32 %v11532_v30, %v11524_v28 }
0x10ce   : > { %v11534_v47 = vpop.eup %11533 }
0x10cf   : > { %v4821_v23 = vmul.f32 %v11534_v47, %v11526_v41  ;;  %10270 = vmatprep.mubr.msk.bf16.mxu0 %vm4115_vm2, %v4822_v51 }
0x10d1   : > { %v4823_v60 = vpack.c.bf16 %v4821_v23, %v4820_v35 }
0x10d3   : > { %10271 = vmatmul.mubr.msk.bf16.vlgmr.msra.gmra.mrb[48].mxu0 %vm4115_vm2, %v4823_v60 }
0x10d4   : > { %10275 = vmatpush3.bf16.xpose.msra.mxu0 %v14272_v27  ;;  %10278 = vmatprep.mubr.bf16.mxu0 %v16134_v17 }
0x10d5   : > { %10276 = vmatprep.subr.bf16.mxu0 %v14296_v57 }
0x10dc   : > { %10277 = vmatpush3.bf16.xpose.msra.mxu0 %v14296_v57 }
0x10dd   : > { %10298 = vmatprep.subr.bf16.mxu0 %v14447_v48 }
0x10e3   : > { %10279 = vmatmul.mubr.bf16.vlgmr.msra.gmra.mrb[52].mxu0 %v16135_v52 }
0x10e4   : > { %10299 = vmatpush3.bf16.msra.mxu0 %v14447_v48 }
0x10e5   : > { %10300 = vmatprep.subr.bf16.mxu0 %v14451_v38 }
0x10e8   : > { %10301 = vmatpush3.bf16.msra.mxu0 %v14451_v38 }
0x10e9   : > { %10306 = vmatprep.subr.bf16.mxu0 %v14432_v53 }
0x11a6   : > { %v14657_v43 = vpop.f32.mrb[48].mxu0 }
0x11a7   : > { %v14659_v58 = vpop.f32.mrb[49].mxu0 }
0x11a8   : > { %v14661_v27 = vpop.f32.mrb[50].mxu0 }
0x11a9   : > { %v4880_v57 = vpack.c.bf16 %v14661_v27, %v14657_v43  ;;  %v14665_v6 = vpop.f32.mrb[51].mxu0  ;;  %v11090_v43 = vld [vmem:[%s13647_s25 + $0x190] ss:$8 sps:$4 sm:$0xff]   ;;  %v11095_v27 = vld [vmem:[%s13647_s25 + $0x1a4] ss:$8 sps:$4 sm:$0xff]  }
0x11aa   : > { %v4879_v16 = vpack.c.bf16 %v14665_v6, %v14659_v58  ;;  %v11089_v58 = vld [vmem:[%s13647_s25 + $0x184] ss:$8 sps:$4 sm:$0xff]   ;;  %v11087_v6 = vld [vmem:[%s13647_s25 + $0x180] ss:$8 sps:$4 sm:$0xff]  }
0x11b6   : > { %v10280_v39 = vpop.f32.mrb[52].mxu0 }
0x11b7   : > { %v4926_v48 = vpop.f32.mrb[53].mxu0  ;;  %v4943_v31 = vsel %vm4050_vm1, %v10280_v39, -1e+30 }
0x11b8   : > { %v4941_v38 = vsel %vm4050_vm1, %v4926_v48, -1e+30  ;;  %v10281_v45 = vpop.f32.mrb[54].mxu0  ;;  %v4951_v41 = vsel %vm4115_vm2, %v4943_v31, -inf }
0x11b9   : > { %v4929_v61 = vpop.f32.mrb[55].mxu0  ;;  %v4945_v50 = vsel %vm4115_vm2, %v4941_v38, -inf  ;;  %v4944_v26 = vsel %vm4050_vm1, %v10281_v45, -1e+30 }
0x11ba   : > { %v4942_v63 = vsel %vm4050_vm1, %v4929_v61, -1e+30  ;;  %4946 = vmax.xlane.f32.xlu0 %v4945_v50  ;;  %v4954_v0 = vsel %vm4115_vm2, %v4944_v26, -inf }
0x11bb   : > { %v4948_v28 = vsel %vm4115_vm2, %v4942_v63, -inf }
0x11bc   : > { %4949 = vmax.xlane.f32.xlu1 %v4948_v28 }
0x11be   : > { %4952 = vmax.xlane.f32.xlu0 %v4951_v41 }
0x11c0   : > { %4955 = vmax.xlane.f32.xlu1 %v4954_v0 }
0x1247   : > { %v4947_v12 = vpop.xlane.xlu0 %4946 }
0x1248   : > { %v4957_v36 = vsub.f32 %v4941_v38, %v4947_v12 }
0x1249   : > { %v4950_v20 = vpop.xlane.xlu1 %4949 }
0x124a   : > { %v4961_v8 = vmul.f32 1.442695, %v4957_v36  ;;  %v4958_v5 = vsub.f32 %v4942_v63, %v4950_v20 }
0x124b   : > { %v4953_v32 = vpop.xlane.xlu0 %4952 }
0x124c   : > { %11535 = vpow2.f32 %v4961_v8  ;;  %v4963_v18 = vmul.f32 1.442695, %v4958_v5  ;;  %v4959_v10 = vsub.f32 %v4943_v31, %v4953_v32 }
0x124d   : > { %v4956_v30 = vpop.xlane.xlu1 %4955 }
0x124e   : > { %11537 = vpow2.f32 %v4963_v18  ;;  %v4965_v51 = vmul.f32 1.442695, %v4959_v10  ;;  %v4960_v47 = vsub.f32 %v4944_v26, %v4956_v30  ;;  %v16136_v18 = vpack.c.bf16 %v14376_v21, %v14368_v9  ;;  %v16137_v10 = vld [vmem:[#allocation73_spill] sm:$0xff]  ;;  %v16138_v30 = vld [vmem:[#allocation70_spill] sm:$0xff] }
0x1250   : > { %11539 = vpow2.f32 %v4965_v51  ;;  %v4967_v35 = vmul.f32 1.442695, %v4960_v47  ;;  %v16139_v51 = vld [vmem:[#allocation68_spill] sm:$0xff] }
0x1251   : > { %v16140_v47 = vpack.c.bf16 %v16138_v30, %v16139_v51 }
0x1252   : > { %11541 = vpow2.f32 %v4967_v35  ;;  %v16141_v35 = vld [vmem:[#allocation74_spill] sm:$0xff] }
0x1256   : > { %v11536_v23 = vpop.eup %11535 }
0x1257   : > { %v4969_v60 = vsel %vm4115_vm2, %v11536_v23, 0.0 }
0x1258   : > { %v11538_v17 = vpop.eup %11537  ;;  %4970 = vadd.xlane.f32.xlu0 %v4969_v60 }
0x1259   : > { %v4972_v52 = vsel %vm4115_vm2, %v11538_v17, 0.0 }
0x125a   : > { %v11540_v39 = vpop.eup %11539  ;;  %4973 = vadd.xlane.f32.xlu1 %v4972_v52 }
0x125b   : > { %v4975_v48 = vsel %vm4115_vm2, %v11540_v39, 0.0 }
0x125c   : > { %v11542_v38 = vpop.eup %11541  ;;  %4976 = vadd.xlane.f32.xlu0 %v4975_v48 }
0x125d   : > { %v4978_v45 = vsel %vm4115_vm2, %v11542_v38, 0.0 }
0x125e   : > { %4979 = vadd.xlane.f32.xlu1 %v4978_v45 }
0x12e5   : > { %v4971_v61 = vpop.xlane.xlu0 %4970 }
0x12e6   : > { %11543 = vrcp.f32 %v4971_v61 }
0x12e7   : > { %v4974_v50 = vpop.xlane.xlu1 %4973 }
0x12e8   : > { %11545 = vrcp.f32 %v4974_v50 }
0x12e9   : > { %v4977_v31 = vpop.xlane.xlu0 %4976 }
0x12ea   : > { %11547 = vrcp.f32 %v4977_v31 }
0x12eb   : > { %v4980_v63 = vpop.xlane.xlu1 %4979 }
0x12ec   : > { %11549 = vrcp.f32 %v4980_v63 }
0x12f0   : > { %v11544_v28 = vpop.eup %11543 }
0x12f1   : > { %v4985_v41 = vmul.f32 %v11544_v28, %v11536_v23 }
0x12f2   : > { %v11546_v26 = vpop.eup %11545 }
0x12f3   : > { %v4986_v0 = vmul.f32 %v11546_v26, %v11538_v17 }
0x12f4   : > { %v11548_v12 = vpop.eup %11547 }
0x12f5   : > { %v4989_v36 = vpack.c.bf16 %v4986_v0, %v4985_v41  ;;  %v4987_v8 = vmul.f32 %v11548_v12, %v11540_v39 }
0x12f6   : > { %v11550_v20 = vpop.eup %11549 }
0x12f7   : > { %v4988_v5 = vmul.f32 %v11550_v20, %v11542_v38  ;;  %10286 = vmatprep.mubr.msk.bf16.mxu1 %vm4115_vm2, %v4989_v36 }
0x12f9   : > { %v4990_v32 = vpack.c.bf16 %v4988_v5, %v4987_v8 }
0x12fb   : > { %10287 = vmatmul.mubr.msk.bf16.vlgmr.msra.gmra.mrb[84].mxu1 %vm4115_vm2, %v4990_v32 }
0x12fc   : > { %10291 = vmatpush3.bf16.xpose.msra.mxu1 %v14430_v4  ;;  %10294 = vmatprep.mubr.bf16.mxu1 %v16136_v18 }
0x12fd   : > { %10292 = vmatprep.subr.bf16.mxu1 %v14434_v24 }
0x1304   : > { %10293 = vmatpush3.bf16.xpose.msra.mxu1 %v14434_v24 }
0x1305   : > { %10314 = vmatprep.subr.bf16.mxu1 %v16137_v10 }
0x130b   : > { %10295 = vmatmul.mubr.bf16.vlgmr.msra.gmra.mrb[88].mxu1 %v16140_v47 }
0x130c   : > { %10315 = vmatpush3.bf16.msra.mxu1 %v16137_v10 }
0x130d   : > { %10316 = vmatprep.subr.bf16.mxu1 %v16141_v35 }
0x1310   : > { %10317 = vmatpush3.bf16.msra.mxu1 %v16141_v35 }
0x13ce   : > { %v14700_v4 = vpop.f32.mrb[84].mxu1 }
0x13cf   : > { %v14702_v9 = vpop.f32.mrb[85].mxu1 }
0x13d0   : > { %v14704_v21 = vpop.f32.mrb[86].mxu1 }
0x13d1   : > { %v5047_v24 = vpack.c.bf16 %v14704_v21, %v14700_v4  ;;  %v14708_v23 = vpop.f32.mrb[87].mxu1  ;;  %v11099_v4 = vld [vmem:[%s13647_s25 + $0x1c0] ss:$8 sps:$4 sm:$0xff]   ;;  %v11102_v21 = vld [vmem:[%s13647_s25 + $0x1d0] ss:$8 sps:$4 sm:$0xff]  }
0x13d2   : > { %v5046_v60 = vpack.c.bf16 %v14708_v23, %v14702_v9  ;;  %v11104_v9 = vld [vmem:[%s13647_s25 + $0x1d4] ss:$8 sps:$4 sm:$0xff]   ;;  %v11105_v23 = vld [vmem:[%s13647_s25 + $0x1e0] ss:$8 sps:$4 sm:$0xff]  }
0x13de   : > { %v10296_v17 = vpop.f32.mrb[88].mxu1 }
0x13df   : > { %v5090_v52 = vpop.f32.mrb[89].mxu1  ;;  %v5107_v61 = vsel %vm4050_vm1, %v10296_v17, -1e+30 }
0x13e0   : > { %v5105_v39 = vsel %vm4050_vm1, %v5090_v52, -1e+30  ;;  %v10297_v48 = vpop.f32.mrb[90].mxu1  ;;  %v5115_v28 = vsel %vm4115_vm2, %v5107_v61, -inf }
0x13e1   : > { %v5093_v38 = vpop.f32.mrb[91].mxu1  ;;  %v5109_v45 = vsel %vm4115_vm2, %v5105_v39, -inf  ;;  %v5108_v63 = vsel %vm4050_vm1, %v10297_v48, -1e+30 }
0x13e2   : > { %v5106_v50 = vsel %vm4050_vm1, %v5093_v38, -1e+30  ;;  %5110 = vmax.xlane.f32.xlu0 %v5109_v45  ;;  %v5118_v26 = vsel %vm4115_vm2, %v5108_v63, -inf }
0x13e3   : > { %v5112_v31 = vsel %vm4115_vm2, %v5106_v50, -inf }
0x13e4   : > { %5113 = vmax.xlane.f32.xlu1 %v5112_v31 }
0x13e6   : > { %5116 = vmax.xlane.f32.xlu0 %v5115_v28 }
0x13e8   : > { %5119 = vmax.xlane.f32.xlu1 %v5118_v26 }
0x146f   : > { %v5111_v41 = vpop.xlane.xlu0 %5110 }
0x1470   : > { %v5121_v0 = vsub.f32 %v5105_v39, %v5111_v41 }
0x1471   : > { %v5114_v12 = vpop.xlane.xlu1 %5113 }
0x1472   : > { %v5125_v36 = vmul.f32 1.442695, %v5121_v0  ;;  %v5122_v20 = vsub.f32 %v5106_v50, %v5114_v12 }
0x1473   : > { %v5117_v8 = vpop.xlane.xlu0 %5116 }
0x1474   : > { %11551 = vpow2.f32 %v5125_v36  ;;  %v5127_v5 = vmul.f32 1.442695, %v5122_v20  ;;  %v5123_v32 = vsub.f32 %v5107_v61, %v5117_v8 }
0x1475   : > { %v5120_v18 = vpop.xlane.xlu1 %5119 }
0x1476   : > { %11553 = vpow2.f32 %v5127_v5  ;;  %v5129_v10 = vmul.f32 1.442695, %v5123_v32  ;;  %v5124_v30 = vsub.f32 %v5108_v63, %v5120_v18  ;;  %v16142_v18 = vld [vmem:[#allocation67_spill] sm:$0xff] }
0x1478   : > { %11555 = vpow2.f32 %v5129_v10  ;;  %v5131_v51 = vmul.f32 1.442695, %v5124_v30  ;;  %v16143_v10 = vld [vmem:[#allocation66_spill] sm:$0xff] }
0x1479   : > { %v16144_v30 = vpack.c.bf16 %v16142_v18, %v16143_v10 }
0x147a   : > { %11557 = vpow2.f32 %v5131_v51  ;;  %v16145_v51 = vld [vmem:[#allocation72_spill] sm:$0xff] }
0x147e   : > { %v11552_v47 = vpop.eup %11551 }
0x147f   : > { %v5133_v35 = vsel %vm4115_vm2, %v11552_v47, 0.0 }
0x1480   : > { %v11554_v17 = vpop.eup %11553  ;;  %5134 = vadd.xlane.f32.xlu0 %v5133_v35  ;;  %v16147_v35 = vld [vmem:[#allocation69_spill] sm:$0xff] }
0x1481   : > { %v5136_v52 = vsel %vm4115_vm2, %v11554_v17, 0.0 }
0x1482   : > { %v11556_v39 = vpop.eup %11555  ;;  %5137 = vadd.xlane.f32.xlu1 %v5136_v52 }
0x1483   : > { %v5139_v48 = vsel %vm4115_vm2, %v11556_v39, 0.0 }
0x1484   : > { %v11558_v38 = vpop.eup %11557  ;;  %5140 = vadd.xlane.f32.xlu0 %v5139_v48 }
0x1485   : > { %v5142_v45 = vsel %vm4115_vm2, %v11558_v38, 0.0 }
0x1486   : > { %5143 = vadd.xlane.f32.xlu1 %v5142_v45 }
0x150d   : > { %v5135_v61 = vpop.xlane.xlu0 %5134 }
0x150e   : > { %11559 = vrcp.f32 %v5135_v61 }
0x150f   : > { %v5138_v50 = vpop.xlane.xlu1 %5137 }
0x1510   : > { %11561 = vrcp.f32 %v5138_v50 }
0x1511   : > { %v5141_v31 = vpop.xlane.xlu0 %5140 }
0x1512   : > { %11563 = vrcp.f32 %v5141_v31 }
0x1513   : > { %v5144_v63 = vpop.xlane.xlu1 %5143 }
0x1514   : > { %11565 = vrcp.f32 %v5144_v63 }
0x1518   : > { %v11560_v28 = vpop.eup %11559 }
0x1519   : > { %v5149_v41 = vmul.f32 %v11560_v28, %v11552_v47  ;;  %v16146_v47 = vld [vmem:[#allocation71_spill] sm:$0xff] }
0x151a   : > { %v11562_v26 = vpop.eup %11561 }
0x151b   : > { %v5150_v0 = vmul.f32 %v11562_v26, %v11554_v17  ;;  %v16148_v17 = vpack.c.bf16 %v16146_v47, %v16147_v35 }
0x151c   : > { %v11564_v12 = vpop.eup %11563 }
0x151d   : > { %v5153_v36 = vpack.c.bf16 %v5150_v0, %v5149_v41  ;;  %v5151_v8 = vmul.f32 %v11564_v12, %v11556_v39 }
0x151e   : > { %v11566_v20 = vpop.eup %11565 }
0x151f   : > { %v5152_v5 = vmul.f32 %v11566_v20, %v11558_v38  ;;  %10302 = vmatprep.mubr.msk.bf16.mxu0 %vm4115_vm2, %v5153_v36 }
0x1521   : > { %v5154_v32 = vpack.c.bf16 %v5152_v5, %v5151_v8 }
0x1523   : > { %10303 = vmatmul.mubr.msk.bf16.vlgmr.msra.gmra.mrb[56].mxu0 %vm4115_vm2, %v5154_v32 }
0x1524   : > { %10307 = vmatpush3.bf16.xpose.msra.mxu0 %v14432_v53  ;;  %10310 = vmatprep.mubr.bf16.mxu0 %v16144_v30 }
0x1525   : > { %10308 = vmatprep.subr.bf16.mxu0 %v16145_v51 }
0x152c   : > { %10309 = vmatpush3.bf16.xpose.msra.mxu0 %v16145_v51 }
0x152d   : > { %6917 = vmatprep.subr.bf16.mxu0 %v11113_v49 }
0x1533   : > { %10311 = vmatmul.mubr.bf16.vlgmr.msra.gmra.mrb[60].mxu0 %v16148_v17 }
0x1534   : > { %6918 = vmatpush1.bf16.msra.mxu0 %v11111_v7 }
0x15f6   : > { %v14739_v52 = vpop.f32.mrb[56].mxu0 }
0x15f7   : > { %v14741_v39 = vpop.f32.mrb[57].mxu0 }
0x15f8   : > { %v14743_v48 = vpop.f32.mrb[58].mxu0 }
0x15f9   : > { %v5211_v53 = vpack.c.bf16 %v14743_v48, %v14739_v52  ;;  %v14747_v38 = vpop.f32.mrb[59].mxu0  ;;  %v11125_v52 = vld [vmem:[%s13654_s16 + $0x74] ss:$28 sps:$4 sm:$0xff]  }
0x15fa   : > { %v5210_v45 = vpack.c.bf16 %v14747_v38, %v14741_v39  ;;  %v11128_v39 = vld [vmem:[%s13654_s16 + $0x84] ss:$28 sps:$4 sm:$0xff]   ;;  %v11123_v48 = vld [vmem:[%s13654_s16 + $0x70] ss:$28 sps:$4 sm:$0xff]  }
0x15fb   : > { %v11131_v38 = vld [vmem:[%s13654_s16 + $0xac] ss:$28 sps:$4 sm:$0xff]  }
0x1606   : > { %v10312_v61 = vpop.f32.mrb[60].mxu0 }
0x1607   : > { %v5254_v50 = vpop.f32.mrb[61].mxu0  ;;  %v5271_v41 = vsel %vm4050_vm1, %v10312_v61, -1e+30 }
0x1608   : > { %v5269_v31 = vsel %vm4050_vm1, %v5254_v50, -1e+30  ;;  %v10313_v63 = vpop.f32.mrb[62].mxu0  ;;  %v5279_v20 = vsel %vm4115_vm2, %v5271_v41, -inf }
0x1609   : > { %v5257_v28 = vpop.f32.mrb[63].mxu0  ;;  %v5273_v26 = vsel %vm4115_vm2, %v5269_v31, -inf  ;;  %v5272_v36 = vsel %vm4050_vm1, %v10313_v63, -1e+30 }
0x160a   : > { %v5270_v0 = vsel %vm4050_vm1, %v5257_v28, -1e+30  ;;  %5274 = vmax.xlane.f32.xlu0 %v5273_v26  ;;  %v5282_v8 = vsel %vm4115_vm2, %v5272_v36, -inf }
0x160b   : > { %v5276_v12 = vsel %vm4115_vm2, %v5270_v0, -inf }
0x160c   : > { %5277 = vmax.xlane.f32.xlu1 %v5276_v12 }
0x160e   : > { %5280 = vmax.xlane.f32.xlu0 %v5279_v20 }
0x1610   : > { %5283 = vmax.xlane.f32.xlu1 %v5282_v8 }
0x1697   : > { %v5275_v5 = vpop.xlane.xlu0 %5274 }
0x1698   : > { %v5285_v32 = vsub.f32 %v5269_v31, %v5275_v5 }
0x1699   : > { %v5278_v18 = vpop.xlane.xlu1 %5277 }
0x169a   : > { %v5289_v10 = vmul.f32 1.442695, %v5285_v32  ;;  %v5286_v30 = vsub.f32 %v5270_v0, %v5278_v18 }
0x169b   : > { %v5281_v51 = vpop.xlane.xlu0 %5280 }
0x169c   : > { %11567 = vpow2.f32 %v5289_v10  ;;  %v5291_v47 = vmul.f32 1.442695, %v5286_v30  ;;  %v5287_v35 = vsub.f32 %v5271_v41, %v5281_v51 }
0x169d   : > { %v5284_v17 = vpop.xlane.xlu1 %5283 }
0x169e   : > { %11569 = vpow2.f32 %v5291_v47  ;;  %v5293_v3 = vmul.f32 1.442695, %v5287_v35  ;;  %v5288_v61 = vsub.f32 %v5272_v36, %v5284_v17  ;;  %v11017_v36 = vld [vmem:[%s13647_s25 + $0x4] ss:$8 sps:$4 sm:$0xff]  }
0x169f   : > { %5778 = vmatprep.subr.bf16.mxu1 %v11017_v36  ;;  %v11029_v36 = vld [vmem:[%s13647_s25 + $0x44] ss:$8 sps:$4 sm:$0xff]  }
0x16a0   : > { %11571 = vpow2.f32 %v5293_v3  ;;  %v5295_v50 = vmul.f32 1.442695, %v5288_v61 }
0x16a2   : > { %11573 = vpow2.f32 %v5295_v50 }
0x16a6   : > { %v11568_v63 = vpop.eup %11567 }
0x16a7   : > { %v5297_v28 = vsel %vm4115_vm2, %v11568_v63, 0.0 }
0x16a8   : > { %v11570_v26 = vpop.eup %11569  ;;  %5298 = vadd.xlane.f32.xlu0 %v5297_v28  ;;  %v11015_v28 = vld [vmem:[%s13647_s25] ss:$8 sps:$4 sm:$0xff]  }
0x16a9   : > { %v5300_v31 = vsel %vm4115_vm2, %v11570_v26, 0.0 }
0x16aa   : > { %v11572_v0 = vpop.eup %11571  ;;  %5301 = vadd.xlane.f32.xlu1 %v5300_v31 }
0x16ab   : > { %v5303_v12 = vsel %vm4115_vm2, %v11572_v0, 0.0 }
0x16ac   : > { %v11574_v41 = vpop.eup %11573  ;;  %5304 = vadd.xlane.f32.xlu0 %v5303_v12  ;;  %v11020_v12 = vld [vmem:[%s13647_s25 + $0x14] ss:$8 sps:$4 sm:$0xff]  }
0x16ad   : > { %v5306_v20 = vsel %vm4115_vm2, %v11574_v41, 0.0 }
0x16ae   : > { %5307 = vadd.xlane.f32.xlu1 %v5306_v20  ;;  %v11024_v20 = vld [vmem:[%s13647_s25 + $0x30] ss:$8 sps:$4 sm:$0xff]  }
0x1735   : > { %v5299_v8 = vpop.xlane.xlu0 %5298 }
0x1736   : > { %11575 = vrcp.f32 %v5299_v8  ;;  %v11035_v8 = vld [vmem:[%s13647_s25 + $0x64] ss:$8 sps:$4 sm:$0xff]  }
0x1737   : > { %v5302_v5 = vpop.xlane.xlu1 %5301 }
0x1738   : > { %11577 = vrcp.f32 %v5302_v5  ;;  %v11033_v5 = vld [vmem:[%s13647_s25 + $0x60] ss:$8 sps:$4 sm:$0xff]  }
0x1739   : > { %v5305_v32 = vpop.xlane.xlu0 %5304 }
0x173a   : > { %11579 = vrcp.f32 %v5305_v32  ;;  %v11038_v32 = vld [vmem:[%s13647_s25 + $0x74] ss:$8 sps:$4 sm:$0xff]  }
0x173b   : > { %v5308_v18 = vpop.xlane.xlu1 %5307 }
0x173c   : > { %11581 = vrcp.f32 %v5308_v18  ;;  %v11036_v18 = vld [vmem:[%s13647_s25 + $0x70] ss:$8 sps:$4 sm:$0xff]  }
0x1740   : > { %v11576_v10 = vpop.eup %11575 }
0x1741   : > { %v5313_v51 = vmul.f32 %v11576_v10, %v11568_v63  ;;  %v11018_v63 = vld [vmem:[%s13647_s25 + $0x10] ss:$8 sps:$4 sm:$0xff]   ;;  %v11041_v10 = vld [vmem:[%s13647_s25 + $0x84] ss:$8 sps:$4 sm:$0xff]  }
0x1742   : > { %v11578_v30 = vpop.eup %11577 }
0x1743   : > { %v5314_v47 = vmul.f32 %v11578_v30, %v11570_v26  ;;  %v11023_v26 = vld [vmem:[%s13647_s25 + $0x24] ss:$8 sps:$4 sm:$0xff]   ;;  %v11039_v30 = vld [vmem:[%s13647_s25 + $0x80] ss:$8 sps:$4 sm:$0xff]  }
0x1744   : > { %v11580_v35 = vpop.eup %11579 }
0x1745   : > { %v5317_v17 = vpack.c.bf16 %v5314_v47, %v5313_v51  ;;  %v5315_v61 = vmul.f32 %v11580_v35, %v11572_v0  ;;  %v11021_v0 = vld [vmem:[%s13647_s25 + $0x20] ss:$8 sps:$4 sm:$0xff]   ;;  %v11044_v51 = vld [vmem:[%s13647_s25 + $0x94] ss:$8 sps:$4 sm:$0xff]   ;;  %v11042_v47 = vld [vmem:[%s13647_s25 + $0x90] ss:$8 sps:$4 sm:$0xff]  }
0x1746   : > { %v11582_v3 = vpop.eup %11581  ;;  %v11047_v35 = vld [vmem:[%s13647_s25 + $0xa4] ss:$8 sps:$4 sm:$0xff]  }
0x1747   : > { %v5316_v50 = vmul.f32 %v11582_v3, %v11574_v41  ;;  %10318 = vmatprep.mubr.msk.bf16.mxu1 %vm4115_vm2, %v5317_v17  ;;  %v11026_v41 = vld [vmem:[%s13647_s25 + $0x34] ss:$8 sps:$4 sm:$0xff]   ;;  %v11045_v17 = vld [vmem:[%s13647_s25 + $0xa0] ss:$8 sps:$4 sm:$0xff]  }
0x1748   : > { %v11050_v3 = vld [vmem:[%s13647_s25 + $0xb4] ss:$8 sps:$4 sm:$0xff]  }
0x1749   : > { %v5318_v31 = vpack.c.bf16 %v5316_v50, %v5315_v61  ;;  %v11048_v61 = vld [vmem:[%s13647_s25 + $0xb0] ss:$8 sps:$4 sm:$0xff]   ;;  %v11053_v50 = vld [vmem:[%s13647_s25 + $0xc4] ss:$8 sps:$4 sm:$0xff]  }
0x174b   : > { %10319 = vmatmul.mubr.msk.bf16.vlgmr.msra.gmra.mrb[92].mxu1 %vm4115_vm2, %v5318_v31  ;;  %v11056_v31 = vld [vmem:[%s13647_s25 + $0xd4] ss:$8 sps:$4 sm:$0xff]  }
0x174c   : > { %5779 = vmatpush1.bf16.msra.mxu1 %v11015_v28  ;;  %5810 = vmatprep.mubr.bf16.mxu1 %v4384_v19  ;;  %v11030_v19 = vld [vmem:[%s13647_s25 + $0x50] ss:$8 sps:$4 sm:$0xff]   ;;  %v11051_v28 = vld [vmem:[%s13647_s25 + $0xc0] ss:$8 sps:$4 sm:$0xff]  }
0x174d   : > { %5780 = vmatprep.subr.bf16.mxu1 %v11020_v12  ;;  %v11054_v12 = vld [vmem:[%s13647_s25 + $0xd0] ss:$8 sps:$4 sm:$0xff]  }
0x1750   : > { %5781 = vmatpush1.bf16.msra.mxu1 %v11018_v63  ;;  %v11059_v63 = vld [vmem:[%s13647_s25 + $0xe4] ss:$8 sps:$4 sm:$0xff]  }
0x1751   : > { %5782 = vmatprep.subr.bf16.mxu1 %v11023_v26  ;;  %v11057_v26 = vld [vmem:[%s13647_s25 + $0xe0] ss:$8 sps:$4 sm:$0xff]  }
0x1754   : > { %5783 = vmatpush1.bf16.msra.mxu1 %v11021_v0  ;;  %v11062_v0 = vld [vmem:[%s13647_s25 + $0xf4] ss:$8 sps:$4 sm:$0xff]  }
0x1755   : > { %5784 = vmatprep.subr.bf16.mxu1 %v11026_v41  ;;  %v11060_v41 = vld [vmem:[%s13647_s25 + $0xf0] ss:$8 sps:$4 sm:$0xff]  }
0x1758   : > { %5785 = vmatpush1.bf16.msra.mxu1 %v11024_v20  ;;  %v11065_v20 = vld [vmem:[%s13647_s25 + $0x104] ss:$8 sps:$4 sm:$0xff]  }
0x1759   : > { %5786 = vmatprep.subr.bf16.mxu1 %v11029_v36  ;;  %v11063_v36 = vld [vmem:[%s13647_s25 + $0x100] ss:$8 sps:$4 sm:$0xff]  }
0x175c   : > { %5787 = vmatpush1.bf16.msra.mxu1 %v11027_v29  ;;  %v11068_v29 = vld [vmem:[%s13647_s25 + $0x114] ss:$8 sps:$4 sm:$0xff]  }
0x175d   : > { %5788 = vmatprep.subr.bf16.mxu1 %v11032_v14  ;;  %v11066_v14 = vld [vmem:[%s13647_s25 + $0x110] ss:$8 sps:$4 sm:$0xff]  }
0x1760   : > { %5789 = vmatpush1.bf16.msra.mxu1 %v11030_v19  ;;  %v11071_v19 = vld [vmem:[%s13647_s25 + $0x124] ss:$8 sps:$4 sm:$0xff]  }
0x1761   : > { %5790 = vmatprep.subr.bf16.mxu1 %v11035_v8  ;;  %v11069_v8 = vld [vmem:[%s13647_s25 + $0x120] ss:$8 sps:$4 sm:$0xff]  }
0x1764   : > { %5791 = vmatpush1.bf16.msra.mxu1 %v11033_v5  ;;  %v11074_v5 = vld [vmem:[%s13647_s25 + $0x134] ss:$8 sps:$4 sm:$0xff]  }
0x1765   : > { %5792 = vmatprep.subr.bf16.mxu1 %v11038_v32  ;;  %v11108_v32 = vld [vmem:[%s13647_s25 + $0x1f0] ss:$8 sps:$4 sm:$0xff]  }
0x1768   : > { %5793 = vmatpush1.bf16.msra.mxu1 %v11036_v18 }
0x1769   : > { %5794 = vmatprep.subr.bf16.mxu1 %v11041_v10 }
0x176c   : > { %5795 = vmatpush1.bf16.msra.mxu1 %v11039_v30 }
0x176d   : > { %5796 = vmatprep.subr.bf16.mxu1 %v11044_v51 }
0x1770   : > { %5797 = vmatpush1.bf16.msra.mxu1 %v11042_v47 }
0x1771   : > { %5798 = vmatprep.subr.bf16.mxu1 %v11047_v35  ;;  %v11129_v35 = vld [vmem:[%s13654_s16 + $0xa8] ss:$28 sps:$4 sm:$0xff]  }
0x1774   : > { %5799 = vmatpush1.bf16.msra.mxu1 %v11045_v17  ;;  %v5940_v17 = vld [vmem:[%s1206_s21] sm:$0x3] }
0x1775   : > { %5800 = vmatprep.subr.bf16.mxu1 %v11050_v3  ;;  %v11132_v3 = vld [vmem:[%s13654_s16 + $0xb8] ss:$28 sps:$4 sm:$0xff]  }
0x1778   : > { %5801 = vmatpush1.bf16.msra.mxu1 %v11048_v61  ;;  %v11137_v61 = vld [vmem:[%s13654_s16 + $0xe4] ss:$28 sps:$4 sm:$0xff]  }
0x1779   : > { %5802 = vmatprep.subr.bf16.mxu1 %v11053_v50  ;;  %v11140_v50 = vld [vmem:[%s13654_s16 + $0xf4] ss:$28 sps:$4 sm:$0xff]  }
0x177c   : > { %5803 = vmatpush1.bf16.msra.mxu1 %v11051_v28  ;;  %v16149_v28 = vld [vmem:[#allocation62_spill] sm:$0xff] }
0x177d   : > { %5804 = vmatprep.subr.bf16.mxu1 %v11056_v31  ;;  %v14896_v31 = vrot.slane %v5940_v17, %v16149_v28 }
0x1780   : > { %5805 = vmatpush1.bf16.msra.mxu1 %v11054_v12  ;;  %v11135_v12 = vld [vmem:[%s13654_s16 + $0xe0] ss:$28 sps:$4 sm:$0xff]  }
0x1781   : > { %5806 = vmatprep.subr.bf16.mxu1 %v11059_v63 }
0x1784   : > { %5807 = vmatpush1.bf16.msra.mxu1 %v11057_v26  ;;  %v16150_v26 = vld [vmem:[#allocation63_spill] sm:$0xff] }
0x1785   : > { %5808 = vmatprep.subr.bf16.mxu1 %v11062_v0  ;;  %v14900_v0 = vrot.slane %v5940_v17, %v16150_v26 }
0x1788   : > { %5809 = vmatpush1.bf16.msra.mxu1 %v11060_v41  ;;  %v11138_v41 = vld [vmem:[%s13654_s16 + $0xf0] ss:$28 sps:$4 sm:$0xff]  }
0x1789   : > { %5851 = vmatprep.subr.bf16.mxu1 %v11065_v20  ;;  %v11143_v20 = vld [vmem:[%s13654_s16 + $0x11c] ss:$28 sps:$4 sm:$0xff]  }
0x178b   : > { %5811 = vmatmul.mubr.bf16.vlgmr.msra.gmra.mrb[96].mxu1 %v4217_v55  ;;  %v11075_v55 = vld [vmem:[%s13647_s25 + $0x140] ss:$8 sps:$4 sm:$0xff]  }
0x178c   : > { %5820 = vmatprep.mubr.bf16.mxu1 %v4385_v1  ;;  %5852 = vmatpush1.bf16.msra.mxu1 %v11063_v36  ;;  %v11084_v1 = vld [vmem:[%s13647_s25 + $0x170] ss:$8 sps:$4 sm:$0xff]   ;;  %v11839_v36 = vld [vmem:[#allocation2] sm:$0xff] }
0x178d   : > { %5853 = vmatprep.subr.bf16.mxu1 %v11068_v29 }
0x1790   : > { %5854 = vmatpush1.bf16.msra.mxu1 %v11066_v14 }
0x1791   : > { %5855 = vmatprep.subr.bf16.mxu1 %v11071_v19  ;;  %v11146_v19 = vld [vmem:[%s13654_s16 + $0x12c] ss:$28 sps:$4 sm:$0xff]  }
0x1793   : > { %5821 = vmatmul.mubr.bf16.gmra.mrb[100].mxu1 %v4218_v15  ;;  %v11081_v15 = vld [vmem:[%s13647_s25 + $0x160] ss:$8 sps:$4 sm:$0xff]  }
0x1794   : > { %5830 = vmatprep.mubr.bf16.mxu1 %v5046_v60  ;;  %5856 = vmatpush1.bf16.msra.mxu1 %v11069_v8  ;;  %v11110_v60 = vld [vmem:[%s13647_s25 + $0x1f4] ss:$8 sps:$4 sm:$0xff]  }
0x1795   : > { %5857 = vmatprep.subr.bf16.mxu1 %v11074_v5  ;;  %v11840_v8 = vld [vmem:[#allocation2 + $0x8] sm:$0xff] }
0x1798   : > { %5858 = vmatpush1.bf16.msra.mxu1 %v11072_v2 }
0x1799   : > { %5859 = vmatprep.subr.bf16.mxu1 %v11077_v40 }
0x179b   : > { %5831 = vmatmul.mubr.bf16.gmra.mrb[104].mxu1 %v4879_v16  ;;  %v11092_v16 = vld [vmem:[%s13647_s25 + $0x194] ss:$8 sps:$4 sm:$0xff]  }
0x179c   : > { %5840 = vmatprep.mubr.bf16.mxu1 %v5047_v24  ;;  %5860 = vmatpush1.bf16.msra.mxu1 %v11075_v55  ;;  %v11107_v24 = vld [vmem:[%s13647_s25 + $0x1e4] ss:$8 sps:$4 sm:$0xff]   ;;  %v11841_v55 = vld [vmem:[#allocation2 + $0x10] sm:$0xff] }
0x179d   : > { %5861 = vmatprep.subr.bf16.mxu1 %v11080_v33 }
0x17a0   : > { %5862 = vmatpush1.bf16.msra.mxu1 %v11078_v13 }
0x17a1   : > { %5863 = vmatprep.subr.bf16.mxu1 %v11083_v25  ;;  %v11141_v25 = vld [vmem:[%s13654_s16 + $0x118] ss:$28 sps:$4 sm:$0xff]  }
0x17a3   : > { %5841 = vmatmul.mubr.bf16.gmra.mrb[108].mxu1 %v4880_v57  ;;  %v11101_v57 = vld [vmem:[%s13647_s25 + $0x1c4] ss:$8 sps:$4 sm:$0xff]  }
0x17a4   : > { %5864 = vmatpush1.bf16.msra.mxu1 %v11081_v15  ;;  %5883 = vmatprep.mubr.bf16.mxu1 %v4712_v22  ;;  %v11096_v22 = vld [vmem:[%s13647_s25 + $0x1b0] ss:$8 sps:$4 sm:$0xff]  }
0x17a5   : > { %5865 = vmatprep.subr.bf16.mxu1 %v11086_v54  ;;  %v11842_v54 = vld [vmem:[#allocation2 + $0x18] sm:$0xff] }
0x17a8   : > { %5866 = vmatpush1.bf16.msra.mxu1 %v11084_v1 }
0x17a9   : > { %5867 = vmatprep.subr.bf16.mxu1 %v11089_v58  ;;  %v11144_v58 = vld [vmem:[%s13654_s16 + $0x128] ss:$28 sps:$4 sm:$0xff]  }
0x17ac   : > { %5868 = vmatpush1.bf16.msra.mxu1 %v11087_v6 }
0x17ad   : > { %5869 = vmatprep.subr.bf16.mxu1 %v11092_v16  ;;  %v11149_v16 = vld [vmem:[%s13654_s16 + $0x154] ss:$28 sps:$4 sm:$0xff]  }
0x17b0   : > { %5870 = vmatpush1.bf16.msra.mxu1 %v11090_v43  ;;  %v11152_v43 = vld [vmem:[%s13654_s16 + $0x164] ss:$28 sps:$4 sm:$0xff]  }
0x17b1   : > { %5871 = vmatprep.subr.bf16.mxu1 %v11095_v27 }
0x17b4   : > { %5872 = vmatpush1.bf16.msra.mxu1 %v11093_v11 }
0x17b5   : > { %5873 = vmatprep.subr.bf16.mxu1 %v11098_v37 }
0x17b8   : > { %5874 = vmatpush1.bf16.msra.mxu1 %v11096_v22 }
0x17b9   : > { %5875 = vmatprep.subr.bf16.mxu1 %v11101_v57  ;;  %v11147_v57 = vld [vmem:[%s13654_s16 + $0x150] ss:$28 sps:$4 sm:$0xff]  }
0x17bc   : > { %5876 = vmatpush1.bf16.msra.mxu1 %v11099_v4 }
0x17bd   : > { %5877 = vmatprep.subr.bf16.mxu1 %v11104_v9 }
0x17c0   : > { %5878 = vmatpush1.bf16.msra.mxu1 %v11102_v21 }
0x17c1   : > { %5879 = vmatprep.subr.bf16.mxu1 %v11107_v24 }
0x17c4   : > { %5880 = vmatpush1.bf16.msra.mxu1 %v11105_v23  ;;  %v11150_v23 = vld [vmem:[%s13654_s16 + $0x160] ss:$28 sps:$4 sm:$0xff]  }
0x17c5   : > { %5881 = vmatprep.subr.bf16.mxu1 %v11110_v60  ;;  %v11843_v60 = vld [vmem:[#allocation2 + $0x20] sm:$0xff] }
0x17c8   : > { %5882 = vmatpush1.bf16.msra.mxu1 %v11108_v32 }
0x17c9   : > { %7063 = vmatprep.subr.bf16.mxu1 %v11116_v42 }
0x17cb   : > { %5884 = vmatmul.mubr.bf16.vlgmr.msra.gmra.mrb[96].mxu1 %v4548_v34  ;;  %v11119_v34 = vld [vmem:[%s13654_s16 + $0x3c] ss:$28 sps:$4 sm:$0xff]  }
0x17cc   : > { %5893 = vmatprep.mubr.bf16.mxu1 %v4713_v46  ;;  %6919 = vmatprep.subr.bf16.mxu0 %v11119_v34  ;;  %v11120_v46 = vld [vmem:[%s13654_s16 + $0x48] ss:$28 sps:$4 sm:$0xff]  }
0x17cd   : > { %6920 = vmatpush1.bf16.msra.mxu0 %v11117_v62 }
0x17ce   : > { %6921 = vmatprep.subr.bf16.mxu0 %v11125_v52 }
0x17d1   : > { %6922 = vmatpush1.bf16.msra.mxu0 %v11123_v48  ;;  %v11156_v48 = vld [vmem:[%s13654_s16 + $0x198] ss:$28 sps:$4 sm:$0xff]  }
0x17d2   : > { %6923 = vmatprep.subr.bf16.mxu0 %v11131_v38 }
0x17d3   : > { %5894 = vmatmul.mubr.bf16.gmra.mrb[100].mxu1 %v4549_v59  ;;  %v11114_v59 = vld [vmem:[%s13654_s16 + $0x10] ss:$28 sps:$4 sm:$0xff]  }
0x17d4   : > { %7064 = vmatpush1.bf16.msra.mxu1 %v11114_v59  ;;  %v11845_v59 = vld [vmem:[#allocation2 + $0x30] sm:$0xff] }
0x17d5   : > { %7065 = vmatprep.subr.bf16.mxu1 %v11122_v44  ;;  %6924 = vmatpush1.bf16.msra.mxu0 %v11129_v35  ;;  %v11153_v44 = vld [vmem:[%s13654_s16 + $0x188] ss:$28 sps:$4 sm:$0xff]  }
0x17d6   : > { %6925 = vmatprep.subr.bf16.mxu0 %v11137_v61 }
0x17d8   : > { %7066 = vmatpush1.bf16.msra.mxu1 %v11120_v46  ;;  %v11846_v46 = vld [vmem:[#allocation2 + $0x38] sm:$0xff] }
0x17d9   : > { %7067 = vmatprep.subr.bf16.mxu1 %v11128_v39  ;;  %6926 = vmatpush1.bf16.msra.mxu0 %v11135_v12 }
0x17da   : > { %6927 = vmatprep.subr.bf16.mxu0 %v11143_v20  ;;  %v11164_v20 = vld [vmem:[%s13654_s16 + $0x1d4] ss:$28 sps:$4 sm:$0xff]  }
0x17dd   : > { %6928 = vmatpush1.bf16.msra.mxu0 %v11141_v25  ;;  %v11179_v25 = vld [vmem:[%s13654_s16 + $0x26c] ss:$28 sps:$4 sm:$0xff]  }
0x17de   : > { %6929 = vmatprep.subr.bf16.mxu0 %v11149_v16  ;;  %v11185_v16 = vld [vmem:[%s13654_s16 + $0x2a4] ss:$28 sps:$4 sm:$0xff]  }
0x17e1   : > { %6930 = vmatpush1.bf16.msra.mxu0 %v11147_v57  ;;  %v11194_v57 = vld [vmem:[%s13654_s16 + $0x2ec] ss:$28 sps:$4 sm:$0xff]  }
0x181e   : > { %v10320_v18 = vpop.f32.mrb[92].mxu1 }
0x181f   : > { %v5359_v10 = vpop.f32.mrb[93].mxu1 }
0x1820   : > { %v10321_v30 = vpop.f32.mrb[94].mxu1 }
0x1821   : > { %v5375_v51 = vpack.c.bf16 %v10321_v30, %v10320_v18  ;;  %v5362_v47 = vpop.f32.mrb[95].mxu1  ;;  %v11158_v30 = vld [vmem:[%s13654_s16 + $0x19c] ss:$28 sps:$4 sm:$0xff]  }
0x1822   : > { %v5374_v56 = vpack.c.bf16 %v5362_v47, %v5359_v10  ;;  %v11155_v10 = vld [vmem:[%s13654_s16 + $0x18c] ss:$28 sps:$4 sm:$0xff]  }
0x1823   : > { %6931 = vmatprep.subr.bf16.mxu0 %v11155_v10  ;;  %v11201_v10 = vld [vmem:[%s13654_s16 + $0x348] ss:$28 sps:$4 sm:$0xff]  }
0x1824   : > { %5903 = vmatprep.mubr.bf16.mxu1 %v5374_v56  ;;  %6932 = vmatpush1.bf16.msra.mxu0 %v11153_v44 }
0x1825   : > { %5904 = vmatmul.mubr.bf16.gmra.mrb[104].mxu1 %v5210_v45  ;;  %v11134_v45 = vld [vmem:[%s13654_s16 + $0xbc] ss:$28 sps:$4 sm:$0xff]  }
0x1826   : > { %5913 = vmatprep.mubr.bf16.mxu1 %v5375_v51  ;;  %v11844_v51 = vld [vmem:[#allocation2 + $0x28] sm:$0xff] }
0x182d   : > { %5914 = vmatmul.mubr.bf16.gmra.mrb[108].mxu1 %v5211_v53  ;;  %v11126_v53 = vld [vmem:[%s13654_s16 + $0x80] ss:$28 sps:$4 sm:$0xff]  }
0x182e   : > { %7068 = vmatpush1.bf16.msra.mxu1 %v11126_v53 }
0x182f   : > { %7069 = vmatprep.subr.bf16.mxu1 %v11134_v45 }
0x1832   : > { %7070 = vmatpush1.bf16.msra.mxu1 %v11132_v3 }
0x1833   : > { %7071 = vmatprep.subr.bf16.mxu1 %v11140_v50 }
0x1836   : > { %7072 = vmatpush1.bf16.msra.mxu1 %v11138_v41  ;;  %v11161_v41 = vld [vmem:[%s13654_s16 + $0x1c4] ss:$28 sps:$4 sm:$0xff]  }
0x1837   : > { %7073 = vmatprep.subr.bf16.mxu1 %v11146_v19  ;;  %6933 = vmatprep.subr.bf16.mxu0 %v11161_v41  ;;  %v11170_v19 = vld [vmem:[%s13654_s16 + $0x20c] ss:$28 sps:$4 sm:$0xff]  }
0x183a   : > { %7074 = vmatpush1.bf16.msra.mxu1 %v11144_v58  ;;  %v11180_v58 = vld [vmem:[%s13654_s16 + $0x278] ss:$28 sps:$4 sm:$0xff]  }
0x183b   : > { %7075 = vmatprep.subr.bf16.mxu1 %v11152_v43  ;;  %v11188_v43 = vld [vmem:[%s13654_s16 + $0x2b4] ss:$28 sps:$4 sm:$0xff]  }
0x183e   : > { %7076 = vmatpush1.bf16.msra.mxu1 %v11150_v23  ;;  %v11195_v23 = vld [vmem:[%s13654_s16 + $0x310] ss:$28 sps:$4 sm:$0xff]  }
0x183f   : > { %7077 = vmatprep.subr.bf16.mxu1 %v11158_v30  ;;  %v11204_v30 = vld [vmem:[%s13654_s16 + $0x358] ss:$28 sps:$4 sm:$0xff]  }
0x1842   : > { %7078 = vmatpush1.bf16.msra.mxu1 %v11156_v48 }
0x1843   : > { %7079 = vmatprep.subr.bf16.mxu1 %v11164_v20 }
0x189e   : > { %v5885_v63 = vpop.f32.mrb[96].mxu1 }
0x189f   : > { %v5924_v29 = vadd.f32 %v11839_v36, %v5885_v63  ;;  %v5887_v14 = vpop.f32.mrb[97].mxu1  ;;  %v11159_v36 = vld [vmem:[%s13654_s16 + $0x1c0] ss:$28 sps:$4 sm:$0xff]  }
0x18a0   : > { %v5925_v5 = vadd.f32 %v11840_v8, %v5887_v14  ;;  %v5889_v2 = vpop.f32.mrb[98].mxu1  ;;  %6934 = vmatpush1.bf16.msra.mxu0 %v11159_v36  ;;  %v11167_v14 = vld [vmem:[%s13654_s16 + $0x1fc] ss:$28 sps:$4 sm:$0xff]  }
0x18a1   : > { %v14906_v40 = vadd.f32 %v14896_v31, %v5924_v29  ;;  %v5926_v33 = vadd.f32 %v11841_v55, %v5889_v2  ;;  %v5891_v13 = vpop.f32.mrb[99].mxu1  ;;  %v11162_v29 = vld [vmem:[%s13654_s16 + $0x1d0] ss:$28 sps:$4 sm:$0xff]   ;;  %v11165_v8 = vld [vmem:[%s13654_s16 + $0x1f8] ss:$28 sps:$4 sm:$0xff]   ;;  %6935 = vmatprep.subr.bf16.mxu0 %v11167_v14 }
0x18a2   : > { %v14910_v15 = vadd.f32 %v14900_v0, %v5925_v5  ;;  %v5927_v1 = vadd.f32 %v11842_v54, %v5891_v13  ;;  %7080 = vmatpush1.bf16.msra.mxu1 %v11162_v29  ;;  %v11168_v5 = vld [vmem:[%s13654_s16 + $0x208] ss:$28 sps:$4 sm:$0xff]   ;;  %v11173_v2 = vld [vmem:[%s13654_s16 + $0x234] ss:$28 sps:$4 sm:$0xff]   ;;  %v11174_v13 = vld [vmem:[%s13654_s16 + $0x240] ss:$28 sps:$4 sm:$0xff]  }
0x18a3   : > { %16151 = vst [vmem:[#allocation73_spill] sm:$0xff] %v14906_v40  ;;  %v14914_v6 = vadd.f32 %v14896_v31, %v5926_v33  ;;  %v5994_v37 = vmul.f32 %v14906_v40, %v14906_v40  ;;  %7081 = vmatprep.subr.bf16.mxu1 %v11170_v19  ;;  %v11176_v55 = vld [vmem:[%s13654_s16 + $0x244] ss:$28 sps:$4 sm:$0xff]   ;;  %v11171_v33 = vld [vmem:[%s13654_s16 + $0x230] ss:$28 sps:$4 sm:$0xff]  }
0x18a4   : > { %16152 = vst [vmem:[#allocation70_spill] sm:$0xff] %v14910_v15  ;;  %v14919_v27 = vadd.f32 %v14900_v0, %v5927_v1  ;;  %v5970_v11 = vadd.f32 %v14910_v15, %v14906_v40  ;;  %v5995_v22 = vmul.f32 %v14910_v15, %v14910_v15  ;;  %6936 = vmatpush1.bf16.msra.mxu0 %v11165_v8  ;;  %v11182_v54 = vld [vmem:[%s13654_s16 + $0x27c] ss:$28 sps:$4 sm:$0xff]   ;;  %v11177_v1 = vld [vmem:[%s13654_s16 + $0x268] ss:$28 sps:$4 sm:$0xff]  }
0x18a5   : > { %16153 = vst [vmem:[#allocation68_spill] sm:$0xff] %v14914_v6  ;;  %v5996_v21 = vmul.f32 %v14914_v6, %v14914_v6  ;;  %6937 = vmatprep.subr.bf16.mxu0 %v11173_v2  ;;  %v11851_v14 = vld [vmem:[#allocation2 + $0x60] sm:$0xff] }
0x18a6   : > { %16154 = vst [vmem:[#allocation74_spill] sm:$0xff] %v14919_v27  ;;  %5971 = vadd.xlane.f32.xlu0 %v5970_v11  ;;  %v5895_v4 = vpop.f32.mrb[100].mxu1  ;;  %v5973_v9 = vadd.f32 %v14919_v27, %v14914_v6  ;;  %v5997_v24 = vmul.f32 %v14919_v27, %v14919_v27  ;;  %v6010_v7 = vadd.f32 %v5995_v22, %v5994_v37  ;;  %v11183_v11 = vld [vmem:[%s13654_s16 + $0x2a0] ss:$28 sps:$4 sm:$0xff]   ;;  %v11186_v37 = vld [vmem:[%s13654_s16 + $0x2b0] ss:$28 sps:$4 sm:$0xff]  }
0x18a7   : > { %v5928_v32 = vadd.f32 %v11843_v60, %v5895_v4  ;;  %v5897_v18 = vpop.f32.mrb[101].mxu1  ;;  %7082 = vmatpush1.bf16.msra.mxu1 %v11168_v5  ;;  %v11191_v22 = vld [vmem:[%s13654_s16 + $0x2dc] ss:$28 sps:$4 sm:$0xff]  }
0x18a8   : > { %v5929_v47 = vadd.f32 %v11844_v51, %v5897_v18  ;;  %5974 = vadd.xlane.f32.xlu1 %v5973_v9  ;;  %v5899_v56 = vpop.f32.mrb[102].mxu1  ;;  %v6013_v39 = vadd.f32 %v5997_v24, %v5996_v21  ;;  %7083 = vmatprep.subr.bf16.mxu1 %v11176_v55  ;;  %v11189_v4 = vld [vmem:[%s13654_s16 + $0x2d8] ss:$28 sps:$4 sm:$0xff]   ;;  %v11192_v9 = vld [vmem:[%s13654_s16 + $0x2e8] ss:$28 sps:$4 sm:$0xff]  }
0x18a9   : > { %v14938_v49 = vadd.f32 %v14896_v31, %v5928_v32  ;;  %v5930_v42 = vadd.f32 %v11845_v59, %v5899_v56  ;;  %v5901_v34 = vpop.f32.mrb[103].mxu1  ;;  %6938 = vmatpush1.bf16.msra.mxu0 %v11171_v33  ;;  %v11197_v21 = vld [vmem:[%s13654_s16 + $0x314] ss:$28 sps:$4 sm:$0xff]   ;;  %v11200_v24 = vld [vmem:[%s13654_s16 + $0x324] ss:$28 sps:$4 sm:$0xff]  }
0x18aa   : > { %v14942_v62 = vadd.f32 %v14900_v0, %v5929_v47  ;;  %v5931_v52 = vadd.f32 %v11846_v46, %v5901_v34  ;;  %6011 = vadd.xlane.f32.xlu0 %v6010_v7  ;;  %6939 = vmatprep.subr.bf16.mxu0 %v11179_v25  ;;  %v11198_v60 = vld [vmem:[%s13654_s16 + $0x320] ss:$28 sps:$4 sm:$0xff]   ;;  %v11203_v32 = vld [vmem:[%s13654_s16 + $0x34c] ss:$28 sps:$4 sm:$0xff]   ;;  %v11847_v56 = vld [vmem:[#allocation2 + $0x40] sm:$0xff] }
0x18ab   : > { %16155 = vst [vmem:[#allocation67_spill] sm:$0xff] %v14938_v49  ;;  %v14946_v53 = vadd.f32 %v14896_v31, %v5930_v42  ;;  %v5998_v35 = vmul.f32 %v14938_v49, %v14938_v49  ;;  %7084 = vmatpush1.bf16.msra.mxu1 %v11174_v13  ;;  %v11206_v18 = vld [vmem:[%s13654_s16 + $0x35c] ss:$28 sps:$4 sm:$0xff]   ;;  %v11209_v51 = vld [vmem:[%s13654_s16 + $0xc] ss:$28 sps:$4 sm:$0xff]  }
0x18ac   : > { %16156 = vst [vmem:[#allocation66_spill] sm:$0xff] %v14942_v62  ;;  %v14949_v38 = vadd.f32 %v14900_v0, %v5931_v52  ;;  %6014 = vadd.xlane.f32.xlu1 %v6013_v39  ;;  %v5976_v45 = vadd.f32 %v14942_v62, %v14938_v49  ;;  %v5999_v17 = vmul.f32 %v14942_v62, %v14942_v62  ;;  %v11848_v42 = vld [vmem:[#allocation2 + $0x48] sm:$0xff]  ;;  %v11849_v52 = vld [vmem:[#allocation2 + $0x50] sm:$0xff] }
0x18ad   : > { %16157 = vst [vmem:[#allocation72_spill] sm:$0xff] %v14946_v53  ;;  %v6000_v61 = vmul.f32 %v14946_v53, %v14946_v53  ;;  %7085 = vmatprep.subr.bf16.mxu1 %v11182_v54  ;;  %6940 = vmatpush1.bf16.msra.mxu0 %v11177_v1  ;;  %v11852_v5 = vld [vmem:[#allocation2 + $0x68] sm:$0xff]  ;;  %v11853_v25 = vld [vmem:[#allocation2 + $0x70] sm:$0xff] }
0x18ae   : > { %16158 = vst [vmem:[#allocation71_spill] sm:$0xff] %v14949_v38  ;;  %5977 = vadd.xlane.f32.xlu0 %v5976_v45  ;;  %v5979_v3 = vadd.f32 %v14949_v38, %v14946_v53  ;;  %v6001_v50 = vmul.f32 %v14949_v38, %v14949_v38  ;;  %v6016_v12 = vadd.f32 %v5999_v17, %v5998_v35  ;;  %v11850_v35 = vld [vmem:[#allocation2 + $0x58] sm:$0xff] }
0x18af   : > { %7086 = vmatpush1.bf16.msra.mxu1 %v11180_v58  ;;  %6941 = vmatprep.subr.bf16.mxu0 %v11185_v16  ;;  %v11854_v16 = vld [vmem:[#allocation2 + $0x78] sm:$0xff] }
0x18b0   : > { %5980 = vadd.xlane.f32.xlu1 %v5979_v3  ;;  %v6019_v63 = vadd.f32 %v6001_v50, %v6000_v61  ;;  %7087 = vmatprep.subr.bf16.mxu1 %v11188_v43 }
0x18b1   : > { %6942 = vmatpush1.bf16.msra.mxu0 %v11183_v11 }
0x18b2   : > { %6017 = vadd.xlane.f32.xlu0 %v6016_v12  ;;  %6943 = vmatprep.subr.bf16.mxu0 %v11191_v22 }
0x18b3   : > { %7088 = vmatpush1.bf16.msra.mxu1 %v11186_v37 }
0x18b4   : > { %6020 = vadd.xlane.f32.xlu1 %v6019_v63  ;;  %7089 = vmatprep.subr.bf16.mxu1 %v11194_v57 }
0x18b5   : > { %6944 = vmatpush1.bf16.msra.mxu0 %v11189_v4 }
0x18b6   : > { %6945 = vmatprep.subr.bf16.mxu0 %v11197_v21 }
0x18b7   : > { %7090 = vmatpush1.bf16.msra.mxu1 %v11192_v9 }
0x18b8   : > { %7091 = vmatprep.subr.bf16.mxu1 %v11200_v24 }
0x18b9   : > { %6946 = vmatpush1.bf16.msra.mxu0 %v11195_v23 }
0x18ba   : > { %6947 = vmatprep.subr.bf16.mxu0 %v11203_v32 }
0x18bb   : > { %7092 = vmatpush1.bf16.msra.mxu1 %v11198_v60  ;;  %v11234_v60 = vld [vmem:[%s13654_s16 + $0x1d8] ss:$28 sps:$4 sm:$0xff]  }
0x18bc   : > { %7093 = vmatprep.subr.bf16.mxu1 %v11206_v18 }
0x18bd   : > { %6948 = vmatpush1.bf16.msra.mxu0 %v11201_v10 }
0x18be   : > { %6990 = vmatprep.subr.bf16.mxu0 %v11209_v51 }
0x18bf   : > { %7094 = vmatpush1.bf16.msra.mxu1 %v11204_v30 }
0x18c0   : > { %10112 = vmatprep.subr.bf16.mxu1 %v11234_v60 }
0x18f8   : > { %v5905_v47 = vpop.f32.mrb[104].mxu1 }
0x18f9   : > { %v5932_v7 = vadd.f32 %v11847_v56, %v5905_v47  ;;  %v5907_v59 = vpop.f32.mrb[105].mxu1 }
0x18fa   : > { %v5933_v34 = vadd.f32 %v11848_v42, %v5907_v59  ;;  %v5909_v44 = vpop.f32.mrb[106].mxu1 }
0x18fb   : > { %v14997_v46 = vadd.f32 %v14896_v31, %v5932_v7  ;;  %v5934_v39 = vadd.f32 %v11849_v52, %v5909_v44  ;;  %v5911_v48 = vpop.f32.mrb[107].mxu1 }
0x18fc   : > { %v15000_v45 = vadd.f32 %v14900_v0, %v5933_v34  ;;  %v5935_v17 = vadd.f32 %v11850_v35, %v5911_v48 }
0x18fd   : > { %16159 = vst [vmem:[#allocation69_spill] sm:$0xff] %v14997_v46  ;;  %v15003_v3 = vadd.f32 %v14896_v31, %v5934_v39  ;;  %v6002_v12 = vmul.f32 %v14997_v46, %v14997_v46 }
0x18fe   : > { %16160 = vst [vmem:[#allocation75_spill] sm:$0xff] %v15000_v45  ;;  %v15006_v61 = vadd.f32 %v14900_v0, %v5935_v17  ;;  %v5982_v50 = vadd.f32 %v15000_v45, %v14997_v46  ;;  %v6003_v63 = vmul.f32 %v15000_v45, %v15000_v45 }
0x18ff   : > { %16161 = vst [vmem:[#allocation76_spill] sm:$0xff] %v15003_v3  ;;  %v6004_v36 = vmul.f32 %v15003_v3, %v15003_v3 }
0x1900   : > { %16162 = vst [vmem:[#allocation77_spill] sm:$0xff] %v15006_v61  ;;  %5983 = vadd.xlane.f32.xlu0 %v5982_v50  ;;  %v5915_v41 = vpop.f32.mrb[108].mxu1  ;;  %v5985_v20 = vadd.f32 %v15006_v61, %v15003_v3  ;;  %v6005_v29 = vmul.f32 %v15006_v61, %v15006_v61  ;;  %v6022_v33 = vadd.f32 %v6003_v63, %v6002_v12 }
0x1901   : > { %v5936_v19 = vadd.f32 %v11851_v14, %v5915_v41  ;;  %v5917_v8 = vpop.f32.mrb[109].mxu1 }
0x1902   : > { %v5937_v2 = vadd.f32 %v11852_v5, %v5917_v8  ;;  %5986 = vadd.xlane.f32.xlu1 %v5985_v20  ;;  %v5919_v55 = vpop.f32.mrb[110].mxu1  ;;  %v6025_v11 = vadd.f32 %v6005_v29, %v6004_v36  ;;  %v5968_v5 = vld [vmem:[%s1233_s30] sm:$0x3] }
0x1903   : > { %v15021_v13 = vadd.f32 %v14896_v31, %v5936_v19  ;;  %v5938_v54 = vadd.f32 %v11853_v25, %v5919_v55  ;;  %v5921_v1 = vpop.f32.mrb[111].mxu1  ;;  %v5969_v25 = vld [vmem:[%s1242_s29] sm:$0x3] }
0x1904   : > { %v15024_v58 = vadd.f32 %v14900_v0, %v5937_v2  ;;  %v5939_v43 = vadd.f32 %v11854_v16, %v5921_v1  ;;  %6023 = vadd.xlane.f32.xlu0 %v6022_v33  ;;  %v15055_v1 = vrot.slane %v5968_v5, %v16149_v28 }
0x1905   : > { %16163 = vst [vmem:[#allocation78_spill] sm:$0xff] %v15021_v13  ;;  %v15027_v37 = vadd.f32 %v14896_v31, %v5938_v54  ;;  %v6006_v4 = vmul.f32 %v15021_v13, %v15021_v13  ;;  %v15052_v54 = vrot.slane %v5968_v5, %v16150_v26  ;;  %v11240_v5 = vld [vmem:[%s13654_s16 + $0x50] ss:$28 sps:$4 sm:$0xff]  }
0x1906   : > { %16164 = vst [vmem:[#allocation79_spill] sm:$0xff] %v15024_v58  ;;  %v15030_v22 = vadd.f32 %v14900_v0, %v5939_v43  ;;  %6026 = vadd.xlane.f32.xlu1 %v6025_v11  ;;  %v5988_v57 = vadd.f32 %v15024_v58, %v15021_v13  ;;  %v6007_v9 = vmul.f32 %v15024_v58, %v15024_v58 }
0x1907   : > { %16165 = vst [vmem:[#allocation80_spill] sm:$0xff] %v15027_v37  ;;  %v6008_v31 = vmul.f32 %v15027_v37, %v15027_v37 }
0x1908   : > { %16166 = vst [vmem:[#allocation81_spill] sm:$0xff] %v15030_v22  ;;  %5989 = vadd.xlane.f32.xlu0 %v5988_v57  ;;  %v5991_v21 = vadd.f32 %v15030_v22, %v15027_v37  ;;  %v6009_v0 = vmul.f32 %v15030_v22, %v15030_v22  ;;  %v6028_v24 = vadd.f32 %v6007_v9, %v6006_v4 }
0x190a   : > { %5992 = vadd.xlane.f32.xlu1 %v5991_v21  ;;  %v6031_v23 = vadd.f32 %v6009_v0, %v6008_v31  ;;  %v15060_v21 = vrot.slane %v5969_v25, %v16150_v26  ;;  %v15063_v31 = vrot.slane %v5969_v25, %v16149_v28 }
0x190c   : > { %6029 = vadd.xlane.f32.xlu0 %v6028_v24 }
0x190e   : > { %6032 = vadd.xlane.f32.xlu1 %v6031_v23 }
0x1933   : > { %v5972_v32 = vpop.xlane.xlu0 %5971 }
0x1934   : > { %v6034_v18 = vmul.f32 0.004464286, %v5972_v32 }
0x1935   : > { %v5975_v10 = vpop.xlane.xlu1 %5974 }
0x1936   : > { %v6035_v30 = vmul.f32 0.004464286, %v5975_v10  ;;  %v6050_v47 = vmul.f32 %v6034_v18, %v6034_v18  ;;  %v6066_v55 = vsub.f32 %v14906_v40, %v6034_v18  ;;  %v6067_v33 = vsub.f32 %v14910_v15, %v6034_v18 }
0x1937   : > { %v6012_v51 = vpop.xlane.xlu0 %6011 }
0x1938   : > { %v6042_v56 = vmul.f32 0.004464286, %v6012_v51  ;;  %v6051_v42 = vmul.f32 %v6035_v30, %v6035_v30  ;;  %v6068_v43 = vsub.f32 %v14914_v6, %v6035_v30  ;;  %v6069_v11 = vsub.f32 %v14919_v27, %v6035_v30 }
0x1939   : > { %v6015_v7 = vpop.xlane.xlu1 %6014 }
0x193a   : > { %v6058_v59 = vsub.f32 %v6042_v56, %v6050_v47  ;;  %v6043_v34 = vmul.f32 0.004464286, %v6015_v7 }
0x193b   : > { %v5978_v44 = vpop.xlane.xlu0 %5977 }
0x193c   : > { %v6082_v52 = vadd.f32 1e-05, %v6058_v59  ;;  %v6059_v39 = vsub.f32 %v6043_v34, %v6051_v42  ;;  %v6036_v48 = vmul.f32 0.004464286, %v5978_v44 }
0x193d   : > { %v5981_v35 = vpop.xlane.xlu1 %5980 }
0x193e   : > { %11583 = vrsqrt.f32 %v6082_v52  ;;  %v6083_v17 = vadd.f32 1e-05, %v6059_v39  ;;  %v6037_v50 = vmul.f32 0.004464286, %v5981_v35  ;;  %v6052_v63 = vmul.f32 %v6036_v48, %v6036_v48  ;;  %v11207_v35 = vld [vmem:[%s13654_s16 + $0x8] ss:$28 sps:$4 sm:$0xff]  }
0x193f   : > { %v6018_v12 = vpop.xlane.xlu0 %6017  ;;  %v6070_v10 = vsub.f32 %v14938_v49, %v6036_v48  ;;  %v6071_v30 = vsub.f32 %v14942_v62, %v6036_v48 }
0x1940   : > { %11585 = vrsqrt.f32 %v6083_v17  ;;  %v6044_v41 = vmul.f32 0.004464286, %v6018_v12  ;;  %v6053_v29 = vmul.f32 %v6037_v50, %v6037_v50  ;;  %v6072_v42 = vsub.f32 %v14946_v53, %v6037_v50  ;;  %v11235_v17 = vld [vmem:[%s13654_s16 + $0x18] ss:$28 sps:$4 sm:$0xff]  }
0x1941   : > { %v6021_v20 = vpop.xlane.xlu1 %6020  ;;  %v6073_v34 = vsub.f32 %v14949_v38, %v6037_v50 }
0x1942   : > { %v6060_v36 = vsub.f32 %v6044_v41, %v6052_v63  ;;  %v6045_v14 = vmul.f32 0.004464286, %v6021_v20  ;;  %v11212_v63 = vld [vmem:[%s13654_s16 + $0x44] ss:$28 sps:$4 sm:$0xff]   ;;  %v11239_v41 = vld [vmem:[%s13654_s16 + $0x210] ss:$28 sps:$4 sm:$0xff]  }
0x1944   : > { %v6084_v19 = vadd.f32 1e-05, %v6060_v36  ;;  %v6061_v8 = vsub.f32 %v6045_v14, %v6053_v29 }
0x1946   : > { %11587 = vrsqrt.f32 %v6084_v19  ;;  %v6085_v2 = vadd.f32 1e-05, %v6061_v8  ;;  %v11210_v8 = vld [vmem:[%s13654_s16 + $0x40] ss:$28 sps:$4 sm:$0xff]  }
0x1948   : > { %v11584_v16 = vpop.eup %11583  ;;  %11589 = vrsqrt.f32 %v6085_v2  ;;  %v11215_v2 = vld [vmem:[%s13654_s16 + $0x7c] ss:$28 sps:$4 sm:$0xff]  }
0x1949   : > { %v6099_v57 = vmul.f32 %v11584_v16, %v6067_v33  ;;  %v6098_v4 = vmul.f32 %v11584_v16, %v6066_v55  ;;  %v11244_v55 = vld [vmem:[%s13654_s16 + $0x248] ss:$28 sps:$4 sm:$0xff]  }
0x194a   : > { %v11586_v9 = vpop.eup %11585 }
0x194b   : > { %v6101_v0 = vmul.f32 %v11586_v9, %v6069_v11  ;;  %v6126_v24 = vmul.f32 %v15052_v54, %v6099_v57  ;;  %v6100_v23 = vmul.f32 %v11586_v9, %v6068_v43  ;;  %v6125_v60 = vmul.f32 %v15055_v1, %v6098_v4  ;;  %v11213_v4 = vld [vmem:[%s13654_s16 + $0x78] ss:$28 sps:$4 sm:$0xff]   ;;  %v11245_v9 = vld [vmem:[%s13654_s16 + $0x88] ss:$28 sps:$4 sm:$0xff]  }
0x194d   : > { %v6128_v32 = vmul.f32 %v15052_v54, %v6101_v0  ;;  %v6127_v18 = vmul.f32 %v15055_v1, %v6100_v23  ;;  %v6153_v51 = vadd.f32 %v15060_v21, %v6126_v24  ;;  %v6152_v56 = vadd.f32 %v15063_v31, %v6125_v60  ;;  %v11218_v0 = vld [vmem:[%s13654_s16 + $0xb4] ss:$28 sps:$4 sm:$0xff]   ;;  %v11249_v24 = vld [vmem:[%s13654_s16 + $0x280] ss:$28 sps:$4 sm:$0xff]  }
0x194e   : > { %v11216_v23 = vld [vmem:[%s13654_s16 + $0xb0] ss:$28 sps:$4 sm:$0xff]   ;;  %v11250_v60 = vld [vmem:[%s13654_s16 + $0xc0] ss:$28 sps:$4 sm:$0xff]  }
0x194f   : > { %v6155_v47 = vadd.f32 %v15060_v21, %v6128_v32  ;;  %v6154_v7 = vadd.f32 %v15063_v31, %v6127_v18  ;;  %v11221_v32 = vld [vmem:[%s13654_s16 + $0xec] ss:$28 sps:$4 sm:$0xff]   ;;  %v11254_v18 = vld [vmem:[%s13654_s16 + $0x2b8] ss:$28 sps:$4 sm:$0xff]  }
0x1950   : > { %v11588_v59 = vpop.eup %11587 }
0x1951   : > { %v15077_v44 = vpack.c.bf16 %v6155_v47, %v6153_v51  ;;  %v15079_v52 = vpack.c.bf16 %v6154_v7, %v6152_v56  ;;  %v6103_v39 = vmul.f32 %v11588_v59, %v6071_v30  ;;  %v6102_v48 = vmul.f32 %v11588_v59, %v6070_v10  ;;  %v11219_v10 = vld [vmem:[%s13654_s16 + $0xe8] ss:$28 sps:$4 sm:$0xff]   ;;  %v11255_v30 = vld [vmem:[%s13654_s16 + $0xf8] ss:$28 sps:$4 sm:$0xff]   ;;  %v11259_v47 = vld [vmem:[%s13654_s16 + $0x2f0] ss:$28 sps:$4 sm:$0xff]  }
0x1952   : > { %v11590_v12 = vpop.eup %11589  ;;  %v11224_v51 = vld [vmem:[%s13654_s16 + $0x124] ss:$28 sps:$4 sm:$0xff]   ;;  %v11260_v7 = vld [vmem:[%s13654_s16 + $0x130] ss:$28 sps:$4 sm:$0xff]   ;;  %v11227_v59 = vld [vmem:[%s13654_s16 + $0x15c] ss:$28 sps:$4 sm:$0xff]  }
0x1953   : > { %6949 = vmatprep.mubr.bf16.mxu0 %v15077_v44  ;;  %7095 = vmatprep.mubr.bf16.mxu1 %v15077_v44  ;;  %v6105_v50 = vmul.f32 %v11590_v12, %v6073_v34  ;;  %v6130_v20 = vmul.f32 %v15052_v54, %v6103_v39  ;;  %v6104_v36 = vmul.f32 %v11590_v12, %v6072_v42  ;;  %v11222_v56 = vld [vmem:[%s13654_s16 + $0x120] ss:$28 sps:$4 sm:$0xff]   ;;  %v11264_v42 = vld [vmem:[%s13654_s16 + $0x328] ss:$28 sps:$4 sm:$0xff]   ;;  %v11225_v34 = vld [vmem:[%s13654_s16 + $0x158] ss:$28 sps:$4 sm:$0xff]  }
0x1954   : > { %6950 = vmatmul.mubr.bf16.vlgmr.msra.gmra.mrb[64].mxu0 %v15079_v52  ;;  %7096 = vmatmul.mubr.bf16.vlgmr.msra.gmra.mrb[112].mxu1 %v15079_v52  ;;  %v6129_v29 = vmul.f32 %v15055_v1, %v6102_v48  ;;  %v11265_v39 = vld [vmem:[%s13654_s16 + $0x168] ss:$28 sps:$4 sm:$0xff]   ;;  %v11230_v48 = vld [vmem:[%s13654_s16 + $0x194] ss:$28 sps:$4 sm:$0xff]   ;;  %v11270_v12 = vld [vmem:[%s13654_s16 + $0x1a0] ss:$28 sps:$4 sm:$0xff]  }
0x1955   : > { %v6132_v14 = vmul.f32 %v15052_v54, %v6105_v50  ;;  %v6131_v19 = vmul.f32 %v15055_v1, %v6104_v36  ;;  %6991 = vmatpush1.bf16.msra.mxu0 %v11207_v35  ;;  %10113 = vmatpush3.bf16.msra.mxu1 %v11235_v17  ;;  %v6157_v33 = vadd.f32 %v15060_v21, %v6130_v20  ;;  %v11269_v35 = vld [vmem:[%s13654_s16 + $0x360] ss:$28 sps:$4 sm:$0xff]   ;;  %v11228_v17 = vld [vmem:[%s13654_s16 + $0x190] ss:$28 sps:$4 sm:$0xff]  }
0x1956   : > { %6992 = vmatprep.subr.bf16.mxu0 %v11212_v63  ;;  %10114 = vmatprep.subr.bf16.mxu1 %v11239_v41  ;;  %v6156_v16 = vadd.f32 %v15063_v31, %v6129_v29  ;;  %v11233_v63 = vld [vmem:[%s13654_s16 + $0x1cc] ss:$28 sps:$4 sm:$0xff]   ;;  %v11238_v50 = vld [vmem:[%s13654_s16 + $0x204] ss:$28 sps:$4 sm:$0xff]   ;;  %v11243_v36 = vld [vmem:[%s13654_s16 + $0x23c] ss:$28 sps:$4 sm:$0xff]  }
0x1957   : > { %v6159_v25 = vadd.f32 %v15060_v21, %v6132_v14  ;;  %v6158_v43 = vadd.f32 %v15063_v31, %v6131_v19  ;;  %v11231_v41 = vld [vmem:[%s13654_s16 + $0x1c8] ss:$28 sps:$4 sm:$0xff]   ;;  %v11236_v20 = vld [vmem:[%s13654_s16 + $0x200] ss:$28 sps:$4 sm:$0xff]   ;;  %v11241_v29 = vld [vmem:[%s13654_s16 + $0x238] ss:$28 sps:$4 sm:$0xff]  }
0x1958   : > { %v11248_v14 = vld [vmem:[%s13654_s16 + $0x274] ss:$28 sps:$4 sm:$0xff]  }
0x1959   : > { %v15101_v11 = vpack.c.bf16 %v6159_v25, %v6157_v33  ;;  %v15103_v57 = vpack.c.bf16 %v6158_v43, %v6156_v16  ;;  %6993 = vmatpush1.bf16.msra.mxu0 %v11210_v8  ;;  %10115 = vmatpush3.bf16.msra.mxu1 %v11240_v5  ;;  %v11246_v19 = vld [vmem:[%s13654_s16 + $0x270] ss:$28 sps:$4 sm:$0xff]   ;;  %v11251_v5 = vld [vmem:[%s13654_s16 + $0x2a8] ss:$28 sps:$4 sm:$0xff]   ;;  %v11263_v33 = vld [vmem:[%s13654_s16 + $0x31c] ss:$28 sps:$4 sm:$0xff]  }
0x195a   : > { %6994 = vmatprep.subr.bf16.mxu0 %v11215_v2  ;;  %10116 = vmatprep.subr.bf16.mxu1 %v11244_v55  ;;  %v11253_v8 = vld [vmem:[%s13654_s16 + $0x2ac] ss:$28 sps:$4 sm:$0xff]   ;;  %v11258_v2 = vld [vmem:[%s13654_s16 + $0x2e4] ss:$28 sps:$4 sm:$0xff]   ;;  %v11261_v25 = vld [vmem:[%s13654_s16 + $0x318] ss:$28 sps:$4 sm:$0xff]  }
0x195b   : > { %6959 = vmatprep.mubr.bf16.mxu0 %v15101_v11  ;;  %7105 = vmatprep.mubr.bf16.mxu1 %v15101_v11  ;;  %v11256_v55 = vld [vmem:[%s13654_s16 + $0x2e0] ss:$28 sps:$4 sm:$0xff]   ;;  %v11268_v16 = vld [vmem:[%s13654_s16 + $0x354] ss:$28 sps:$4 sm:$0xff]  }
0x195c   : > { %6960 = vmatmul.mubr.bf16.gmra.mrb[68].mxu0 %v15103_v57  ;;  %7106 = vmatmul.mubr.bf16.gmra.mrb[116].mxu1 %v15103_v57 }
0x195d   : > { %6995 = vmatpush1.bf16.msra.mxu0 %v11213_v4  ;;  %10117 = vmatpush3.bf16.msra.mxu1 %v11245_v9  ;;  %v11266_v4 = vld [vmem:[%s13654_s16 + $0x350] ss:$28 sps:$4 sm:$0xff]  }
0x195e   : > { %6996 = vmatprep.subr.bf16.mxu0 %v11218_v0  ;;  %10118 = vmatprep.subr.bf16.mxu1 %v11249_v24  ;;  %v11273_v0 = vld [vmem:[%s13658_s3 + $0x4] ss:$8 sps:$4 sm:$0xff]  }
0x1961   : > { %6997 = vmatpush1.bf16.msra.mxu0 %v11216_v23  ;;  %10119 = vmatpush3.bf16.msra.mxu1 %v11250_v60 }
0x1962   : > { %6998 = vmatprep.subr.bf16.mxu0 %v11221_v32  ;;  %10120 = vmatprep.subr.bf16.mxu1 %v11254_v18 }
0x1965   : > { %6999 = vmatpush1.bf16.msra.mxu0 %v11219_v10  ;;  %10121 = vmatpush3.bf16.msra.mxu1 %v11255_v30 }
0x1966   : > { %7000 = vmatprep.subr.bf16.mxu0 %v11224_v51  ;;  %10122 = vmatprep.subr.bf16.mxu1 %v11259_v47 }
0x1969   : > { %7001 = vmatpush1.bf16.msra.mxu0 %v11222_v56  ;;  %10123 = vmatpush3.bf16.msra.mxu1 %v11260_v7 }
0x196a   : > { %7002 = vmatprep.subr.bf16.mxu0 %v11227_v59  ;;  %10124 = vmatprep.subr.bf16.mxu1 %v11264_v42 }
0x196d   : > { %7003 = vmatpush1.bf16.msra.mxu0 %v11225_v34  ;;  %10125 = vmatpush3.bf16.msra.mxu1 %v11265_v39 }
0x196e   : > { %7004 = vmatprep.subr.bf16.mxu0 %v11230_v48  ;;  %10126 = vmatprep.subr.bf16.mxu1 %v11269_v35 }
0x1971   : > { %7005 = vmatpush1.bf16.msra.mxu0 %v11228_v17  ;;  %10127 = vmatpush3.bf16.msra.mxu1 %v11270_v12 }
0x1972   : > { %7006 = vmatprep.subr.bf16.mxu0 %v11233_v63 }
0x1975   : > { %7007 = vmatpush1.bf16.msra.mxu0 %v11231_v41 }
0x1976   : > { %7008 = vmatprep.subr.bf16.mxu0 %v11238_v50 }
0x1979   : > { %7009 = vmatpush1.bf16.msra.mxu0 %v11236_v20 }
0x197a   : > { %7010 = vmatprep.subr.bf16.mxu0 %v11243_v36 }
0x197d   : > { %7011 = vmatpush1.bf16.msra.mxu0 %v11241_v29 }
0x197e   : > { %7012 = vmatprep.subr.bf16.mxu0 %v11248_v14 }
0x1981   : > { %7013 = vmatpush1.bf16.msra.mxu0 %v11246_v19 }
0x1982   : > { %7014 = vmatprep.subr.bf16.mxu0 %v11253_v8 }
0x1985   : > { %7015 = vmatpush1.bf16.msra.mxu0 %v11251_v5 }
0x1986   : > { %7016 = vmatprep.subr.bf16.mxu0 %v11258_v2 }
0x1989   : > { %7017 = vmatpush1.bf16.msra.mxu0 %v11256_v55 }
0x198a   : > { %7018 = vmatprep.subr.bf16.mxu0 %v11263_v33 }
0x198d   : > { %v5984_v43 = vpop.xlane.xlu0 %5983  ;;  %7019 = vmatpush1.bf16.msra.mxu0 %v11261_v25 }
0x198e   : > { %v6038_v9 = vmul.f32 0.004464286, %v5984_v43  ;;  %7020 = vmatprep.subr.bf16.mxu0 %v11268_v16 }
0x198f   : > { %v5987_v24 = vpop.xlane.xlu1 %5986 }
0x1990   : > { %v6039_v23 = vmul.f32 0.004464286, %v5987_v24  ;;  %v6054_v32 = vmul.f32 %v6038_v9, %v6038_v9  ;;  %v6074_v19 = vsub.f32 %v14997_v46, %v6038_v9  ;;  %v6075_v8 = vsub.f32 %v15000_v45, %v6038_v9 }
0x1991   : > { %v6024_v60 = vpop.xlane.xlu0 %6023  ;;  %7021 = vmatpush1.bf16.msra.mxu0 %v11266_v4 }
0x1992   : > { %v6046_v18 = vmul.f32 0.004464286, %v6024_v60  ;;  %8349 = vmatprep.subr.bf16.mxu0 %v11273_v0  ;;  %v6055_v51 = vmul.f32 %v6039_v23, %v6039_v23  ;;  %v6076_v2 = vsub.f32 %v15003_v3, %v6039_v23  ;;  %v6077_v55 = vsub.f32 %v15006_v61, %v6039_v23 }
0x1993   : > { %v6027_v10 = vpop.xlane.xlu1 %6026 }
0x1994   : > { %v6062_v30 = vsub.f32 %v6046_v18, %v6054_v32  ;;  %v6047_v47 = vmul.f32 0.004464286, %v6027_v10 }
0x1995   : > { %v5990_v56 = vpop.xlane.xlu0 %5989 }
0x1996   : > { %v6086_v7 = vadd.f32 1e-05, %v6062_v30  ;;  %v6063_v59 = vsub.f32 %v6047_v47, %v6055_v51  ;;  %v6040_v42 = vmul.f32 0.004464286, %v5990_v56 }
0x1997   : > { %v5993_v34 = vpop.xlane.xlu1 %5992 }
0x1998   : > { %11591 = vrsqrt.f32 %v6086_v7  ;;  %v6087_v39 = vadd.f32 1e-05, %v6063_v59  ;;  %v6041_v48 = vmul.f32 0.004464286, %v5993_v34  ;;  %v6056_v17 = vmul.f32 %v6040_v42, %v6040_v42 }
0x1999   : > { %v6030_v35 = vpop.xlane.xlu0 %6029  ;;  %v6078_v9 = vsub.f32 %v15021_v13, %v6040_v42  ;;  %v6079_v18 = vsub.f32 %v15024_v58, %v6040_v42 }
0x199a   : > { %11593 = vrsqrt.f32 %v6087_v39  ;;  %v6048_v12 = vmul.f32 0.004464286, %v6030_v35  ;;  %v6057_v50 = vmul.f32 %v6041_v48, %v6041_v48  ;;  %v6080_v56 = vsub.f32 %v15027_v37, %v6041_v48 }
0x199b   : > { %v6033_v63 = vpop.xlane.xlu1 %6032  ;;  %v6081_v7 = vsub.f32 %v15030_v22, %v6041_v48  ;;  %v16178_v22 = vld [vmem:[#allocation64_spill] sm:$0xff] }
0x199c   : > { %v6064_v41 = vsub.f32 %v6048_v12, %v6056_v17  ;;  %v6049_v20 = vmul.f32 0.004464286, %v6033_v63 }
0x199e   : > { %v6088_v36 = vadd.f32 1e-05, %v6064_v41  ;;  %v6065_v29 = vsub.f32 %v6049_v20, %v6057_v50 }
0x19a0   : > { %11595 = vrsqrt.f32 %v6088_v36  ;;  %v6089_v14 = vadd.f32 1e-05, %v6065_v29 }
0x19a2   : > { %v11592_v5 = vpop.eup %11591  ;;  %11597 = vrsqrt.f32 %v6089_v14 }
0x19a3   : > { %v6107_v33 = vmul.f32 %v11592_v5, %v6075_v8  ;;  %v6106_v25 = vmul.f32 %v11592_v5, %v6074_v19  ;;  %v11282_v5 = vld [vmem:[%s13658_s3 + $0x34] ss:$8 sps:$4 sm:$0xff]  }
0x19a4   : > { %v11594_v16 = vpop.eup %11593 }
0x19a5   : > { %v6109_v43 = vmul.f32 %v11594_v16, %v6077_v55  ;;  %v6134_v4 = vmul.f32 %v15052_v54, %v6107_v33  ;;  %v6108_v0 = vmul.f32 %v11594_v16, %v6076_v2  ;;  %v6133_v24 = vmul.f32 %v15055_v1, %v6106_v25  ;;  %v11283_v2 = vld [vmem:[%s13658_s3 + $0x40] ss:$8 sps:$4 sm:$0xff]   ;;  %v11288_v55 = vld [vmem:[%s13658_s3 + $0x54] ss:$8 sps:$4 sm:$0xff]   ;;  %v11291_v33 = vld [vmem:[%s13658_s3 + $0x64] ss:$8 sps:$4 sm:$0xff]  }
0x19a6   : > { %v11289_v25 = vld [vmem:[%s13658_s3 + $0x60] ss:$8 sps:$4 sm:$0xff]   ;;  %v11294_v16 = vld [vmem:[%s13658_s3 + $0x74] ss:$8 sps:$4 sm:$0xff]  }
0x19a7   : > { %v6136_v60 = vmul.f32 %v15052_v54, %v6109_v43  ;;  %v6135_v32 = vmul.f32 %v15055_v1, %v6108_v0  ;;  %v6161_v10 = vadd.f32 %v15060_v21, %v6134_v4  ;;  %v6160_v30 = vadd.f32 %v15063_v31, %v6133_v24  ;;  %v11292_v43 = vld [vmem:[%s13658_s3 + $0x70] ss:$8 sps:$4 sm:$0xff]   ;;  %v11297_v4 = vld [vmem:[%s13658_s3 + $0x84] ss:$8 sps:$4 sm:$0xff]   ;;  %v11295_v0 = vld [vmem:[%s13658_s3 + $0x80] ss:$8 sps:$4 sm:$0xff]  }
0x19a8   : > { %v11300_v24 = vld [vmem:[%s13658_s3 + $0x94] ss:$8 sps:$4 sm:$0xff]  }
0x19a9   : > { %v6163_v23 = vadd.f32 %v15060_v21, %v6136_v60  ;;  %v6162_v51 = vadd.f32 %v15063_v31, %v6135_v32  ;;  %v11298_v60 = vld [vmem:[%s13658_s3 + $0x90] ss:$8 sps:$4 sm:$0xff]   ;;  %v11303_v32 = vld [vmem:[%s13658_s3 + $0xa4] ss:$8 sps:$4 sm:$0xff]  }
0x19aa   : > { %v11596_v47 = vpop.eup %11595 }
0x19ab   : > { %v6173_v59 = vpack.c.bf16 %v6163_v23, %v6161_v10  ;;  %v6172_v34 = vpack.c.bf16 %v6162_v51, %v6160_v30  ;;  %v6111_v39 = vmul.f32 %v11596_v47, %v6079_v18  ;;  %v6110_v35 = vmul.f32 %v11596_v47, %v6078_v9  ;;  %v11301_v9 = vld [vmem:[%s13658_s3 + $0xa0] ss:$8 sps:$4 sm:$0xff]   ;;  %v11306_v18 = vld [vmem:[%s13658_s3 + $0xb4] ss:$8 sps:$4 sm:$0xff]   ;;  %v11304_v10 = vld [vmem:[%s13658_s3 + $0xb0] ss:$8 sps:$4 sm:$0xff]  }
0x19ac   : > { %v11598_v17 = vpop.eup %11597  ;;  %v11309_v23 = vld [vmem:[%s13658_s3 + $0xc4] ss:$8 sps:$4 sm:$0xff]   ;;  %v11307_v30 = vld [vmem:[%s13658_s3 + $0xc0] ss:$8 sps:$4 sm:$0xff]   ;;  %v11312_v51 = vld [vmem:[%s13658_s3 + $0xd4] ss:$8 sps:$4 sm:$0xff]  }
0x19ad   : > { %6969 = vmatprep.mubr.bf16.mxu0 %v6173_v59  ;;  %7115 = vmatprep.mubr.bf16.mxu1 %v6173_v59  ;;  %v6113_v42 = vmul.f32 %v11598_v17, %v6081_v7  ;;  %v6138_v12 = vmul.f32 %v15052_v54, %v6111_v39  ;;  %v6112_v63 = vmul.f32 %v11598_v17, %v6080_v56  ;;  %v11310_v47 = vld [vmem:[%s13658_s3 + $0xd0] ss:$8 sps:$4 sm:$0xff]   ;;  %v11315_v56 = vld [vmem:[%s13658_s3 + $0xe4] ss:$8 sps:$4 sm:$0xff]   ;;  %v11313_v7 = vld [vmem:[%s13658_s3 + $0xe0] ss:$8 sps:$4 sm:$0xff]  }
0x19ae   : > { %6970 = vmatmul.mubr.bf16.gmra.mrb[72].mxu0 %v6172_v34  ;;  %7116 = vmatmul.mubr.bf16.gmra.mrb[120].mxu1 %v6172_v34  ;;  %v6137_v41 = vmul.f32 %v15055_v1, %v6110_v35  ;;  %v11321_v39 = vld [vmem:[%s13658_s3 + $0x104] ss:$8 sps:$4 sm:$0xff]   ;;  %v15213_v35 = vld [vmem:[%s13656_s7] sm:$0xff] }
0x19af   : > { %v6140_v50 = vmul.f32 %v15052_v54, %v6113_v42  ;;  %v6139_v48 = vmul.f32 %v15055_v1, %v6112_v63  ;;  %v6165_v20 = vadd.f32 %v15060_v21, %v6138_v12  ;;  %v11271_v54 = vld [vmem:[%s13658_s3] ss:$8 sps:$4 sm:$0xff]   ;;  %v11276_v1 = vld [vmem:[%s13658_s3 + $0x14] ss:$8 sps:$4 sm:$0xff]   ;;  %v15217_v17 = vrot.slane %v15213_v35, %v16149_v28 }
0x19b0   : > { %v6164_v29 = vadd.f32 %v15063_v31, %v6137_v41  ;;  %v16167_v42 = vld [vmem:[#allocation61_spill] sm:$0xff]  ;;  %v15226_v41 = vrot.slane %v15213_v35, %v16150_v26 }
0x19b1   : > { %v6167_v36 = vadd.f32 %v15060_v21, %v6140_v50  ;;  %v6166_v14 = vadd.f32 %v15063_v31, %v6139_v48  ;;  %v11274_v21 = vld [vmem:[%s13658_s3 + $0x10] ss:$8 sps:$4 sm:$0xff]   ;;  %v11279_v31 = vld [vmem:[%s13658_s3 + $0x24] ss:$8 sps:$4 sm:$0xff]   ;;  %v16168_v12 = vsub.s32 4, %v16167_v42  ;;  %v16169_v50 = vsub.s32 5, %v16167_v42 }
0x19b3   : > { %v6175_v19 = vpack.c.bf16 %v6167_v36, %v6165_v20  ;;  %v6174_v8 = vpack.c.bf16 %v6166_v14, %v6164_v29  ;;  %v15222_v63 = vrot.slane %v15213_v35, %v16168_v12  ;;  %v15231_v48 = vrot.slane %v15213_v35, %v16169_v50 }
0x19b5   : > { %6979 = vmatprep.mubr.bf16.mxu0 %v6175_v19  ;;  %7125 = vmatprep.mubr.bf16.mxu1 %v6175_v19 }
0x19b6   : > { %6980 = vmatmul.mubr.bf16.gmra.mrb[76].mxu0 %v6174_v8  ;;  %7126 = vmatmul.mubr.bf16.gmra.mrb[124].mxu1 %v6174_v8 }
0x19b7   : > { %7022 = vmatprep.mubr.bf16.mxu0 %v15077_v44  ;;  %7168 = vmatprep.mubr.bf16.mxu1 %v15077_v44  ;;  %v11277_v44 = vld [vmem:[%s13658_s3 + $0x20] ss:$8 sps:$4 sm:$0xff]  }
0x19be   : > { %7023 = vmatmul.mubr.bf16.vlgmr.msra.gmra.mrb[80].mxu0 %v15079_v52  ;;  %7169 = vmatmul.mubr.bf16.vlgmr.msra.gmra.mrb[128].mxu1 %v15079_v52  ;;  %v11280_v52 = vld [vmem:[%s13658_s3 + $0x30] ss:$8 sps:$4 sm:$0xff]  }
0x19bf   : > { %7032 = vmatprep.mubr.bf16.mxu0 %v15101_v11  ;;  %7176 = vmatprep.mubr.bf16.mxu1 %v15101_v11  ;;  %v11285_v11 = vld [vmem:[%s13658_s3 + $0x44] ss:$8 sps:$4 sm:$0xff]  }
0x19c0   : > { %8350 = vmatpush1.bf16.msra.mxu0 %v11271_v54 }
0x19c1   : > { %8351 = vmatprep.subr.bf16.mxu0 %v11276_v1 }
0x19c4   : > { %8352 = vmatpush1.bf16.msra.mxu0 %v11274_v21 }
0x19c5   : > { %8353 = vmatprep.subr.bf16.mxu0 %v11279_v31 }
0x19c6   : > { %7033 = vmatmul.mubr.bf16.gmra.mrb[84].mxu0 %v15103_v57  ;;  %7177 = vmatmul.mubr.bf16.gmra.mrb[132].mxu1 %v15103_v57  ;;  %v11286_v57 = vld [vmem:[%s13658_s3 + $0x50] ss:$8 sps:$4 sm:$0xff]  }
0x19c7   : > { %7042 = vmatprep.mubr.bf16.mxu0 %v6173_v59  ;;  %7184 = vmatprep.mubr.bf16.mxu1 %v6173_v59  ;;  %v11318_v59 = vld [vmem:[%s13658_s3 + $0xf4] ss:$8 sps:$4 sm:$0xff]  }
0x19c8   : > { %8354 = vmatpush1.bf16.msra.mxu0 %v11277_v44 }
0x19c9   : > { %8355 = vmatprep.subr.bf16.mxu0 %v11282_v5 }
0x19cc   : > { %8356 = vmatpush1.bf16.msra.mxu0 %v11280_v52 }
0x19cd   : > { %8357 = vmatprep.subr.bf16.mxu0 %v11285_v11 }
0x19ce   : > { %7043 = vmatmul.mubr.bf16.gmra.mrb[88].mxu0 %v6172_v34  ;;  %7185 = vmatmul.mubr.bf16.gmra.mrb[136].mxu1 %v6172_v34  ;;  %v11316_v34 = vld [vmem:[%s13658_s3 + $0xf0] ss:$8 sps:$4 sm:$0xff]  }
0x19cf   : > { %7052 = vmatprep.mubr.bf16.mxu0 %v6175_v19  ;;  %7192 = vmatprep.mubr.bf16.mxu1 %v6175_v19 }
0x19d0   : > { %8358 = vmatpush1.bf16.msra.mxu0 %v11283_v2 }
0x19d1   : > { %8359 = vmatprep.subr.bf16.mxu0 %v11288_v55 }
0x19d4   : > { %8360 = vmatpush1.bf16.msra.mxu0 %v11286_v57 }
0x19d5   : > { %8361 = vmatprep.subr.bf16.mxu0 %v11291_v33 }
0x19d6   : > { %7053 = vmatmul.mubr.bf16.gmra.mrb[92].mxu0 %v6174_v8  ;;  %7193 = vmatmul.mubr.bf16.gmra.mrb[140].mxu1 %v6174_v8 }
0x19d8   : > { %8362 = vmatpush1.bf16.msra.mxu0 %v11289_v25 }
0x19d9   : > { %8363 = vmatprep.subr.bf16.mxu0 %v11294_v16 }
0x19dc   : > { %8364 = vmatpush1.bf16.msra.mxu0 %v11292_v43 }
0x19dd   : > { %8365 = vmatprep.subr.bf16.mxu0 %v11297_v4 }
0x19e0   : > { %8366 = vmatpush1.bf16.msra.mxu0 %v11295_v0 }
0x19e1   : > { %8367 = vmatprep.subr.bf16.mxu0 %v11300_v24 }
0x19e4   : > { %8368 = vmatpush1.bf16.msra.mxu0 %v11298_v60 }
0x19e5   : > { %8369 = vmatprep.subr.bf16.mxu0 %v11303_v32 }
0x19e8   : > { %8370 = vmatpush1.bf16.msra.mxu0 %v11301_v9 }
0x19e9   : > { %8371 = vmatprep.subr.bf16.mxu0 %v11306_v18 }
0x19ec   : > { %8372 = vmatpush1.bf16.msra.mxu0 %v11304_v10 }
0x19ed   : > { %8373 = vmatprep.subr.bf16.mxu0 %v11309_v23 }
0x19f0   : > { %8374 = vmatpush1.bf16.msra.mxu0 %v11307_v30 }
0x19f1   : > { %8375 = vmatprep.subr.bf16.mxu0 %v11312_v51 }
0x19f4   : > { %8376 = vmatpush1.bf16.msra.mxu0 %v11310_v47 }
0x19f5   : > { %8377 = vmatprep.subr.bf16.mxu0 %v11315_v56 }
0x19f8   : > { %8378 = vmatpush1.bf16.msra.mxu0 %v11313_v7 }
0x19f9   : > { %8379 = vmatprep.subr.bf16.mxu0 %v11318_v59 }
0x19fc   : > { %8380 = vmatpush1.bf16.msra.mxu0 %v11316_v34 }
0x19fd   : > { %8422 = vmatprep.subr.bf16.mxu0 %v11321_v39 }
0x1a27   : > { %v6951_v20 = vpop.f32.mrb[64].mxu0  ;;  %v7097_v36 = vpop.f32.mrb[112].mxu1 }
0x1a28   : > { %v15234_v29 = vadd.f32 %v6951_v20, %v15217_v17  ;;  %v15237_v14 = vadd.f32 %v7097_v36, %v15222_v63  ;;  %v6953_v19 = vpop.f32.mrb[65].mxu0  ;;  %v7099_v8 = vpop.f32.mrb[113].mxu1 }
0x1a29   : > { %v15240_v54 = vadd.f32 %v6953_v19, %v15226_v41  ;;  %v15243_v1 = vadd.f32 %v7099_v8, %v15231_v48  ;;  %v6955_v21 = vpop.f32.mrb[66].mxu0  ;;  %v7101_v31 = vpop.f32.mrb[114].mxu1 }
0x1a2a   : > { %v9842_v44 = vmul.f32 -1.702, %v15234_v29  ;;  %v9846_v5 = vmul.f32 -1.702, %v15237_v14  ;;  %v15248_v52 = vadd.f32 %v6955_v21, %v15217_v17  ;;  %v15251_v11 = vadd.f32 %v7101_v31, %v15222_v63  ;;  %v6957_v2 = vpop.f32.mrb[67].mxu0  ;;  %v7103_v55 = vpop.f32.mrb[115].mxu1 }
0x1a2b   : > { %v9843_v57 = vmul.f32 -1.702, %v15240_v54  ;;  %v9847_v33 = vmul.f32 -1.702, %v15243_v1  ;;  %v15256_v25 = vadd.f32 %v6957_v2, %v15226_v41  ;;  %v15259_v16 = vadd.f32 %v7103_v55, %v15231_v48 }
0x1a2c   : > { %v7313_v43 = vmul.f32 1.442695, %v9842_v44  ;;  %v7321_v4 = vmul.f32 1.442695, %v9846_v5  ;;  %v9849_v0 = vmul.f32 -1.702, %v15248_v52 }
0x1a2d   : > { %v7315_v24 = vmul.f32 1.442695, %v9843_v57  ;;  %v7323_v60 = vmul.f32 1.442695, %v9847_v33  ;;  %v9853_v32 = vmul.f32 -1.702, %v15251_v11 }
0x1a2e   : > { %11599 = vpow2.f32 %v7313_v43  ;;  %v7327_v9 = vmul.f32 1.442695, %v9849_v0  ;;  %v9850_v18 = vmul.f32 -1.702, %v15256_v25  ;;  %v9854_v10 = vmul.f32 -1.702, %v15259_v16 }
0x1a2f   : > { %11601 = vpow2.f32 %v7321_v4  ;;  %v7335_v23 = vmul.f32 1.442695, %v9853_v32  ;;  %v6961_v30 = vpop.f32.mrb[68].mxu0  ;;  %v7107_v51 = vpop.f32.mrb[116].mxu1 }
0x1a30   : > { %11603 = vpow2.f32 %v7315_v24  ;;  %v7329_v47 = vmul.f32 1.442695, %v9850_v18  ;;  %v15266_v56 = vadd.f32 %v6961_v30, %v15217_v17  ;;  %v6963_v7 = vpop.f32.mrb[69].mxu0  ;;  %v7109_v59 = vpop.f32.mrb[117].mxu1  ;;  %v7337_v34 = vmul.f32 1.442695, %v9854_v10 }
0x1a31   : > { %11605 = vpow2.f32 %v7323_v60  ;;  %v15269_v39 = vadd.f32 %v7107_v51, %v15222_v63  ;;  %v15272_v12 = vadd.f32 %v6963_v7, %v15226_v41  ;;  %v6965_v50 = vpop.f32.mrb[70].mxu0  ;;  %v7111_v20 = vpop.f32.mrb[118].mxu1  ;;  %v15282_v43 = vadd.f32 %v7109_v59, %v15231_v48 }
0x1a32   : > { %11607 = vpow2.f32 %v7327_v9  ;;  %v9856_v36 = vmul.f32 -1.702, %v15266_v56  ;;  %v15276_v19 = vadd.f32 %v6965_v50, %v15217_v17  ;;  %v6967_v8 = vpop.f32.mrb[71].mxu0  ;;  %v7113_v21 = vpop.f32.mrb[119].mxu1  ;;  %v15286_v51 = vadd.f32 %v7111_v20, %v15222_v63 }
0x1a33   : > { %11609 = vpow2.f32 %v7335_v23  ;;  %v9860_v31 = vmul.f32 -1.702, %v15269_v39  ;;  %v9857_v44 = vmul.f32 -1.702, %v15272_v12  ;;  %v9861_v10 = vmul.f32 -1.702, %v15282_v43 }
0x1a34   : > { %11611 = vpow2.f32 %v7329_v47  ;;  %v7341_v5 = vmul.f32 1.442695, %v9856_v36  ;;  %v9863_v2 = vmul.f32 -1.702, %v15276_v19  ;;  %v15289_v59 = vadd.f32 %v6967_v8, %v15226_v41 }
0x1a35   : > { %11613 = vpow2.f32 %v7337_v34  ;;  %v7349_v55 = vmul.f32 1.442695, %v9860_v31  ;;  %v7343_v57 = vmul.f32 1.442695, %v9857_v44  ;;  %v15292_v36 = vadd.f32 %v7113_v21, %v15231_v48 }
0x1a36   : > { %11615 = vpow2.f32 %v7341_v5  ;;  %v7355_v33 = vmul.f32 1.442695, %v9863_v2  ;;  %v7351_v5 = vmul.f32 1.442695, %v9861_v10  ;;  %v9864_v8 = vmul.f32 -1.702, %v15289_v59 }
0x1a37   : > { %11617 = vpow2.f32 %v7349_v55  ;;  %v9867_v55 = vmul.f32 -1.702, %v15286_v51 }
0x1a38   : > { %v11600_v4 = vpop.eup %11599  ;;  %11619 = vpow2.f32 %v7343_v57 }
0x1a39   : > { %v11602_v0 = vpop.eup %11601  ;;  %v7425_v24 = vadd.f32 1.0, %v11600_v4  ;;  %11621 = vpow2.f32 %v7355_v33  ;;  %v9868_v4 = vmul.f32 -1.702, %v15292_v36 }
0x1a3a   : > { %v11604_v60 = vpop.eup %11603  ;;  %v7429_v32 = vadd.f32 1.0, %v11602_v0 }
0x1a3b   : > { %v11606_v9 = vpop.eup %11605  ;;  %11623 = vrcp.f32 %v7425_v24  ;;  %v7426_v18 = vadd.f32 1.0, %v11604_v60  ;;  %v7363_v24 = vmul.f32 1.442695, %v9867_v55  ;;  %v7365_v10 = vmul.f32 1.442695, %v9868_v4 }
0x1a3c   : > { %v11608_v23 = vpop.eup %11607  ;;  %11625 = vrcp.f32 %v7429_v32  ;;  %v7430_v30 = vadd.f32 1.0, %v11606_v9  ;;  %v7357_v9 = vmul.f32 1.442695, %v9864_v8 }
0x1a3d   : > { %v11610_v47 = vpop.eup %11609  ;;  %11627 = vrcp.f32 %v7426_v18  ;;  %v7432_v7 = vadd.f32 1.0, %v11608_v23 }
0x1a3e   : > { %v11612_v34 = vpop.eup %11611  ;;  %11629 = vrcp.f32 %v7430_v30  ;;  %v7436_v50 = vadd.f32 1.0, %v11610_v47 }
0x1a3f   : > { %v11614_v31 = vpop.eup %11613  ;;  %11631 = vrcp.f32 %v7432_v7  ;;  %v7433_v44 = vadd.f32 1.0, %v11612_v34 }
0x1a40   : > { %v11616_v2 = vpop.eup %11615  ;;  %11633 = vrcp.f32 %v7436_v50  ;;  %v7437_v20 = vadd.f32 1.0, %v11614_v31 }
0x1a41   : > { %11635 = vrcp.f32 %v7433_v44  ;;  %v7439_v57 = vadd.f32 1.0, %v11616_v2  ;;  %v11618_v33 = vpop.eup %11617 }
0x1a42   : > { %11637 = vrcp.f32 %v7437_v20  ;;  %v11620_v0 = vpop.eup %11619 }
0x1a43   : > { %11639 = vpow2.f32 %v7351_v5  ;;  %v11622_v21 = vpop.eup %11621 }
0x1a44   : > { %11641 = vrcp.f32 %v7439_v57  ;;  %v7446_v32 = vadd.f32 1.0, %v11622_v21  ;;  %v11319_v21 = vld [vmem:[%s13658_s3 + $0x100] ss:$8 sps:$4 sm:$0xff]  }
0x1a45   : > { %v11624_v60 = vpop.eup %11623 }
0x1a46   : > { %v11626_v18 = vpop.eup %11625  ;;  %11643 = vrcp.f32 %v7446_v32  ;;  %v7593_v34 = vmul.f32 %v11624_v60, %v15234_v29  ;;  %v7440_v60 = vadd.f32 1.0, %v11620_v0 }
0x1a47   : > { %v11628_v23 = vpop.eup %11627  ;;  %11645 = vpow2.f32 %v7363_v24  ;;  %v15300_v44 = vmul.f32 %v11626_v18, %v15237_v14  ;;  %v7443_v14 = vadd.f32 1.0, %v11618_v33  ;;  %v11322_v33 = vld [vmem:[%s13658_s3 + $0x110] ss:$8 sps:$4 sm:$0xff]  }
0x1a48   : > { %v11630_v30 = vpop.eup %11629  ;;  %11647 = vpow2.f32 %v7357_v9  ;;  %v7594_v20 = vmul.f32 %v11628_v23, %v15240_v54  ;;  %v11324_v54 = vld [vmem:[%s13658_s3 + $0x114] ss:$8 sps:$4 sm:$0xff]   ;;  %v11327_v23 = vld [vmem:[%s13658_s3 + $0x124] ss:$8 sps:$4 sm:$0xff]  }
0x1a49   : > { %v11632_v47 = vpop.eup %11631  ;;  %11649 = vpow2.f32 %v7365_v10  ;;  %16170 = vst [vmem:[#allocation61_spill] sm:$0xff] %v15300_v44  ;;  %v15308_v29 = vmul.f32 %v11630_v30, %v15243_v1 }
0x1a4a   : > { %v11634_v7 = vpop.eup %11633  ;;  %v7600_v50 = vmul.f32 %v11632_v47, %v15248_v52  ;;  %11651 = vrcp.f32 %v7443_v14  ;;  %v11336_v14 = vld [vmem:[%s13658_s3 + $0x154] ss:$8 sps:$4 sm:$0xff]  }
0x1a4b   : > { %v11636_v31 = vpop.eup %11635  ;;  %v15303_v5 = vmul.f32 %v11634_v7, %v15251_v11  ;;  %16172 = vst [vmem:[#allocation83_spill] sm:$0xff] %v15308_v29  ;;  %11653 = vrcp.f32 %v7440_v60 }
0x1a4c   : > { %v11638_v2 = vpop.eup %11637  ;;  %v7649_v55 = vpack.c.bf16 %v7600_v50, %v7593_v34  ;;  %v7601_v57 = vmul.f32 %v11636_v31, %v15256_v25  ;;  %v11330_v34 = vld [vmem:[%s13658_s3 + $0x134] ss:$8 sps:$4 sm:$0xff]   ;;  %v11328_v50 = vld [vmem:[%s13658_s3 + $0x130] ss:$8 sps:$4 sm:$0xff]   ;;  %v11333_v31 = vld [vmem:[%s13658_s3 + $0x144] ss:$8 sps:$4 sm:$0xff]  }
0x1a4d   : > { %16171 = vst [vmem:[#allocation82_spill] sm:$0xff] %v15303_v5  ;;  %v11640_v8 = vpop.eup %11639  ;;  %v15313_v4 = vmul.f32 %v11638_v2, %v15259_v16 }
0x1a4e   : > { %v7650_v11 = vpack.c.bf16 %v7601_v57, %v7594_v20  ;;  %v11642_v24 = vpop.eup %11641  ;;  %v7444_v32 = vadd.f32 1.0, %v11640_v8  ;;  %v11331_v57 = vld [vmem:[%s13658_s3 + $0x140] ss:$8 sps:$4 sm:$0xff]  }
0x1a4f   : > { %16173 = vst [vmem:[#allocation84_spill] sm:$0xff] %v15313_v4  ;;  %v7607_v18 = vmul.f32 %v11642_v24, %v15266_v56 }
0x1a50   : > { %8381 = vmatprep.mubr.bf16.mxu0 %v7650_v11  ;;  %v11644_v1 = vpop.eup %11643  ;;  %11655 = vrcp.f32 %v7444_v32 }
0x1a51   : > { %8382 = vmatmul.mubr.bf16.vlgmr.msra.gmra.mrb[96].mxu0 %v7649_v55  ;;  %v11646_v9 = vpop.eup %11645  ;;  %v7614_v16 = vmul.f32 %v11644_v1, %v15276_v19  ;;  %v11325_v19 = vld [vmem:[%s13658_s3 + $0x120] ss:$8 sps:$4 sm:$0xff]  }
0x1a52   : > { %8423 = vmatpush1.bf16.msra.mxu0 %v11319_v21  ;;  %v11648_v10 = vpop.eup %11647  ;;  %v7450_v0 = vadd.f32 1.0, %v11646_v9 }
0x1a53   : > { %8424 = vmatprep.subr.bf16.mxu0 %v11324_v54  ;;  %v11650_v30 = vpop.eup %11649  ;;  %v7447_v47 = vadd.f32 1.0, %v11648_v10  ;;  %v7656_v7 = vpack.c.bf16 %v7614_v16, %v7607_v18  ;;  %v11334_v18 = vld [vmem:[%s13658_s3 + $0x150] ss:$8 sps:$4 sm:$0xff]   ;;  %v11343_v10 = vld [vmem:[%s13658_s3 + $0x180] ss:$8 sps:$4 sm:$0xff]  }
0x1a54   : > { %11657 = vrcp.f32 %v7450_v0  ;;  %v7451_v56 = vadd.f32 1.0, %v11650_v30  ;;  %v11652_v2 = vpop.eup %11651  ;;  %v11340_v16 = vld [vmem:[%s13658_s3 + $0x170] ss:$8 sps:$4 sm:$0xff]   ;;  %v11348_v0 = vld [vmem:[%s13658_s3 + $0x194] ss:$8 sps:$4 sm:$0xff]  }
0x1a55   : > { %11659 = vrcp.f32 %v7447_v47  ;;  %v11654_v20 = vpop.eup %11653  ;;  %v15330_v21 = vmul.f32 %v11652_v2, %v15269_v39  ;;  %v11351_v30 = vld [vmem:[%s13658_s3 + $0x1a4] ss:$8 sps:$4 sm:$0xff]   ;;  %v11349_v47 = vld [vmem:[%s13658_s3 + $0x1a0] ss:$8 sps:$4 sm:$0xff]  }
0x1a56   : > { %8425 = vmatpush1.bf16.msra.mxu0 %v11322_v33  ;;  %11661 = vrcp.f32 %v7451_v56  ;;  %v7608_v54 = vmul.f32 %v11654_v20, %v15272_v12  ;;  %v11339_v12 = vld [vmem:[%s13658_s3 + $0x164] ss:$8 sps:$4 sm:$0xff]   ;;  %v11352_v56 = vld [vmem:[%s13658_s3 + $0x1b0] ss:$8 sps:$4 sm:$0xff]  }
0x1a57   : > { %8426 = vmatprep.subr.bf16.mxu0 %v11327_v23  ;;  %16174 = vst [vmem:[#allocation85_spill] sm:$0xff] %v15330_v21  ;;  %v11345_v33 = vld [vmem:[%s13658_s3 + $0x184] ss:$8 sps:$4 sm:$0xff]   ;;  %v11346_v23 = vld [vmem:[%s13658_s3 + $0x190] ss:$8 sps:$4 sm:$0xff]  }
0x1a5a   : > { %8427 = vmatpush1.bf16.msra.mxu0 %v11325_v19  ;;  %v11656_v55 = vpop.eup %11655  ;;  %v11357_v19 = vld [vmem:[%s13658_s3 + $0x1c4] ss:$8 sps:$4 sm:$0xff]  }
0x1a5b   : > { %8428 = vmatprep.subr.bf16.mxu0 %v11330_v34  ;;  %v15338_v1 = vmul.f32 %v11656_v55, %v15282_v43  ;;  %v11337_v43 = vld [vmem:[%s13658_s3 + $0x160] ss:$8 sps:$4 sm:$0xff]  }
0x1a5c   : > { %v11355_v34 = vld [vmem:[%s13658_s3 + $0x1c0] ss:$8 sps:$4 sm:$0xff]  }
0x1a5d   : > { %16176 = vst [vmem:[#allocation87_spill] sm:$0xff] %v15338_v1 }
0x1a5e   : > { %8429 = vmatpush1.bf16.msra.mxu0 %v11328_v50  ;;  %v11658_v8 = vpop.eup %11657  ;;  %v11360_v50 = vld [vmem:[%s13658_s3 + $0x1d4] ss:$8 sps:$4 sm:$0xff]  }
0x1a5f   : > { %8430 = vmatprep.subr.bf16.mxu0 %v11333_v31  ;;  %v11660_v11 = vpop.eup %11659  ;;  %v15333_v24 = vmul.f32 %v11658_v8, %v15286_v51 }
0x1a60   : > { %v11662_v60 = vpop.eup %11661  ;;  %v7615_v32 = vmul.f32 %v11660_v11, %v15289_v59 }
0x1a61   : > { %16175 = vst [vmem:[#allocation86_spill] sm:$0xff] %v15333_v24  ;;  %v15341_v9 = vmul.f32 %v11662_v60, %v15292_v36  ;;  %v11342_v36 = vld [vmem:[%s13658_s3 + $0x174] ss:$8 sps:$4 sm:$0xff]  }
0x1a62   : > { %8431 = vmatpush1.bf16.msra.mxu0 %v11331_v57  ;;  %v7657_v51 = vpack.c.bf16 %v7615_v32, %v7608_v54  ;;  %v11358_v32 = vld [vmem:[%s13658_s3 + $0x1d0] ss:$8 sps:$4 sm:$0xff]  }
0x1a63   : > { %16177 = vst [vmem:[#allocation88_spill] sm:$0xff] %v15341_v9  ;;  %8432 = vmatprep.subr.bf16.mxu0 %v11336_v14 }
0x1a64   : > { %8391 = vmatprep.mubr.bf16.mxu0 %v7657_v51  ;;  %v11363_v51 = vld [vmem:[%s13658_s3 + $0x1e4] ss:$8 sps:$4 sm:$0xff]  }
0x1a65   : > { %8392 = vmatmul.mubr.bf16.gmra.mrb[100].mxu0 %v7656_v7  ;;  %v11354_v7 = vld [vmem:[%s13658_s3 + $0x1b4] ss:$8 sps:$4 sm:$0xff]  }
0x1a66   : > { %8433 = vmatpush1.bf16.msra.mxu0 %v11334_v18 }
0x1a67   : > { %8434 = vmatprep.subr.bf16.mxu0 %v11339_v12 }
0x1a6a   : > { %8435 = vmatpush1.bf16.msra.mxu0 %v11337_v43 }
0x1a6b   : > { %8436 = vmatprep.subr.bf16.mxu0 %v11342_v36 }
0x1a6e   : > { %8437 = vmatpush1.bf16.msra.mxu0 %v11340_v16 }
0x1a6f   : > { %8438 = vmatprep.subr.bf16.mxu0 %v11345_v33 }
0x1a72   : > { %8439 = vmatpush1.bf16.msra.mxu0 %v11343_v10 }
0x1a73   : > { %8440 = vmatprep.subr.bf16.mxu0 %v11348_v0 }
0x1a76   : > { %8441 = vmatpush1.bf16.msra.mxu0 %v11346_v23 }
0x1a77   : > { %8442 = vmatprep.subr.bf16.mxu0 %v11351_v30 }
0x1a7a   : > { %8443 = vmatpush1.bf16.msra.mxu0 %v11349_v47  ;;  %v11361_v47 = vld [vmem:[%s13658_s3 + $0x1e0] ss:$8 sps:$4 sm:$0xff]  }
0x1a7b   : > { %8444 = vmatprep.subr.bf16.mxu0 %v11354_v7 }
0x1a7e   : > { %8445 = vmatpush1.bf16.msra.mxu0 %v11352_v56 }
0x1a7f   : > { %8446 = vmatprep.subr.bf16.mxu0 %v11357_v19 }
0x1a81   : > { %v6971_v31 = vpop.f32.mrb[72].mxu0  ;;  %v7117_v2 = vpop.f32.mrb[120].mxu1 }
0x1a82   : > { %v15364_v20 = vadd.f32 %v6971_v31, %v15217_v17  ;;  %v15367_v55 = vadd.f32 %v7117_v2, %v15222_v63  ;;  %v6973_v57 = vpop.f32.mrb[73].mxu0  ;;  %v7119_v8 = vpop.f32.mrb[121].mxu1  ;;  %8447 = vmatpush1.bf16.msra.mxu0 %v11355_v34  ;;  %v11366_v34 = vld [vmem:[%s13658_s3 + $0x1f4] ss:$8 sps:$4 sm:$0xff]  }
0x1a83   : > { %v15370_v14 = vadd.f32 %v6973_v57, %v15226_v41  ;;  %v15373_v11 = vadd.f32 %v7119_v8, %v15231_v48  ;;  %v6975_v60 = vpop.f32.mrb[74].mxu0  ;;  %v7121_v54 = vpop.f32.mrb[122].mxu1  ;;  %8448 = vmatprep.subr.bf16.mxu0 %v11360_v50 }
0x1a84   : > { %v9870_v18 = vmul.f32 -1.702, %v15364_v20  ;;  %v9874_v12 = vmul.f32 -1.702, %v15367_v55  ;;  %v15380_v43 = vadd.f32 %v6975_v60, %v15217_v17  ;;  %v15383_v36 = vadd.f32 %v7121_v54, %v15222_v63  ;;  %v6977_v16 = vpop.f32.mrb[75].mxu0  ;;  %v7123_v33 = vpop.f32.mrb[123].mxu1 }
0x1a85   : > { %v9871_v10 = vmul.f32 -1.702, %v15370_v14  ;;  %v9875_v0 = vmul.f32 -1.702, %v15373_v11  ;;  %v15388_v23 = vadd.f32 %v6977_v16, %v15226_v41  ;;  %v15391_v30 = vadd.f32 %v7123_v33, %v15231_v48 }
0x1a86   : > { %v7369_v7 = vmul.f32 1.442695, %v9870_v18  ;;  %v7377_v56 = vmul.f32 1.442695, %v9874_v12  ;;  %v9877_v19 = vmul.f32 -1.702, %v15380_v43  ;;  %8449 = vmatpush1.bf16.msra.mxu0 %v11358_v32 }
0x1a87   : > { %v7371_v31 = vmul.f32 1.442695, %v9871_v10  ;;  %v7379_v2 = vmul.f32 1.442695, %v9875_v0  ;;  %v9881_v50 = vmul.f32 -1.702, %v15383_v36  ;;  %8450 = vmatprep.subr.bf16.mxu0 %v11363_v51 }
0x1a88   : > { %11663 = vpow2.f32 %v7369_v7  ;;  %v7383_v57 = vmul.f32 1.442695, %v9877_v19  ;;  %v9878_v8 = vmul.f32 -1.702, %v15388_v23  ;;  %v9882_v60 = vmul.f32 -1.702, %v15391_v30 }
0x1a89   : > { %11665 = vpow2.f32 %v7377_v56  ;;  %v7391_v54 = vmul.f32 1.442695, %v9881_v50  ;;  %v6981_v18 = vpop.f32.mrb[76].mxu0  ;;  %v7127_v12 = vpop.f32.mrb[124].mxu1  ;;  %v11364_v50 = vld [vmem:[%s13658_s3 + $0x1f0] ss:$8 sps:$4 sm:$0xff]  }
0x1a8a   : > { %11667 = vpow2.f32 %v7371_v31  ;;  %v7385_v16 = vmul.f32 1.442695, %v9878_v8  ;;  %v7393_v33 = vmul.f32 1.442695, %v9882_v60  ;;  %v15400_v10 = vadd.f32 %v6981_v18, %v15217_v17  ;;  %v6983_v0 = vpop.f32.mrb[77].mxu0  ;;  %v7129_v32 = vpop.f32.mrb[125].mxu1  ;;  %8451 = vmatpush1.bf16.msra.mxu0 %v11361_v47 }
0x1a8b   : > { %11669 = vpow2.f32 %v7379_v2  ;;  %v15403_v7 = vadd.f32 %v7127_v12, %v15222_v63  ;;  %v15406_v51 = vadd.f32 %v6983_v0, %v15226_v41  ;;  %v15409_v56 = vadd.f32 %v7129_v32, %v15231_v48  ;;  %v6985_v19 = vpop.f32.mrb[78].mxu0  ;;  %v7131_v31 = vpop.f32.mrb[126].mxu1  ;;  %8452 = vmatprep.subr.bf16.mxu0 %v11366_v34  ;;  %v11369_v12 = vld [vmem:[%s13658_s3 + $0x204] ss:$8 sps:$4 sm:$0xff]  }
0x1a8c   : > { %11671 = vpow2.f32 %v7383_v57  ;;  %v9884_v8 = vmul.f32 -1.702, %v15400_v10  ;;  %v15414_v60 = vadd.f32 %v6985_v19, %v15217_v17  ;;  %v6987_v2 = vpop.f32.mrb[79].mxu0  ;;  %v7133_v18 = vpop.f32.mrb[127].mxu1  ;;  %v15422_v34 = vadd.f32 %v7131_v31, %v15222_v63  ;;  %v16179_v63 = vld [vmem:[#allocation65_spill] sm:$0xff] }
0x1a8d   : > { %11673 = vpow2.f32 %v7391_v54  ;;  %v9888_v0 = vmul.f32 -1.702, %v15403_v7  ;;  %v9885_v32 = vmul.f32 -1.702, %v15406_v51  ;;  %v9889_v39 = vmul.f32 -1.702, %v15409_v56 }
0x1a8e   : > { %11675 = vpow2.f32 %v7385_v16  ;;  %v7397_v47 = vmul.f32 1.442695, %v9884_v8  ;;  %v9891_v57 = vmul.f32 -1.702, %v15414_v60  ;;  %8453 = vmatpush1.bf16.msra.mxu0 %v11364_v50  ;;  %v15425_v54 = vadd.f32 %v6987_v2, %v15226_v41 }
0x1a8f   : > { %11677 = vpow2.f32 %v7393_v33  ;;  %v7405_v59 = vmul.f32 1.442695, %v9888_v0  ;;  %v7399_v52 = vmul.f32 1.442695, %v9885_v32  ;;  %v7407_v17 = vmul.f32 1.442695, %v9889_v39  ;;  %8495 = vmatprep.subr.bf16.mxu0 %v11369_v12 }
0x1a90   : > { %11679 = vpow2.f32 %v7397_v47  ;;  %v7411_v19 = vmul.f32 1.442695, %v9891_v57  ;;  %v15429_v33 = vrot.slane %v15213_v35, %v16178_v22  ;;  %v15433_v31 = vrot.slane %v15213_v35, %v16179_v63 }
0x1a91   : > { %11681 = vpow2.f32 %v7405_v59  ;;  %v7024_v25 = vpop.f32.mrb[80].mxu0  ;;  %v10128_v16 = vpop.f32.mrb[128].mxu1  ;;  %v15437_v47 = vadd.f32 %v7133_v18, %v15231_v48  ;;  %v16180_v18 = vsub.s32 6, %v16167_v42 }
0x1a92   : > { %v11664_v8 = vpop.eup %11663  ;;  %11683 = vpow2.f32 %v7399_v52  ;;  %v7026_v39 = vpop.f32.mrb[81].mxu0  ;;  %v9895_v52 = vmul.f32 -1.702, %v15422_v34  ;;  %v15441_v13 = vadd.f32 %v7024_v25, %v15429_v33 }
0x1a93   : > { %v10129_v50 = vpop.f32.mrb[129].mxu1  ;;  %v11666_v0 = vpop.eup %11665  ;;  %v7453_v32 = vadd.f32 1.0, %v11664_v8  ;;  %11685 = vpow2.f32 %v7407_v17  ;;  %v9892_v17 = vmul.f32 -1.702, %v15425_v54  ;;  %v15444_v48 = vadd.f32 %v7026_v39, %v15433_v31 }
0x1a94   : > { %v7028_v59 = vpop.f32.mrb[82].mxu0  ;;  %v10131_v41 = vpop.f32.mrb[130].mxu1  ;;  %v7457_v12 = vadd.f32 1.0, %v11666_v0  ;;  %11687 = vpow2.f32 %v7411_v19  ;;  %v10130_v0 = vadd.f32 %v10129_v50, %v10128_v16 }
0x1a95   : > { %v11668_v2 = vpop.eup %11667  ;;  %v7030_v22 = vpop.f32.mrb[83].mxu0  ;;  %11689 = vrcp.f32 %v7453_v32  ;;  %v15449_v32 = vrot.slane %v15213_v35, %v16180_v18  ;;  %v7413_v35 = vmul.f32 1.442695, %v9892_v17  ;;  %v9844_v18 = vmul.f32 -1.702, %v15441_v13 }
0x1a96   : > { %v11670_v57 = vpop.eup %11669  ;;  %v7454_v37 = vadd.f32 1.0, %v11668_v2  ;;  %v10132_v8 = vpop.f32.mrb[131].mxu1  ;;  %11691 = vrcp.f32 %v7457_v12  ;;  %v7419_v12 = vmul.f32 1.442695, %v9895_v52  ;;  %v9845_v46 = vmul.f32 -1.702, %v15444_v48 }
0x1a97   : > { %v11672_v58 = vpop.eup %11671  ;;  %v7458_v63 = vadd.f32 1.0, %v11670_v57  ;;  %v9896_v57 = vmul.f32 -1.702, %v15437_v47 }
0x1a98   : > { %v11674_v19 = vpop.eup %11673  ;;  %11693 = vrcp.f32 %v7454_v37  ;;  %v7460_v61 = vadd.f32 1.0, %v11672_v58  ;;  %v15453_v37 = vadd.f32 %v7028_v59, %v15429_v33  ;;  %v10133_v58 = vadd.f32 %v10132_v8, %v10131_v41 }
0x1a99   : > { %v11676_v2 = vpop.eup %11675  ;;  %11695 = vrcp.f32 %v7458_v63  ;;  %v7464_v3 = vadd.f32 1.0, %v11674_v19  ;;  %v7034_v39 = vpop.f32.mrb[84].mxu0  ;;  %v7319_v40 = vmul.f32 1.442695, %v9845_v46 }
0x1a9a   : > { %v11678_v25 = vpop.eup %11677  ;;  %11697 = vrcp.f32 %v7460_v61  ;;  %v7461_v16 = vadd.f32 1.0, %v11676_v2  ;;  %v10134_v50 = vpop.f32.mrb[132].mxu1  ;;  %v15458_v61 = vadd.f32 %v10130_v0, %v15449_v32  ;;  %v15464_v17 = vadd.f32 %v10133_v58, %v15449_v32 }
0x1a9b   : > { %v11680_v45 = vpop.eup %11679  ;;  %11699 = vrcp.f32 %v7464_v3  ;;  %v7465_v42 = vadd.f32 1.0, %v11678_v25  ;;  %v7036_v63 = vpop.f32.mrb[85].mxu0  ;;  %v15461_v3 = vadd.f32 %v7030_v22, %v15433_v31 }
0x1a9c   : > { %v11682_v19 = vpop.eup %11681  ;;  %11701 = vrcp.f32 %v7461_v16  ;;  %v7467_v52 = vadd.f32 1.0, %v11680_v45  ;;  %v10135_v59 = vpop.f32.mrb[133].mxu1  ;;  %v9851_v16 = vmul.f32 -1.702, %v15453_v37  ;;  %v9848_v58 = vmul.f32 -1.702, %v15458_v61 }
0x1a9d   : > { %v7038_v2 = vpop.f32.mrb[86].mxu0  ;;  %v11684_v41 = vpop.eup %11683  ;;  %11703 = vrcp.f32 %v7465_v42  ;;  %v7471_v8 = vadd.f32 1.0, %v11682_v19  ;;  %v15468_v42 = vadd.f32 %v7034_v39, %v15429_v33  ;;  %v10136_v19 = vadd.f32 %v10135_v59, %v10134_v50 }
0x1a9e   : > { %v10137_v25 = vpop.f32.mrb[134].mxu1  ;;  %v11686_v38 = vpop.eup %11685  ;;  %11705 = vrcp.f32 %v7467_v52  ;;  %v7468_v45 = vadd.f32 1.0, %v11684_v41  ;;  %v15472_v6 = vadd.f32 %v7036_v63, %v15433_v31  ;;  %v7421_v41 = vmul.f32 1.442695, %v9896_v57 }
0x1a9f   : > { %v7040_v53 = vpop.f32.mrb[87].mxu0  ;;  %v10138_v0 = vpop.f32.mrb[135].mxu1  ;;  %11707 = vrcp.f32 %v7471_v8  ;;  %v7472_v49 = vadd.f32 1.0, %v11686_v38  ;;  %v9852_v15 = vmul.f32 -1.702, %v15461_v3  ;;  %v15477_v50 = vadd.f32 %v10136_v19, %v15449_v32 }
0x1aa0   : > { %v11688_v62 = vpop.eup %11687  ;;  %11709 = vrcp.f32 %v7468_v45  ;;  %v9855_v8 = vmul.f32 -1.702, %v15464_v17  ;;  %v7317_v39 = vmul.f32 1.442695, %v9844_v18  ;;  %v7331_v63 = vmul.f32 1.442695, %v9851_v16 }
0x1aa1   : > { %v11690_v22 = vpop.eup %11689  ;;  %v7474_v27 = vadd.f32 1.0, %v11688_v62  ;;  %11711 = vrcp.f32 %v7472_v49  ;;  %v7044_v62 = vpop.f32.mrb[88].mxu0  ;;  %v9858_v26 = vmul.f32 -1.702, %v15468_v42  ;;  %v15481_v49 = vadd.f32 %v7038_v2, %v15429_v33 }
0x1aa2   : > { %v11692_v52 = vpop.eup %11691  ;;  %v10140_v59 = vpop.f32.mrb[136].mxu1  ;;  %v9859_v46 = vmul.f32 -1.702, %v15472_v6  ;;  %v15485_v18 = vadd.f32 %v7040_v53, %v15433_v31  ;;  %v7333_v16 = vmul.f32 1.442695, %v9852_v15  ;;  %v10139_v9 = vadd.f32 %v10138_v0, %v10137_v25 }
0x1aa3   : > { %v11694_v38 = vpop.eup %11693  ;;  %11713 = vrcp.f32 %v7474_v27  ;;  %v7046_v57 = vpop.f32.mrb[89].mxu0  ;;  %v7325_v27 = vmul.f32 1.442695, %v9848_v58  ;;  %v7339_v1 = vmul.f32 1.442695, %v9855_v8  ;;  %v15495_v58 = vmul.f32 %v11692_v52, %v15367_v55 }
0x1aa4   : > { %v11696_v45 = vpop.eup %11695  ;;  %11715 = vpow2.f32 %v7419_v12  ;;  %v10141_v28 = vpop.f32.mrb[137].mxu1  ;;  %v9862_v53 = vmul.f32 -1.702, %v15477_v50  ;;  %v15499_v4 = vmul.f32 %v11694_v38, %v15370_v14  ;;  %v7345_v15 = vmul.f32 1.442695, %v9858_v26 }
0x1aa5   : > { %v11698_v21 = vpop.eup %11697  ;;  %11717 = vpow2.f32 %v7413_v35  ;;  %v15487_v19 = vpop.f32.mrb[90].mxu0  ;;  %v15492_v35 = vmul.f32 %v11690_v22, %v15364_v20  ;;  %v9865_v25 = vmul.f32 -1.702, %v15481_v49  ;;  %v7347_v20 = vmul.f32 1.442695, %v9859_v46 }
0x1aa6   : > { %v10143_v24 = vpop.f32.mrb[138].mxu1  ;;  %v11700_v12 = vpop.eup %11699  ;;  %11719 = vpow2.f32 %v7421_v41  ;;  %v15503_v41 = vmul.f32 %v11696_v45, %v15373_v11  ;;  %v9866_v55 = vmul.f32 -1.702, %v15485_v18  ;;  %v15507_v52 = vmul.f32 %v11698_v21, %v15380_v43 }
0x1aa7   : > { %v15489_v2 = vpop.f32.mrb[91].mxu0  ;;  %v10144_v44 = vpop.f32.mrb[139].mxu1  ;;  %11721 = vpow2.f32 %v7317_v39  ;;  %v15510_v14 = vadd.f32 %v10139_v9, %v15449_v32  ;;  %v15513_v26 = vadd.f32 %v7044_v62, %v15429_v33  ;;  %v7353_v8 = vmul.f32 1.442695, %v9862_v53 }
0x1aa8   : > { %v11702_v5 = vpop.eup %11701  ;;  %11723 = vpow2.f32 %v7319_v40  ;;  %v15516_v11 = vadd.f32 %v7046_v57, %v15433_v31  ;;  %v10142_v38 = vadd.f32 %v10141_v28, %v10140_v59  ;;  %v15523_v43 = vmul.f32 %v11700_v12, %v15383_v36 }
0x1aa9   : > { %v11704_v29 = vpop.eup %11703  ;;  %11725 = vpow2.f32 %v7325_v27  ;;  %16181 = vst [vmem:[#allocation64_spill] sm:$0xff] %v15510_v14  ;;  %16182 = vst [vmem:[#allocation65_spill] sm:$0xff] %v15513_v26  ;;  %v15518_v39 = vpop.f32.mrb[92].mxu0  ;;  %v7629_v9 = vmul.f32 %v11702_v5, %v15388_v23  ;;  %v7359_v62 = vmul.f32 1.442695, %v9865_v25  ;;  %v10145_v25 = vadd.f32 %v10144_v44, %v10143_v24 }
0x1aaa   : > { %v11706_v0 = vpop.eup %11705  ;;  %11727 = vpow2.f32 %v7331_v63  ;;  %v15520_v45 = vpop.f32.mrb[140].mxu1  ;;  %v15529_v57 = vmul.f32 %v11704_v29, %v15391_v30  ;;  %v15534_v59 = vmul.f32 1.442695, %v9866_v55  ;;  %v9869_v23 = vmul.f32 -1.702, %v15510_v14 }
0x1aab   : > { %v11708_v22 = vpop.eup %11707  ;;  %11729 = vpow2.f32 %v7333_v16  ;;  %v15526_v63 = vpop.f32.mrb[93].mxu0  ;;  %v15532_v28 = vmul.f32 %v11706_v0, %v15400_v10  ;;  %v9872_v29 = vmul.f32 -1.702, %v15513_v26  ;;  %v15558_v14 = vadd.f32 %v15487_v19, %v15429_v33 }
0x1aac   : > { %v11710_v40 = vpop.eup %11709  ;;  %11731 = vpow2.f32 %v7339_v1  ;;  %v10147_v27 = vpop.f32.mrb[141].mxu1  ;;  %v15541_v1 = vmul.f32 %v11708_v22, %v15403_v7  ;;  %v7664_v19 = vpack.c.bf16 %v7629_v9, %v15499_v4  ;;  %v15578_v4 = vadd.f32 %v10145_v25, %v15449_v32 }
0x1aad   : > { %v11712_v21 = vpop.eup %11711  ;;  %11733 = vpow2.f32 %v7345_v15  ;;  %v15536_v16 = vpop.f32.mrb[94].mxu0  ;;  %v9873_v15 = vmul.f32 -1.702, %v15516_v11  ;;  %v15551_v55 = vmul.f32 %v11710_v40, %v15406_v51  ;;  %v15564_v51 = vmul.f32 1.442695, %v9869_v23 }
0x1aae   : > { %v11714_v46 = vpop.eup %11713  ;;  %v15538_v36 = vpop.f32.mrb[142].mxu1  ;;  %11735 = vpow2.f32 %v7347_v20  ;;  %v15554_v20 = vadd.f32 %v10142_v38, %v15449_v32  ;;  %v15566_v40 = vmul.f32 1.442695, %v9872_v29  ;;  %8401 = vmatprep.mubr.bf16.mxu0 %v7664_v19  ;;  %v10148_v9 = vadd.f32 %v10147_v27, %v15520_v45 }
0x1aaf   : > { %v11716_v5 = vpop.eup %11715  ;;  %v15545_v30 = vpop.f32.mrb[95].mxu0  ;;  %11737 = vpow2.f32 %v7353_v8  ;;  %v15562_v8 = vadd.f32 %v15489_v2, %v15433_v31  ;;  %v15588_v25 = vadd.f32 %v15526_v63, %v15433_v31 }
0x1ab0   : > { %v15547_v10 = vpop.f32.mrb[143].mxu1  ;;  %v11718_v12 = vpop.eup %11717  ;;  %v7478_v53 = vadd.f32 1.0, %v11716_v5  ;;  %11739 = vpow2.f32 %v7359_v62  ;;  %v15569_v62 = vmul.f32 %v11712_v21, %v15409_v56  ;;  %v9876_v2 = vmul.f32 -1.702, %v15554_v20 }
0x1ab1   : > { %v11720_v0 = vpop.eup %11719  ;;  %v7475_v7 = vadd.f32 1.0, %v11718_v12  ;;  %v9880_v56 = vmul.f32 -1.702, %v15562_v8  ;;  %v15596_v63 = vadd.f32 %v15547_v10, %v15538_v36 }
0x1ab2   : > { %v11722_v22 = vpop.eup %11721  ;;  %11741 = vrcp.f32 %v7478_v53  ;;  %v7479_v26 = vadd.f32 1.0, %v11720_v0  ;;  %v7663_v0 = vpack.c.bf16 %v15507_v52, %v15492_v35  ;;  %v7642_v35 = vmul.f32 %v11714_v46, %v15414_v60 }
0x1ab3   : > { %v11724_v44 = vpop.eup %11723  ;;  %11743 = vrcp.f32 %v7475_v7  ;;  %v7427_v24 = vadd.f32 1.0, %v11722_v22  ;;  %v9879_v7 = vmul.f32 -1.702, %v15558_v14  ;;  %v7381_v27 = vmul.f32 1.442695, %v9876_v2 }
0x1ab4   : > { %v11726_v38 = vpop.eup %11725  ;;  %11745 = vrcp.f32 %v7479_v26  ;;  %v7428_v5 = vadd.f32 1.0, %v11724_v44  ;;  %8402 = vmatmul.mubr.bf16.gmra.mrb[104].mxu0 %v7663_v0  ;;  %v7375_v44 = vmul.f32 1.442695, %v9873_v15  ;;  %v7389_v15 = vmul.f32 1.442695, %v9880_v56 }
0x1ab5   : > { %v11728_v12 = vpop.eup %11727  ;;  %11747 = vrcp.f32 %v7427_v24  ;;  %v7431_v53 = vadd.f32 1.0, %v11726_v38  ;;  %v15602_v56 = vadd.f32 %v15536_v16, %v15429_v33  ;;  %v7670_v36 = vpack.c.bf16 %v7642_v35, %v15532_v28 }
0x1ab6   : > { %v11730_v23 = vpop.eup %11729  ;;  %11749 = vrcp.f32 %v7428_v5  ;;  %v7434_v29 = vadd.f32 1.0, %v11728_v12  ;;  %v15584_v5 = vadd.f32 %v15518_v39, %v15429_v33  ;;  %v7387_v12 = vmul.f32 1.442695, %v9879_v7 }
0x1ab7   : > { %v11732_v26 = vpop.eup %11731  ;;  %11751 = vrcp.f32 %v7431_v53  ;;  %v7435_v21 = vadd.f32 1.0, %v11730_v23  ;;  %v9883_v53 = vmul.f32 -1.702, %v15578_v4  ;;  %v15592_v39 = vadd.f32 %v10148_v9, %v15449_v32 }
0x1ab8   : > { %v11734_v22 = vpop.eup %11733  ;;  %11753 = vrcp.f32 %v7434_v29  ;;  %v7438_v52 = vadd.f32 1.0, %v11732_v26  ;;  %v9886_v2 = vmul.f32 -1.702, %v15584_v5  ;;  %v9887_v7 = vmul.f32 -1.702, %v15588_v25 }
0x1ab9   : > { %v11736_v24 = vpop.eup %11735  ;;  %11755 = vrcp.f32 %v7435_v21  ;;  %v7441_v38 = vadd.f32 1.0, %v11734_v22  ;;  %v7668_v33 = vpack.c.bf16 %v15529_v57, %v15503_v41  ;;  %v9890_v16 = vmul.f32 -1.702, %v15592_v39  ;;  %v11430_v41 = vld [vmem:[%s13658_s3 + $0x350] ss:$8 sps:$4 sm:$0xff]  }
0x1aba   : > { %v11738_v19 = vpop.eup %11737  ;;  %11757 = vrcp.f32 %v7438_v52  ;;  %v7442_v45 = vadd.f32 1.0, %v11736_v24  ;;  %v15615_v52 = vadd.f32 %v15545_v30, %v15433_v31  ;;  %v7403_v24 = vmul.f32 1.442695, %v9887_v7  ;;  %v11367_v7 = vld [vmem:[%s13658_s3 + $0x200] ss:$8 sps:$4 sm:$0xff]  }
0x1abb   : > { %v11740_v60 = vpop.eup %11739  ;;  %11759 = vrcp.f32 %v7441_v38  ;;  %v7445_v46 = vadd.f32 1.0, %v11738_v19  ;;  %v11435_v57 = vld [vmem:[%s13658_s3 + $0x364] ss:$8 sps:$4 sm:$0xff]  }
0x1abc   : > { %v11742_v0 = vpop.eup %11741  ;;  %11761 = vrcp.f32 %v7442_v45  ;;  %v7448_v23 = vadd.f32 1.0, %v11740_v60  ;;  %v9894_v45 = vmul.f32 -1.702, %v15615_v52 }
0x1abd   : > { %v11744_v29 = vpop.eup %11743  ;;  %11763 = vrcp.f32 %v7445_v46  ;;  %v15605_v21 = vmul.f32 %v11742_v0, %v15422_v34 }
0x1abe   : > { %v11746_v26 = vpop.eup %11745  ;;  %v7643_v9 = vmul.f32 %v11744_v29, %v15425_v54  ;;  %11765 = vrcp.f32 %v7448_v23  ;;  %v7395_v54 = vmul.f32 1.442695, %v9883_v53  ;;  %v7409_v53 = vmul.f32 1.442695, %v9890_v16 }
0x1abf   : > { %v11748_v10 = vpop.eup %11747  ;;  %v15610_v22 = vmul.f32 %v11746_v26, %v15437_v47  ;;  %11767 = vpow2.f32 %v15534_v59  ;;  %v7401_v47 = vmul.f32 1.442695, %v9886_v2  ;;  %v7667_v59 = vpack.c.bf16 %v15523_v43, %v15495_v58  ;;  %v11436_v58 = vld [vmem:[%s13658_s3 + $0x370] ss:$8 sps:$4 sm:$0xff]  }
0x1ac0   : > { %v11750_v34 = vpop.eup %11749  ;;  %11769 = vpow2.f32 %v15564_v51  ;;  %v7671_v28 = vpack.c.bf16 %v7643_v9, %v15551_v55  ;;  %v9893_v51 = vmul.f32 -1.702, %v15602_v56  ;;  %v7674_v38 = vpack.c.bf16 %v15605_v21, %v15541_v1  ;;  %v11372_v9 = vld [vmem:[%s13658_s3 + $0x214] ss:$8 sps:$4 sm:$0xff]   ;;  %v8657_v1 = vld [vmem:[%s1278_s6] sm:$0x3] }
0x1ac1   : > { %v11752_v35 = vpop.eup %11751  ;;  %11771 = vpow2.f32 %v15566_v40  ;;  %v7675_v31 = vpack.c.bf16 %v15610_v22, %v15569_v62  ;;  %v7595_v19 = vmul.f32 %v11748_v10, %v15441_v13  ;;  %v7596_v46 = vmul.f32 %v11750_v34, %v15444_v48  ;;  %v16197_v62 = vld [vmem:[#allocation62_spill] sm:$0xff] }
0x1ac2   : > { %v11754_v30 = vpop.eup %11753  ;;  %11773 = vpow2.f32 %v7375_v44  ;;  %8411 = vmatprep.mubr.bf16.mxu0 %v7671_v28  ;;  %v15636_v23 = vmul.f32 %v11752_v35, %v15458_v61  ;;  %v11370_v35 = vld [vmem:[%s13658_s3 + $0x210] ss:$8 sps:$4 sm:$0xff]   ;;  %v12777_v43 = vmov 0   ;;  %v8662_v21 = vrot.slane %v8657_v1, %v16197_v62  ;;  %v16214_v62 = vld [vmem:[#allocation81_spill] sm:$0xff] }
0x1ac3   : > { %v11756_v55 = vpop.eup %11755  ;;  %v7602_v40 = vmul.f32 %v11754_v30, %v15453_v37  ;;  %11775 = vpow2.f32 %v7381_v27  ;;  %8412 = vmatmul.mubr.bf16.gmra.mrb[108].mxu0 %v7670_v36  ;;  %v7415_v27 = vmul.f32 1.442695, %v9893_v51  ;;  %v15660_v30 = vadd.f32 %v15596_v63, %v15449_v32  ;;  %v11378_v63 = vld [vmem:[%s13658_s3 + $0x234] ss:$8 sps:$4 sm:$0xff]  }
0x1ac4   : > { %v11758_v60 = vpop.eup %11757  ;;  %v7603_v44 = vmul.f32 %v11756_v55, %v15461_v3  ;;  %11777 = vpow2.f32 %v7387_v12  ;;  %v7417_v12 = vmul.f32 1.442695, %v9894_v45 }
0x1ac5   : > { %v11760_v0 = vpop.eup %11759  ;;  %v7651_v29 = vpack.c.bf16 %v7602_v40, %v7595_v19  ;;  %v15639_v13 = vmul.f32 %v11758_v60, %v15464_v17  ;;  %11779 = vpow2.f32 %v7389_v15  ;;  %v9897_v32 = vmul.f32 -1.702, %v15660_v30 }
0x1ac6   : > { %v15641_v37 = vpop.eup %11761  ;;  %11781 = vpow2.f32 %v7395_v54  ;;  %v7652_v48 = vpack.c.bf16 %v7603_v44, %v7596_v46  ;;  %v15649_v15 = vmul.f32 %v11760_v0, %v15468_v42  ;;  %v11373_v46 = vld [vmem:[%s13658_s3 + $0x220] ss:$8 sps:$4 sm:$0xff]  }
0x1ac7   : > { %v15643_v2 = vpop.eup %11763  ;;  %v7655_v3 = vpack.c.bf16 %v15639_v13, %v15636_v23  ;;  %11783 = vpow2.f32 %v7401_v47 }
0x1ac8   : > { %v11766_v61 = vpop.eup %11765  ;;  %11785 = vpow2.f32 %v7403_v24  ;;  %8454 = vmatprep.mubr.bf16.mxu0 %v7652_v48  ;;  %v11375_v24 = vld [vmem:[%s13658_s3 + $0x224] ss:$8 sps:$4 sm:$0xff]  }
0x1ac9   : > { %v11768_v17 = vpop.eup %11767  ;;  %v15652_v26 = vmul.f32 %v11766_v61, %v15481_v49  ;;  %11787 = vpow2.f32 %v7409_v53  ;;  %v11376_v61 = vld [vmem:[%s13658_s3 + $0x230] ss:$8 sps:$4 sm:$0xff]  }
0x1aca   : > { %v11770_v36 = vpop.eup %11769  ;;  %v7449_v10 = vadd.f32 1.0, %v11768_v17  ;;  %11789 = vpow2.f32 %v7415_v27 }
0x1acb   : > { %v11772_v34 = vpop.eup %11771  ;;  %v7452_v54 = vadd.f32 1.0, %v11770_v36  ;;  %11791 = vpow2.f32 %v7417_v12  ;;  %8455 = vmatmul.mubr.bf16.vlgmr.msra.gmra.mrb[96].mxu0 %v7651_v29  ;;  %v7658_v16 = vpack.c.bf16 %v15652_v26, %v15649_v15  ;;  %v11381_v36 = vld [vmem:[%s13658_s3 + $0x244] ss:$8 sps:$4 sm:$0xff]  }
0x1acc   : > { %v11774_v28 = vpop.eup %11773  ;;  %11793 = vrcp.f32 %v7449_v10  ;;  %v7455_v42 = vadd.f32 1.0, %v11772_v34  ;;  %8496 = vmatpush1.bf16.msra.mxu0 %v11367_v7 }
0x1acd   : > { %v11776_v49 = vpop.eup %11775  ;;  %11795 = vrcp.f32 %v7452_v54  ;;  %v7456_v47 = vadd.f32 1.0, %v11774_v28  ;;  %8497 = vmatprep.subr.bf16.mxu0 %v11372_v9  ;;  %v7423_v9 = vmul.f32 1.442695, %v9897_v32  ;;  %v7610_v28 = vmul.f32 %v15641_v37, %v15472_v6  ;;  %v11384_v37 = vld [vmem:[%s13658_s3 + $0x254] ss:$8 sps:$4 sm:$0xff]  }
0x1ace   : > { %v11778_v51 = vpop.eup %11777  ;;  %11797 = vrcp.f32 %v7455_v42  ;;  %v7459_v55 = vadd.f32 1.0, %v11776_v49  ;;  %v15673_v49 = vmul.f32 %v15643_v2, %v15477_v50  ;;  %v16184_v2 = vld [vmem:[#allocation65_spill] sm:$0xff]  ;;  %v11382_v32 = vld [vmem:[%s13658_s3 + $0x250] ss:$8 sps:$4 sm:$0xff]  }
0x1acf   : > { %v11780_v19 = vpop.eup %11779  ;;  %11799 = vrcp.f32 %v7456_v47  ;;  %v7462_v40 = vadd.f32 1.0, %v11778_v51  ;;  %v16183_v47 = vld [vmem:[#allocation64_spill] sm:$0xff] }
0x1ad0   : > { %v11782_v45 = vpop.eup %11781  ;;  %11801 = vrcp.f32 %v7459_v55  ;;  %v7463_v60 = vadd.f32 1.0, %v11780_v19  ;;  %8498 = vmatpush1.bf16.msra.mxu0 %v11370_v35  ;;  %v11379_v19 = vld [vmem:[%s13658_s3 + $0x240] ss:$8 sps:$4 sm:$0xff]  }
0x1ad1   : > { %v11784_v44 = vpop.eup %11783  ;;  %11803 = vrcp.f32 %v7462_v40  ;;  %v7466_v53 = vadd.f32 1.0, %v11782_v45  ;;  %8499 = vmatprep.subr.bf16.mxu0 %v11375_v24 }
0x1ad2   : > { %v11786_v0 = vpop.eup %11785  ;;  %11805 = vrcp.f32 %v7463_v60  ;;  %v7469_v29 = vadd.f32 1.0, %v11784_v44 }
0x1ad3   : > { %v11788_v27 = vpop.eup %11787  ;;  %11807 = vrcp.f32 %v7466_v53  ;;  %v7470_v48 = vadd.f32 1.0, %v11786_v0 }
0x1ad4   : > { %v11790_v12 = vpop.eup %11789  ;;  %8500 = vmatpush1.bf16.msra.mxu0 %v11373_v46  ;;  %11809 = vrcp.f32 %v7469_v29 }
0x1ad5   : > { %v11792_v7 = vpop.eup %11791  ;;  %v7476_v17 = vadd.f32 1.0, %v11790_v12  ;;  %8501 = vmatprep.subr.bf16.mxu0 %v11378_v63  ;;  %11811 = vrcp.f32 %v7470_v48  ;;  %v7473_v48 = vadd.f32 1.0, %v11788_v27 }
0x1ad6   : > { %v11794_v10 = vpop.eup %11793  ;;  %v7477_v34 = vadd.f32 1.0, %v11792_v7  ;;  %v11390_v7 = vld [vmem:[%s13658_s3 + $0x274] ss:$8 sps:$4 sm:$0xff]  }
0x1ad7   : > { %v11796_v54 = vpop.eup %11795  ;;  %v7617_v42 = vmul.f32 %v11794_v10, %v15485_v18  ;;  %11813 = vrcp.f32 %v7476_v17 }
0x1ad8   : > { %v11798_v35 = vpop.eup %11797  ;;  %v15676_v24 = vmul.f32 %v11796_v54, %v16183_v47  ;;  %11815 = vrcp.f32 %v7477_v34  ;;  %8502 = vmatpush1.bf16.msra.mxu0 %v11376_v61  ;;  %v11391_v54 = vld [vmem:[%s13658_s3 + $0x280] ss:$8 sps:$4 sm:$0xff]  }
0x1ad9   : > { %v11800_v51 = vpop.eup %11799  ;;  %11817 = vpow2.f32 %v7423_v9  ;;  %v7659_v55 = vpack.c.bf16 %v7617_v42, %v7610_v28  ;;  %8503 = vmatprep.subr.bf16.mxu0 %v11381_v36  ;;  %v7623_v45 = vmul.f32 %v11798_v35, %v16184_v2  ;;  %v16186_v28 = vld [vmem:[#allocation83_spill] sm:$0xff] }
0x1ada   : > { %v11802_v6 = vpop.eup %11801  ;;  %v7662_v18 = vpack.c.bf16 %v15676_v24, %v15673_v49  ;;  %v7624_v44 = vmul.f32 %v11800_v51, %v15516_v11  ;;  %11819 = vrcp.f32 %v7473_v48  ;;  %v11394_v35 = vld [vmem:[%s13658_s3 + $0x290] ss:$8 sps:$4 sm:$0xff]   ;;  %v11399_v51 = vld [vmem:[%s13658_s3 + $0x2a4] ss:$8 sps:$4 sm:$0xff]  }
0x1adb   : > { %v11804_v40 = vpop.eup %11803  ;;  %8464 = vmatprep.mubr.bf16.mxu0 %v7659_v55  ;;  %v15691_v63 = vmul.f32 %v11802_v6, %v15554_v20  ;;  %v11385_v20 = vld [vmem:[%s13658_s3 + $0x260] ss:$8 sps:$4 sm:$0xff]   ;;  %v11400_v2 = vld [vmem:[%s13658_s3 + $0x2b0] ss:$8 sps:$4 sm:$0xff]  }
0x1adc   : > { %v11806_v50 = vpop.eup %11805  ;;  %v7630_v60 = vmul.f32 %v11804_v40, %v15558_v14  ;;  %8465 = vmatmul.mubr.bf16.gmra.mrb[100].mxu0 %v7658_v16  ;;  %v11387_v14 = vld [vmem:[%s13658_s3 + $0x264] ss:$8 sps:$4 sm:$0xff]   ;;  %v11402_v40 = vld [vmem:[%s13658_s3 + $0x2b4] ss:$8 sps:$4 sm:$0xff]  }
0x1add   : > { %v11808_v46 = vpop.eup %11807  ;;  %v7631_v53 = vmul.f32 %v11806_v50, %v15562_v8  ;;  %8504 = vmatpush1.bf16.msra.mxu0 %v11379_v19 }
0x1ade   : > { %v15694_v0 = vmul.f32 %v11808_v46, %v15578_v4  ;;  %v7665_v29 = vpack.c.bf16 %v7630_v60, %v7623_v45  ;;  %8505 = vmatprep.subr.bf16.mxu0 %v11384_v37  ;;  %v11810_v15 = vpop.eup %11809  ;;  %v11397_v37 = vld [vmem:[%s13658_s3 + $0x2a0] ss:$8 sps:$4 sm:$0xff]   ;;  %v11406_v60 = vld [vmem:[%s13658_s3 + $0x2d0] ss:$8 sps:$4 sm:$0xff]   ;;  %v11411_v46 = vld [vmem:[%s13658_s3 + $0x2e4] ss:$8 sps:$4 sm:$0xff]  }
0x1adf   : > { %v7666_v26 = vpack.c.bf16 %v7631_v53, %v7624_v44  ;;  %v11812_v16 = vpop.eup %11811  ;;  %v7637_v4 = vmul.f32 %v11810_v15, %v15584_v5  ;;  %v11388_v5 = vld [vmem:[%s13658_s3 + $0x270] ss:$8 sps:$4 sm:$0xff]   ;;  %v11403_v45 = vld [vmem:[%s13658_s3 + $0x2c0] ss:$8 sps:$4 sm:$0xff]   ;;  %v11414_v53 = vld [vmem:[%s13658_s3 + $0x2f4] ss:$8 sps:$4 sm:$0xff]  }
0x1ae0   : > { %v7669_v11 = vpack.c.bf16 %v15694_v0, %v15691_v63  ;;  %v7638_v27 = vmul.f32 %v11812_v16, %v15588_v25  ;;  %v11396_v25 = vld [vmem:[%s13658_s3 + $0x294] ss:$8 sps:$4 sm:$0xff]   ;;  %v11409_v44 = vld [vmem:[%s13658_s3 + $0x2e0] ss:$8 sps:$4 sm:$0xff]  }
0x1ae1   : > { %v11814_v8 = vpop.eup %11813  ;;  %8474 = vmatprep.mubr.bf16.mxu0 %v7666_v26  ;;  %8506 = vmatpush1.bf16.msra.mxu0 %v11382_v32  ;;  %v11412_v32 = vld [vmem:[%s13658_s3 + $0x2f0] ss:$8 sps:$4 sm:$0xff]   ;;  %v11420_v15 = vld [vmem:[%s13658_s3 + $0x314] ss:$8 sps:$4 sm:$0xff]   ;;  %v16189_v16 = vld [vmem:[#allocation61_spill] sm:$0xff] }
0x1ae2   : > { %v11816_v12 = vpop.eup %11815  ;;  %v7644_v61 = vmul.f32 %v11814_v8, %v15602_v56  ;;  %8507 = vmatprep.subr.bf16.mxu0 %v11387_v14  ;;  %v11393_v56 = vld [vmem:[%s13658_s3 + $0x284] ss:$8 sps:$4 sm:$0xff]   ;;  %v11415_v14 = vld [vmem:[%s13658_s3 + $0x300] ss:$8 sps:$4 sm:$0xff]  }
0x1ae3   : > { %v11818_v17 = vpop.eup %11817  ;;  %v7645_v9 = vmul.f32 %v11816_v12, %v15615_v52  ;;  %v16185_v52 = vld [vmem:[#allocation84_spill] sm:$0xff]  ;;  %v16188_v26 = vld [vmem:[#allocation82_spill] sm:$0xff] }
0x1ae4   : > { %v7480_v36 = vadd.f32 1.0, %v11818_v17  ;;  %8475 = vmatmul.mubr.bf16.gmra.mrb[104].mxu0 %v7665_v29  ;;  %v7672_v10 = vpack.c.bf16 %v7644_v61, %v7637_v4  ;;  %v16187_v42 = vpack.c.bf16 %v16185_v52, %v16186_v28  ;;  %v11820_v47 = vpop.eup %11819  ;;  %v11417_v29 = vld [vmem:[%s13658_s3 + $0x304] ss:$8 sps:$4 sm:$0xff]   ;;  %v16190_v48 = vpack.c.bf16 %v16188_v26, %v16189_v16  ;;  %v11418_v4 = vld [vmem:[%s13658_s3 + $0x310] ss:$8 sps:$4 sm:$0xff]  }
0x1ae5   : > { %v7673_v34 = vpack.c.bf16 %v7645_v9, %v7638_v27  ;;  %8508 = vmatpush1.bf16.msra.mxu0 %v11385_v20  ;;  %v15715_v19 = vmul.f32 %v11820_v47, %v15592_v39  ;;  %v11405_v39 = vld [vmem:[%s13658_s3 + $0x2c4] ss:$8 sps:$4 sm:$0xff]   ;;  %v16192_v20 = vld [vmem:[#allocation87_spill] sm:$0xff] }
0x1ae6   : > { %11821 = vrcp.f32 %v7480_v36  ;;  %8509 = vmatprep.subr.bf16.mxu0 %v11390_v7  ;;  %v16191_v8 = vld [vmem:[#allocation88_spill] sm:$0xff]  ;;  %v16194_v27 = vld [vmem:[#allocation86_spill] sm:$0xff]  ;;  %v16195_v9 = vld [vmem:[#allocation85_spill] sm:$0xff] }
0x1ae7   : > { %8484 = vmatprep.mubr.bf16.mxu0 %v7673_v34  ;;  %v16193_v12 = vpack.c.bf16 %v16191_v8, %v16192_v20  ;;  %v11423_v61 = vld [vmem:[%s13658_s3 + $0x324] ss:$8 sps:$4 sm:$0xff]   ;;  %v11421_v7 = vld [vmem:[%s13658_s3 + $0x320] ss:$8 sps:$4 sm:$0xff]   ;;  %v11426_v17 = vld [vmem:[%s13658_s3 + $0x334] ss:$8 sps:$4 sm:$0xff]   ;;  %v16196_v36 = vpack.c.bf16 %v16194_v27, %v16195_v9 }
0x1ae8   : > { %v11429_v34 = vld [vmem:[%s13658_s3 + $0x344] ss:$8 sps:$4 sm:$0xff]   ;;  %v16208_v26 = vld [vmem:[#allocation75_spill] sm:$0xff] }
0x1ae9   : > { %8510 = vmatpush1.bf16.msra.mxu0 %v11388_v5  ;;  %v11427_v5 = vld [vmem:[%s13658_s3 + $0x340] ss:$8 sps:$4 sm:$0xff]   ;;  %v16202_v52 = vld [vmem:[#allocation74_spill] sm:$0xff] }
0x1aea   : > { %8511 = vmatprep.subr.bf16.mxu0 %v11393_v56  ;;  %v11432_v56 = vld [vmem:[%s13658_s3 + $0x354] ss:$8 sps:$4 sm:$0xff]  }
0x1aeb   : > { %v16201_v63 = vld [vmem:[#allocation68_spill] sm:$0xff] }
0x1aec   : > { %8485 = vmatmul.mubr.bf16.gmra.mrb[108].mxu0 %v7672_v10  ;;  %v11424_v10 = vld [vmem:[%s13658_s3 + $0x330] ss:$8 sps:$4 sm:$0xff]   ;;  %v16209_v20 = vld [vmem:[#allocation76_spill] sm:$0xff] }
0x1aed   : > { %8527 = vmatprep.mubr.bf16.mxu0 %v16187_v42  ;;  %8512 = vmatpush1.bf16.msra.mxu0 %v11391_v54  ;;  %v11438_v54 = vld [vmem:[%s13658_s3 + $0x374] ss:$8 sps:$4 sm:$0xff]  }
0x1aee   : > { %8513 = vmatprep.subr.bf16.mxu0 %v11396_v25 }
0x1af0   : > { %v11822_v55 = vpop.eup %11821 }
0x1af1   : > { %v15718_v6 = vmul.f32 %v11822_v55, %v15660_v30  ;;  %8514 = vmatpush1.bf16.msra.mxu0 %v11394_v35  ;;  %v11408_v30 = vld [vmem:[%s13658_s3 + $0x2d4] ss:$8 sps:$4 sm:$0xff]  }
0x1af2   : > { %8515 = vmatprep.subr.bf16.mxu0 %v11399_v51  ;;  %v16203_v51 = vld [vmem:[#allocation67_spill] sm:$0xff] }
0x1af3   : > { %v7676_v50 = vpack.c.bf16 %v15718_v6, %v15715_v19  ;;  %v16204_v6 = vld [vmem:[#allocation66_spill] sm:$0xff] }
0x1af5   : > { %8516 = vmatpush1.bf16.msra.mxu0 %v11397_v37 }
0x1af6   : > { %8517 = vmatprep.subr.bf16.mxu0 %v11402_v40 }
0x1af9   : > { %8518 = vmatpush1.bf16.msra.mxu0 %v11400_v2  ;;  %v16205_v2 = vld [vmem:[#allocation72_spill] sm:$0xff] }
0x1afa   : > { %8519 = vmatprep.subr.bf16.mxu0 %v11405_v39 }
0x1afd   : > { %8520 = vmatpush1.bf16.msra.mxu0 %v11403_v45 }
0x1afe   : > { %8521 = vmatprep.subr.bf16.mxu0 %v11408_v30 }
0x1b01   : > { %8522 = vmatpush1.bf16.msra.mxu0 %v11406_v60  ;;  %v16206_v60 = vld [vmem:[#allocation71_spill] sm:$0xff] }
0x1b02   : > { %8523 = vmatprep.subr.bf16.mxu0 %v11411_v46 }
0x1b05   : > { %8524 = vmatpush1.bf16.msra.mxu0 %v11409_v44 }
0x1b06   : > { %8525 = vmatprep.subr.bf16.mxu0 %v11414_v53 }
0x1b09   : > { %8526 = vmatpush1.bf16.msra.mxu0 %v11412_v32 }
0x1b0a   : > { %8568 = vmatprep.subr.bf16.mxu0 %v11417_v29  ;;  %v16207_v29 = vld [vmem:[#allocation69_spill] sm:$0xff] }
0x1b0c   : > { %8528 = vmatmul.mubr.bf16.vlgmr.msra.gmra.mrb[96].mxu0 %v16190_v48 }
0x1b0d   : > { %8537 = vmatprep.mubr.bf16.mxu0 %v16193_v12  ;;  %8569 = vmatpush1.bf16.msra.mxu0 %v11415_v14 }
0x1b0e   : > { %8570 = vmatprep.subr.bf16.mxu0 %v11420_v15 }
0x1b11   : > { %8571 = vmatpush1.bf16.msra.mxu0 %v11418_v4 }
0x1b12   : > { %8572 = vmatprep.subr.bf16.mxu0 %v11423_v61 }
0x1b14   : > { %8538 = vmatmul.mubr.bf16.gmra.mrb[100].mxu0 %v16196_v36 }
0x1b15   : > { %8547 = vmatprep.mubr.bf16.mxu0 %v7668_v33  ;;  %8573 = vmatpush1.bf16.msra.mxu0 %v11421_v7  ;;  %v11433_v33 = vld [vmem:[%s13658_s3 + $0x360] ss:$8 sps:$4 sm:$0xff]  }
0x1b16   : > { %8574 = vmatprep.subr.bf16.mxu0 %v11426_v17  ;;  %v16210_v7 = vld [vmem:[#allocation77_spill] sm:$0xff] }
0x1b19   : > { %8575 = vmatpush1.bf16.msra.mxu0 %v11424_v10  ;;  %v16211_v10 = vld [vmem:[#allocation78_spill] sm:$0xff] }
0x1b1a   : > { %8576 = vmatprep.subr.bf16.mxu0 %v11429_v34 }
0x1b1c   : > { %8548 = vmatmul.mubr.bf16.gmra.mrb[104].mxu0 %v7667_v59  ;;  %v16198_v59 = vld [vmem:[#allocation63_spill] sm:$0xff] }
0x1b1d   : > { %8557 = vmatprep.mubr.bf16.mxu0 %v7675_v31  ;;  %8577 = vmatpush1.bf16.msra.mxu0 %v11427_v5  ;;  %v8666_v31 = vrot.slane %v8657_v1, %v16198_v59 }
0x1b1e   : > { %8578 = vmatprep.subr.bf16.mxu0 %v11432_v56  ;;  %v16212_v56 = vld [vmem:[#allocation79_spill] sm:$0xff] }
0x1b21   : > { %8579 = vmatpush1.bf16.msra.mxu0 %v11430_v41 }
0x1b22   : > { %8580 = vmatprep.subr.bf16.mxu0 %v11435_v57 }
0x1b24   : > { %8558 = vmatmul.mubr.bf16.gmra.mrb[108].mxu0 %v7674_v38  ;;  %v16199_v38 = vld [vmem:[#allocation73_spill] sm:$0xff] }
0x1b25   : > { %8581 = vmatpush1.bf16.msra.mxu0 %v11433_v33  ;;  %8600 = vmatprep.mubr.bf16.mxu0 %v12777_v43 }
0x1b26   : > { %8582 = vmatprep.subr.bf16.mxu0 %v11438_v54  ;;  %v16213_v54 = vld [vmem:[#allocation80_spill] sm:$0xff] }
0x1b29   : > { %8583 = vmatpush1.bf16.msra.mxu0 %v11436_v58 }
0x1b2c   : > { %8601 = vmatmul.mubr.bf16.vlgmr.msra.gmra.mrb[96].mxu0 %v7655_v3  ;;  %v16200_v3 = vld [vmem:[#allocation70_spill] sm:$0xff] }
0x1b2d   : > { %8610 = vmatprep.mubr.bf16.mxu0 %v12777_v43 }
0x1b34   : > { %8611 = vmatmul.mubr.bf16.gmra.mrb[100].mxu0 %v7662_v18 }
0x1b35   : > { %8620 = vmatprep.mubr.bf16.mxu0 %v12777_v43 }
0x1b3c   : > { %8621 = vmatmul.mubr.bf16.gmra.mrb[104].mxu0 %v7669_v11 }
0x1b3d   : > { %8630 = vmatprep.mubr.bf16.mxu0 %v12777_v43 }
0x1b44   : > { %8631 = vmatmul.mubr.bf16.gmra.mrb[108].mxu0 %v7676_v50 }
0x1bff   : > { %v8602_v22 = vpop.f32.mrb[96].mxu0 }
0x1c00   : > { %v8641_v23 = vadd.f32 %v8602_v22, %v16199_v38  ;;  %v8604_v13 = vpop.f32.mrb[97].mxu0 }
0x1c01   : > { %v8642_v49 = vadd.f32 %v8604_v13, %v16200_v3  ;;  %v8606_v24 = vpop.f32.mrb[98].mxu0  ;;  %v11855_v3 = vld [vmem:[#allocation26 + $0x40] sm:$0xff] (!%p10010_p0)  }
0x1c02   : > { %v15788_v18 = vadd.f32 %v8662_v21, %v8641_v23  ;;  %v8643_v0 = vadd.f32 %v8606_v24, %v16201_v63  ;;  %v8608_v11 = vpop.f32.mrb[99].mxu0  ;;  %v11856_v63 = vld [vmem:[#allocation26] sm:$0xff] (!%p10010_p0)   ;;  %10152 = vmatprep.subr.bf16.mxu0 (!%p10010_p0), %v11855_v3 }
0x1c03   : > { %v15791_v25 = vadd.f32 %v8666_v31, %v8642_v49  ;;  %v8644_v28 = vadd.f32 %v8608_v11, %v16202_v52  ;;  %10153 = vmatpush3.bf16.msra.mxu0 (!%p10010_p0), %v11856_v63 }
0x1c04   : > { %8685 = vst [vmem:[#allocation2] sm:$0xff] %v15788_v18  ;;  %v8671_v42 = vadd.f32 %v8662_v21, %v8643_v0 }
0x1c05   : > { %8686 = vst [vmem:[#allocation2 + $0x8] sm:$0xff] %v15791_v25  ;;  %v8672_v35 = vadd.f32 %v8666_v31, %v8644_v28 }
0x1c06   : > { %8687 = vst [vmem:[#allocation2 + $0x10] sm:$0xff] %v8671_v42 }
0x1c07   : > { %8688 = vst [vmem:[#allocation2 + $0x18] sm:$0xff] %v8672_v35  ;;  %v8612_v47 = vpop.f32.mrb[100].mxu0 }
0x1c08   : > { %v8645_v55 = vadd.f32 %v8612_v47, %v16203_v51  ;;  %v8614_v19 = vpop.f32.mrb[101].mxu0  ;;  %v11857_v47 = vld [vmem:[#allocation26 + $0x48] sm:$0xff] (!%p10010_p0)  }
0x1c09   : > { %v8646_v37 = vadd.f32 %v8614_v19, %v16204_v6  ;;  %v8616_v40 = vpop.f32.mrb[102].mxu0  ;;  %v11858_v51 = vld [vmem:[#allocation26 + $0x8] sm:$0xff] (!%p10010_p0)   ;;  %10154 = vmatprep.subr.bf16.mxu0 (!%p10010_p0), %v11857_v47  ;;  %v11862_v19 = vld [vmem:[#allocation26 + $0x18] sm:$0xff] (!%p10010_p0)   ;;  %v11863_v6 = vld [vmem:[#allocation26 + $0x60] sm:$0xff] (!%p10010_p0)  }
0x1c0a   : > { %v8673_v50 = vadd.f32 %v8662_v21, %v8645_v55  ;;  %v8647_v39 = vadd.f32 %v8616_v40, %v16205_v2  ;;  %v8618_v45 = vpop.f32.mrb[103].mxu0  ;;  %10155 = vmatpush3.bf16.msra.mxu0 (!%p10010_p0), %v11858_v51  ;;  %v11860_v55 = vld [vmem:[#allocation26 + $0x10] sm:$0xff] (!%p10010_p0)   ;;  %v11865_v40 = vld [vmem:[#allocation26 + $0x68] sm:$0xff] (!%p10010_p0)  }
0x1c0b   : > { %v8674_v30 = vadd.f32 %v8666_v31, %v8646_v37  ;;  %v8648_v46 = vadd.f32 %v8618_v45, %v16206_v60  ;;  %v11864_v37 = vld [vmem:[#allocation26 + $0x20] sm:$0xff] (!%p10010_p0)   ;;  %v11867_v2 = vld [vmem:[#allocation26 + $0x70] sm:$0xff] (!%p10010_p0)   ;;  %v11869_v45 = vld [vmem:[#allocation26 + $0x78] sm:$0xff] (!%p10010_p0)  }
0x1c0c   : > { %8689 = vst [vmem:[#allocation2 + $0x20] sm:$0xff] %v8673_v50  ;;  %v8675_v44 = vadd.f32 %v8662_v21, %v8647_v39  ;;  %v11866_v50 = vld [vmem:[#allocation26 + $0x28] sm:$0xff] (!%p10010_p0)   ;;  %v11868_v39 = vld [vmem:[#allocation26 + $0x30] sm:$0xff] (!%p10010_p0)  }
0x1c0d   : > { %8690 = vst [vmem:[#allocation2 + $0x28] sm:$0xff] %v8674_v30  ;;  %v8676_v53 = vadd.f32 %v8666_v31, %v8648_v46  ;;  %v11870_v30 = vld [vmem:[#allocation26 + $0x38] sm:$0xff] (!%p10010_p0)  }
0x1c0e   : > { %8691 = vst [vmem:[#allocation2 + $0x30] sm:$0xff] %v8675_v44 }
0x1c0f   : > { %8692 = vst [vmem:[#allocation2 + $0x38] sm:$0xff] %v8676_v53  ;;  %v8622_v32 = vpop.f32.mrb[104].mxu0 }
0x1c10   : > { %v8649_v14 = vadd.f32 %v8622_v32, %v16207_v29  ;;  %v8624_v15 = vpop.f32.mrb[105].mxu0 }
0x1c11   : > { %v8650_v16 = vadd.f32 %v8624_v15, %v16208_v26  ;;  %v8626_v48 = vpop.f32.mrb[106].mxu0  ;;  %v8714_v15 = vld [vmem:[#allocation23] sm:$0x3] (!%p10010_p0)  ;;  %v8715_v26 = vld [vmem:[#allocation25] sm:$0x3] (!%p10010_p0) }
0x1c12   : > { %v8677_v8 = vadd.f32 %v8662_v21, %v8649_v14  ;;  %v8651_v12 = vadd.f32 %v8626_v48, %v16209_v20  ;;  %v8628_v4 = vpop.f32.mrb[107].mxu0 }
0x1c13   : > { %v8678_v61 = vadd.f32 %v8666_v31, %v8650_v16  ;;  %v8652_v17 = vadd.f32 %v8628_v4, %v16210_v7 }
0x1c14   : > { %8693 = vst [vmem:[#allocation2 + $0x40] sm:$0xff] %v8677_v8  ;;  %v8679_v27 = vadd.f32 %v8662_v21, %v8651_v12  ;;  %v8707_v23 = vrot.slane (!%p10010_p0), %v8677_v8, 7  ;;  %v16216_v8 = vld [vmem:[#allocation62_spill] sm:$0xff] (!%p10010_p0)  ;;  %v16217_v12 = vld [vmem:[#allocation63_spill] sm:$0xff] (!%p10010_p0) }
0x1c15   : > { %8694 = vst [vmem:[#allocation2 + $0x48] sm:$0xff] %v8678_v61  ;;  %v8680_v9 = vadd.f32 %v8666_v31, %v8652_v17  ;;  %v8708_v13 = vrot.slane (!%p10010_p0), %v8678_v61, 7  ;;  %v8743_v20 = vrot.slane (!%p10010_p0), %v8714_v15, %v16216_v8  ;;  %v8747_v4 = vrot.slane (!%p10010_p0), %v8714_v15, %v16217_v12 }
0x1c16   : > { %8695 = vst [vmem:[#allocation2 + $0x50] sm:$0xff] %v8679_v27  ;;  %v8712_v49 = vsel (!%p10010_p0), %vm8711_vm3, %v15788_v18, %v8707_v23  ;;  %v11859_v18 = vld [vmem:[#allocation26 + $0x50] sm:$0xff] (!%p10010_p0)   ;;  %v8756_v17 = vrot.slane (!%p10010_p0), %v8715_v26, %v16216_v8  ;;  %v8760_v27 = vrot.slane (!%p10010_p0), %v8715_v26, %v16217_v12 }
0x1c17   : > { %8696 = vst [vmem:[#allocation2 + $0x58] sm:$0xff] %v8680_v9  ;;  %v8632_v36 = vpop.f32.mrb[108].mxu0  ;;  %v8713_v24 = vsel (!%p10010_p0), %vm8711_vm3, %v15791_v25, %v8708_v13  ;;  %v8717_v0 = vsel (!%p10010_p0), %vm8716_vm4, %v8712_v49, 0.0  ;;  %10156 = vmatprep.subr.bf16.mxu0 (!%p10010_p0), %v11859_v18  ;;  %v11861_v25 = vld [vmem:[#allocation26 + $0x58] sm:$0xff] (!%p10010_p0)  }
0x1c18   : > { %v8653_v34 = vadd.f32 %v8632_v36, %v16211_v10  ;;  %v8634_v5 = vpop.f32.mrb[109].mxu0  ;;  %v8718_v11 = vsel (!%p10010_p0), %vm8716_vm4, %v8713_v24, 0.0  ;;  %v8723_v52 = vmul.f32 (!%p10010_p0), %v8713_v24, %v8713_v24  ;;  %10157 = vmatpush3.bf16.msra.mxu0 (!%p10010_p0), %v11860_v55 }
0x1c19   : > { %v8654_v41 = vadd.f32 %v8634_v5, %v16212_v56  ;;  %v8636_v57 = vpop.f32.mrb[110].mxu0  ;;  %8704 = sbr.rel (%p10010_p0) target bundleno = 7587 (0x1da3), region = 236  ;;  %10158 = vmatprep.subr.bf16.mxu0 (!%p10010_p0), %v11861_v25 }
0x1c1a   : > { %v8681_v33 = vadd.f32 %v8662_v21, %v8653_v34  ;;  %v8655_v58 = vadd.f32 %v8636_v57, %v16213_v54  ;;  %v8638_v43 = vpop.f32.mrb[111].mxu0  ;;  %v8725_v42 = vsel (!%p10010_p0), %vm8716_vm4, %v8723_v52, 0.0 }
0x1c1b   : > { %v8682_v1 = vadd.f32 %v8666_v31, %v8654_v41  ;;  %v8656_v22 = vadd.f32 %v8638_v43, %v16214_v62 }
0x1c1c   : > { %8697 = vst [vmem:[#allocation2 + $0x60] sm:$0xff] %v8681_v33  ;;  %v8683_v59 = vadd.f32 %v8662_v21, %v8655_v58  ;;  %v8722_v21 = vmul.f32 (!%p10010_p0), %v8712_v49, %v8712_v49  ;;  %10159 = vmatpush3.bf16.msra.mxu0 (!%p10010_p0), %v11862_v19 }
0x1c1d   : > { %8698 = vst [vmem:[#allocation2 + $0x68] sm:$0xff] %v8682_v1  ;;  %v8684_v38 = vadd.f32 %v8666_v31, %v8656_v22  ;;  %v8719_v31 = vadd.f32 (!%p10010_p0), %v8718_v11, %v8717_v0  ;;  %10160 = vmatprep.subr.bf16.mxu0 (!%p10010_p0), %v11863_v6 }
0x1c1e   : > { %8699 = vst [vmem:[#allocation2 + $0x70] sm:$0xff] %v8683_v59  ;;  %v8724_v28 = vsel (!%p10010_p0), %vm8716_vm4, %v8722_v21, 0.0 }
0x1c1f   : > { %8700 = vst [vmem:[#allocation2 + $0x78] sm:$0xff] %v8684_v38  ;;  %8720 = vadd.xlane.f32.xlu0 (!%p10010_p0), %v8719_v31  ;;  %v8726_v35 = vadd.f32 (!%p10010_p0), %v8725_v42, %v8724_v28 }
0x1c20   : > { %10161 = vmatpush3.bf16.msra.mxu0 %v11864_v37 }
0x1c21   : > { %10162 = vmatprep.subr.bf16.mxu0 %v11865_v40 }
0x1c23   : > { %8727 = vadd.xlane.f32.xlu0 %v8726_v35 }
0x1c24   : > { %10163 = vmatpush3.bf16.msra.mxu0 %v11866_v50 }
0x1c25   : > { %10164 = vmatprep.subr.bf16.mxu0 %v11867_v2 }
0x1c28   : > { %10165 = vmatpush3.bf16.msra.mxu0 %v11868_v39 }
0x1c29   : > { %10166 = vmatprep.subr.bf16.mxu0 %v11869_v45 }
0x1c2c   : > { %10167 = vmatpush3.bf16.msra.mxu0 %v11870_v30 }
0x1cac   : > { %v8721_v60 = vpop.xlane.xlu0 %8720 }
0x1cad   : > { %v8729_v46 = vmul.f32 0.004464286, %v8721_v60 }
0x1caf   : > { %v8731_v53 = vmul.f32 %v8729_v46, %v8729_v46  ;;  %v8733_v16 = vsub.f32 %v8712_v49, %v8729_v46  ;;  %v8734_v48 = vsub.f32 %v8713_v24, %v8729_v46 }
0x1cb0   : > { %v8728_v44 = vpop.xlane.xlu0 %8727 }
0x1cb1   : > { %v8730_v32 = vmul.f32 0.004464286, %v8728_v44 }
0x1cb3   : > { %v8732_v29 = vsub.f32 %v8730_v32, %v8731_v53 }
0x1cb5   : > { %v8735_v14 = vadd.f32 1e-05, %v8732_v29 }
0x1cb7   : > { %11871 = vrsqrt.f32 %v8735_v14 }
0x1cc1   : > { %v11872_v61 = vpop.eup %11871 }
0x1cc2   : > { %v8738_v7 = vmul.f32 %v11872_v61, %v8734_v48  ;;  %v8737_v9 = vmul.f32 %v11872_v61, %v8733_v16 }
0x1cc4   : > { %v8751_v36 = vmul.f32 %v8747_v4, %v8738_v7  ;;  %v8750_v10 = vmul.f32 %v8743_v20, %v8737_v9 }
0x1cc6   : > { %v8764_v34 = vadd.f32 %v8760_v27, %v8751_v36  ;;  %v8763_v5 = vadd.f32 %v8756_v17, %v8750_v10 }
0x1cc8   : > { %v8766_v56 = vpack.c.bf16 %v8764_v34, %v8764_v34  ;;  %v8765_v41 = vpack.c.bf16 %v8763_v5, %v8763_v5 }
0x1cca   : > { %8927 = vmatprep.mubr.bf16.mxu0 %v8766_v56 }
0x1ccb   : > { %8928 = vmatmul.mubr.bf16.vlgmr.msra.gmra.mrb[0].mxu0 %v8765_v41 }
0x1d9e   : > { %v10168_v57 = vpop.f32.mrb[0].mxu0 }
0x1d9f   : > { %v10169_v33 = vpop.f32.mrb[1].mxu0 }
0x1da0   : > { %v10170_v54 = vadd.f32 %v10169_v33, %v10168_v57  ;;  %v10171_v58 = vpop.f32.mrb[2].mxu0 }
0x1da1   : > { %v10172_v43 = vpop.f32.mrb[3].mxu0 }
0x1da2   : > { %8935 = vst [vmem:[#allocation40] sm:$0x3] %v10170_v54 }
0x1da3 PF: > { %s16218_s28 = sld [smem:[#allocation55_spill]]  ;;  %s12778_s4 = smov [#allocation40]  }
0x1da4   : > { %s8945_s13 = sshll.u32 %s12778_s4, 4  ;;  %s8946_s13 = int_to_ptr.vmem [resolvable:$true] %s8945_s13 }
0x1da5   : > { %s12625_s5 = scalar_lea.vmem %s8946_s13, 32  ;;  %p12632_p9 = scmp.lt.s32.totalorder %s8946_s13, %s8946_s13 }
0x1da6   : > { %p12626_p2 = scmp.ne.s32.totalorder %s8946_s13, %s12625_s5  ;;  %p12633_p6 = scmp.lt.s32.totalorder %s12625_s5, %s12625_s5 }
0x1da8   : > { %p12634_p5 = por %p12633_p6, %p12632_p9 }
0x1da9   : > { %p10593_p4 = scmp.eq.s32.totalorder %s16218_s28, 1 }
0x1dab   : > { %p12627_p1 = pnand %p12626_p2, %p10593_p4 }
0x1dad   : > { %p12628_p10 = pneg %p12627_p1 }
0x1daf   : > { %p12635_p12 = pnand %p12634_p5, %p12628_p10 }
0x1db1   : > { %12638 = shalt.err (!%p12635_p12)
}
0x1db2   : > { %s16219_s12 = sld [smem:[#allocation114_spill]] }
0x1db8   : > { %s12639_s17 = scalar_lea.hbm %s16219_s12, 32 }
0x1db9   : > { %p12640_p8 = scmp.ne.s32.totalorder %s16219_s12, %s12639_s17  ;;  %p12645_p11 = scmp.lt.u32.totalorder %s12639_s17, %s16219_s12 }
0x1dbb   : > { %p12641_p13 = pnand %p12640_p8, %p10593_p4 }
0x1dbd   : > { %p12642_p3 = pneg %p12641_p13 }
0x1dbf   : > { %p12647_p7 = pnand %p12645_p11, %p12642_p3 }
0x1dc1   : > { %12650 = shalt.err (!%p12647_p7)
}
0x1dc2   : > { %10481 = dma.vmem_to_hbm [thread:$0]  (%p10593_p4), %s8946_s13, 32, %s16219_s12, [#allocation7]  }
0x1dc3   : > { %12712 = dma.done.wait (%p10593_p4), [#allocation7], 32  }
0x1dc4   : > { %12714 = vsyncadd (%p10593_p4), [#allocation7], 4294967264 }
0x1dc5 PF: > { %s16220_s30 = sld [smem:[#allocation54_spill]]  ;;  %s16221_s27 = sld [smem:[#allocation51_spill]] }
0x1dc6   : > { %s16222_s3 = sld [smem:[#allocation52_spill]]  ;;  %s16223_s7 = sld [smem:[#allocation60_spill]] }
0x1dc7   : > { %s16224_s29 = sld [smem:[#allocation58_spill]]  ;;  %s16225_s28 = smov %s12733_s8 }
0x1dcb   : > { %s45_s4 = sadd.s32 1, %s16220_s30  }
0x1dcc   : > { %p42_p0 = scmp.ge.s32.totalorder %s45_s4, 4  }
0x1dcd   : > { %s16226_s8 = smov %s16224_s29 }
0x1dce   :  { %44 = sbr.rel (!%p42_p0) target bundleno = 38 (0x26), region = 351 }
0x1dd5   :  { %8958 = vsyncpa [#allocation6], 1 }
0x1dd6   :  { %8960 = vsyncpa [#allocation6 + $0x1], 1 }
0x1dd7   :  { %8961 = vsyncpa [#allocation9], 1 }
0x1dd8   :  { %8962 = vsyncpa [#allocation12], 1 }
0x1dd9   :  { %8963 = vsyncpa [#allocation15], 1 }
0x1dda   :  { %8964 = vsyncpa [#allocation18], 1 }
0x1ddb   :  { %8965 = vsyncpa [#allocation21], 1 }
0x1ddc   :  { %8966 = vsyncpa [#allocation24], 1 }
0x1ddd   :  { %8967 = vsyncpa [#allocation27], 1 }
0x1dde   :  { %8968 = vsyncpa [#allocation7], 1 }
0x1ddf   :  { %8970 = vsyncpa [#allocation7 + $0x1], 1 }

</bundles_post_ra>
